<compile_context>
chip_gen: v7x
topology: tpu7x:2x2x1
jax: 0.10.0
libtpu: 0.0.40
codegen_flags: <defaults>
</compile_context>

<pallas_src>
import math
from functools import partial

import jax
import jax.numpy as jnp
from jax.experimental import pallas as pl
from jax.experimental.pallas import tpu as pltpu

# ----- static configuration (the `args` of the PyTorch module) -----
N_AGENTS = 8
UNIT_DIM = 16
N_HEAD = 4
EMBED = 32                                  # mixing_embed_dim
STATE_SHAPE = UNIT_DIM * N_AGENTS + 8       # 136 (extra non-unit state features)
ATTEND_REG_COEF = 1e-3
MASK_DEAD = True
# TODO(synk): the two_hyper_layers / nonlinear=False / weight_head=False branches of __init__
# are not exercised by the (only) return path of forward() and are not implemented.

# Fused-weight column layout (single states @ W_all matmul).
REP = N_HEAD * N_AGENTS * UNIT_DIM          # 512: per-head, agent-replicated W_comb projections
OFF_V1 = REP                                # 512: V first layer (32 cols)
OFF_QC = OFF_V1 + EMBED                     # 544: per-head q coefficient (4 cols)
OFF_WH = OFF_QC + N_HEAD                    # 548: hyper_w_head (4 cols)
N_USED = OFF_WH + N_HEAD                    # 552
N_FUSED = ((N_USED + 127) // 128) * 128     # 640: pad to lane-dense multiple of 128
OUT_W = 2 + 2 * N_HEAD                      # [y, v, reg(4), ent(4)]


def qatten_kernel(states_ref, q_ref, act_ref,
                  w_all_ref, b_all_ref, r_ref, w_v2_ref, b_v2_ref,
                  out_ref):
    states = states_ref[...]                      # (TB, S)
    q = q_ref[...]                                # (TB, A)
    acts = act_ref[...]                           # (TB, A)

    # --- one fused lane-dense contraction for every state-consuming layer ---
    proj = jnp.dot(states, w_all_ref[...],
                   preferred_element_type=jnp.float32) + b_all_ref[...]       # (TB, 640)

    # --- attention logits for all heads/agents via one elementwise product + one
    #     MXU segmented reduction (no per-agent loop, no lane relayouts) ---
    unit = states[:, :N_AGENTS * UNIT_DIM]        # (TB, 128) agent-major unit features
    unit_rep = jnp.concatenate([unit] * N_HEAD, axis=1)                       # (TB, 512)
    prod = unit_rep * proj[:, :REP]                                           # (TB, 512)
    logits_u = jnp.dot(prod, r_ref[...],
                       preferred_element_type=jnp.float32)                    # (TB, H*A)

    qc = proj[:, OFF_QC:OFF_QC + N_HEAD]          # (TB, H)  per-head q coefficient
    wh = jnp.abs(proj[:, OFF_WH:OFF_WH + N_HEAD])  # (TB, H)  |hyper_w_head(states)|

    # --- state-bias V network: fused first layer -> ReLU -> VPU dot with w_v2 ---
    h1 = jnp.maximum(proj[:, OFF_V1:OFF_V1 + EMBED], 0.0)                     # (TB, E)
    v = jnp.sum(h1 * w_v2_ref[...], axis=1, keepdims=True) + b_v2_ref[...]    # (TB, 1)

    inv_sqrt_e = 1.0 / math.sqrt(EMBED)
    head_q_cols, reg_cols, ent_cols = [], [], []
    for h in range(N_HEAD):
        # unscaled logits for head h (q-term folded here), shape (TB, A)
        lg = logits_u[:, h * N_AGENTS:(h + 1) * N_AGENTS] + q * qc[:, h:h + 1]
        sc = lg * inv_sqrt_e
        if MASK_DEAD:
            sc = jnp.where(acts == 0.0, -99999999.0, sc)
        m = jnp.max(sc, axis=1, keepdims=True)
        e = jnp.exp(sc - m)
        p = e * pl.reciprocal(jnp.sum(e, axis=1, keepdims=True), approx=True)  # softmax
        head_q_cols.append(jnp.sum(q * p, axis=1, keepdims=True))              # (TB, 1)
        reg_cols.append(jnp.sum(lg * lg, axis=1, keepdims=True))                # (TB, 1)
        ent_cols.append(jnp.sum(-p * jnp.log(p + 1e-8), axis=1, keepdims=True))  # (TB, 1)

    head_qs = jnp.concatenate(head_q_cols, axis=1)        # (TB, H)
    y = jnp.sum(wh * head_qs, axis=1, keepdims=True)      # (TB, 1) weighted-head mix

    # single packed store: [y, v, reg per head, entropy per head] (per row)
    out_ref[...] = jnp.concatenate([y, v] + reg_cols + ent_cols, axis=1)


def pack_params(params):
    """Fold key-extractors into selectors and pack all state-consuming weights."""
    w_sel = params["w_sel"]              # (H, S, E)
    w_key_u = params["w_key_u"]          # (H, U, E)
    w_key_q = params["w_key_q"]          # (H, 1, E)

    # W_comb[h] = W_sel[h] @ W_key_u[h]^T : (H, S, U)
    w_comb = jnp.einsum("hse,hue->hsu", w_sel, w_key_u)
    # replicate per agent so the projection arrives already agent-aligned in lanes:
    # column h*128 + a*16 + u  <-  w_comb[h, :, u]
    w_comb_rep = jnp.broadcast_to(w_comb[:, :, None, :],
                                  (N_HEAD, STATE_SHAPE, N_AGENTS, UNIT_DIM))
    w_comb_rep = jnp.transpose(w_comb_rep, (1, 0, 2, 3)).reshape(STATE_SHAPE, REP)

    # per-head coefficient of q_a in the logit: (S, H)
    w_qc = jnp.einsum("hse,he->sh", w_sel, w_key_q[:, 0, :])

    w_all = jnp.zeros((STATE_SHAPE, N_FUSED), jnp.float32)
    w_all = w_all.at[:, :REP].set(w_comb_rep)
    w_all = w_all.at[:, OFF_V1:OFF_V1 + EMBED].set(params["w_v1"])
    w_all = w_all.at[:, OFF_QC:OFF_QC + N_HEAD].set(w_qc)
    w_all = w_all.at[:, OFF_WH:OFF_WH + N_HEAD].set(params["w_wh"])

    b_all = jnp.zeros((1, N_FUSED), jnp.float32)
    b_all = b_all.at[:, OFF_V1:OFF_V1 + EMBED].set(params["b_v1"])
    b_all = b_all.at[:, OFF_WH:OFF_WH + N_HEAD].set(params["b_wh"])

    # constant segmented-reduction matrix: sums each 16-lane unit group to one logit lane
    rows = jnp.arange(REP)
    col = (rows // (N_AGENTS * UNIT_DIM)) * N_AGENTS + (rows % (N_AGENTS * UNIT_DIM)) // UNIT_DIM
    r_all = jax.nn.one_hot(col, N_HEAD * N_AGENTS, dtype=jnp.float32)   # (512, 32)

    return w_all, b_all, r_all, params["w_v2"].T, params["b_v2"]        # w_v2 as (1, E)


def _pick_block(bs, block_batch):
    if block_batch is not None and bs % block_batch == 0:
        return block_batch
    for tb in (1024, 512, 256, 128):
        if bs % tb == 0:
            return tb
    return bs


def qatten_forward(q_values, states, actions, params, *, block_batch=None):
    bs = states.shape[0]
    w_all, b_all, r_all, w_v2_row, b_v2 = pack_params(params)
    tb = _pick_block(bs, block_batch)
    nb = bs // tb

    out = pl.pallas_call(
        qatten_kernel,
        out_shape=jax.ShapeDtypeStruct((bs, OUT_W), jnp.float32),
        grid=(nb,),
        in_specs=[
            pl.BlockSpec((tb, STATE_SHAPE), lambda i: (i, 0)),        # states (batch-tiled)
            pl.BlockSpec((tb, N_AGENTS), lambda i: (i, 0)),           # q_values
            pl.BlockSpec((tb, N_AGENTS), lambda i: (i, 0)),           # actions
            pl.BlockSpec((STATE_SHAPE, N_FUSED), lambda i: (0, 0)),   # fused weights (resident)
            pl.BlockSpec((1, N_FUSED), lambda i: (0, 0)),             # fused bias row
            pl.BlockSpec((REP, N_HEAD * N_AGENTS), lambda i: (0, 0)),  # segmented-reduce matrix
            pl.BlockSpec((1, EMBED), lambda i: (0, 0)),               # V second-layer weight row
            pl.BlockSpec((1, 1), lambda i: (0, 0)),                   # V second-layer bias
        ],
        out_specs=pl.BlockSpec((tb, OUT_W), lambda i: (i, 0)),
        compiler_params=pltpu.CompilerParams(
            dimension_semantics=("parallel",)),
    )(states, q_values, actions, w_all, b_all, r_all, w_v2_row, b_v2)

    q_tot = out[:, 0:1].reshape(bs, 1, 1)                     # y.view(bs, -1, 1)
    v = out[:, 1:2]                                           # (bs, 1)
    reg_rows = out[:, 2:2 + N_HEAD]                           # per-row sum_a logits^2
    ent_rows = out[:, 2 + N_HEAD:2 + 2 * N_HEAD]              # per-row entropy
    attend_mag_regs = ATTEND_REG_COEF * (jnp.sum(reg_rows) / (bs * N_AGENTS))
    head_entropies = jnp.sum(ent_rows, axis=0) / bs           # (n_head,)
    return q_tot, v, attend_mag_regs, head_entropies


# ---------------- pure-JAX reference (for correctness check) ----------------
def qatten_ref(q_values, states, actions, params):
    bs = states.shape[0]
    unit_states = states[:, :UNIT_DIM * N_AGENTS].reshape(bs, N_AGENTS, UNIT_DIM)
    enc = jnp.concatenate([unit_states, q_values[:, :, None]], axis=2)  # (bs, A, U+1)
    head_qs, regs, ents = [], [], []
    wh = jnp.abs(states @ params["w_wh"] + params["b_wh"])              # (bs, n_head)
    for h in range(N_HEAD):
        sel = states @ params["w_sel"][h]                               # (bs, E)
        wk = jnp.concatenate([params["w_key_u"][h], params["w_key_q"][h]], axis=0)
        keys = jnp.einsum("bau,ue->bae", enc, wk)                       # (bs, A, E)
        logits = jnp.einsum("be,bae->ba", sel, keys)                    # (bs, A)
        scaled = logits / jnp.sqrt(jnp.float32(EMBED))
        if MASK_DEAD:
            scaled = jnp.where(actions == 0.0, -99999999.0, scaled)
        p = jax.nn.softmax(scaled, axis=1)
        head_qs.append(jnp.sum(q_values * p, axis=1, keepdims=True))
        regs.append(jnp.mean(logits ** 2))
        ents.append(jnp.mean(-jnp.sum(jnp.log(p + 1e-8) * p, axis=1)))
    y = sum(wh[:, h:h + 1] * head_qs[h] for h in range(N_HEAD))
    h1 = jnp.maximum(states @ params["w_v1"] + params["b_v1"], 0.0)
    v = h1 @ params["w_v2"] + params["b_v2"]
    return (y.reshape(bs, 1, 1), v,
            ATTEND_REG_COEF * sum(regs), jnp.stack(ents))


def make_params(key):
    ks = jax.random.split(key, 10)

    def uni(k, shape, fan_in):
        b = 1.0 / math.sqrt(fan_in)
        return jax.random.uniform(k, shape, jnp.float32, -b, b)

    w_key_full = uni(ks[1], (N_HEAD, UNIT_DIM + 1, EMBED), UNIT_DIM + 1)
    return {
        # selector_extractors: Linear(state_shape, embed, bias=False), transposed
        "w_sel": uni(ks[0], (N_HEAD, STATE_SHAPE, EMBED), STATE_SHAPE),
        # key_extractors: Linear(unit_dim+1, embed, bias=False), transposed & split
        "w_key_u": w_key_full[:, :UNIT_DIM, :],                 # (H, U, E)
        "w_key_q": w_key_full[:, UNIT_DIM:, :],                 # (H, 1, E)
        # V: Linear(S, E) -> ReLU -> Linear(E, 1)
        "w_v1": uni(ks[2], (STATE_SHAPE, EMBED), STATE_SHAPE),
        "b_v1": uni(ks[3], (1, EMBED), STATE_SHAPE),
        "w_v2": uni(ks[4], (EMBED, 1), EMBED),
        "b_v2": uni(ks[5], (1, 1), EMBED),
        # hyper_w_head: Linear(S, n_head)
        "w_wh": uni(ks[6], (STATE_SHAPE, N_HEAD), STATE_SHAPE),
        "b_wh": uni(ks[7], (1, N_HEAD), STATE_SHAPE),
    }


if __name__ == "__main__":
    BS = 256          # small demo batch; tiled into 2 blocks of 128 to exercise the grid
    root = jax.random.PRNGKey(0)
    k_p, k_s, k_q, k_a = jax.random.split(root, 4)

    params = make_params(k_p)
    states = jax.random.normal(k_s, (BS, STATE_SHAPE), jnp.float32)
    q_values = jax.random.normal(k_q, (BS, N_AGENTS), jnp.float32)
    actions = jax.random.bernoulli(k_a, 0.8, (BS, N_AGENTS)).astype(jnp.float32)

    fwd = jax.jit(partial(qatten_forward, block_batch=128))
    out = jax.block_until_ready(fwd(q_values, states, actions, params))
    q_tot, v, reg, ents = out

    rq, rv, rreg, rents = qatten_ref(q_values, states, actions, params)
    assert q_tot.shape == (BS, 1, 1) and v.shape == (BS, 1)
    assert bool(jnp.allclose(q_tot, rq, rtol=2e-2, atol=2e-2)), "q_tot mismatch"
    assert bool(jnp.allclose(v, rv, rtol=2e-2, atol=2e-2)), "v mismatch"
    assert bool(jnp.allclose(reg, rreg, rtol=2e-2, atol=2e-2)), "attend_mag_regs mismatch"
    assert bool(jnp.allclose(ents, rents, rtol=2e-2, atol=2e-2)), "head_entropies mismatch"

    print("KERNEL_OK")
</pallas_src>

<mosaic_0001>
module attributes {stable_mosaic.version = 11 : i64} {
  func.func @qatten_kernel(%arg0: i32, %arg1: memref<128x136xf32, #tpu.memory_space<vmem>>, %arg2: memref<128x8xf32, #tpu.memory_space<vmem>>, %arg3: memref<128x8xf32, #tpu.memory_space<vmem>>, %arg4: memref<136x640xf32, #tpu.memory_space<vmem>>, %arg5: memref<1x640xf32, #tpu.memory_space<vmem>>, %arg6: memref<512x32xf32, #tpu.memory_space<vmem>>, %arg7: memref<1x32xf32, #tpu.memory_space<vmem>>, %arg8: memref<1x1xf32, #tpu.memory_space<vmem>>, %arg9: memref<128x10xf32, #tpu.memory_space<vmem>>) attributes {dimension_semantics = [#tpu.dimension_semantics<parallel>], iteration_bounds = array<i64: 2>, scalar_prefetch = 0 : i64, scratch_operands = 0 : i64, tpu.core_type = #tpu.core_type<tc>, window_params = [{transform_indices = @transform_0, window_bounds = array<i64: 128, 136>}, {transform_indices = @transform_1, window_bounds = array<i64: 128, 8>}, {transform_indices = @transform_2, window_bounds = array<i64: 128, 8>}, {pipeline_mode = #tpu.pipeline_mode<synchronous>, transform_indices = @transform_3, window_bounds = array<i64: 136, 640>}, {pipeline_mode = #tpu.pipeline_mode<synchronous>, transform_indices = @transform_4, window_bounds = array<i64: 1, 640>}, {pipeline_mode = #tpu.pipeline_mode<synchronous>, transform_indices = @transform_5, window_bounds = array<i64: 512, 32>}, {pipeline_mode = #tpu.pipeline_mode<synchronous>, transform_indices = @transform_6, window_bounds = array<i64: 1, 32>}, {pipeline_mode = #tpu.pipeline_mode<synchronous>, transform_indices = @transform_7, window_bounds = array<i64: 1, 1>}, {transform_indices = @transform_8, window_bounds = array<i64: 128, 10>}]} {
    %c0 = arith.constant 0 : index
    %c0_0 = arith.constant 0 : index
    %0 = vector.load %arg1[%c0, %c0_0] : memref<128x136xf32, #tpu.memory_space<vmem>>, vector<128x136xf32>
    %c0_1 = arith.constant 0 : index
    %c0_2 = arith.constant 0 : index
    %1 = vector.load %arg2[%c0_1, %c0_2] : memref<128x8xf32, #tpu.memory_space<vmem>>, vector<128x8xf32>
    %c0_3 = arith.constant 0 : index
    %c0_4 = arith.constant 0 : index
    %2 = vector.load %arg3[%c0_3, %c0_4] : memref<128x8xf32, #tpu.memory_space<vmem>>, vector<128x8xf32>
    %c0_5 = arith.constant 0 : index
    %c0_6 = arith.constant 0 : index
    %3 = vector.load %arg4[%c0_5, %c0_6] : memref<136x640xf32, #tpu.memory_space<vmem>>, vector<136x640xf32>
    %cst = arith.constant dense<0.000000e+00> : vector<128x640xf32>
    %4 = tpu.matmul %0, %3, %cst {dimension_numbers = #tpu.dot_dimension_numbers<[1], [0], [0], [1], [0, 0, 1, 1], [], []>} : vector<128x136xf32>, vector<136x640xf32>, vector<128x640xf32> -> vector<128x640xf32>
    %c0_7 = arith.constant 0 : index
    %c0_8 = arith.constant 0 : index
    %5 = vector.load %arg5[%c0_7, %c0_8] : memref<1x640xf32, #tpu.memory_space<vmem>>, vector<1x640xf32>
    %6 = vector.broadcast %5 : vector<1x640xf32> to vector<128x640xf32>
    %7 = arith.addf %4, %6 : vector<128x640xf32>
    %8 = vector.extract_strided_slice %0 {offsets = [0, 0], sizes = [128, 128], strides = [1, 1]} : vector<128x136xf32> to vector<128x128xf32>
    %9 = tpu.concatenate %8, %8, %8, %8 in 1 : vector<128x128xf32>, vector<128x128xf32>, vector<128x128xf32>, vector<128x128xf32> -> vector<128x512xf32>
    %10 = vector.extract_strided_slice %7 {offsets = [0, 0], sizes = [128, 512], strides = [1, 1]} : vector<128x640xf32> to vector<128x512xf32>
    %11 = arith.mulf %9, %10 : vector<128x512xf32>
    %c0_9 = arith.constant 0 : index
    %c0_10 = arith.constant 0 : index
    %12 = vector.load %arg6[%c0_9, %c0_10] : memref<512x32xf32, #tpu.memory_space<vmem>>, vector<512x32xf32>
    %cst_11 = arith.constant dense<0.000000e+00> : vector<128x32xf32>
    %13 = tpu.matmul %11, %12, %cst_11 {dimension_numbers = #tpu.dot_dimension_numbers<[1], [0], [0], [1], [0, 0, 1, 1], [], []>} : vector<128x512xf32>, vector<512x32xf32>, vector<128x32xf32> -> vector<128x32xf32>
    %14 = vector.extract_strided_slice %7 {offsets = [0, 544], sizes = [128, 4], strides = [1, 1]} : vector<128x640xf32> to vector<128x4xf32>
    %15 = vector.extract_strided_slice %7 {offsets = [0, 548], sizes = [128, 4], strides = [1, 1]} : vector<128x640xf32> to vector<128x4xf32>
    %16 = math.absf %15 : vector<128x4xf32>
    %17 = vector.extract_strided_slice %7 {offsets = [0, 512], sizes = [128, 32], strides = [1, 1]} : vector<128x640xf32> to vector<128x32xf32>
    %cst_12 = arith.constant 0.000000e+00 : f32
    %18 = vector.broadcast %cst_12 : f32 to vector<128x32xf32>
    %19 = arith.maximumf %17, %18 : vector<128x32xf32>
    %c0_13 = arith.constant 0 : index
    %c0_14 = arith.constant 0 : index
    %20 = vector.load %arg7[%c0_13, %c0_14] : memref<1x32xf32, #tpu.memory_space<vmem>>, vector<1x32xf32>
    %21 = vector.broadcast %20 : vector<1x32xf32> to vector<128x32xf32>
    %22 = arith.mulf %19, %21 : vector<128x32xf32>
    %cst_15 = arith.constant dense<0.000000e+00> : vector<128xf32>
    %23 = vector.multi_reduction <add>, %22, %cst_15 [1] : vector<128x32xf32> to vector<128xf32>
    %24 = vector.shape_cast %23 : vector<128xf32> to vector<128x1xf32>
    %c0_16 = arith.constant 0 : index
    %c0_17 = arith.constant 0 : index
    %25 = vector.load %arg8[%c0_16, %c0_17] : memref<1x1xf32, #tpu.memory_space<vmem>>, vector<1x1xf32>
    %26 = vector.broadcast %25 : vector<1x1xf32> to vector<128x1xf32>
    %27 = arith.addf %24, %26 : vector<128x1xf32>
    %28 = vector.extract_strided_slice %13 {offsets = [0, 0], sizes = [128, 8], strides = [1, 1]} : vector<128x32xf32> to vector<128x8xf32>
    %29 = vector.extract_strided_slice %14 {offsets = [0, 0], sizes = [128, 1], strides = [1, 1]} : vector<128x4xf32> to vector<128x1xf32>
    %30 = vector.broadcast %29 : vector<128x1xf32> to vector<128x8xf32>
    %31 = arith.mulf %1, %30 : vector<128x8xf32>
    %32 = arith.addf %28, %31 : vector<128x8xf32>
    %cst_18 = arith.constant 0.176776692 : f32
    %33 = vector.broadcast %cst_18 : f32 to vector<128x8xf32>
    %34 = arith.mulf %32, %33 : vector<128x8xf32>
    %cst_19 = arith.constant 0.000000e+00 : f32
    %35 = vector.broadcast %cst_19 : f32 to vector<128x8xf32>
    %36 = arith.cmpf oeq, %2, %35 : vector<128x8xf32>
    %cst_20 = arith.constant -1.000000e+08 : f32
    %37 = vector.broadcast %cst_20 : f32 to vector<128x8xf32>
    %38 = arith.select %36, %37, %34 : vector<128x8xi1>, vector<128x8xf32>
    %cst_21 = arith.constant dense<0xFF800000> : vector<128xf32>
    %39 = vector.multi_reduction <maximumf>, %38, %cst_21 [1] : vector<128x8xf32> to vector<128xf32>
    %40 = vector.shape_cast %39 : vector<128xf32> to vector<128x1xf32>
    %41 = vector.broadcast %40 : vector<128x1xf32> to vector<128x8xf32>
    %42 = arith.subf %38, %41 : vector<128x8xf32>
    %43 = math.exp %42 : vector<128x8xf32>
    %cst_22 = arith.constant dense<0.000000e+00> : vector<128xf32>
    %44 = vector.multi_reduction <add>, %43, %cst_22 [1] : vector<128x8xf32> to vector<128xf32>
    %45 = vector.shape_cast %44 : vector<128xf32> to vector<128x1xf32>
    %46 = tpu.reciprocal %45 {approx = true} : vector<128x1xf32> -> vector<128x1xf32>
    %47 = vector.broadcast %46 : vector<128x1xf32> to vector<128x8xf32>
    %48 = arith.mulf %43, %47 : vector<128x8xf32>
    %49 = arith.mulf %1, %48 : vector<128x8xf32>
    %cst_23 = arith.constant dense<0.000000e+00> : vector<128xf32>
    %50 = vector.multi_reduction <add>, %49, %cst_23 [1] : vector<128x8xf32> to vector<128xf32>
    %51 = vector.shape_cast %50 : vector<128xf32> to vector<128x1xf32>
    %52 = arith.mulf %32, %32 : vector<128x8xf32>
    %cst_24 = arith.constant dense<0.000000e+00> : vector<128xf32>
    %53 = vector.multi_reduction <add>, %52, %cst_24 [1] : vector<128x8xf32> to vector<128xf32>
    %54 = vector.shape_cast %53 : vector<128xf32> to vector<128x1xf32>
    %cst_25 = arith.constant 0.000000e+00 : f32
    %55 = vector.broadcast %cst_25 : f32 to vector<128x8xf32>
    %56 = arith.subf %55, %48 : vector<128x8xf32>
    %cst_26 = arith.constant 9.99999993E-9 : f32
    %57 = vector.broadcast %cst_26 : f32 to vector<128x8xf32>
    %58 = arith.addf %48, %57 : vector<128x8xf32>
    %59 = math.log %58 : vector<128x8xf32>
    %60 = arith.mulf %56, %59 : vector<128x8xf32>
    %cst_27 = arith.constant dense<0.000000e+00> : vector<128xf32>
    %61 = vector.multi_reduction <add>, %60, %cst_27 [1] : vector<128x8xf32> to vector<128xf32>
    %62 = vector.shape_cast %61 : vector<128xf32> to vector<128x1xf32>
    %63 = vector.extract_strided_slice %13 {offsets = [0, 8], sizes = [128, 8], strides = [1, 1]} : vector<128x32xf32> to vector<128x8xf32>
    %64 = vector.extract_strided_slice %14 {offsets = [0, 1], sizes = [128, 1], strides = [1, 1]} : vector<128x4xf32> to vector<128x1xf32>
    %65 = vector.broadcast %64 : vector<128x1xf32> to vector<128x8xf32>
    %66 = arith.mulf %1, %65 : vector<128x8xf32>
    %67 = arith.addf %63, %66 : vector<128x8xf32>
    %cst_28 = arith.constant 0.176776692 : f32
    %68 = vector.broadcast %cst_28 : f32 to vector<128x8xf32>
    %69 = arith.mulf %67, %68 : vector<128x8xf32>
    %cst_29 = arith.constant 0.000000e+00 : f32
    %70 = vector.broadcast %cst_29 : f32 to vector<128x8xf32>
    %71 = arith.cmpf oeq, %2, %70 : vector<128x8xf32>
    %cst_30 = arith.constant -1.000000e+08 : f32
    %72 = vector.broadcast %cst_30 : f32 to vector<128x8xf32>
    %73 = arith.select %71, %72, %69 : vector<128x8xi1>, vector<128x8xf32>
    %cst_31 = arith.constant dense<0xFF800000> : vector<128xf32>
    %74 = vector.multi_reduction <maximumf>, %73, %cst_31 [1] : vector<128x8xf32> to vector<128xf32>
    %75 = vector.shape_cast %74 : vector<128xf32> to vector<128x1xf32>
    %76 = vector.broadcast %75 : vector<128x1xf32> to vector<128x8xf32>
    %77 = arith.subf %73, %76 : vector<128x8xf32>
    %78 = math.exp %77 : vector<128x8xf32>
    %cst_32 = arith.constant dense<0.000000e+00> : vector<128xf32>
    %79 = vector.multi_reduction <add>, %78, %cst_32 [1] : vector<128x8xf32> to vector<128xf32>
    %80 = vector.shape_cast %79 : vector<128xf32> to vector<128x1xf32>
    %81 = tpu.reciprocal %80 {approx = true} : vector<128x1xf32> -> vector<128x1xf32>
    %82 = vector.broadcast %81 : vector<128x1xf32> to vector<128x8xf32>
    %83 = arith.mulf %78, %82 : vector<128x8xf32>
    %84 = arith.mulf %1, %83 : vector<128x8xf32>
    %cst_33 = arith.constant dense<0.000000e+00> : vector<128xf32>
    %85 = vector.multi_reduction <add>, %84, %cst_33 [1] : vector<128x8xf32> to vector<128xf32>
    %86 = vector.shape_cast %85 : vector<128xf32> to vector<128x1xf32>
    %87 = arith.mulf %67, %67 : vector<128x8xf32>
    %cst_34 = arith.constant dense<0.000000e+00> : vector<128xf32>
    %88 = vector.multi_reduction <add>, %87, %cst_34 [1] : vector<128x8xf32> to vector<128xf32>
    %89 = vector.shape_cast %88 : vector<128xf32> to vector<128x1xf32>
    %cst_35 = arith.constant 0.000000e+00 : f32
    %90 = vector.broadcast %cst_35 : f32 to vector<128x8xf32>
    %91 = arith.subf %90, %83 : vector<128x8xf32>
    %cst_36 = arith.constant 9.99999993E-9 : f32
    %92 = vector.broadcast %cst_36 : f32 to vector<128x8xf32>
    %93 = arith.addf %83, %92 : vector<128x8xf32>
    %94 = math.log %93 : vector<128x8xf32>
    %95 = arith.mulf %91, %94 : vector<128x8xf32>
    %cst_37 = arith.constant dense<0.000000e+00> : vector<128xf32>
    %96 = vector.multi_reduction <add>, %95, %cst_37 [1] : vector<128x8xf32> to vector<128xf32>
    %97 = vector.shape_cast %96 : vector<128xf32> to vector<128x1xf32>
    %98 = vector.extract_strided_slice %13 {offsets = [0, 16], sizes = [128, 8], strides = [1, 1]} : vector<128x32xf32> to vector<128x8xf32>
    %99 = vector.extract_strided_slice %14 {offsets = [0, 2], sizes = [128, 1], strides = [1, 1]} : vector<128x4xf32> to vector<128x1xf32>
    %100 = vector.broadcast %99 : vector<128x1xf32> to vector<128x8xf32>
    %101 = arith.mulf %1, %100 : vector<128x8xf32>
    %102 = arith.addf %98, %101 : vector<128x8xf32>
    %cst_38 = arith.constant 0.176776692 : f32
    %103 = vector.broadcast %cst_38 : f32 to vector<128x8xf32>
    %104 = arith.mulf %102, %103 : vector<128x8xf32>
    %cst_39 = arith.constant 0.000000e+00 : f32
    %105 = vector.broadcast %cst_39 : f32 to vector<128x8xf32>
    %106 = arith.cmpf oeq, %2, %105 : vector<128x8xf32>
    %cst_40 = arith.constant -1.000000e+08 : f32
    %107 = vector.broadcast %cst_40 : f32 to vector<128x8xf32>
    %108 = arith.select %106, %107, %104 : vector<128x8xi1>, vector<128x8xf32>
    %cst_41 = arith.constant dense<0xFF800000> : vector<128xf32>
    %109 = vector.multi_reduction <maximumf>, %108, %cst_41 [1] : vector<128x8xf32> to vector<128xf32>
    %110 = vector.shape_cast %109 : vector<128xf32> to vector<128x1xf32>
    %111 = vector.broadcast %110 : vector<128x1xf32> to vector<128x8xf32>
    %112 = arith.subf %108, %111 : vector<128x8xf32>
    %113 = math.exp %112 : vector<128x8xf32>
    %cst_42 = arith.constant dense<0.000000e+00> : vector<128xf32>
    %114 = vector.multi_reduction <add>, %113, %cst_42 [1] : vector<128x8xf32> to vector<128xf32>
    %115 = vector.shape_cast %114 : vector<128xf32> to vector<128x1xf32>
    %116 = tpu.reciprocal %115 {approx = true} : vector<128x1xf32> -> vector<128x1xf32>
    %117 = vector.broadcast %116 : vector<128x1xf32> to vector<128x8xf32>
    %118 = arith.mulf %113, %117 : vector<128x8xf32>
    %119 = arith.mulf %1, %118 : vector<128x8xf32>
    %cst_43 = arith.constant dense<0.000000e+00> : vector<128xf32>
    %120 = vector.multi_reduction <add>, %119, %cst_43 [1] : vector<128x8xf32> to vector<128xf32>
    %121 = vector.shape_cast %120 : vector<128xf32> to vector<128x1xf32>
    %122 = arith.mulf %102, %102 : vector<128x8xf32>
    %cst_44 = arith.constant dense<0.000000e+00> : vector<128xf32>
    %123 = vector.multi_reduction <add>, %122, %cst_44 [1] : vector<128x8xf32> to vector<128xf32>
    %124 = vector.shape_cast %123 : vector<128xf32> to vector<128x1xf32>
    %cst_45 = arith.constant 0.000000e+00 : f32
    %125 = vector.broadcast %cst_45 : f32 to vector<128x8xf32>
    %126 = arith.subf %125, %118 : vector<128x8xf32>
    %cst_46 = arith.constant 9.99999993E-9 : f32
    %127 = vector.broadcast %cst_46 : f32 to vector<128x8xf32>
    %128 = arith.addf %118, %127 : vector<128x8xf32>
    %129 = math.log %128 : vector<128x8xf32>
    %130 = arith.mulf %126, %129 : vector<128x8xf32>
    %cst_47 = arith.constant dense<0.000000e+00> : vector<128xf32>
    %131 = vector.multi_reduction <add>, %130, %cst_47 [1] : vector<128x8xf32> to vector<128xf32>
    %132 = vector.shape_cast %131 : vector<128xf32> to vector<128x1xf32>
    %133 = vector.extract_strided_slice %13 {offsets = [0, 24], sizes = [128, 8], strides = [1, 1]} : vector<128x32xf32> to vector<128x8xf32>
    %134 = vector.extract_strided_slice %14 {offsets = [0, 3], sizes = [128, 1], strides = [1, 1]} : vector<128x4xf32> to vector<128x1xf32>
    %135 = vector.broadcast %134 : vector<128x1xf32> to vector<128x8xf32>
    %136 = arith.mulf %1, %135 : vector<128x8xf32>
    %137 = arith.addf %133, %136 : vector<128x8xf32>
    %cst_48 = arith.constant 0.176776692 : f32
    %138 = vector.broadcast %cst_48 : f32 to vector<128x8xf32>
    %139 = arith.mulf %137, %138 : vector<128x8xf32>
    %cst_49 = arith.constant 0.000000e+00 : f32
    %140 = vector.broadcast %cst_49 : f32 to vector<128x8xf32>
    %141 = arith.cmpf oeq, %2, %140 : vector<128x8xf32>
    %cst_50 = arith.constant -1.000000e+08 : f32
    %142 = vector.broadcast %cst_50 : f32 to vector<128x8xf32>
    %143 = arith.select %141, %142, %139 : vector<128x8xi1>, vector<128x8xf32>
    %cst_51 = arith.constant dense<0xFF800000> : vector<128xf32>
    %144 = vector.multi_reduction <maximumf>, %143, %cst_51 [1] : vector<128x8xf32> to vector<128xf32>
    %145 = vector.shape_cast %144 : vector<128xf32> to vector<128x1xf32>
    %146 = vector.broadcast %145 : vector<128x1xf32> to vector<128x8xf32>
    %147 = arith.subf %143, %146 : vector<128x8xf32>
    %148 = math.exp %147 : vector<128x8xf32>
    %cst_52 = arith.constant dense<0.000000e+00> : vector<128xf32>
    %149 = vector.multi_reduction <add>, %148, %cst_52 [1] : vector<128x8xf32> to vector<128xf32>
    %150 = vector.shape_cast %149 : vector<128xf32> to vector<128x1xf32>
    %151 = tpu.reciprocal %150 {approx = true} : vector<128x1xf32> -> vector<128x1xf32>
    %152 = vector.broadcast %151 : vector<128x1xf32> to vector<128x8xf32>
    %153 = arith.mulf %148, %152 : vector<128x8xf32>
    %154 = arith.mulf %1, %153 : vector<128x8xf32>
    %cst_53 = arith.constant dense<0.000000e+00> : vector<128xf32>
    %155 = vector.multi_reduction <add>, %154, %cst_53 [1] : vector<128x8xf32> to vector<128xf32>
    %156 = vector.shape_cast %155 : vector<128xf32> to vector<128x1xf32>
    %157 = arith.mulf %137, %137 : vector<128x8xf32>
    %cst_54 = arith.constant dense<0.000000e+00> : vector<128xf32>
    %158 = vector.multi_reduction <add>, %157, %cst_54 [1] : vector<128x8xf32> to vector<128xf32>
    %159 = vector.shape_cast %158 : vector<128xf32> to vector<128x1xf32>
    %cst_55 = arith.constant 0.000000e+00 : f32
    %160 = vector.broadcast %cst_55 : f32 to vector<128x8xf32>
    %161 = arith.subf %160, %153 : vector<128x8xf32>
    %cst_56 = arith.constant 9.99999993E-9 : f32
    %162 = vector.broadcast %cst_56 : f32 to vector<128x8xf32>
    %163 = arith.addf %153, %162 : vector<128x8xf32>
    %164 = math.log %163 : vector<128x8xf32>
    %165 = arith.mulf %161, %164 : vector<128x8xf32>
    %cst_57 = arith.constant dense<0.000000e+00> : vector<128xf32>
    %166 = vector.multi_reduction <add>, %165, %cst_57 [1] : vector<128x8xf32> to vector<128xf32>
    %167 = vector.shape_cast %166 : vector<128xf32> to vector<128x1xf32>
    %168 = tpu.concatenate %51, %86, %121, %156 in 1 : vector<128x1xf32>, vector<128x1xf32>, vector<128x1xf32>, vector<128x1xf32> -> vector<128x4xf32>
    %169 = arith.mulf %16, %168 : vector<128x4xf32>
    %cst_58 = arith.constant dense<0.000000e+00> : vector<128xf32>
    %170 = vector.multi_reduction <add>, %169, %cst_58 [1] : vector<128x4xf32> to vector<128xf32>
    %171 = vector.shape_cast %170 : vector<128xf32> to vector<128x1xf32>
    %172 = tpu.concatenate %171, %27, %54, %89, %124, %159, %62, %97, %132, %167 in 1 : vector<128x1xf32>, vector<128x1xf32>, vector<128x1xf32>, vector<128x1xf32>, vector<128x1xf32>, vector<128x1xf32>, vector<128x1xf32>, vector<128x1xf32>, vector<128x1xf32>, vector<128x1xf32> -> vector<128x10xf32>
    %c0_59 = arith.constant 0 : index
    %c0_60 = arith.constant 0 : index
    %173 = vector.load %arg9[%c0_59, %c0_60] : memref<128x10xf32, #tpu.memory_space<vmem>>, vector<128x10xf32>
    tpu.vector_store %arg9[%c0_59, %c0_60], %172 {strides = array<i32>} : memref<128x10xf32, #tpu.memory_space<vmem>>, vector<128x10xf32>,
    return
  }
  func.func @transform_0(%arg0: i32) -> (i32, i32) {
    %c0_i32 = arith.constant 0 : i32
    %c0_i32_0 = arith.constant 0 : i32
    return %arg0, %c0_i32 : i32, i32
  }
  func.func @transform_1(%arg0: i32) -> (i32, i32) {
    %c0_i32 = arith.constant 0 : i32
    %c0_i32_0 = arith.constant 0 : i32
    return %arg0, %c0_i32 : i32, i32
  }
  func.func @transform_2(%arg0: i32) -> (i32, i32) {
    %c0_i32 = arith.constant 0 : i32
    %c0_i32_0 = arith.constant 0 : i32
    return %arg0, %c0_i32 : i32, i32
  }
  func.func @transform_3(%arg0: i32) -> (i32, i32) {
    %c0_i32 = arith.constant 0 : i32
    %c0_i32_0 = arith.constant 0 : i32
    %c0_i32_1 = arith.constant 0 : i32
    return %c0_i32, %c0_i32_0 : i32, i32
  }
  func.func @transform_4(%arg0: i32) -> (i32, i32) {
    %c0_i32 = arith.constant 0 : i32
    %c0_i32_0 = arith.constant 0 : i32
    %c0_i32_1 = arith.constant 0 : i32
    return %c0_i32, %c0_i32_0 : i32, i32
  }
  func.func @transform_5(%arg0: i32) -> (i32, i32) {
    %c0_i32 = arith.constant 0 : i32
    %c0_i32_0 = arith.constant 0 : i32
    %c0_i32_1 = arith.constant 0 : i32
    return %c0_i32, %c0_i32_0 : i32, i32
  }
  func.func @transform_6(%arg0: i32) -> (i32, i32) {
    %c0_i32 = arith.constant 0 : i32
    %c0_i32_0 = arith.constant 0 : i32
    %c0_i32_1 = arith.constant 0 : i32
    return %c0_i32, %c0_i32_0 : i32, i32
  }
  func.func @transform_7(%arg0: i32) -> (i32, i32) {
    %c0_i32 = arith.constant 0 : i32
    %c0_i32_0 = arith.constant 0 : i32
    %c0_i32_1 = arith.constant 0 : i32
    return %c0_i32, %c0_i32_0 : i32, i32
  }
  func.func @transform_8(%arg0: i32) -> (i32, i32) {
    %c0_i32 = arith.constant 0 : i32
    %c0_i32_0 = arith.constant 0 : i32
    return %arg0, %c0_i32 : i32, i32
  }
}

</mosaic_0001>

<bundles_post_ra>
// kernel: qatten_forward.1
= control target key start
LH: loop header
LB: loop body
LE: loop exit
PB: predicated region body
PF: predicated region fallthrough
CT: control target
= control target key end

     0   :  { %s5956_s29 = smov 0   ;;  %s10409_s0 = inlined_call_operand.vmem [shape: f32[256,136], index: 0, kind: input, shape index: {}]   ;;  %s10410_s1 = inlined_call_operand.vmem [shape: f32[256,8], index: 1, kind: input, shape index: {}]   ;;  %s10411_s2 = inlined_call_operand.vmem [shape: f32[256,8], index: 2, kind: input, shape index: {}]   ;;  %s10412_s3 = inlined_call_operand.vmem [shape: f32[136,640], index: 3, kind: input, shape index: {}]   ;;  %s10413_s4 = inlined_call_operand.vmem [shape: f32[1,640], index: 4, kind: input, shape index: {}]   ;;  %s10414_s5 = inlined_call_operand.vmem [shape: f32[512,32], index: 5, kind: input, shape index: {}]   ;;  %s10415_s6 = inlined_call_operand.vmem [shape: f32[1,32], index: 6, kind: input, shape index: {}]   ;;  %s10416_s7 = inlined_call_operand.<no memory space> [shape: f32[1,1], index: 7, kind: input, shape index: {}]   ;;  %s10417_s8 = inlined_call_operand.vmem [shape: f32[256,10], index: 8, kind: output, shape index: {}]  }
   0x1   :  { %v13_v0 = vstv %s10416_s7 }
   0x2   :  { %14 = vst [vmem:[#allocation2] sm:$0x1] %v13_v0 }
   0x3 LB: > { %s4996_s30 = sadd.s32 4294967295, %s5891_s29   ;;  %p5000_p0 = scmp.ge.s32.totalorder %s5891_s29, 1  ;;  %s5891_s29 = sphi %s5956_s29, %s20_s29  }
   0x4   : > { %p288_p1 = scmp.lt.s32.totalorder %s5891_s29, 3 }
   0x6   : > { %p289_p2 = pnand %p5000_p0, %p288_p1 }
   0x8   : > { %292 = sbr.rel (%p289_p2) target bundleno = 2966 (0xb96), region = 52 }
   0xf   : > { %v423_v1 = vld [vmem:[%s10412_s3 + $0x8] sm:$0xff]  ;;  %v428_v2 = vld [vmem:[%s10412_s3 + $0x30] sm:$0xff]  ;;  %v425_v3 = vld [vmem:[%s10412_s3 + $0x18] sm:$0xff]  ;;  %s6020_s23 = sshll.u32 %s4996_s30, 4  ;;  %vm534_vm0 = vcmask 64512   ;;  %vm1523_vm1 = vcmask 261120  }
  0x10   : > { %v5223_v4 = vpack.c.bf16 %v428_v2, %v423_v1  ;;  %v430_v5 = vld [vmem:[%s10412_s3 + $0x40] sm:$0xff]  ;;  %v427_v7 = vld [vmem:[%s10412_s3 + $0x28] sm:$0xff]  ;;  %v424_v10 = vld [vmem:[%s10412_s3 + $0x10] sm:$0xff]  ;;  %p334_p3 = scmp.lt.s32.totalorder %s6020_s23, 31  ;;  %s5899_s28 = smov 8  }
  0x11   : > { %v422_v6 = vld [vmem:[%s10412_s3] sm:$0xff]  ;;  %v5255_v8 = vpack.c.bf16 %v430_v5, %v425_v3  ;;  %v429_v11 = vld [vmem:[%s10412_s3 + $0x38] sm:$0xff]  ;;  %v435_v15 = vld [vmem:[%s10412_s3 + $0x68] sm:$0xff]  ;;  %s5900_s11 = smov 112   ;;  %s5903_s13 = smov 24  }
  0x12   : > { %v5225_v9 = vpack.c.bf16 %v427_v7, %v422_v6  ;;  %v433_v12 = vld [vmem:[%s10412_s3 + $0x58] sm:$0xff]  ;;  %5224 = vmatprep.subr.bf16.mxu0 %v5223_v4  ;;  %v5257_v13 = vpack.c.bf16 %v429_v11, %v424_v10  ;;  %v438_v14 = vld [vmem:[%s10412_s3 + $0x80] sm:$0xff]  ;;  %v440_v16 = vld [vmem:[%s10412_s3 + $0x90] sm:$0xff]  ;;  %s11104_s23 = smov (!%p334_p3, %s6020_s23), 31  ;;  %s5904_s14 = smov 104  }
  0x13   : > { %5256 = vmatprep.subr.bf16.mxu1 %v5255_v8  ;;  %v5227_v17 = vpack.c.bf16 %v438_v14, %v433_v12  ;;  %v5259_v18 = vpack.c.bf16 %v440_v16, %v435_v15  ;;  %v432_v19 = vld [vmem:[%s10412_s3 + $0x50] sm:$0xff]  ;;  %v437_v20 = vld [vmem:[%s10412_s3 + $0x78] sm:$0xff]  ;;  %v434_v21 = vld [vmem:[%s10412_s3 + $0x60] sm:$0xff]  ;;  %s5062_s12 = sshll.u32 %s11104_s23, 4  ;;  %s7070_s24 = sshll.u32 %s11104_s23, 3 }
  0x14   : > { %5226 = vmatpush1.bf16.msra.mxu0 %v5225_v9  ;;  %5258 = vmatpush1.bf16.msra.mxu1 %v5257_v13  ;;  %v5229_v22 = vpack.c.bf16 %v437_v20, %v432_v19  ;;  %v439_v23 = vld [vmem:[%s10412_s3 + $0x88] sm:$0xff]  ;;  %v448_v25 = vld [vmem:[%s10412_s3 + $0xd0] sm:$0xff]  ;;  %v445_v28 = vld [vmem:[%s10412_s3 + $0xb8] sm:$0xff]  ;;  %s6134_s7 = scalar_lea.vmem %s10409_s0, %s5062_s12  ;;  %s7078_s27 = scalar_lea.vmem %s10410_s1, %s7070_s24 }
  0x15   : > { %v443_v24 = vld [vmem:[%s10412_s3 + $0xa8] sm:$0xff]  ;;  %5228 = vmatprep.subr.bf16.mxu0 %v5227_v17  ;;  %5260 = vmatprep.subr.bf16.mxu1 %v5259_v18  ;;  %v5261_v26 = vpack.c.bf16 %v439_v23, %v434_v21  ;;  %v450_v29 = vld [vmem:[%s10412_s3 + $0xe0] sm:$0xff]  ;;  %v444_v33 = vld [vmem:[%s10412_s3 + $0xb0] sm:$0xff]  ;;  %s5898_s23 = smov 16   ;;  %s7276_s10 = scalar_lea.vmem %s10411_s2, %s7070_s24 }
  0x16   : > { %v5231_v27 = vpack.c.bf16 %v448_v25, %v443_v24  ;;  %v442_v30 = vld [vmem:[%s10412_s3 + $0xa0] sm:$0xff]  ;;  %v5263_v31 = vpack.c.bf16 %v450_v29, %v445_v28  ;;  %v447_v32 = vld [vmem:[%s10412_s3 + $0xc8] sm:$0xff]  ;;  %v449_v34 = vld [vmem:[%s10412_s3 + $0xd8] sm:$0xff]  ;;  %s5905_s15 = smov 36   ;;  %s5906_s16 = smov 92  }
  0x17   : > { %v5233_v35 = vpack.c.bf16 %v447_v32, %v442_v30  ;;  %v453_v36 = vld [vmem:[%s10412_s3 + $0xf8] sm:$0xff]  ;;  %v458_v37 = vld [vmem:[%s10412_s3 + $0x120] sm:$0xff]  ;;  %v455_v38 = vld [vmem:[%s10412_s3 + $0x108] sm:$0xff]  ;;  %v5265_v39 = vpack.c.bf16 %v449_v34, %v444_v33  ;;  %s5907_s17 = smov 1   ;;  %s10106_s19 = scalar_lea.vmem %s10417_s8, %s7070_s24 }
  0x18   : > { %5230 = vmatpush1.bf16.msra.mxu0 %v5229_v22  ;;  %5262 = vmatpush1.bf16.msra.mxu1 %v5261_v26  ;;  %v5235_v40 = vpack.c.bf16 %v458_v37, %v453_v36  ;;  %v460_v41 = vld [vmem:[%s10412_s3 + $0x130] sm:$0xff]  ;;  %v457_v43 = vld [vmem:[%s10412_s3 + $0x118] sm:$0xff]  ;;  %v454_v45 = vld [vmem:[%s10412_s3 + $0x100] sm:$0xff] }
  0x19   : > { %5232 = vmatprep.subr.bf16.mxu0 %v5231_v27  ;;  %v452_v42 = vld [vmem:[%s10412_s3 + $0xf0] sm:$0xff]  ;;  %5264 = vmatprep.subr.bf16.mxu1 %v5263_v31  ;;  %v5267_v44 = vpack.c.bf16 %v460_v41, %v455_v38  ;;  %v459_v46 = vld [vmem:[%s10412_s3 + $0x128] sm:$0xff]  ;;  %v465_v49 = vld [vmem:[%s10412_s3 + $0x158] sm:$0xff] }
  0x1a   : > { %v463_v47 = vld [vmem:[%s10412_s3 + $0x148] sm:$0xff]  ;;  %v468_v48 = vld [vmem:[%s10412_s3 + $0x170] sm:$0xff]  ;;  %v470_v50 = vld [vmem:[%s10412_s3 + $0x180] sm:$0xff]  ;;  %v5237_v51 = vpack.c.bf16 %v457_v43, %v452_v42  ;;  %v5269_v52 = vpack.c.bf16 %v459_v46, %v454_v45  ;;  %v5893_v45 = vmov 0.0|0.0  }
  0x1b   : > { %v5239_v53 = vpack.c.bf16 %v468_v48, %v463_v47  ;;  %v462_v54 = vld [vmem:[%s10412_s3 + $0x140] sm:$0xff]  ;;  %v467_v55 = vld [vmem:[%s10412_s3 + $0x168] sm:$0xff]  ;;  %v464_v56 = vld [vmem:[%s10412_s3 + $0x150] sm:$0xff]  ;;  %v5271_v57 = vpack.c.bf16 %v470_v50, %v465_v49 }
  0x1c   : > { %5234 = vmatpush1.bf16.msra.mxu0 %v5233_v35  ;;  %5266 = vmatpush1.bf16.msra.mxu1 %v5265_v39  ;;  %v469_v58 = vld [vmem:[%s10412_s3 + $0x178] sm:$0xff]  ;;  %v478_v60 = vld [vmem:[%s10412_s3 + $0x1c0] sm:$0xff]  ;;  %v475_v61 = vld [vmem:[%s10412_s3 + $0x1a8] sm:$0xff]  ;;  %v5241_v63 = vpack.c.bf16 %v467_v55, %v462_v54 }
  0x1d   : > { %5236 = vmatprep.subr.bf16.mxu0 %v5235_v40  ;;  %5268 = vmatprep.subr.bf16.mxu1 %v5267_v44  ;;  %v473_v59 = vld [vmem:[%s10412_s3 + $0x198] sm:$0xff]  ;;  %v480_v62 = vld [vmem:[%s10412_s3 + $0x1d0] sm:$0xff]  ;;  %v5273_v0 = vpack.c.bf16 %v469_v58, %v464_v56  ;;  %v474_v4 = vld [vmem:[%s10412_s3 + $0x1a0] sm:$0xff] }
  0x1e   : > { %v5243_v1 = vpack.c.bf16 %v478_v60, %v473_v59  ;;  %v472_v2 = vld [vmem:[%s10412_s3 + $0x190] sm:$0xff]  ;;  %v477_v3 = vld [vmem:[%s10412_s3 + $0x1b8] sm:$0xff]  ;;  %v5275_v5 = vpack.c.bf16 %v480_v62, %v475_v61  ;;  %v479_v6 = vld [vmem:[%s10412_s3 + $0x1c8] sm:$0xff] }
  0x1f   : > { %v483_v7 = vld [vmem:[%s10412_s3 + $0x1e8] sm:$0xff]  ;;  %v488_v8 = vld [vmem:[%s10412_s3 + $0x210] sm:$0xff]  ;;  %v485_v9 = vld [vmem:[%s10412_s3 + $0x1f8] sm:$0xff]  ;;  %v5245_v11 = vpack.c.bf16 %v477_v3, %v472_v2  ;;  %v5277_v13 = vpack.c.bf16 %v479_v6, %v474_v4 }
  0x20   : > { %5238 = vmatpush1.bf16.msra.mxu0 %v5237_v51  ;;  %5270 = vmatpush1.bf16.msra.mxu1 %v5269_v52  ;;  %v490_v10 = vld [vmem:[%s10412_s3 + $0x220] sm:$0xff]  ;;  %v5247_v14 = vpack.c.bf16 %v488_v8, %v483_v7  ;;  %v487_v15 = vld [vmem:[%s10412_s3 + $0x208] sm:$0xff]  ;;  %v484_v16 = vld [vmem:[%s10412_s3 + $0x1f0] sm:$0xff] }
  0x21   : > { %5240 = vmatprep.subr.bf16.mxu0 %v5239_v53  ;;  %5272 = vmatprep.subr.bf16.mxu1 %v5271_v57  ;;  %v482_v12 = vld [vmem:[%s10412_s3 + $0x1e0] sm:$0xff]  ;;  %v489_v17 = vld [vmem:[%s10412_s3 + $0x218] sm:$0xff]  ;;  %v5279_v18 = vpack.c.bf16 %v490_v10, %v485_v9  ;;  %v6155_v21 = vld [vmem:[%s6134_s7 + $0x8] sm:$0xff] }
  0x22   : > { %v493_v19 = vld [vmem:[%s10412_s3 + $0x238] sm:$0xff]  ;;  %v498_v20 = vld [vmem:[%s10412_s3 + $0x260] sm:$0xff]  ;;  %v495_v22 = vld [vmem:[%s10412_s3 + $0x248] sm:$0xff]  ;;  %5010 = vmatprep.mubr.msk.f32.mxu0 %vm534_vm0, %v6155_v21  ;;  %5026 = vmatprep.mubr.msk.f32.mxu1 %vm534_vm0, %v6155_v21  ;;  %v5249_v24 = vpack.c.bf16 %v487_v15, %v482_v12  ;;  %v5281_v25 = vpack.c.bf16 %v489_v17, %v484_v16 }
  0x23   : > { %v500_v23 = vld [vmem:[%s10412_s3 + $0x270] sm:$0xff]  ;;  %v5251_v26 = vpack.c.bf16 %v498_v20, %v493_v19  ;;  %v497_v28 = vld [vmem:[%s10412_s3 + $0x258] sm:$0xff]  ;;  %v494_v30 = vld [vmem:[%s10412_s3 + $0x240] sm:$0xff]  ;;  %v5894_v19 = vmov 0.0  }
  0x24   : > { %5242 = vmatpush1.bf16.msra.mxu0 %v5241_v63  ;;  %5274 = vmatpush1.bf16.msra.mxu1 %v5273_v0  ;;  %v492_v27 = vld [vmem:[%s10412_s3 + $0x230] sm:$0xff]  ;;  %v5283_v29 = vpack.c.bf16 %v500_v23, %v495_v22  ;;  %v499_v31 = vld [vmem:[%s10412_s3 + $0x268] sm:$0xff]  ;;  %v505_v35 = vld [vmem:[%s10412_s3 + $0x298] sm:$0xff] }
  0x25   : > { %5244 = vmatprep.subr.bf16.mxu0 %v5243_v1  ;;  %5276 = vmatprep.subr.bf16.mxu1 %v5275_v5  ;;  %v5253_v32 = vpack.c.bf16 %v497_v28, %v492_v27  ;;  %v5285_v33 = vpack.c.bf16 %v499_v31, %v494_v30  ;;  %v503_v34 = vld [vmem:[%s10412_s3 + $0x288] sm:$0xff]  ;;  %v426_v36 = vld [vmem:[%s10412_s3 + $0x20] sm:$0xff]  ;;  %v504_v39 = vld [vmem:[%s10412_s3 + $0x290] sm:$0xff] }
  0x26   : > { %v431_v37 = vld [vmem:[%s10412_s3 + $0x48] sm:$0xff]  ;;  %v502_v38 = vld [vmem:[%s10412_s3 + $0x280] sm:$0xff]  ;;  %v6201_v42 = vld [vmem:[%s6134_s7 + $0x18] sm:$0xff] }
  0x27   : > { %v6198_v40 = vld [vmem:[%s6134_s7] sm:$0xff]  ;;  %v5288_v41 = vpack.c.bf16 %v431_v37, %v426_v36  ;;  %v436_v43 = vld [vmem:[%s10412_s3 + $0x70] sm:$0xff]  ;;  %v441_v44 = vld [vmem:[%s10412_s3 + $0x98] sm:$0xff] }
  0x28   : > { %5246 = vmatpush1.bf16.msra.mxu0 %v5245_v11  ;;  %5278 = vmatpush1.bf16.msra.mxu1 %v5277_v13  ;;  %v6213_v46 = vld [vmem:[%s6134_s7 + $0x10] sm:$0xff]  ;;  %v6218_v47 = vld [vmem:[%s6134_s7 + $0x28] sm:$0xff]  ;;  %v5291_v48 = vpack.c.bf16 %v441_v44, %v436_v43  ;;  %v446_v49 = vld [vmem:[%s10412_s3 + $0xc0] sm:$0xff] }
  0x29   : > { %5248 = vmatprep.subr.bf16.mxu0 %v5247_v14  ;;  %5280 = vmatprep.subr.bf16.mxu1 %v5279_v18  ;;  %v451_v50 = vld [vmem:[%s10412_s3 + $0xe8] sm:$0xff]  ;;  %v6235_v51 = vld [vmem:[%s6134_s7 + $0x20] sm:$0xff]  ;;  %v6240_v52 = vld [vmem:[%s6134_s7 + $0x38] sm:$0xff] }
  0x2a   : > { %v5294_v53 = vpack.c.bf16 %v451_v50, %v446_v49  ;;  %v456_v54 = vld [vmem:[%s10412_s3 + $0x110] sm:$0xff]  ;;  %v461_v55 = vld [vmem:[%s10412_s3 + $0x138] sm:$0xff]  ;;  %v6260_v57 = vld [vmem:[%s6134_s7 + $0x48] sm:$0xff] }
  0x2b   : > { %v6255_v56 = vld [vmem:[%s6134_s7 + $0x30] sm:$0xff]  ;;  %v5297_v58 = vpack.c.bf16 %v461_v55, %v456_v54  ;;  %v466_v59 = vld [vmem:[%s10412_s3 + $0x160] sm:$0xff]  ;;  %v471_v60 = vld [vmem:[%s10412_s3 + $0x188] sm:$0xff] }
  0x2c   : > { %5250 = vmatpush1.bf16.msra.mxu0 %v5249_v24  ;;  %5282 = vmatpush1.bf16.msra.mxu1 %v5281_v25  ;;  %v6275_v61 = vld [vmem:[%s6134_s7 + $0x40] sm:$0xff]  ;;  %v6280_v62 = vld [vmem:[%s6134_s7 + $0x58] sm:$0xff]  ;;  %v5300_v63 = vpack.c.bf16 %v471_v60, %v466_v59  ;;  %v476_v0 = vld [vmem:[%s10412_s3 + $0x1b0] sm:$0xff] }
  0x2d   : > { %5252 = vmatprep.subr.bf16.mxu0 %v5251_v26  ;;  %5284 = vmatprep.subr.bf16.mxu1 %v5283_v29  ;;  %v481_v1 = vld [vmem:[%s10412_s3 + $0x1d8] sm:$0xff]  ;;  %v6295_v2 = vld [vmem:[%s6134_s7 + $0x50] sm:$0xff]  ;;  %v6300_v3 = vld [vmem:[%s6134_s7 + $0x68] sm:$0xff] }
  0x2e   : > { %v5303_v4 = vpack.c.bf16 %v481_v1, %v476_v0  ;;  %v486_v5 = vld [vmem:[%s10412_s3 + $0x200] sm:$0xff]  ;;  %v491_v6 = vld [vmem:[%s10412_s3 + $0x228] sm:$0xff]  ;;  %v6320_v8 = vld [vmem:[%s6134_s7 + $0x78] sm:$0xff] }
  0x2f   : > { %v6315_v7 = vld [vmem:[%s6134_s7 + $0x60] sm:$0xff]  ;;  %v5306_v9 = vpack.c.bf16 %v491_v6, %v486_v5  ;;  %v496_v10 = vld [vmem:[%s10412_s3 + $0x250] sm:$0xff]  ;;  %v501_v11 = vld [vmem:[%s10412_s3 + $0x278] sm:$0xff] }
  0x30   : > { %5254 = vmatpush1.bf16.msra.mxu0 %v5253_v32  ;;  %5286 = vmatpush1.bf16.msra.mxu1 %v5285_v33  ;;  %v6335_v12 = vld [vmem:[%s6134_s7 + $0x70] sm:$0xff]  ;;  %v6340_v13 = vld [vmem:[%s6134_s7 + $0x88] sm:$0xff]  ;;  %v5309_v14 = vpack.c.bf16 %v501_v11, %v496_v10  ;;  %v1130_v15 = vld [vmem:[%s10414_s5 + $0x80] sm:$0xff] }
  0x31   : > { %615 = vmatprep.subr.mxu0 %v503_v34  ;;  %776 = vmatprep.subr.mxu1 %v505_v35  ;;  %v1131_v16 = vld [vmem:[%s10414_s5 + $0x88] sm:$0xff]  ;;  %v6355_v17 = vld [vmem:[%s6134_s7 + $0x80] sm:$0xff]  ;;  %v6360_v18 = vld [vmem:[%s6134_s7 + $0x98] sm:$0xff] }
  0x32   : > { %v506_v20 = vld [vmem:[%s10412_s3 + $0x2a0] sm:$0xff]  ;;  %v5311_v22 = vpack.c.bf16 %v1131_v16, %v1130_v15  ;;  %v6371_v23 = vld [vmem:[%s6134_s7 + $0x90] sm:$0xff]  ;;  %v1163_v25 = vld [vmem:[%s10414_s5 + $0x188] sm:$0xff] }
  0x33   : > { %v1162_v24 = vld [vmem:[%s10414_s5 + $0x180] sm:$0xff]  ;;  %v6382_v26 = vld [vmem:[%s6134_s7 + $0xa8] sm:$0xff]  ;;  %v6394_v29 = vld [vmem:[%s6134_s7 + $0xb8] sm:$0xff] }
  0x34   : > { %616 = vmatpush1.msra.mxu0 %v502_v38  ;;  %777 = vmatpush1.msra.mxu1 %v504_v39  ;;  %v5343_v27 = vpack.c.bf16 %v1163_v25, %v1162_v24  ;;  %v6389_v28 = vld [vmem:[%s6134_s7 + $0xa0] sm:$0xff]  ;;  %v6401_v30 = vld [vmem:[%s6134_s7 + $0xb0] sm:$0xff]  ;;  %v6406_v31 = vld [vmem:[%s6134_s7 + $0xc8] sm:$0xff] }
  0x35   : > { %648 = vmatmul.mubr.f32.vlgmr.msra.gmra.mrb[0].mxu0 %v6198_v40  ;;  %809 = vmatmul.mubr.f32.vlgmr.msra.gmra.mrb[0].mxu1 %v6198_v40  ;;  %v6413_v32 = vld [vmem:[%s6134_s7 + $0xc0] sm:$0xff]  ;;  %v6418_v33 = vld [vmem:[%s6134_s7 + $0xd8] sm:$0xff]  ;;  %v6425_v34 = vld [vmem:[%s6134_s7 + $0xd0] sm:$0xff] }
  0x36   : > { %5375 = vmatprep.subr.bf16.mxu1 %v5893_v45  ;;  %5011 = vmatprep.mubr.msk.f32.mxu0 %vm534_vm0, %v6201_v42  ;;  %v6430_v35 = vld [vmem:[%s6134_s7 + $0xe8] sm:$0xff]  ;;  %v6437_v36 = vld [vmem:[%s6134_s7 + $0xe0] sm:$0xff]  ;;  %v6442_v37 = vld [vmem:[%s6134_s7 + $0xf8] sm:$0xff] }
  0x37   : > { %5384 = vmatpush1.bf16.msra.mxu1 %v5288_v41  ;;  %5027 = vmatprep.mubr.msk.f32.mxu1 %vm534_vm0, %v6201_v42  ;;  %v6449_v38 = vld [vmem:[%s6134_s7 + $0xf0] sm:$0xff]  ;;  %v1114_v39 = vld [vmem:[%s10414_s5] sm:$0xff]  ;;  %v1147_v44 = vld [vmem:[%s10414_s5 + $0x108] sm:$0xff]  ;;  %s5901_s7 = smov 120  }
  0x38   : > { %5376 = vmatprep.subr.bf16.mxu1 %v5893_v45  ;;  %5287 = vmatprep.subr.bf16.mxu0 %v5893_v45  ;;  %v1146_v43 = vld [vmem:[%s10414_s5 + $0x100] sm:$0xff]  ;;  %v1164_v49 = vld [vmem:[%s10414_s5 + $0x190] sm:$0xff]  ;;  %v1165_v50 = vld [vmem:[%s10414_s5 + $0x198] sm:$0xff] }
  0x39   : > { %654 = vmatmul.mubr.f32.gmra.mrb[2].mxu0 %v6213_v46  ;;  %815 = vmatmul.mubr.f32.gmra.mrb[2].mxu1 %v6213_v46  ;;  %v5345_v54 = vpack.c.bf16 %v1147_v44, %v1146_v43  ;;  %v1148_v59 = vld [vmem:[%s10414_s5 + $0x110] sm:$0xff]  ;;  %v5347_v60 = vpack.c.bf16 %v1165_v50, %v1164_v49  ;;  %v1134_v0 = vld [vmem:[%s10414_s5 + $0xa0] sm:$0xff]  ;;  %v1135_v1 = vld [vmem:[%s10414_s5 + $0xa8] sm:$0xff] }
  0x3a   : > { %5012 = vmatprep.mubr.msk.f32.mxu0 %vm534_vm0, %v6218_v47  ;;  %5028 = vmatprep.mubr.msk.f32.mxu1 %vm534_vm0, %v6218_v47  ;;  %v1167_v5 = vld [vmem:[%s10414_s5 + $0x1a8] sm:$0xff]  ;;  %v5319_v10 = vpack.c.bf16 %v1135_v1, %v1134_v0  ;;  %v1136_v16 = vld [vmem:[%s10414_s5 + $0xb0] sm:$0xff]  ;;  %v1138_v43 = vld [vmem:[%s10414_s5 + $0xc0] sm:$0xff] }
  0x3b   : > { %5385 = vmatpush1.bf16.msra.mxu1 %v5291_v48  ;;  %5289 = vmatpush1.bf16.msra.mxu0 %v5288_v41  ;;  %v1115_v41 = vld [vmem:[%s10414_s5 + $0x8] sm:$0xff] }
  0x3c   : > { %5377 = vmatprep.subr.bf16.mxu1 %v5893_v45  ;;  %5290 = vmatprep.subr.bf16.mxu0 %v5893_v45  ;;  %v1119_v11 = vld [vmem:[%s10414_s5 + $0x28] sm:$0xff] }
  0x3d   : > { %660 = vmatmul.mubr.f32.gmra.mrb[4].mxu0 %v6235_v51  ;;  %821 = vmatmul.mubr.f32.gmra.mrb[4].mxu1 %v6235_v51  ;;  %v1151_v15 = vld [vmem:[%s10414_s5 + $0x128] sm:$0xff] }
  0x3e   : > { %5013 = vmatprep.mubr.msk.f32.mxu0 %vm534_vm0, %v6240_v52  ;;  %5029 = vmatprep.mubr.msk.f32.mxu1 %vm534_vm0, %v6240_v52  ;;  %v1139_v44 = vld [vmem:[%s10414_s5 + $0xc8] sm:$0xff] }
  0x3f   : > { %5386 = vmatpush1.bf16.msra.mxu1 %v5294_v53  ;;  %5292 = vmatpush1.bf16.msra.mxu0 %v5291_v48  ;;  %v1133_v48 = vld [vmem:[%s10414_s5 + $0x98] sm:$0xff] }
  0x40   : > { %5378 = vmatprep.subr.bf16.mxu1 %v5893_v45  ;;  %5293 = vmatprep.subr.bf16.mxu0 %v5893_v45 }
  0x41   : > { %666 = vmatmul.mubr.f32.gmra.mrb[6].mxu0 %v6255_v56  ;;  %827 = vmatmul.mubr.f32.gmra.mrb[6].mxu1 %v6255_v56 }
  0x42   : > { %5014 = vmatprep.mubr.msk.f32.mxu0 %vm534_vm0, %v6260_v57  ;;  %5030 = vmatprep.mubr.msk.f32.mxu1 %vm534_vm0, %v6260_v57 }
  0x43   : > { %5387 = vmatpush1.bf16.msra.mxu1 %v5297_v58  ;;  %5295 = vmatpush1.bf16.msra.mxu0 %v5294_v53  ;;  %v5313_v53 = vpack.c.bf16 %v1115_v41, %v1114_v39  ;;  %v1152_v39 = vld [vmem:[%s10414_s5 + $0x130] sm:$0xff]  ;;  %v1153_v41 = vld [vmem:[%s10414_s5 + $0x138] sm:$0xff] }
  0x44   : > { %5379 = vmatprep.subr.bf16.mxu1 %v5893_v45  ;;  %5296 = vmatprep.subr.bf16.mxu0 %v5893_v45  ;;  %v5357_v50 = vpack.c.bf16 %v1153_v41, %v1152_v39  ;;  %v1129_v41 = vld [vmem:[%s10414_s5 + $0x78] sm:$0xff] }
  0x45   : > { %672 = vmatmul.mubr.f32.gmra.mrb[8].mxu0 %v6275_v61  ;;  %833 = vmatmul.mubr.f32.gmra.mrb[8].mxu1 %v6275_v61 }
  0x46   : > { %5015 = vmatprep.mubr.msk.f32.mxu0 %vm534_vm0, %v6280_v62  ;;  %5031 = vmatprep.mubr.msk.f32.mxu1 %vm534_vm0, %v6280_v62 }
  0x47   : > { %5388 = vmatpush1.bf16.msra.mxu1 %v5300_v63  ;;  %5298 = vmatpush1.bf16.msra.mxu0 %v5297_v58  ;;  %v1116_v58 = vld [vmem:[%s10414_s5 + $0x10] sm:$0xff] }
  0x48   : > { %5380 = vmatprep.subr.bf16.mxu1 %v5893_v45  ;;  %5299 = vmatprep.subr.bf16.mxu0 %v5893_v45 }
  0x49   : > { %678 = vmatmul.mubr.f32.gmra.mrb[10].mxu0 %v6295_v2  ;;  %839 = vmatmul.mubr.f32.gmra.mrb[10].mxu1 %v6295_v2 }
  0x4a   : > { %5016 = vmatprep.mubr.msk.f32.mxu0 %vm534_vm0, %v6300_v3  ;;  %5032 = vmatprep.mubr.msk.f32.mxu1 %vm534_vm0, %v6300_v3 }
  0x4b   : > { %5389 = vmatpush1.bf16.msra.mxu1 %v5303_v4  ;;  %5301 = vmatpush1.bf16.msra.mxu0 %v5300_v63  ;;  %v1149_v63 = vld [vmem:[%s10414_s5 + $0x118] sm:$0xff] }
  0x4c   : > { %5381 = vmatprep.subr.bf16.mxu1 %v5893_v45  ;;  %5302 = vmatprep.subr.bf16.mxu0 %v5893_v45 }
  0x4d   : > { %684 = vmatmul.mubr.f32.gmra.mrb[12].mxu0 %v6315_v7  ;;  %845 = vmatmul.mubr.f32.gmra.mrb[12].mxu1 %v6315_v7 }
  0x4e   : > { %5017 = vmatprep.mubr.msk.f32.mxu0 %vm534_vm0, %v6320_v8  ;;  %5033 = vmatprep.mubr.msk.f32.mxu1 %vm534_vm0, %v6320_v8 }
  0x4f   : > { %5390 = vmatpush1.bf16.msra.mxu1 %v5306_v9  ;;  %5304 = vmatpush1.bf16.msra.mxu0 %v5303_v4  ;;  %v1166_v4 = vld [vmem:[%s10414_s5 + $0x1a0] sm:$0xff] }
  0x50   : > { %5382 = vmatprep.subr.bf16.mxu1 %v5893_v45  ;;  %5305 = vmatprep.subr.bf16.mxu0 %v5893_v45 }
  0x51   : > { %690 = vmatmul.mubr.f32.gmra.mrb[14].mxu0 %v6335_v12  ;;  %851 = vmatmul.mubr.f32.gmra.mrb[14].mxu1 %v6335_v12 }
  0x52   : > { %5018 = vmatprep.mubr.msk.f32.mxu0 %vm534_vm0, %v6340_v13  ;;  %5034 = vmatprep.mubr.msk.f32.mxu1 %vm534_vm0, %v6340_v13 }
  0x53   : > { %5391 = vmatpush1.bf16.msra.mxu1 %v5309_v14  ;;  %5307 = vmatpush1.bf16.msra.mxu0 %v5306_v9  ;;  %v5349_v9 = vpack.c.bf16 %v1149_v63, %v1148_v59  ;;  %v1141_v59 = vld [vmem:[%s10414_s5 + $0xd8] sm:$0xff] }
  0x54   : > { %5383 = vmatprep.subr.mxu1 %v5894_v19  ;;  %5308 = vmatprep.subr.bf16.mxu0 %v5893_v45  ;;  %v1132_v45 = vld [vmem:[%s10414_s5 + $0x90] sm:$0xff]  ;;  %v1173_v63 = vld [vmem:[%s10414_s5 + $0x1d8] sm:$0xff] }
  0x55   : > { %696 = vmatmul.mubr.f32.gmra.mrb[16].mxu0 %v6355_v17  ;;  %857 = vmatmul.mubr.f32.gmra.mrb[16].mxu1 %v6355_v17  ;;  %v5315_v55 = vpack.c.bf16 %v1133_v48, %v1132_v45  ;;  %v1170_v45 = vld [vmem:[%s10414_s5 + $0x1c0] sm:$0xff]  ;;  %v1171_v48 = vld [vmem:[%s10414_s5 + $0x1c8] sm:$0xff] }
  0x56   : > { %5019 = vmatprep.mubr.msk.f32.mxu0 %vm534_vm0, %v6360_v18  ;;  %5035 = vmatprep.mubr.msk.f32.mxu1 %vm534_vm0, %v6360_v18 }
  0x57   : > { %5392 = vmatpush1.msra.mxu1 %v506_v20  ;;  %5310 = vmatpush1.bf16.msra.mxu0 %v5309_v14  ;;  %v5351_v14 = vpack.c.bf16 %v1167_v5, %v1166_v4  ;;  %v1125_v5 = vld [vmem:[%s10414_s5 + $0x58] sm:$0xff] }
  0x58   : > { %5312 = vmatprep.subr.bf16.mxu1 %v5311_v22  ;;  %937 = vmatprep.subr.mxu0 %v5894_v19  ;;  %v1168_v19 = vld [vmem:[%s10414_s5 + $0x1b0] sm:$0xff] }
  0x59   : > { %702 = vmatmul.mubr.f32.gmra.mrb[18].mxu0 %v6371_v23  ;;  %863 = vmatmul.mubr.f32.gmra.mrb[18].mxu1 %v6371_v23 }
  0x5a   : > { %5020 = vmatprep.mubr.msk.f32.mxu0 %vm534_vm0, %v6382_v26  ;;  %5036 = vmatprep.mubr.msk.f32.mxu1 %vm534_vm0, %v6382_v26 }
  0x5b   : > { %938 = vmatpush1.msra.mxu0 %v506_v20  ;;  %v1169_v20 = vld [vmem:[%s10414_s5 + $0x1b8] sm:$0xff] }
  0x5c   : > { %5344 = vmatprep.subr.bf16.mxu0 %v5343_v27  ;;  %v1121_v27 = vld [vmem:[%s10414_s5 + $0x38] sm:$0xff] }
  0x5d   : > { %708 = vmatmul.mubr.f32.gmra.mrb[20].mxu0 %v6389_v28  ;;  %869 = vmatmul.mubr.f32.gmra.mrb[20].mxu1 %v6389_v28 }
  0x5e   : > { %5021 = vmatprep.mubr.msk.f32.mxu0 %vm534_vm0, %v6394_v29  ;;  %5037 = vmatprep.mubr.msk.f32.mxu1 %vm534_vm0, %v6394_v29 }
  0x61   : > { %714 = vmatmul.mubr.f32.gmra.mrb[22].mxu0 %v6401_v30  ;;  %875 = vmatmul.mubr.f32.gmra.mrb[22].mxu1 %v6401_v30 }
  0x62   : > { %5022 = vmatprep.mubr.msk.f32.mxu0 %vm534_vm0, %v6406_v31  ;;  %5038 = vmatprep.mubr.msk.f32.mxu1 %vm534_vm0, %v6406_v31 }
  0x65   : > { %720 = vmatmul.mubr.f32.gmra.mrb[24].mxu0 %v6413_v32  ;;  %881 = vmatmul.mubr.f32.gmra.mrb[24].mxu1 %v6413_v32 }
  0x66   : > { %5023 = vmatprep.mubr.msk.f32.mxu0 %vm534_vm0, %v6418_v33  ;;  %5039 = vmatprep.mubr.msk.f32.mxu1 %vm534_vm0, %v6418_v33 }
  0x69   : > { %726 = vmatmul.mubr.f32.gmra.mrb[26].mxu0 %v6425_v34  ;;  %887 = vmatmul.mubr.f32.gmra.mrb[26].mxu1 %v6425_v34 }
  0x6a   : > { %5024 = vmatprep.mubr.msk.f32.mxu0 %vm534_vm0, %v6430_v35  ;;  %5040 = vmatprep.mubr.msk.f32.mxu1 %vm534_vm0, %v6430_v35 }
  0x6d   : > { %732 = vmatmul.mubr.f32.gmra.mrb[28].mxu0 %v6437_v36  ;;  %893 = vmatmul.mubr.f32.gmra.mrb[28].mxu1 %v6437_v36 }
  0x6e   : > { %5025 = vmatprep.mubr.msk.f32.mxu0 %vm534_vm0, %v6442_v37  ;;  %5041 = vmatprep.mubr.msk.f32.mxu1 %vm534_vm0, %v6442_v37 }
  0x71   : > { %738 = vmatmul.mubr.f32.gmra.mrb[30].mxu0 %v6449_v38  ;;  %899 = vmatmul.mubr.f32.gmra.mrb[30].mxu1 %v6449_v38 }
  0x72   : > { %5042 = vmatprep.mubr.msk.f32.mxu0 %vm534_vm0, %v6155_v21  ;;  %5050 = vmatprep.mubr.msk.f32.mxu1 %vm534_vm0, %v6340_v13  ;;  %v1117_v21 = vld [vmem:[%s10414_s5 + $0x18] sm:$0xff]  ;;  %v1150_v13 = vld [vmem:[%s10414_s5 + $0x120] sm:$0xff] }
  0x73   : > { %v5317_v6 = vpack.c.bf16 %v1117_v21, %v1116_v58  ;;  %v5353_v24 = vpack.c.bf16 %v1151_v15, %v1150_v13  ;;  %v1155_v58 = vld [vmem:[%s10414_s5 + $0x148] sm:$0xff]  ;;  %v1140_v21 = vld [vmem:[%s10414_s5 + $0xd0] sm:$0xff] }
  0x74   : > { %v5331_v4 = vpack.c.bf16 %v1141_v59, %v1140_v21  ;;  %v1175_v13 = vld [vmem:[%s10414_s5 + $0x1e8] sm:$0xff] }
  0x75   : > { %970 = vmatmul.mubr.f32.vlgmr.msra.gmra.mrb[32].mxu0 %v6198_v40  ;;  %1010 = vmatmul.mubr.f32.vlgmr.msra.gmra.mrb[32].mxu1 %v6355_v17 }
  0x76   : > { %5043 = vmatprep.mubr.msk.f32.mxu0 %vm534_vm0, %v6201_v42  ;;  %5051 = vmatprep.mubr.msk.f32.mxu1 %vm534_vm0, %v6360_v18  ;;  %v1118_v42 = vld [vmem:[%s10414_s5 + $0x20] sm:$0xff]  ;;  %v1137_v18 = vld [vmem:[%s10414_s5 + $0xb8] sm:$0xff] }
  0x77   : > { %5314 = vmatpush3.bf16.msra.mxu1 %v5313_v53  ;;  %5346 = vmatpush3.bf16.msra.mxu0 %v5345_v54  ;;  %v5321_v22 = vpack.c.bf16 %v1119_v11, %v1118_v42  ;;  %v5323_v25 = vpack.c.bf16 %v1137_v18, %v1136_v16  ;;  %v5327_v53 = vpack.c.bf16 %v1139_v44, %v1138_v43  ;;  %v1123_v54 = vld [vmem:[%s10414_s5 + $0x48] sm:$0xff]  ;;  %v1174_v11 = vld [vmem:[%s10414_s5 + $0x1e0] sm:$0xff]  ;;  %v1161_v44 = vld [vmem:[%s10414_s5 + $0x178] sm:$0xff] }
  0x78   : > { %5316 = vmatprep.subr.bf16.mxu1 %v5315_v55  ;;  %5348 = vmatprep.subr.bf16.mxu0 %v5347_v60  ;;  %v1154_v55 = vld [vmem:[%s10414_s5 + $0x140] sm:$0xff]  ;;  %v1172_v60 = vld [vmem:[%s10414_s5 + $0x1d0] sm:$0xff]  ;;  %v1143_v42 = vld [vmem:[%s10414_s5 + $0xe8] sm:$0xff] }
  0x79   : > { %975 = vmatmul.mubr.f32.gmra.mrb[34].mxu0 %v6213_v46  ;;  %1015 = vmatmul.mubr.f32.gmra.mrb[34].mxu1 %v6371_v23  ;;  %v5361_v1 = vpack.c.bf16 %v1155_v58, %v1154_v55  ;;  %v1127_v18 = vld [vmem:[%s10414_s5 + $0x68] sm:$0xff] }
  0x7a   : > { %5044 = vmatprep.mubr.msk.f32.mxu0 %vm534_vm0, %v6218_v47  ;;  %5052 = vmatprep.mubr.msk.f32.mxu1 %vm534_vm0, %v6382_v26  ;;  %v1120_v47 = vld [vmem:[%s10414_s5 + $0x30] sm:$0xff]  ;;  %v5355_v26 = vpack.c.bf16 %v1169_v20, %v1168_v19  ;;  %v1158_v19 = vld [vmem:[%s10414_s5 + $0x160] sm:$0xff]  ;;  %v1159_v20 = vld [vmem:[%s10414_s5 + $0x168] sm:$0xff] }
  0x7b   : > { %5318 = vmatpush3.bf16.msra.mxu1 %v5317_v6  ;;  %5350 = vmatpush3.bf16.msra.mxu0 %v5349_v9  ;;  %v5325_v49 = vpack.c.bf16 %v1121_v27, %v1120_v47  ;;  %v1156_v6 = vld [vmem:[%s10414_s5 + $0x150] sm:$0xff]  ;;  %v1157_v9 = vld [vmem:[%s10414_s5 + $0x158] sm:$0xff]  ;;  %v5369_v39 = vpack.c.bf16 %v1159_v20, %v1158_v19 }
  0x7c   : > { %5320 = vmatprep.subr.bf16.mxu1 %v5319_v10  ;;  %5352 = vmatprep.subr.bf16.mxu0 %v5351_v14  ;;  %v1142_v10 = vld [vmem:[%s10414_s5 + $0xe0] sm:$0xff]  ;;  %v5365_v15 = vpack.c.bf16 %v1157_v9, %v1156_v6  ;;  %v1177_v47 = vld [vmem:[%s10414_s5 + $0x1f8] sm:$0xff] }
  0x7d   : > { %980 = vmatmul.mubr.f32.gmra.mrb[36].mxu0 %v6235_v51  ;;  %1020 = vmatmul.mubr.f32.gmra.mrb[36].mxu1 %v6389_v28  ;;  %v5335_v16 = vpack.c.bf16 %v1143_v42, %v1142_v10 }
  0x7e   : > { %5045 = vmatprep.mubr.msk.f32.mxu0 %vm534_vm0, %v6240_v52  ;;  %5053 = vmatprep.mubr.msk.f32.mxu1 %vm534_vm0, %v6394_v29  ;;  %v1122_v52 = vld [vmem:[%s10414_s5 + $0x40] sm:$0xff]  ;;  %v5359_v29 = vpack.c.bf16 %v1171_v48, %v1170_v45 }
  0x7f   : > { %5322 = vmatpush3.bf16.msra.mxu1 %v5321_v22  ;;  %5354 = vmatpush3.bf16.msra.mxu0 %v5353_v24  ;;  %v5329_v0 = vpack.c.bf16 %v1123_v54, %v1122_v52  ;;  %v1144_v22 = vld [vmem:[%s10414_s5 + $0xf0] sm:$0xff]  ;;  %v1145_v24 = vld [vmem:[%s10414_s5 + $0xf8] sm:$0xff]  ;;  %v6693_v54 = vld [vmem:[%s10413_s4] sm:$0x1f] }
  0x80   : > { %5324 = vmatprep.subr.bf16.mxu1 %v5323_v25  ;;  %5356 = vmatprep.subr.bf16.mxu0 %v5355_v26  ;;  %v1176_v25 = vld [vmem:[%s10414_s5 + $0x1f0] sm:$0xff]  ;;  %v5339_v26 = vpack.c.bf16 %v1145_v24, %v1144_v22 }
  0x81   : > { %985 = vmatmul.mubr.f32.gmra.mrb[38].mxu0 %v6255_v56  ;;  %1025 = vmatmul.mubr.f32.gmra.mrb[38].mxu1 %v6401_v30  ;;  %v5371_v43 = vpack.c.bf16 %v1177_v47, %v1176_v25 }
  0x82   : > { %5046 = vmatprep.mubr.msk.f32.mxu0 %vm534_vm0, %v6260_v57  ;;  %5054 = vmatprep.mubr.msk.f32.mxu1 %vm534_vm0, %v6406_v31  ;;  %v1124_v57 = vld [vmem:[%s10414_s5 + $0x50] sm:$0xff]  ;;  %v5363_v31 = vpack.c.bf16 %v1173_v63, %v1172_v60 }
  0x83   : > { %5326 = vmatpush3.bf16.msra.mxu1 %v5325_v49  ;;  %5358 = vmatpush3.bf16.msra.mxu0 %v5357_v50  ;;  %v5333_v14 = vpack.c.bf16 %v1125_v5, %v1124_v57  ;;  %v5895_v49 = vmov 32  }
  0x84   : > { %5328 = vmatprep.subr.bf16.mxu1 %v5327_v53  ;;  %5360 = vmatprep.subr.bf16.mxu0 %v5359_v29 }
  0x85   : > { %990 = vmatmul.mubr.f32.gmra.mrb[40].mxu0 %v6275_v61  ;;  %1030 = vmatmul.mubr.f32.gmra.mrb[40].mxu1 %v6413_v32 }
  0x86   : > { %5047 = vmatprep.mubr.msk.f32.mxu0 %vm534_vm0, %v6280_v62  ;;  %5055 = vmatprep.mubr.msk.f32.mxu1 %vm534_vm0, %v6418_v33  ;;  %v1126_v62 = vld [vmem:[%s10414_s5 + $0x60] sm:$0xff]  ;;  %v5367_v33 = vpack.c.bf16 %v1175_v13, %v1174_v11 }
  0x87   : > { %5330 = vmatpush3.bf16.msra.mxu1 %v5329_v0  ;;  %5362 = vmatpush3.bf16.msra.mxu0 %v5361_v1  ;;  %v5337_v27 = vpack.c.bf16 %v1127_v18, %v1126_v62 }
  0x88   : > { %5332 = vmatprep.subr.bf16.mxu1 %v5331_v4  ;;  %5364 = vmatprep.subr.bf16.mxu0 %v5363_v31 }
  0x89   : > { %995 = vmatmul.mubr.f32.gmra.mrb[42].mxu0 %v6295_v2  ;;  %1035 = vmatmul.mubr.f32.gmra.mrb[42].mxu1 %v6425_v34 }
  0x8a   : > { %5048 = vmatprep.mubr.msk.f32.mxu0 %vm534_vm0, %v6300_v3  ;;  %5056 = vmatprep.mubr.msk.f32.mxu1 %vm534_vm0, %v6430_v35  ;;  %v1128_v3 = vld [vmem:[%s10414_s5 + $0x70] sm:$0xff] }
  0x8b   : > { %5334 = vmatpush3.bf16.msra.mxu1 %v5333_v14  ;;  %5366 = vmatpush3.bf16.msra.mxu0 %v5365_v15  ;;  %v1160_v35 = vld [vmem:[%s10414_s5 + $0x170] sm:$0xff]  ;;  %v5341_v45 = vpack.c.bf16 %v1129_v41, %v1128_v3 }
  0x8c   : > { %5336 = vmatprep.subr.bf16.mxu1 %v5335_v16  ;;  %5368 = vmatprep.subr.bf16.mxu0 %v5367_v33  ;;  %v5373_v48 = vpack.c.bf16 %v1161_v44, %v1160_v35 }
  0x8d   : > { %1000 = vmatmul.mubr.f32.gmra.mrb[44].mxu0 %v6315_v7  ;;  %1040 = vmatmul.mubr.f32.gmra.mrb[44].mxu1 %v6437_v36 }
  0x8e   : > { %5049 = vmatprep.mubr.msk.f32.mxu0 %vm534_vm0, %v6320_v8  ;;  %5057 = vmatprep.mubr.msk.f32.mxu1 %vm534_vm0, %v6442_v37  ;;  %v509_v8 = vlaneseq }
  0x8f   : > { %5338 = vmatpush3.bf16.msra.mxu1 %v5337_v27  ;;  %5370 = vmatpush3.bf16.msra.mxu0 %v5369_v39 }
  0x90   : > { %5340 = vmatprep.subr.bf16.mxu1 %v5339_v26  ;;  %5372 = vmatprep.subr.bf16.mxu0 %v5371_v43  ;;  %v6685_v50 = vshrl.u32 %v509_v8, 7 }
  0x91   : > { %1005 = vmatmul.mubr.f32.gmra.mrb[46].mxu0 %v6335_v12  ;;  %1045 = vmatmul.mubr.f32.gmra.mrb[46].mxu1 %v6449_v38 }
  0x92   : > { %5417 = vset.pattern.permute.xlu1 %v5895_v49  ;;  %5416 = vset.pattern.permute.xlu0 %v5895_v49  ;;  %v511_v37 = vsub.s32 0, %v6685_v50  ;;  %v519_v53 = vsub.s32 2, %v6685_v50  ;;  %v515_v52 = vsub.s32 1, %v6685_v50  ;;  %v523_v55 = vsub.s32 3, %v6685_v50 }
  0x93   : > { %5342 = vmatpush3.bf16.msra.mxu1 %v5341_v45  ;;  %5374 = vmatpush3.bf16.msra.mxu0 %v5373_v48 }
  0x94   : > { %v6697_v29 = vrot.slane %v6693_v54, %v511_v37  ;;  %v6700_v58 = vrot.slane %v6693_v54, %v519_v53  ;;  %v6703_v21 = vrot.slane %v6693_v54, %v515_v52  ;;  %v6706_v59 = vrot.slane %v6693_v54, %v523_v55 }
 0x108   : > { %v649_v60 = vpop.f32.mrb[0].mxu0  ;;  %v810_v0 = vpop.f32.mrb[0].mxu1 }
 0x109   : > { %v650_v63 = vadd.f32 %v649_v60, %v6697_v29  ;;  %v651_v1 = vpop.f32.mrb[1].mxu0  ;;  %v811_v4 = vadd.f32 %v810_v0, %v6700_v58  ;;  %v812_v5 = vpop.f32.mrb[1].mxu1 }
 0x10a   : > { %v652_v57 = vadd.f32 %v651_v1, %v6703_v21  ;;  %v813_v31 = vadd.f32 %v812_v5, %v6706_v59 }
 0x10b   : > { %v1050_v6 = vmul.f32 %v650_v63, %v6198_v40  ;;  %v1052_v15 = vmul.f32 %v811_v4, %v6198_v40 }
 0x10c   : > { %v1051_v9 = vmul.f32 %v652_v57, %v6198_v40  ;;  %v655_v10 = vpop.f32.mrb[2].mxu0  ;;  %v1053_v42 = vmul.f32 %v813_v31, %v6198_v40  ;;  %v816_v13 = vpop.f32.mrb[2].mxu1 }
 0x10d   : > { %v656_v11 = vadd.f32 %v655_v10, %v6697_v29  ;;  %v657_v14 = vpop.f32.mrb[3].mxu0  ;;  %v817_v16 = vadd.f32 %v816_v13, %v6700_v58  ;;  %v818_v18 = vpop.f32.mrb[3].mxu1 }
 0x10e   : > { %v658_v62 = vadd.f32 %v657_v14, %v6703_v21  ;;  %1242 = vmatprep.mubr.f32.mxu1 %v1051_v9  ;;  %v819_v33 = vadd.f32 %v818_v18, %v6706_v59  ;;  %1387 = vmatprep.mubr.f32.mxu0 %v1053_v42 }
 0x10f   : > { %v1054_v19 = vmul.f32 %v656_v11, %v6213_v46  ;;  %1243 = vmatmul.mubr.f32.vlgmr.msra.gmra.mrb[48].mxu1 %v1050_v6  ;;  %1388 = vmatmul.mubr.f32.vlgmr.msra.gmra.mrb[48].mxu0 %v1052_v15  ;;  %v1056_v27 = vmul.f32 %v817_v16, %v6213_v46 }
 0x110   : > { %v1055_v20 = vmul.f32 %v658_v62, %v6213_v46  ;;  %v661_v22 = vpop.f32.mrb[4].mxu0  ;;  %v1057_v24 = vmul.f32 %v819_v33, %v6213_v46  ;;  %v822_v25 = vpop.f32.mrb[4].mxu1 }
 0x111   : > { %v662_v40 = vadd.f32 %v661_v22, %v6697_v29  ;;  %v663_v47 = vpop.f32.mrb[5].mxu0  ;;  %v823_v39 = vadd.f32 %v822_v25, %v6700_v58  ;;  %v824_v3 = vpop.f32.mrb[5].mxu1 }
 0x112   : > { %v664_v26 = vadd.f32 %v663_v47, %v6703_v21  ;;  %1247 = vmatprep.mubr.f32.mxu1 %v1055_v20  ;;  %v825_v43 = vadd.f32 %v824_v3, %v6706_v59  ;;  %1392 = vmatprep.mubr.f32.mxu0 %v1057_v24 }
 0x113   : > { %v1058_v41 = vmul.f32 %v662_v40, %v6235_v51  ;;  %1248 = vmatmul.mubr.f32.gmra.mrb[50].mxu1 %v1054_v19  ;;  %1393 = vmatmul.mubr.f32.gmra.mrb[50].mxu0 %v1056_v27  ;;  %v1060_v37 = vmul.f32 %v823_v39, %v6235_v51 }
 0x114   : > { %v1059_v35 = vmul.f32 %v664_v26, %v6235_v51  ;;  %v667_v44 = vpop.f32.mrb[6].mxu0  ;;  %v1061_v45 = vmul.f32 %v825_v43, %v6235_v51  ;;  %v828_v48 = vpop.f32.mrb[6].mxu1 }
 0x115   : > { %v668_v46 = vadd.f32 %v667_v44, %v6697_v29  ;;  %v669_v8 = vpop.f32.mrb[7].mxu0  ;;  %v829_v53 = vadd.f32 %v828_v48, %v6700_v58  ;;  %v830_v55 = vpop.f32.mrb[7].mxu1 }
 0x116   : > { %v670_v52 = vadd.f32 %v669_v8, %v6703_v21  ;;  %1252 = vmatprep.mubr.f32.mxu1 %v1059_v35  ;;  %v831_v63 = vadd.f32 %v830_v55, %v6706_v59  ;;  %1397 = vmatprep.mubr.f32.mxu0 %v1061_v45 }
 0x117   : > { %v1062_v60 = vmul.f32 %v668_v46, %v6255_v56  ;;  %1253 = vmatmul.mubr.f32.gmra.mrb[52].mxu1 %v1058_v41  ;;  %1398 = vmatmul.mubr.f32.gmra.mrb[52].mxu0 %v1060_v37  ;;  %v1064_v6 = vmul.f32 %v829_v53, %v6255_v56 }
 0x118   : > { %v1063_v0 = vmul.f32 %v670_v52, %v6255_v56  ;;  %v673_v1 = vpop.f32.mrb[8].mxu0  ;;  %v1065_v4 = vmul.f32 %v831_v63, %v6255_v56  ;;  %v834_v57 = vpop.f32.mrb[8].mxu1 }
 0x119   : > { %v674_v51 = vadd.f32 %v673_v1, %v6697_v29  ;;  %v675_v5 = vpop.f32.mrb[9].mxu0  ;;  %v835_v31 = vadd.f32 %v834_v57, %v6700_v58  ;;  %v836_v10 = vpop.f32.mrb[9].mxu1 }
 0x11a   : > { %v676_v9 = vadd.f32 %v675_v5, %v6703_v21  ;;  %1257 = vmatprep.mubr.f32.mxu1 %v1063_v0  ;;  %v837_v11 = vadd.f32 %v836_v10, %v6706_v59  ;;  %1402 = vmatprep.mubr.f32.mxu0 %v1065_v4 }
 0x11b   : > { %v1066_v42 = vmul.f32 %v674_v51, %v6275_v61  ;;  %1258 = vmatmul.mubr.f32.gmra.mrb[54].mxu1 %v1062_v60  ;;  %1403 = vmatmul.mubr.f32.gmra.mrb[54].mxu0 %v1064_v6  ;;  %v1068_v18 = vmul.f32 %v835_v31, %v6275_v61 }
 0x11c   : > { %v1067_v13 = vmul.f32 %v676_v9, %v6275_v61  ;;  %v679_v14 = vpop.f32.mrb[10].mxu0  ;;  %v1069_v15 = vmul.f32 %v837_v11, %v6275_v61  ;;  %v840_v16 = vpop.f32.mrb[10].mxu1 }
 0x11d   : > { %v680_v56 = vadd.f32 %v679_v14, %v6697_v29  ;;  %v681_v62 = vpop.f32.mrb[11].mxu0  ;;  %v841_v19 = vadd.f32 %v840_v16, %v6700_v58  ;;  %v842_v20 = vpop.f32.mrb[11].mxu1 }
 0x11e   : > { %v682_v33 = vadd.f32 %v681_v62, %v6703_v21  ;;  %1262 = vmatprep.mubr.f32.mxu1 %v1067_v13  ;;  %v843_v24 = vadd.f32 %v842_v20, %v6706_v59  ;;  %1407 = vmatprep.mubr.f32.mxu0 %v1069_v15 }
 0x11f   : > { %v1070_v22 = vmul.f32 %v680_v56, %v6295_v2  ;;  %1263 = vmatmul.mubr.f32.gmra.mrb[56].mxu1 %v1066_v42  ;;  %1408 = vmatmul.mubr.f32.gmra.mrb[56].mxu0 %v1068_v18  ;;  %v1072_v26 = vmul.f32 %v841_v19, %v6295_v2 }
 0x120   : > { %v1071_v40 = vmul.f32 %v682_v33, %v6295_v2  ;;  %v685_v25 = vpop.f32.mrb[12].mxu0  ;;  %v1073_v47 = vmul.f32 %v843_v24, %v6295_v2  ;;  %v846_v27 = vpop.f32.mrb[12].mxu1 }
 0x121   : > { %v686_v61 = vadd.f32 %v685_v25, %v6697_v29  ;;  %v687_v39 = vpop.f32.mrb[13].mxu0  ;;  %v847_v3 = vadd.f32 %v846_v27, %v6700_v58  ;;  %v848_v43 = vpop.f32.mrb[13].mxu1 }
 0x122   : > { %v688_v41 = vadd.f32 %v687_v39, %v6703_v21  ;;  %1267 = vmatprep.mubr.f32.mxu1 %v1071_v40  ;;  %v849_v44 = vadd.f32 %v848_v43, %v6706_v59  ;;  %1412 = vmatprep.mubr.f32.mxu0 %v1073_v47 }
 0x123   : > { %v1074_v35 = vmul.f32 %v686_v61, %v6315_v7  ;;  %1268 = vmatmul.mubr.f32.gmra.mrb[58].mxu1 %v1070_v22  ;;  %1413 = vmatmul.mubr.f32.gmra.mrb[58].mxu0 %v1072_v26  ;;  %v1076_v53 = vmul.f32 %v847_v3, %v6315_v7 }
 0x124   : > { %v1075_v45 = vmul.f32 %v688_v41, %v6315_v7  ;;  %v691_v46 = vpop.f32.mrb[14].mxu0  ;;  %v1077_v48 = vmul.f32 %v849_v44, %v6315_v7  ;;  %v852_v8 = vpop.f32.mrb[14].mxu1 }
 0x125   : > { %v692_v2 = vadd.f32 %v691_v46, %v6697_v29  ;;  %v693_v37 = vpop.f32.mrb[15].mxu0  ;;  %v853_v52 = vadd.f32 %v852_v8, %v6700_v58  ;;  %v854_v60 = vpop.f32.mrb[15].mxu1 }
 0x126   : > { %v694_v55 = vadd.f32 %v693_v37, %v6703_v21  ;;  %1272 = vmatprep.mubr.f32.mxu1 %v1075_v45  ;;  %v855_v0 = vadd.f32 %v854_v60, %v6706_v59  ;;  %1417 = vmatprep.mubr.f32.mxu0 %v1077_v48 }
 0x127   : > { %v1078_v63 = vmul.f32 %v692_v2, %v6335_v12  ;;  %1273 = vmatmul.mubr.f32.gmra.mrb[60].mxu1 %v1074_v35  ;;  %1418 = vmatmul.mubr.f32.gmra.mrb[60].mxu0 %v1076_v53  ;;  %v1080_v6 = vmul.f32 %v853_v52, %v6335_v12 }
 0x128   : > { %v1079_v1 = vmul.f32 %v694_v55, %v6335_v12  ;;  %v697_v4 = vpop.f32.mrb[16].mxu0  ;;  %v1081_v51 = vmul.f32 %v855_v0, %v6335_v12  ;;  %v858_v57 = vpop.f32.mrb[16].mxu1 }
 0x129   : > { %v698_v7 = vadd.f32 %v697_v4, %v6697_v29  ;;  %v699_v5 = vpop.f32.mrb[17].mxu0  ;;  %v859_v31 = vadd.f32 %v858_v57, %v6700_v58  ;;  %v860_v10 = vpop.f32.mrb[17].mxu1 }
 0x12a   : > { %v700_v9 = vadd.f32 %v699_v5, %v6703_v21  ;;  %1277 = vmatprep.mubr.f32.mxu1 %v1079_v1  ;;  %v861_v11 = vadd.f32 %v860_v10, %v6706_v59  ;;  %1422 = vmatprep.mubr.f32.mxu0 %v1081_v51 }
 0x12b   : > { %v1082_v42 = vmul.f32 %v698_v7, %v6355_v17  ;;  %1278 = vmatmul.mubr.f32.gmra.mrb[62].mxu1 %v1078_v63  ;;  %1423 = vmatmul.mubr.f32.gmra.mrb[62].mxu0 %v1080_v6  ;;  %v1084_v62 = vmul.f32 %v859_v31, %v6355_v17 }
 0x12c   : > { %v1083_v13 = vmul.f32 %v700_v9, %v6355_v17  ;;  %v703_v14 = vpop.f32.mrb[18].mxu0  ;;  %v1085_v15 = vmul.f32 %v861_v11, %v6355_v17  ;;  %v864_v56 = vpop.f32.mrb[18].mxu1 }
 0x12d   : > { %v704_v12 = vadd.f32 %v703_v14, %v6697_v29  ;;  %v705_v16 = vpop.f32.mrb[19].mxu0  ;;  %v865_v18 = vadd.f32 %v864_v56, %v6700_v58  ;;  %v866_v33 = vpop.f32.mrb[19].mxu1 }
 0x12e   : > { %v706_v19 = vadd.f32 %v705_v16, %v6703_v21  ;;  %1282 = vmatprep.mubr.f32.mxu1 %v1083_v13  ;;  %v867_v22 = vadd.f32 %v866_v33, %v6706_v59  ;;  %1427 = vmatprep.mubr.f32.mxu0 %v1085_v15 }
 0x12f   : > { %v1086_v20 = vmul.f32 %v704_v12, %v6371_v23  ;;  %1283 = vmatmul.mubr.f32.gmra.mrb[64].mxu1 %v1082_v42  ;;  %1428 = vmatmul.mubr.f32.gmra.mrb[64].mxu0 %v1084_v62  ;;  %v1088_v27 = vmul.f32 %v865_v18, %v6371_v23 }
 0x130   : > { %v1087_v24 = vmul.f32 %v706_v19, %v6371_v23  ;;  %v709_v40 = vpop.f32.mrb[20].mxu0  ;;  %v1089_v25 = vmul.f32 %v867_v22, %v6371_v23  ;;  %v870_v47 = vpop.f32.mrb[20].mxu1 }
 0x131   : > { %v710_v17 = vadd.f32 %v709_v40, %v6697_v29  ;;  %v711_v61 = vpop.f32.mrb[21].mxu0  ;;  %v871_v39 = vadd.f32 %v870_v47, %v6700_v58  ;;  %v872_v3 = vpop.f32.mrb[21].mxu1 }
 0x132   : > { %v712_v26 = vadd.f32 %v711_v61, %v6703_v21  ;;  %1287 = vmatprep.mubr.f32.mxu1 %v1087_v24  ;;  %v873_v43 = vadd.f32 %v872_v3, %v6706_v59  ;;  %1432 = vmatprep.mubr.f32.mxu0 %v1089_v25  ;;  %v527_v24 = vsub.s32 4, %v6685_v50 }
 0x133   : > { %v1090_v41 = vmul.f32 %v710_v17, %v6389_v28  ;;  %1288 = vmatmul.mubr.f32.gmra.mrb[66].mxu1 %v1086_v20  ;;  %1433 = vmatmul.mubr.f32.gmra.mrb[66].mxu0 %v1088_v27  ;;  %v1092_v2 = vmul.f32 %v871_v39, %v6389_v28 }
 0x134   : > { %v1091_v35 = vmul.f32 %v712_v26, %v6389_v28  ;;  %v715_v44 = vpop.f32.mrb[22].mxu0  ;;  %v1093_v45 = vmul.f32 %v873_v43, %v6389_v28  ;;  %v876_v46 = vpop.f32.mrb[22].mxu1  ;;  %v6830_v43 = vrot.slane %v6693_v54, %v527_v24 }
 0x135   : > { %v716_v23 = vadd.f32 %v715_v44, %v6697_v29  ;;  %v717_v48 = vpop.f32.mrb[23].mxu0  ;;  %v877_v8 = vadd.f32 %v876_v46, %v6700_v58  ;;  %v878_v53 = vpop.f32.mrb[23].mxu1 }
 0x136   : > { %v718_v37 = vadd.f32 %v717_v48, %v6703_v21  ;;  %1292 = vmatprep.mubr.f32.mxu1 %v1091_v35  ;;  %v879_v55 = vadd.f32 %v878_v53, %v6706_v59  ;;  %1437 = vmatprep.mubr.f32.mxu0 %v1093_v45 }
 0x137   : > { %v1094_v52 = vmul.f32 %v716_v23, %v6401_v30  ;;  %1293 = vmatmul.mubr.f32.gmra.mrb[68].mxu1 %v1090_v41  ;;  %1438 = vmatmul.mubr.f32.gmra.mrb[68].mxu0 %v1092_v2  ;;  %v1096_v51 = vmul.f32 %v877_v8, %v6401_v30 }
 0x138   : > { %v1095_v60 = vmul.f32 %v718_v37, %v6401_v30  ;;  %v721_v63 = vpop.f32.mrb[24].mxu0  ;;  %v1097_v0 = vmul.f32 %v879_v55, %v6401_v30  ;;  %v882_v1 = vpop.f32.mrb[24].mxu1 }
 0x139   : > { %v722_v28 = vadd.f32 %v721_v63, %v6697_v29  ;;  %v723_v4 = vpop.f32.mrb[25].mxu0  ;;  %v883_v7 = vadd.f32 %v882_v1, %v6700_v58  ;;  %v884_v5 = vpop.f32.mrb[25].mxu1 }
 0x13a   : > { %v724_v57 = vadd.f32 %v723_v4, %v6703_v21  ;;  %1297 = vmatprep.mubr.f32.mxu1 %v1095_v60  ;;  %v885_v31 = vadd.f32 %v884_v5, %v6706_v59  ;;  %1442 = vmatprep.mubr.f32.mxu0 %v1097_v0  ;;  %v10419_v0 = vmov 33  }
 0x13b   : > { %v1098_v6 = vmul.f32 %v722_v28, %v6413_v32  ;;  %1298 = vmatmul.mubr.f32.gmra.mrb[70].mxu1 %v1094_v52  ;;  %1443 = vmatmul.mubr.f32.gmra.mrb[70].mxu0 %v1096_v51  ;;  %v1100_v14 = vmul.f32 %v883_v7, %v6413_v32 }
 0x13c   : > { %v1099_v9 = vmul.f32 %v724_v57, %v6413_v32  ;;  %v727_v10 = vpop.f32.mrb[26].mxu0  ;;  %v1101_v42 = vmul.f32 %v885_v31, %v6413_v32  ;;  %v888_v11 = vpop.f32.mrb[26].mxu1 }
 0x13d   : > { %v728_v30 = vadd.f32 %v727_v10, %v6697_v29  ;;  %v729_v13 = vpop.f32.mrb[27].mxu0  ;;  %v889_v15 = vadd.f32 %v888_v11, %v6700_v58  ;;  %v890_v56 = vpop.f32.mrb[27].mxu1 }
 0x13e   : > { %v730_v12 = vadd.f32 %v729_v13, %v6703_v21  ;;  %1302 = vmatprep.mubr.f32.mxu1 %v1099_v9  ;;  %v891_v62 = vadd.f32 %v890_v56, %v6706_v59  ;;  %1447 = vmatprep.mubr.f32.mxu0 %v1101_v42 }
 0x13f   : > { %v1102_v16 = vmul.f32 %v728_v30, %v6425_v34  ;;  %1303 = vmatmul.mubr.f32.gmra.mrb[72].mxu1 %v1098_v6  ;;  %1448 = vmatmul.mubr.f32.gmra.mrb[72].mxu0 %v1100_v14  ;;  %v1104_v40 = vmul.f32 %v889_v15, %v6425_v34  ;;  %v10418_v6 = vmov 34  }
 0x140   : > { %v1103_v18 = vmul.f32 %v730_v12, %v6425_v34  ;;  %v733_v19 = vpop.f32.mrb[28].mxu0  ;;  %v1105_v33 = vmul.f32 %v891_v62, %v6425_v34  ;;  %v894_v20 = vpop.f32.mrb[28].mxu1 }
 0x141   : > { %v734_v32 = vadd.f32 %v733_v19, %v6697_v29  ;;  %v735_v22 = vpop.f32.mrb[29].mxu0  ;;  %v895_v25 = vadd.f32 %v894_v20, %v6700_v58  ;;  %v896_v47 = vpop.f32.mrb[29].mxu1 }
 0x142   : > { %v736_v17 = vadd.f32 %v735_v22, %v6703_v21  ;;  %1307 = vmatprep.mubr.f32.mxu1 %v1103_v18  ;;  %v897_v27 = vadd.f32 %v896_v47, %v6706_v59  ;;  %1452 = vmatprep.mubr.f32.mxu0 %v1105_v33 }
 0x143   : > { %v1106_v61 = vmul.f32 %v734_v32, %v6437_v36  ;;  %1308 = vmatmul.mubr.f32.gmra.mrb[74].mxu1 %v1102_v16  ;;  %1453 = vmatmul.mubr.f32.gmra.mrb[74].mxu0 %v1104_v40  ;;  %v1108_v35 = vmul.f32 %v895_v25, %v6437_v36 }
 0x144   : > { %v1107_v39 = vmul.f32 %v736_v17, %v6437_v36  ;;  %v739_v26 = vpop.f32.mrb[30].mxu0  ;;  %v1109_v50 = vmul.f32 %v897_v27, %v6437_v36  ;;  %v900_v3 = vpop.f32.mrb[30].mxu1 }
 0x145   : > { %v740_v34 = vadd.f32 %v739_v26, %v6697_v29  ;;  %v741_v41 = vpop.f32.mrb[31].mxu0  ;;  %v901_v44 = vadd.f32 %v900_v3, %v6700_v58  ;;  %v902_v23 = vpop.f32.mrb[31].mxu1  ;;  %v6918_v3 = vld [vmem:[%s10415_s6] ss:$0 sm:$0xff] }
 0x146   : > { %v742_v45 = vadd.f32 %v741_v41, %v6703_v21  ;;  %1312 = vmatprep.mubr.f32.mxu1 %v1107_v39  ;;  %v903_v46 = vadd.f32 %v902_v23, %v6706_v59  ;;  %1457 = vmatprep.mubr.f32.mxu0 %v1109_v50 }
 0x147   : > { %1313 = vmatmul.mubr.f32.gmra.mrb[76].mxu1 %v1106_v61  ;;  %1458 = vmatmul.mubr.f32.gmra.mrb[76].mxu0 %v1108_v35  ;;  %v1110_v2 = vmul.f32 %v740_v34, %v6449_v38  ;;  %v1112_v21 = vmul.f32 %v901_v44, %v6449_v38 }
 0x148   : > { %v1111_v48 = vmul.f32 %v742_v45, %v6449_v38  ;;  %v971_v29 = vpop.f32.mrb[32].mxu0  ;;  %v1113_v54 = vmul.f32 %v903_v46, %v6449_v38  ;;  %v1011_v58 = vpop.f32.mrb[32].mxu1 }
 0x149   : > { %v6840_v36 = vadd.f32 %v971_v29, %v6830_v43  ;;  %v973_v8 = vpop.f32.mrb[33].mxu0  ;;  %v6844_v37 = vadd.f32 %v1011_v58, %v6830_v43  ;;  %v1013_v59 = vpop.f32.mrb[33].mxu1 }
 0x14a   : > { %1317 = vmatprep.mubr.f32.mxu1 %v1111_v48  ;;  %1462 = vmatprep.mubr.f32.mxu0 %v1113_v54 }
 0x14b   : > { %10546 = vst [vmem:[#allocation3_spill] sm:$0xff] %v6840_v36  ;;  %10547 = vst [vmem:[#allocation4_spill] sm:$0xff] %v6844_v37  ;;  %1597 = vperm.xlu0 %5416, %v6840_v36   ;;  %1637 = vperm.xlu1 %5417, %v6844_v37   ;;  %v1484_v34 = vmax.f32 %v6840_v36, 0.0 }
 0x14c   : > { %1463 = vmatmul.mubr.f32.gmra.mrb[78].mxu0 %v1112_v21  ;;  %v976_v53 = vpop.f32.mrb[34].mxu0  ;;  %1318 = vmatmul.mubr.f32.gmra.mrb[78].mxu1 %v1110_v2  ;;  %v1016_v52 = vpop.f32.mrb[34].mxu1 }
 0x14d   : > { %v6849_v55 = vadd.f32 %v976_v53, %v6830_v43  ;;  %v978_v60 = vpop.f32.mrb[35].mxu0  ;;  %v6852_v38 = vadd.f32 %v1016_v52, %v6830_v43  ;;  %v1018_v63 = vpop.f32.mrb[35].mxu1  ;;  %v1507_v41 = vmul.f32 %v6918_v3, %v1484_v34 }
 0x14f   : > { %10548 = vst [vmem:[#allocation5_spill] sm:$0xff] %v6849_v55  ;;  %10549 = vst [vmem:[#allocation6_spill] sm:$0xff] %v6852_v38  ;;  %5418 = vset.pattern.permute.xlu0 %v10419_v0  ;;  %5419 = vset.pattern.permute.xlu1 %v10419_v0  ;;  %v1524_v35 = vsel %vm1523_vm1, %v1507_v41, 0.0  ;;  %v1493_v23 = vmax.f32 %v6852_v38, 0.0  ;;  %v1485_v29 = vmax.f32 %v6849_v55, 0.0 }
 0x150   : > { %2188 = vperm.xlu0 %5418, %v6840_v36   ;;  %v981_v28 = vpop.f32.mrb[36].mxu0  ;;  %2220 = vperm.xlu1 %5419, %v6844_v37   ;;  %v1021_v51 = vpop.f32.mrb[36].mxu1 }
 0x151   : > { %v6859_v1 = vadd.f32 %v981_v28, %v6830_v43  ;;  %v983_v4 = vpop.f32.mrb[37].mxu0  ;;  %v6862_v7 = vadd.f32 %v1021_v51, %v6830_v43  ;;  %v1023_v57 = vpop.f32.mrb[37].mxu1  ;;  %v1516_v46 = vmul.f32 %v6918_v3, %v1493_v23  ;;  %v1508_v2 = vmul.f32 %v6918_v3, %v1485_v29 }
 0x153   : > { %10550 = vst [vmem:[#allocation7_spill] sm:$0xff] %v6859_v1  ;;  %10551 = vst [vmem:[#allocation8_spill] sm:$0xff] %v6862_v7  ;;  %v1551_v48 = vsel %vm1523_vm1, %v1516_v46, 0.0  ;;  %v1527_v54 = vsel %vm1523_vm1, %v1508_v2, 0.0  ;;  %v1486_v58 = vmax.f32 %v6859_v1, 0.0 }
 0x154   : > { %5422 = vset.pattern.permute.xlu0 %v5895_v49  ;;  %v986_v5 = vpop.f32.mrb[38].mxu0  ;;  %5420 = vset.pattern.permute.xlu1 %v10418_v6  ;;  %v1026_v10 = vpop.f32.mrb[38].mxu1 }
 0x155   : > { %1642 = vperm.xlu0 %5422, %v6852_v38   ;;  %v6868_v31 = vadd.f32 %v986_v5, %v6830_v43  ;;  %v988_v9 = vpop.f32.mrb[39].mxu0  ;;  %2940 = vperm.xlu1 %5420, %v6840_v36   ;;  %v6872_v42 = vadd.f32 %v1026_v10, %v6830_v43  ;;  %v1028_v30 = vpop.f32.mrb[39].mxu1  ;;  %v1509_v21 = vmul.f32 %v6918_v3, %v1486_v58 }
 0x156   : > { %v1494_v30 = vmax.f32 %v6862_v7, 0.0 }
 0x157   : > { %10552 = vst [vmem:[#allocation9_spill] sm:$0xff] %v6868_v31  ;;  %10553 = vst [vmem:[#allocation10_spill] sm:$0xff] %v6872_v42  ;;  %v1530_v28 = vsel %vm1523_vm1, %v1509_v21, 0.0 }
 0x158   : > { %v991_v11 = vpop.f32.mrb[40].mxu0  ;;  %v1031_v13 = vpop.f32.mrb[40].mxu1 }
 0x159   : > { %5424 = vset.pattern.permute.xlu0 %v10419_v0  ;;  %2972 = vperm.xlu1 %5420, %v6844_v37   ;;  %v6878_v14 = vadd.f32 %v991_v11, %v6830_v43  ;;  %v6881_v15 = vadd.f32 %v1031_v13, %v6830_v43  ;;  %v993_v12 = vpop.f32.mrb[41].mxu0  ;;  %v1033_v56 = vpop.f32.mrb[41].mxu1 }
 0x15a   : > { %2224 = vperm.xlu0 %5424, %v6852_v38  }
 0x15b   : > { %10554 = vst [vmem:[#allocation11_spill] sm:$0xff] %v6878_v14  ;;  %10555 = vst [vmem:[#allocation12_spill] sm:$0xff] %v6881_v15 }
 0x15c   : > { %v996_v16 = vpop.f32.mrb[42].mxu0  ;;  %v1036_v18 = vpop.f32.mrb[42].mxu1 }
 0x15d   : > { %v6884_v62 = vadd.f32 %v996_v16, %v6830_v43  ;;  %v998_v19 = vpop.f32.mrb[43].mxu0  ;;  %5421 = vset.pattern.permute.xlu1 %v5895_v49  ;;  %v6889_v33 = vadd.f32 %v1036_v18, %v6830_v43  ;;  %v1038_v32 = vpop.f32.mrb[43].mxu1 }
 0x15e   : > { %5425 = vset.pattern.permute.xlu0 %v10418_v6  ;;  %1602 = vperm.xlu1 %5421, %v6849_v55   ;;  %v1517_v32 = vmul.f32 %v6918_v3, %v1494_v30 }
 0x15f   : > { %10556 = vst [vmem:[#allocation13_spill] sm:$0xff] %v6884_v62  ;;  %10557 = vst [vmem:[#allocation14_spill] sm:$0xff] %v6889_v33  ;;  %2944 = vperm.xlu0 %5425, %v6849_v55  }
 0x160   : > { %v1001_v20 = vpop.f32.mrb[44].mxu0  ;;  %v1041_v24 = vpop.f32.mrb[44].mxu1 }
 0x161   : > { %v6894_v22 = vadd.f32 %v1001_v20, %v6830_v43  ;;  %v1003_v40 = vpop.f32.mrb[45].mxu0  ;;  %v6897_v25 = vadd.f32 %v1041_v24, %v6830_v43  ;;  %v1043_v17 = vpop.f32.mrb[45].mxu1 }
 0x162   : > { %5423 = vset.pattern.permute.xlu1 %v10419_v0 }
 0x163   : > { %10558 = vst [vmem:[#allocation15_spill] sm:$0xff] %v6894_v22  ;;  %10559 = vst [vmem:[#allocation16_spill] sm:$0xff] %v6897_v25  ;;  %2192 = vperm.xlu1 %5423, %v6849_v55  }
 0x164   : > { %v1006_v47 = vpop.f32.mrb[46].mxu0  ;;  %v1046_v27 = vpop.f32.mrb[46].mxu1 }
 0x165   : > { %v6902_v61 = vadd.f32 %v1006_v47, %v6830_v43  ;;  %v1008_v39 = vpop.f32.mrb[47].mxu0  ;;  %v6905_v26 = vadd.f32 %v1046_v27, %v6830_v43  ;;  %v1048_v50 = vpop.f32.mrb[47].mxu1  ;;  %v1492_v43 = vmax.f32 %v6844_v37, 0.0  ;;  %v7173_v37 = vld [vmem:[%s7078_s27 + $0x28] sm:$0xff] }
 0x166   : > { %v1554_v50 = vsel %vm1523_vm1, %v1517_v32, 0.0 }
 0x167   : > { %10560 = vst [vmem:[#allocation17_spill] sm:$0xff] %v6902_v61  ;;  %10561 = vst [vmem:[#allocation18_spill] sm:$0xff] %v6905_v26  ;;  %5426 = vset.pattern.permute.xlu1 %v10418_v6  ;;  %v1515_v44 = vmul.f32 %v6918_v3, %v1492_v43 }
 0x168   : > { %2976 = vperm.xlu1 %5426, %v6852_v38   ;;  %v7159_v38 = vld [vmem:[%s7078_s27 + $0x60] sm:$0xff] }
 0x169   : > { %v1548_v45 = vsel %vm1523_vm1, %v1515_v44, 0.0 }
 0x16c   : > { %5427 = vset.pattern.permute.xlu1 %v5895_v49 }
 0x16d   : > { %1607 = vperm.xlu1 %5427, %v6859_v1  }
 0x171   : > { %1647 = vperm.xlu1 %5427, %v6862_v7  }
 0x175   : > { %5428 = vset.pattern.permute.xlu1 %v10419_v0 }
 0x176   : > { %2196 = vperm.xlu1 %5428, %v6859_v1  }
 0x17a   : > { %2228 = vperm.xlu1 %5428, %v6862_v7  }
 0x17e   : > { %1525 = vadd.xlane.f32.xlu0 %v1524_v35  ;;  %5429 = vset.pattern.permute.xlu1 %v10418_v6 }
 0x17f   : > { %2948 = vperm.xlu1 %5429, %v6859_v1  }
 0x182   : > { %1549 = vadd.xlane.f32.xlu0 %v1548_v45 }
 0x183   : > { %5430 = vset.pattern.permute.xlu1 %v5895_v49 }
 0x198   : > { %2980 = vperm.xlu0 %5425, %v6862_v7   ;;  %v7152_v7 = vld [vmem:[%s7078_s27 + $0x20] sm:$0xff] }
 0x19c   : > { %5431 = vset.pattern.permute.xlu0 %v5895_v49 }
 0x1a3   : > { %1552 = vadd.xlane.f32.xlu1 %v1551_v48 }
 0x1b4   : > { %1612 = vperm.xlu1 %5430, %v6868_v31  }
 0x1b7   : > { %1528 = vadd.xlane.f32.xlu0 %v1527_v54 }
 0x1b8   : > { %5432 = vset.pattern.permute.xlu1 %v10419_v0 }
 0x1b9   : > { %2200 = vperm.xlu1 %5432, %v6868_v31  }
 0x1bd   : > { %5434 = vset.pattern.permute.xlu1 %v10418_v6 }
 0x1be   : > { %2952 = vperm.xlu1 %5434, %v6868_v31  }
 0x1c2   : > { %2984 = vperm.xlu1 %5434, %v6872_v42  }
 0x1c6   : > { %5435 = vset.pattern.permute.xlu1 %v5895_v49 }
 0x1cd   : > { %1652 = vperm.xlu0 %5431, %v6872_v42  }
 0x1d1   : > { %5433 = vset.pattern.permute.xlu0 %v10419_v0 }
 0x1d2   : > { %2232 = vperm.xlu0 %5433, %v6872_v42  }
 0x1d6   : > { %5438 = vset.pattern.permute.xlu0 %v10418_v6 }
 0x1e2   : > { %v5095_v8 = vpop.f32.mrb[48].mxu1  ;;  %v5175_v59 = vpop.f32.mrb[48].mxu0 }
 0x1e3   : > { %v5096_v53 = vpop.f32.mrb[49].mxu1  ;;  %v5176_v52 = vpop.f32.mrb[49].mxu0 }
 0x1e4   : > { %v5097_v60 = vadd.f32 %v5096_v53, %v5095_v8  ;;  %v5177_v63 = vadd.f32 %v5176_v52, %v5175_v59 }
 0x1e6   : > { %v5098_v4 = vpop.f32.mrb[50].mxu1  ;;  %v6951_v51 = vadd.f32 %v5177_v63, %v5097_v60  ;;  %v5178_v57 = vpop.f32.mrb[50].mxu0  ;;  %1531 = vadd.xlane.f32.xlu1 %v1530_v28 }
 0x1e7   : > { %v5099_v5 = vpop.f32.mrb[51].mxu1  ;;  %v5179_v10 = vpop.f32.mrb[51].mxu0 }
 0x1e8   : > { %10562 = vst [vmem:[#allocation19_spill] sm:$0xff] %v6951_v51  ;;  %v5100_v9 = vadd.f32 %v5099_v5, %v5098_v4  ;;  %v5180_v11 = vadd.f32 %v5179_v10, %v5178_v57 }
 0x1ea   : > { %v5101_v13 = vpop.f32.mrb[52].mxu1  ;;  %v6954_v12 = vadd.f32 %v5180_v11, %v5100_v9  ;;  %v5181_v56 = vpop.f32.mrb[52].mxu0 }
 0x1eb   : > { %v5102_v16 = vpop.f32.mrb[53].mxu1  ;;  %v5182_v19 = vpop.f32.mrb[53].mxu0 }
 0x1ec   : > { %10563 = vst [vmem:[#allocation20_spill] sm:$0xff] %v6954_v12  ;;  %v5103_v18 = vadd.f32 %v5102_v16, %v5101_v13  ;;  %v5183_v20 = vadd.f32 %v5182_v19, %v5181_v56 }
 0x1ee   : > { %v5104_v24 = vpop.f32.mrb[54].mxu1  ;;  %v6957_v40 = vadd.f32 %v5183_v20, %v5103_v18  ;;  %v5184_v17 = vpop.f32.mrb[54].mxu0 }
 0x1ef   : > { %v5105_v47 = vpop.f32.mrb[55].mxu1  ;;  %v5185_v39 = vpop.f32.mrb[55].mxu0 }
 0x1f0   : > { %10564 = vst [vmem:[#allocation21_spill] sm:$0xff] %v6957_v40  ;;  %v5106_v27 = vadd.f32 %v5105_v47, %v5104_v24  ;;  %v5186_v34 = vadd.f32 %v5185_v39, %v5184_v17 }
 0x1f1   : > { %1555 = vadd.xlane.f32.xlu0 %v1554_v50 }
 0x1f2   : > { %v5107_v41 = vpop.f32.mrb[56].mxu1  ;;  %v6960_v43 = vadd.f32 %v5186_v34, %v5106_v27  ;;  %v5187_v35 = vpop.f32.mrb[56].mxu0 }
 0x1f3   : > { %v5108_v44 = vpop.f32.mrb[57].mxu1  ;;  %v5188_v23 = vpop.f32.mrb[57].mxu0 }
 0x1f4   : > { %10565 = vst [vmem:[#allocation22_spill] sm:$0xff] %v6960_v43  ;;  %v5109_v45 = vadd.f32 %v5108_v44, %v5107_v41  ;;  %v5189_v46 = vadd.f32 %v5188_v23, %v5187_v35 }
 0x1f6   : > { %v5110_v48 = vpop.f32.mrb[58].mxu1  ;;  %v6962_v29 = vadd.f32 %v5189_v46, %v5109_v45  ;;  %v5190_v2 = vpop.f32.mrb[58].mxu0 }
 0x1f7   : > { %v5111_v54 = vpop.f32.mrb[59].mxu1  ;;  %v5191_v58 = vpop.f32.mrb[59].mxu0  ;;  %1617 = vperm.xlu1 %5435, %v6878_v14  }
 0x1f8   : > { %10566 = vst [vmem:[#allocation23_spill] sm:$0xff] %v6962_v29  ;;  %v5112_v8 = vadd.f32 %v5111_v54, %v5110_v48  ;;  %v5192_v21 = vadd.f32 %v5191_v58, %v5190_v2 }
 0x1fa   : > { %v5113_v59 = vpop.f32.mrb[60].mxu1  ;;  %v6965_v53 = vadd.f32 %v5192_v21, %v5112_v8  ;;  %v5193_v52 = vpop.f32.mrb[60].mxu0 }
 0x1fb   : > { %v5114_v60 = vpop.f32.mrb[61].mxu1  ;;  %v5194_v63 = vpop.f32.mrb[61].mxu0  ;;  %1657 = vperm.xlu1 %5435, %v6881_v15  }
 0x1fc   : > { %10567 = vst [vmem:[#allocation24_spill] sm:$0xff] %v6965_v53  ;;  %v5115_v28 = vadd.f32 %v5114_v60, %v5113_v59  ;;  %v5195_v4 = vadd.f32 %v5194_v63, %v5193_v52 }
 0x1fe   : > { %v5116_v57 = vpop.f32.mrb[62].mxu1  ;;  %v6968_v5 = vadd.f32 %v5195_v4, %v5115_v28  ;;  %v5196_v9 = vpop.f32.mrb[62].mxu0 }
 0x1ff   : > { %v5197_v10 = vpop.f32.mrb[63].mxu0  ;;  %5436 = vset.pattern.permute.xlu1 %v10419_v0  ;;  %v5117_v30 = vpop.f32.mrb[63].mxu1 }
 0x200   : > { %10568 = vst [vmem:[#allocation25_spill] sm:$0xff] %v6968_v5  ;;  %v5198_v11 = vadd.f32 %v5197_v10, %v5196_v9  ;;  %v5118_v13 = vadd.f32 %v5117_v30, %v5116_v57  ;;  %2204 = vperm.xlu1 %5436, %v6878_v14  }
 0x202   : > { %v5119_v56 = vpop.f32.mrb[64].mxu1  ;;  %v6972_v16 = vadd.f32 %v5198_v11, %v5118_v13  ;;  %v5199_v18 = vpop.f32.mrb[64].mxu0 }
 0x203   : > { %v5120_v19 = vpop.f32.mrb[65].mxu1  ;;  %v5200_v20 = vpop.f32.mrb[65].mxu0 }
 0x204   : > { %10569 = vst [vmem:[#allocation26_spill] sm:$0xff] %v6972_v16  ;;  %v5121_v32 = vadd.f32 %v5120_v19, %v5119_v56  ;;  %v5201_v24 = vadd.f32 %v5200_v20, %v5199_v18  ;;  %2236 = vperm.xlu1 %5436, %v6881_v15  }
 0x206   : > { %v5122_v17 = vpop.f32.mrb[66].mxu1  ;;  %v6975_v47 = vadd.f32 %v5201_v24, %v5121_v32  ;;  %v5202_v27 = vpop.f32.mrb[66].mxu0 }
 0x207   : > { %2988 = vperm.xlu0 %5438, %v6881_v15   ;;  %v5123_v39 = vpop.f32.mrb[67].mxu1  ;;  %v5203_v50 = vpop.f32.mrb[67].mxu0 }
 0x208   : > { %10570 = vst [vmem:[#allocation27_spill] sm:$0xff] %v6975_v47  ;;  %v5124_v34 = vadd.f32 %v5123_v39, %v5122_v17  ;;  %v5204_v41 = vadd.f32 %v5203_v50, %v5202_v27  ;;  %5437 = vset.pattern.permute.xlu1 %v10418_v6 }
 0x209   : > { %2956 = vperm.xlu1 %5437, %v6878_v14  }
 0x20a   : > { %v5125_v35 = vpop.f32.mrb[68].mxu1  ;;  %v6980_v44 = vadd.f32 %v5204_v41, %v5124_v34  ;;  %v5205_v45 = vpop.f32.mrb[68].mxu0 }
 0x20b   : > { %5440 = vset.pattern.permute.xlu0 %v5895_v49  ;;  %v5206_v23 = vpop.f32.mrb[69].mxu0  ;;  %v5126_v46 = vpop.f32.mrb[69].mxu1 }
 0x20c   : > { %10571 = vst [vmem:[#allocation28_spill] sm:$0xff] %v6980_v44  ;;  %1662 = vperm.xlu0 %5440, %v6889_v33   ;;  %v5207_v48 = vadd.f32 %v5206_v23, %v5205_v45  ;;  %v5127_v2 = vadd.f32 %v5126_v46, %v5125_v35 }
 0x20d   : > { %5439 = vset.pattern.permute.xlu1 %v5895_v49 }
 0x20e   : > { %v5128_v54 = vpop.f32.mrb[70].mxu1  ;;  %v6985_v58 = vadd.f32 %v5207_v48, %v5127_v2  ;;  %v5208_v8 = vpop.f32.mrb[70].mxu0 }
 0x20f   : > { %v5209_v21 = vpop.f32.mrb[71].mxu0  ;;  %v5129_v59 = vpop.f32.mrb[71].mxu1 }
 0x210   : > { %10572 = vst [vmem:[#allocation29_spill] sm:$0xff] %v6985_v58  ;;  %5442 = vset.pattern.permute.xlu0 %v10419_v0  ;;  %v5210_v52 = vadd.f32 %v5209_v21, %v5208_v8  ;;  %v5130_v60 = vadd.f32 %v5129_v59, %v5128_v54  ;;  %v1487_v21 = vmax.f32 %v6868_v31, 0.0  ;;  %v1488_v59 = vmax.f32 %v6878_v14, 0.0 }
 0x211   : > { %2240 = vperm.xlu0 %5442, %v6889_v33   ;;  %v1499_v31 = vmax.f32 %v6905_v26, 0.0 }
 0x212   : > { %v5131_v63 = vpop.f32.mrb[72].mxu1  ;;  %v6989_v28 = vadd.f32 %v5210_v52, %v5130_v60  ;;  %v5211_v4 = vpop.f32.mrb[72].mxu0  ;;  %v1510_v60 = vmul.f32 %v6918_v3, %v1487_v21 }
 0x213   : > { %v5132_v57 = vpop.f32.mrb[73].mxu1  ;;  %v5212_v10 = vpop.f32.mrb[73].mxu0  ;;  %v1522_v36 = vmul.f32 %v6918_v3, %v1499_v31 }
 0x214   : > { %10573 = vst [vmem:[#allocation30_spill] sm:$0xff] %v6989_v28  ;;  %v5133_v9 = vadd.f32 %v5132_v57, %v5131_v63  ;;  %v5213_v30 = vadd.f32 %v5212_v10, %v5211_v4  ;;  %v7002_v52 = vpop.permute.xlu1 %1637  ;;  %v1495_v63 = vmax.f32 %v6872_v42, 0.0  ;;  %v1511_v4 = vmul.f32 %v6918_v3, %v1488_v59  ;;  %v7055_v21 = vpop.permute.xlu0 %1597  ;;  %v7144_v42 = vld [vmem:[%s7078_s27 + $0x58] sm:$0xff] }
 0x215   : > { %5447 = vset.pattern.permute.xlu0 %v10418_v6  ;;  %v1496_v57 = vmax.f32 %v6881_v15, 0.0 }
 0x216   : > { %v5134_v11 = vpop.f32.mrb[74].mxu1  ;;  %v6992_v13 = vadd.f32 %v5213_v30, %v5133_v9  ;;  %v5214_v56 = vpop.f32.mrb[74].mxu0  ;;  %v1533_v9 = vsel %vm1523_vm1, %v1510_v60, 0.0  ;;  %v1518_v10 = vmul.f32 %v6918_v3, %v1495_v63 }
 0x217   : > { %v5215_v18 = vpop.f32.mrb[75].mxu0  ;;  %v5135_v19 = vpop.f32.mrb[75].mxu1 }
 0x218   : > { %10574 = vst [vmem:[#allocation31_spill] sm:$0xff] %v6992_v13  ;;  %v5216_v32 = vadd.f32 %v5215_v18, %v5214_v56  ;;  %v5136_v20 = vadd.f32 %v5135_v19, %v5134_v11  ;;  %v7010_v30 = vpop.permute.xlu1 %2220  ;;  %v1536_v11 = vsel %vm1523_vm1, %v1511_v4, 0.0  ;;  %v1519_v56 = vmul.f32 %v6918_v3, %v1496_v57  ;;  %v7061_v4 = vpop.permute.xlu0 %2188 }
 0x219   : > { %v1557_v18 = vsel %vm1523_vm1, %v1518_v10, 0.0 }
 0x21a   : > { %v5137_v24 = vpop.f32.mrb[76].mxu1  ;;  %v6994_v17 = vadd.f32 %v5216_v32, %v5136_v20  ;;  %v5217_v27 = vpop.f32.mrb[76].mxu0  ;;  %v1560_v19 = vsel %vm1523_vm1, %v1519_v56, 0.0  ;;  %v1489_v56 = vmax.f32 %v6884_v62, 0.0 }
 0x21b   : > { %v5138_v39 = vpop.f32.mrb[77].mxu1  ;;  %v5218_v34 = vpop.f32.mrb[77].mxu0 }
 0x21c   : > { %10575 = vst [vmem:[#allocation32_spill] sm:$0xff] %v6994_v17  ;;  %v5139_v50 = vadd.f32 %v5138_v39, %v5137_v24  ;;  %v5219_v41 = vadd.f32 %v5218_v34, %v5217_v27  ;;  %v2941_v32 = vpop.permute.xlu1 %2940 }
 0x21e   : > { %v6996_v35 = vadd.f32 %v5219_v41, %v5139_v50 }
 0x21f   : > { %v5220_v45 = vpop.f32.mrb[78].mxu0  ;;  %v5140_v23 = vpop.f32.mrb[78].mxu1 }
 0x220   : > { %10576 = vst [vmem:[#allocation33_spill] sm:$0xff] %v6996_v35  ;;  %v5221_v46 = vpop.f32.mrb[79].mxu0  ;;  %v5141_v48 = vpop.f32.mrb[79].mxu1 }
 0x221   : > { %v5222_v2 = vadd.f32 %v5221_v46, %v5220_v45  ;;  %v5142_v54 = vadd.f32 %v5141_v48, %v5140_v23  ;;  %v2973_v20 = vpop.permute.xlu1 %2972  ;;  %v1490_v46 = vmax.f32 %v6894_v22, 0.0 }
 0x223   : > { %v6998_v8 = vadd.f32 %v5222_v2, %v5142_v54  ;;  %v1513_v2 = vmul.f32 %v6918_v3, %v1490_v46  ;;  %v1498_v54 = vmax.f32 %v6897_v25, 0.0  ;;  %v1497_v46 = vmax.f32 %v6889_v33, 0.0 }
 0x225   : > { %10577 = vst [vmem:[#allocation34_spill] sm:$0xff] %v6998_v8  ;;  %v7016_v24 = vpop.permute.xlu1 %1602  ;;  %v1542_v59 = vsel %vm1523_vm1, %v1513_v2, 0.0  ;;  %v1521_v60 = vmul.f32 %v6918_v3, %v1498_v54  ;;  %v7083_v2 = vld [vmem:[%s7078_s27] sm:$0xff] }
 0x229   : > { %v7019_v27 = vpop.permute.xlu1 %2192 }
 0x22d   : > { %1534 = vadd.xlane.f32.xlu1 %v1533_v9  ;;  %v7024_v39 = vpop.permute.xlu1 %2976  ;;  %v7064_v9 = vpop.permute.xlu0 %1642 }
 0x230   : > { %1537 = vadd.xlane.f32.xlu0 %v1536_v11 }
 0x231   : > { %1558 = vadd.xlane.f32.xlu1 %v1557_v18  ;;  %v7031_v50 = vpop.permute.xlu1 %1607  ;;  %v2225_v11 = vpop.permute.xlu0 %2224 }
 0x234   : > { %1561 = vadd.xlane.f32.xlu0 %v1560_v19  ;;  %v1512_v19 = vmul.f32 %v6918_v3, %v1489_v56  ;;  %v7096_v56 = vld [vmem:[%s7078_s27 + $0x40] sm:$0xff] }
 0x235   : > { %v7037_v34 = vpop.permute.xlu1 %1647  ;;  %v7085_v54 = vpop.permute.xlu0 %2944 }
 0x239   : > { %v7040_v41 = vpop.permute.xlu1 %2196 }
 0x23d   : > { %v7045_v45 = vpop.permute.xlu1 %2228 }
 0x241   : > { %v2949_v23 = vpop.permute.xlu1 %2948 }
 0x242   : > { %1622 = vperm.xlu1 %5439, %v6884_v62  }
 0x245   : > { %v7051_v48 = vpop.xlane.xlu1 %1552 }
 0x246   : > { %5441 = vset.pattern.permute.xlu1 %v10419_v0  ;;  %10578 = vst [vmem:[#allocation35_spill] sm:$0xff] %v7051_v48  ;;  %v3011_v48 = vmul.f32 %v2973_v20, %v7096_v56 }
 0x247   : > { %2208 = vperm.xlu1 %5441, %v6884_v62  }
 0x249   : > { %v7059_v63 = vpop.permute.xlu1 %1612 }
 0x24a   : > { %2996 = vperm.xlu0 %5447, %v6897_v25  }
 0x24b   : > { %5443 = vset.pattern.permute.xlu1 %v10418_v6 }
 0x24c   : > { %2960 = vperm.xlu1 %5443, %v6884_v62   ;;  %v7177_v62 = vld [vmem:[%s7078_s27 + $0x68] sm:$0xff] }
 0x24d   : > { %v2201_v57 = vpop.permute.xlu1 %2200 }
 0x24e   : > { %5449 = vset.pattern.permute.xlu0 %v5895_v49 }
 0x24f   : > { %1672 = vperm.xlu0 %5449, %v6905_v26  }
 0x250   : > { %2992 = vperm.xlu1 %5443, %v6889_v33  }
 0x251   : > { %v7066_v10 = vpop.permute.xlu1 %2952 }
 0x253   : > { %5451 = vset.pattern.permute.xlu0 %v10419_v0 }
 0x254   : > { %2248 = vperm.xlu0 %5451, %v6905_v26   ;;  %5444 = vset.pattern.permute.xlu1 %v5895_v49 }
 0x255   : > { %1627 = vperm.xlu1 %5444, %v6894_v22   ;;  %v7072_v18 = vpop.permute.xlu1 %2984 }
 0x259   : > { %1667 = vperm.xlu1 %5444, %v6897_v25  }
 0x25d   : > { %5445 = vset.pattern.permute.xlu1 %v10419_v0  ;;  %v7092_v0 = vpop.xlane.xlu0 %1525 }
 0x25e   : > { %2212 = vperm.xlu1 %5445, %v6894_v22   ;;  %10580 = vst [vmem:[#allocation37_spill] sm:$0xff] %v7092_v0  ;;  %v7128_v0 = vld [vmem:[%s7078_s27 + $0x50] sm:$0xff] }
 0x262   : > { %2244 = vperm.xlu1 %5445, %v6897_v25  }
 0x266   : > { %5446 = vset.pattern.permute.xlu1 %v10418_v6  ;;  %v1520_v6 = vmul.f32 %v6918_v3, %v1497_v46 }
 0x267   : > { %2964 = vperm.xlu1 %5446, %v6894_v22  }
 0x26b   : > { %5448 = vset.pattern.permute.xlu1 %v5895_v49  ;;  %v1566_v49 = vsel %vm1523_vm1, %v1521_v60, 0.0  ;;  %v3003_v60 = vmul.f32 %v2941_v32, %v7083_v2  ;;  %v7104_v32 = vld [vmem:[%s7078_s27 + $0x8] sm:$0xff] }
 0x26c   : > { %v2252_v46 = vmul.f32 %v7019_v27, %v7104_v32 }
 0x273   : > { %1543 = vadd.xlane.f32.xlu0 %v1542_v59  ;;  %v7087_v59 = vpop.xlane.xlu1 %1531 }
 0x274   : > { %10579 = vst [vmem:[#allocation36_spill] sm:$0xff] %v7087_v59  ;;  %v1563_v59 = vsel %vm1523_vm1, %v1520_v6, 0.0 }
 0x277   : > { %1567 = vadd.xlane.f32.xlu0 %v1566_v49  ;;  %v1539_v49 = vsel %vm1523_vm1, %v1512_v19, 0.0  ;;  %v7100_v25 = vpop.permute.xlu1 %1617  ;;  %v7106_v19 = vpop.xlane.xlu0 %1549 }
 0x278   : > { %10581 = vst [vmem:[#allocation38_spill] sm:$0xff] %v7106_v19 }
 0x27b   : > { %v2981_v6 = vpop.permute.xlu0 %2980  ;;  %v7114_v20 = vpop.permute.xlu1 %1657 }
 0x27f   : > { %v7124_v19 = vpop.permute.xlu1 %2204 }
 0x28b   : > { %1540 = vadd.xlane.f32.xlu1 %v1539_v49  ;;  %v7121_v49 = vpop.xlane.xlu0 %1528 }
 0x28c   : > { %10582 = vst [vmem:[#allocation39_spill] sm:$0xff] %v7121_v49  ;;  %v7138_v49 = vpop.permute.xlu1 %2236 }
 0x28d   : > { %3035 = vrot.lane.b32.xlu0 %v3003_v60, %s5898_s23  ;;  %v7111_v60 = vld [vmem:[%s7078_s27 + $0x48] sm:$0xff] }
 0x28f   : > { %1564 = vadd.xlane.f32.xlu1 %v1563_v59  ;;  %v2260_v59 = vmul.f32 %v2225_v11, %v7111_v60  ;;  %v3013_v11 = vmul.f32 %v2981_v6, %v7128_v0 }
 0x291   : > { %3051 = vrot.lane.b32.xlu0 %v3011_v48, %s5898_s23  ;;  %v7119_v48 = vld [vmem:[%s7078_s27 + $0x10] sm:$0xff] }
 0x292   : > { %v3005_v27 = vmul.f32 %v2949_v23, %v7119_v48 }
 0x295   : > { %2285 = vrot.lane.b32.xlu0 %v2252_v46, %s5899_s28  ;;  %v7130_v46 = vpop.permute.xlu0 %1652 }
 0x299   : > { %2301 = vrot.lane.b32.xlu0 %v2260_v59, %s5899_s28  ;;  %v7136_v59 = vld [vmem:[%s7078_s27 + $0x18] sm:$0xff]  ;;  %v2233_v33 = vpop.permute.xlu0 %2232 }
 0x29a   : > { %v2254_v23 = vmul.f32 %v2201_v57, %v7136_v59  ;;  %v2262_v6 = vmul.f32 %v2233_v33, %v7144_v42  ;;  %v10585_v57 = vmov 34  }
 0x29d   : > { %3039 = vrot.lane.b32.xlu0 %v3005_v27, %s5898_s23  ;;  %v10583_v27 = vmov 33   ;;  %v7148_v15 = vpop.xlane.xlu0 %1555 }
 0x29e   : > { %10584 = vst [vmem:[#allocation40_spill] sm:$0xff] %v7148_v15 }
 0x2a0   : > { %1632 = vperm.xlu1 %5448, %v6902_v61  }
 0x2a1   : > { %3055 = vrot.lane.b32.xlu0 %v3013_v11, %s5898_s23  ;;  %v2957_v11 = vpop.permute.xlu1 %2956 }
 0x2a4   : > { %5450 = vset.pattern.permute.xlu1 %v10583_v27  ;;  %v3007_v27 = vmul.f32 %v2957_v11, %v7152_v7 }
 0x2a5   : > { %2289 = vrot.lane.b32.xlu0 %v2254_v23, %s5899_s28  ;;  %2216 = vperm.xlu1 %5450, %v6902_v61   ;;  %v2989_v23 = vpop.permute.xlu0 %2988 }
 0x2a6   : > { %v3015_v33 = vmul.f32 %v2989_v23, %v7159_v38 }
 0x2a9   : > { %2305 = vrot.lane.b32.xlu0 %v2262_v6, %s5899_s28  ;;  %5452 = vset.pattern.permute.xlu1 %v10585_v57  ;;  %v7170_v11 = vpop.permute.xlu0 %1662 }
 0x2aa   : > { %2968 = vperm.xlu1 %5452, %v6902_v61  }
 0x2ad   : > { %3043 = vrot.lane.b32.xlu0 %v3007_v27, %s5898_s23  ;;  %v2241_v23 = vpop.permute.xlu0 %2240 }
 0x2ae   : > { %3000 = vperm.xlu1 %5452, %v6905_v26   ;;  %v2264_v14 = vmul.f32 %v2241_v23, %v7177_v62  ;;  %v2251_v26 = vmul.f32 %v7061_v4, %v7083_v2  ;;  %v3004_v4 = vmul.f32 %v7085_v54, %v7104_v32 }
 0x2b1   : > { %3059 = vrot.lane.b32.xlu0 %v3015_v33, %s5898_s23  ;;  %v1491_v33 = vmax.f32 %v6902_v61, 0.0 }
 0x2ba   : > { %v7164_v6 = vpop.xlane.xlu1 %1534 }
 0x2bb   : > { %10586 = vst [vmem:[#allocation41_spill] sm:$0xff] %v7164_v6 }
 0x2bd   : > { %v7192_v55 = vpop.xlane.xlu0 %1537 }
 0x2be   : > { %v7166_v15 = vpop.xlane.xlu1 %1558  ;;  %10588 = vst [vmem:[#allocation43_spill] sm:$0xff] %v7192_v55 }
 0x2bf   : > { %10587 = vst [vmem:[#allocation42_spill] sm:$0xff] %v7166_v15  ;;  %v1514_v15 = vmul.f32 %v6918_v3, %v1491_v33 }
 0x2c1   : > { %v7196_v8 = vpop.xlane.xlu0 %1561 }
 0x2c2   : > { %v7168_v57 = vpop.permute.xlu1 %1622  ;;  %10589 = vst [vmem:[#allocation44_spill] sm:$0xff] %v7196_v8 }
 0x2c6   : > { %v2209_v22 = vpop.permute.xlu1 %2208 }
 0x2c7   : > { %v2256_v27 = vmul.f32 %v2209_v22, %v7173_v37  ;;  %v1545_v22 = vsel %vm1523_vm1, %v1514_v15, 0.0  ;;  %v7199_v15 = vld [vmem:[%s7078_s27 + $0x30] sm:$0xff] }
 0x2c9   : > { %2293 = vrot.lane.b32.xlu0 %v2256_v27, %s5899_s28  ;;  %v1569_v27 = vsel %vm1523_vm1, %v1522_v36, 0.0  ;;  %v7204_v36 = vld [vmem:[%s7078_s27 + $0x70] sm:$0xff] }
 0x2cb   : > { %v2961_v6 = vpop.permute.xlu1 %2960 }
 0x2cd   : > { %2309 = vrot.lane.b32.xlu0 %v2264_v14, %s5899_s28 }
 0x2cf   : > { %v2993_v1 = vpop.permute.xlu1 %2992 }
 0x2d2   : > { %1546 = vadd.xlane.f32.xlu1 %v1545_v22  ;;  %v2259_v22 = vmul.f32 %v7010_v30, %v7096_v56  ;;  %v2253_v30 = vmul.f32 %v7040_v41, %v7119_v48  ;;  %v2255_v41 = vmul.f32 %v7124_v19, %v7152_v7 }
 0x2d4   : > { %v7187_v23 = vpop.permute.xlu1 %1627 }
 0x2d6   : > { %1570 = vadd.xlane.f32.xlu1 %v1569_v27  ;;  %v2997_v27 = vpop.permute.xlu0 %2996 }
 0x2d7   : > { %v3017_v55 = vmul.f32 %v2997_v27, %v7204_v36  ;;  %v7253_v27 = vld [vmem:[%s7078_s27 + $0x38] sm:$0xff] }
 0x2d8   : > { %v7190_v61 = vpop.permute.xlu1 %1667 }
 0x2dd   : > { %v2213_v14 = vpop.permute.xlu1 %2212 }
 0x2de   : > { %v2257_v54 = vmul.f32 %v2213_v14, %v7199_v15  ;;  %v7257_v14 = vld [vmem:[%s7078_s27 + $0x78] sm:$0xff] }
 0x2e1   : > { %v2245_v33 = vpop.permute.xlu1 %2244 }
 0x2e6   : > { %v2965_v31 = vpop.permute.xlu1 %2964 }
 0x2e7   : > { %v3009_v3 = vmul.f32 %v2965_v31, %v7199_v15  ;;  %2283 = vrot.lane.b32.xlu1 %v2251_v26, %s5899_s28  ;;  %v3012_v26 = vmul.f32 %v7024_v39, %v7111_v60  ;;  %v2261_v31 = vmul.f32 %v7045_v45, %v7128_v0  ;;  %v3014_v39 = vmul.f32 %v7072_v18, %v7144_v42 }
 0x2e8   : > { %v2263_v45 = vmul.f32 %v7138_v49, %v7159_v38  ;;  %v3016_v18 = vmul.f32 %v2993_v1, %v7177_v62 }
 0x2e9   : > { %3047 = vrot.lane.b32.xlu0 %v3009_v3, %s5898_s23  ;;  %v2265_v3 = vmul.f32 %v2245_v33, %v7204_v36 }
 0x2eb   : > { %2299 = vrot.lane.b32.xlu1 %v2259_v22, %s5899_s28 }
 0x2ed   : > { %3063 = vrot.lane.b32.xlu0 %v3017_v55, %s5898_s23  ;;  %v3006_v55 = vmul.f32 %v7066_v10, %v7136_v59  ;;  %v3008_v10 = vmul.f32 %v2961_v6, %v7173_v37  ;;  %v7250_v6 = vpop.permute.xlu0 %1672 }
 0x2ef   : > { %3037 = vrot.lane.b32.xlu1 %v3004_v4, %s5898_s23 }
 0x2f3   : > { %3053 = vrot.lane.b32.xlu1 %v3012_v26, %s5898_s23  ;;  %v2249_v26 = vpop.permute.xlu0 %2248 }
 0x2f7   : > { %2287 = vrot.lane.b32.xlu1 %v2253_v30, %s5899_s28  ;;  %v2266_v30 = vmul.f32 %v2249_v26, %v7257_v14 }
 0x2fb   : > { %2303 = vrot.lane.b32.xlu1 %v2261_v31, %s5899_s28 }
 0x2ff   : > { %3041 = vrot.lane.b32.xlu1 %v3006_v55, %s5898_s23 }
 0x303   : > { %3057 = vrot.lane.b32.xlu1 %v3014_v39, %s5898_s23 }
 0x307   : > { %2291 = vrot.lane.b32.xlu1 %v2255_v41, %s5899_s28  ;;  %v1675_v41 = vmul.f32 %v7055_v21, %v7083_v2  ;;  %v1677_v21 = vmul.f32 %v7031_v50, %v7119_v48  ;;  %v1679_v50 = vmul.f32 %v7100_v25, %v7152_v7 }
 0x309   : > { %v1695_v7 = vadd.f32 %v1679_v50, %v6962_v29 }
 0x30b   : > { %2307 = vrot.lane.b32.xlu1 %v2263_v45, %s5899_s28  ;;  %v1676_v45 = vmul.f32 %v7016_v24, %v7104_v32  ;;  %v1693_v24 = vadd.f32 %v1677_v21, %v6957_v40  ;;  %v1681_v21 = vmul.f32 %v7187_v23, %v7199_v15 }
 0x30d   : > { %v1697_v23 = vadd.f32 %v1681_v21, %v6968_v5 }
 0x30f   : > { %3045 = vrot.lane.b32.xlu1 %v3008_v10, %s5898_s23  ;;  %v1691_v10 = vadd.f32 %v1675_v41, %v6951_v51 }
 0x311   : > { %v1995_v2 = vmul.f32 %v1691_v10, %v1691_v10  ;;  %v1707_v26 = vmul.f32 0.17677669, %v1691_v10  ;;  %v7318_v10 = vld [vmem:[%s7276_s10 + $0x20] sm:$0xff] }
 0x312   : > { %10595 = vst [vmem:[#allocation50_spill] sm:$0xff] %v7318_v10  ;;  %vm1727_vm5 = vcmp.eq.f32.partialorder %v7318_v10, 0.0 }
 0x313   : > { %3061 = vrot.lane.b32.xlu1 %v3016_v18, %s5898_s23  ;;  %v1692_v18 = vadd.f32 %v1676_v45, %v6954_v12  ;;  %v2011_v32 = vsel %vm534_vm0, %v1995_v2, 0.0 }
 0x317   : > { %2295 = vrot.lane.b32.xlu1 %v2257_v54, %s5899_s28  ;;  %v7279_v54 = vld [vmem:[%s7276_s10 + $0x8] sm:$0xff] }
 0x318   : > { %v7242_v19 = vpop.xlane.xlu1 %1540  ;;  %10592 = vst [vmem:[#allocation47_spill] sm:$0xff] %v7279_v54  ;;  %vm1724_vm2 = vcmp.eq.f32.partialorder %v7279_v54, 0.0 }
 0x319   : > { %10590 = vst [vmem:[#allocation45_spill] sm:$0xff] %v7242_v19 }
 0x31b   : > { %2311 = vrot.lane.b32.xlu1 %v2265_v3, %s5899_s28  ;;  %v1708_v3 = vmul.f32 0.17677669, %v1692_v18 }
 0x31c   : > { %v7246_v49 = vpop.xlane.xlu1 %1564 }
 0x31d   : > { %10591 = vst [vmem:[#allocation46_spill] sm:$0xff] %v7246_v49 }
 0x320   : > { %v7248_v22 = vpop.permute.xlu1 %1632 }
 0x321   : > { %v1682_v21 = vmul.f32 %v7248_v22, %v7253_v27 }
 0x323   : > { %v1698_v22 = vadd.f32 %v1682_v21, %v6972_v16 }
 0x324   : > { %v2217_v1 = vpop.permute.xlu1 %2216 }
 0x325   : > { %v2258_v4 = vmul.f32 %v2217_v1, %v7253_v27  ;;  %v7288_v1 = vsel %vm1724_vm2, -1e+08, %v1708_v3  ;;  %v1999_v3 = vmul.f32 %v1695_v7, %v1695_v7 }
 0x326   : > { %v1758_v48 = vsel %vm534_vm0, %v7288_v1, -inf }
 0x327   : > { %2297 = vrot.lane.b32.xlu0 %v2258_v4, %s5899_s28  ;;  %v7291_v4 = vld [vmem:[%s7276_s10] sm:$0xff]  ;;  %v2023_v15 = vsel %vm534_vm0, %v1999_v3, 0.0 }
 0x328   : > { %10593 = vst [vmem:[#allocation48_spill] sm:$0xff] %v7291_v4  ;;  %vm1723_vm3 = vcmp.eq.f32.partialorder %v7291_v4, 0.0 }
 0x329   : > { %v2969_v33 = vpop.permute.xlu1 %2968 }
 0x32a   : > { %v3010_v31 = vmul.f32 %v2969_v33, %v7253_v27  ;;  %v1997_v33 = vmul.f32 %v1693_v24, %v1693_v24 }
 0x32b   : > { %2313 = vrot.lane.b32.xlu0 %v2266_v30, %s5899_s28  ;;  %v7294_v30 = vld [vmem:[%s7276_s10 + $0x10] sm:$0xff] }
 0x32c   : > { %3049 = vrot.lane.b32.xlu1 %v3010_v31, %s5898_s23  ;;  %10594 = vst [vmem:[#allocation49_spill] sm:$0xff] %v7294_v30  ;;  %v1709_v31 = vmul.f32 0.17677669, %v1693_v24  ;;  %vm1725_vm4 = vcmp.eq.f32.partialorder %v7294_v30, 0.0  ;;  %v2017_v25 = vsel %vm534_vm0, %v1997_v33, 0.0 }
 0x32d   : > { %v3001_v55 = vpop.permute.xlu1 %3000  ;;  %v1711_v24 = vmul.f32 0.17677669, %v1695_v7 }
 0x32e   : > { %v3018_v39 = vmul.f32 %v3001_v55, %v7257_v14  ;;  %v1678_v55 = vmul.f32 %v7059_v63, %v7136_v59  ;;  %v7312_v41 = vsel %vm1725_vm4, -1e+08, %v1709_v31  ;;  %v1996_v59 = vmul.f32 %v1692_v18, %v1692_v18 }
 0x32f   : > { %v1761_v2 = vsel %vm534_vm0, %v7312_v41, -inf  ;;  %v7336_v33 = vsel %vm1727_vm5, -1e+08, %v1711_v24 }
 0x330   : > { %3065 = vrot.lane.b32.xlu1 %v3018_v39, %s5898_s23  ;;  %v7306_v39 = vsel %vm1723_vm3, -1e+08, %v1707_v26  ;;  %v1694_v45 = vadd.f32 %v1678_v55, %v6960_v43  ;;  %v1680_v26 = vmul.f32 %v7168_v57, %v7173_v37  ;;  %v2014_v18 = vsel %vm534_vm0, %v1996_v59, 0.0  ;;  %v7345_v55 = vld [vmem:[%s7276_s10 + $0x30] sm:$0xff]  ;;  %v7352_v59 = vld [vmem:[%s7276_s10 + $0x28] sm:$0xff] }
 0x331   : > { %v1755_v63 = vsel %vm534_vm0, %v7306_v39, -inf  ;;  %10597 = vst [vmem:[#allocation52_spill] sm:$0xff] %v7345_v55  ;;  %v1767_v7 = vsel %vm534_vm0, %v7336_v33, -inf  ;;  %10598 = vst [vmem:[#allocation53_spill] sm:$0xff] %v7352_v59  ;;  %vm1729_vm7 = vcmp.eq.f32.partialorder %v7345_v55, 0.0  ;;  %vm1728_vm8 = vcmp.eq.f32.partialorder %v7352_v59, 0.0 }
 0x332   : > { %v1998_v50 = vmul.f32 %v1694_v45, %v1694_v45  ;;  %v1696_v37 = vadd.f32 %v1680_v26, %v6965_v53 }
 0x334   : > { %v2020_v57 = vsel %vm534_vm0, %v1998_v50, 0.0  ;;  %v2000_v3 = vmul.f32 %v1696_v37, %v1696_v37  ;;  %v1712_v24 = vmul.f32 0.17677669, %v1696_v37  ;;  %v7373_v50 = vld [vmem:[%s7276_s10 + $0x40] sm:$0xff]  ;;  %v7378_v37 = vld [vmem:[%s7276_s10 + $0x38] sm:$0xff] }
 0x335   : > { %10599 = vst [vmem:[#allocation54_spill] sm:$0xff] %v7373_v50  ;;  %10600 = vst [vmem:[#allocation55_spill] sm:$0xff] %v7378_v37  ;;  %vm1731_vm9 = vcmp.eq.f32.partialorder %v7373_v50, 0.0  ;;  %vm1730_vm10 = vcmp.eq.f32.partialorder %v7378_v37, 0.0 }
 0x336   : > { %v2026_v27 = vsel %vm534_vm0, %v2000_v3, 0.0 }
 0x34a   : > { %2012 = vadd.xlane.f32.xlu0 %v2011_v32  ;;  %v7325_v32 = vld [vmem:[%s7276_s10 + $0x18] sm:$0xff] }
 0x34b   : > { %10596 = vst [vmem:[#allocation51_spill] sm:$0xff] %v7325_v32  ;;  %vm1726_vm6 = vcmp.eq.f32.partialorder %v7325_v32, 0.0 }
 0x34e   : > { %1759 = vmax.xlane.f32.xlu0 %v1758_v48  ;;  %v1710_v48 = vmul.f32 0.17677669, %v1694_v45  ;;  %v1683_v45 = vmul.f32 %v7002_v52, %v7096_v56 }
 0x350   : > { %v7342_v31 = vsel %vm1726_vm6, -1e+08, %v1710_v48  ;;  %v1699_v52 = vadd.f32 %v1683_v45, %v6975_v47  ;;  %v1714_v45 = vmul.f32 0.17677669, %v1698_v22 }
 0x352   : > { %2018 = vadd.xlane.f32.xlu0 %v2017_v25  ;;  %v2001_v25 = vmul.f32 %v1697_v23, %v1697_v23 }
 0x354   : > { %1756 = vmax.xlane.f32.xlu1 %v1755_v63  ;;  %v1713_v63 = vmul.f32 0.17677669, %v1697_v23  ;;  %v2029_v26 = vsel %vm534_vm0, %v2001_v25, 0.0  ;;  %v2003_v23 = vmul.f32 %v1699_v52, %v1699_v52  ;;  %v2002_v25 = vmul.f32 %v1698_v22, %v1698_v22 }
 0x356   : > { %1762 = vmax.xlane.f32.xlu0 %v1761_v2  ;;  %v1764_v2 = vsel %vm534_vm0, %v7342_v31, -inf  ;;  %v7364_v56 = vsel %vm1729_vm7, -1e+08, %v1713_v63  ;;  %v1684_v63 = vmul.f32 %v7064_v9, %v7111_v60  ;;  %v2035_v21 = vsel %vm534_vm0, %v2003_v23, 0.0  ;;  %v7401_v60 = vld [vmem:[%s7276_s10 + $0x50] sm:$0xff] }
 0x357   : > { %v1773_v48 = vsel %vm534_vm0, %v7364_v56, -inf  ;;  %v7398_v9 = vsel %vm1730_vm10, -1e+08, %v1714_v45  ;;  %10601 = vst [vmem:[#allocation56_spill] sm:$0xff] %v7401_v60  ;;  %vm1733_vm11 = vcmp.eq.f32.partialorder %v7401_v60, 0.0 }
 0x358   : > { %2015 = vadd.xlane.f32.xlu1 %v2014_v18  ;;  %v7370_v18 = vsel %vm1728_vm8, -1e+08, %v1712_v24  ;;  %v1700_v3 = vadd.f32 %v1684_v63, %v6980_v44  ;;  %v1687_v24 = vmul.f32 %v7114_v20, %v7159_v38  ;;  %v1776_v23 = vsel %vm534_vm0, %v7398_v9, -inf  ;;  %v7431_v63 = vld [vmem:[%s7276_s10 + $0x60] sm:$0xff] }
 0x359   : > { %10604 = vst [vmem:[#allocation59_spill] sm:$0xff] %v7431_v63  ;;  %vm1735_vm13 = vcmp.eq.f32.partialorder %v7431_v63, 0.0 }
 0x35a   : > { %2024 = vadd.xlane.f32.xlu0 %v2023_v15  ;;  %v1715_v15 = vmul.f32 0.17677669, %v1699_v52  ;;  %v1716_v38 = vmul.f32 0.17677669, %v1700_v3  ;;  %v1703_v20 = vadd.f32 %v1687_v24, %v6992_v13  ;;  %v7438_v24 = vld [vmem:[%s7276_s10 + $0x58] sm:$0xff] }
 0x35b   : > { %10605 = vst [vmem:[#allocation60_spill] sm:$0xff] %v7438_v24  ;;  %vm1734_vm14 = vcmp.eq.f32.partialorder %v7438_v24, 0.0 }
 0x35c   : > { %2021 = vadd.xlane.f32.xlu1 %v2020_v57  ;;  %v1685_v57 = vmul.f32 %v7037_v34, %v7128_v0  ;;  %v7392_v0 = vsel %vm1731_vm9, -1e+08, %v1715_v15  ;;  %v2032_v34 = vsel %vm534_vm0, %v2002_v25, 0.0  ;;  %v2004_v15 = vmul.f32 %v1700_v3, %v1700_v3 }
 0x35d   : > { %v1719_v3 = vmul.f32 0.17677669, %v1703_v20 }
 0x35e   : > { %1768 = vmax.xlane.f32.xlu0 %v1767_v7  ;;  %v1770_v7 = vsel %vm534_vm0, %v7370_v18, -inf  ;;  %v2038_v25 = vsel %vm534_vm0, %v2004_v15, 0.0 }
 0x360   : > { %1765 = vmax.xlane.f32.xlu1 %v1764_v2  ;;  %v1701_v2 = vadd.f32 %v1685_v57, %v6985_v58 }
 0x362   : > { %2030 = vadd.xlane.f32.xlu0 %v2029_v26  ;;  %v1779_v26 = vsel %vm534_vm0, %v7392_v0, -inf  ;;  %v2005_v52 = vmul.f32 %v1701_v2, %v1701_v2  ;;  %v1717_v22 = vmul.f32 0.17677669, %v1701_v2 }
 0x364   : > { %2027 = vadd.xlane.f32.xlu1 %v2026_v27  ;;  %v7408_v27 = vld [vmem:[%s7276_s10 + $0x48] sm:$0xff]  ;;  %v2041_v57 = vsel %vm534_vm0, %v2005_v52, 0.0  ;;  %v7442_v52 = vpop.xlane.xlu1 %1546 }
 0x365   : > { %10602 = vst [vmem:[#allocation57_spill] sm:$0xff] %v7408_v27  ;;  %vm1732_vm12 = vcmp.eq.f32.partialorder %v7408_v27, 0.0  ;;  %10606 = vst [vmem:[#allocation61_spill] sm:$0xff] %v7442_v52 }
 0x366   : > { %1774 = vmax.xlane.f32.xlu0 %v1773_v48  ;;  %v1686_v48 = vmul.f32 %v7130_v46, %v7144_v42  ;;  %v7420_v42 = vsel %vm1733_vm11, -1e+08, %v1717_v22  ;;  %v7428_v45 = vsel %vm1732_vm12, -1e+08, %v1716_v38 }
 0x367   : > { %v1785_v2 = vsel %vm534_vm0, %v7420_v42, -inf  ;;  %v1782_v22 = vsel %vm534_vm0, %v7428_v45, -inf }
 0x368   : > { %1771 = vmax.xlane.f32.xlu1 %v1770_v7  ;;  %v1702_v46 = vadd.f32 %v1686_v48, %v6989_v28  ;;  %v7423_v7 = vpop.xlane.xlu0 %1543 }
 0x369   : > { %10603 = vst [vmem:[#allocation58_spill] sm:$0xff] %v7423_v7 }
 0x36a   : > { %2036 = vadd.xlane.f32.xlu0 %v2035_v21  ;;  %v1689_v21 = vmul.f32 %v7190_v61, %v7204_v36  ;;  %v2006_v48 = vmul.f32 %v1702_v46, %v1702_v46  ;;  %v1718_v61 = vmul.f32 0.17677669, %v1702_v46  ;;  %v7465_v46 = vpop.xlane.xlu1 %1570 }
 0x36b   : > { %10609 = vst [vmem:[#allocation64_spill] sm:$0xff] %v7465_v46 }
 0x36c   : > { %2033 = vadd.xlane.f32.xlu1 %v2032_v34  ;;  %v2007_v34 = vmul.f32 %v1703_v20, %v1703_v20  ;;  %v1705_v36 = vadd.f32 %v1689_v21, %v6996_v35  ;;  %v2044_v38 = vsel %vm534_vm0, %v2006_v48, 0.0  ;;  %v7460_v20 = vsel %vm1734_vm14, -1e+08, %v1718_v61 }
 0x36e   : > { %1780 = vmax.xlane.f32.xlu0 %v1779_v26  ;;  %v1688_v26 = vmul.f32 %v7170_v11, %v7177_v62  ;;  %v2047_v15 = vsel %vm534_vm0, %v2007_v34, 0.0  ;;  %v7454_v62 = vsel %vm1735_vm13, -1e+08, %v1719_v3  ;;  %v2009_v21 = vmul.f32 %v1705_v36, %v1705_v36  ;;  %v7470_v34 = vld [vmem:[%s7276_s10 + $0x68] sm:$0xff] }
 0x36f   : > { %10610 = vst [vmem:[#allocation65_spill] sm:$0xff] %v7470_v34  ;;  %v1690_v3 = vmul.f32 %v7250_v6, %v7257_v14  ;;  %vm10501_vm1 = vcmp.eq.f32.partialorder %v7470_v34, 0.0  ;;  %v10611_v6 = vld [vmem:[#allocation34_spill] sm:$0xff] }
 0x370   : > { %1777 = vmax.xlane.f32.xlu1 %v1776_v23  ;;  %v7448_v23 = vpop.xlane.xlu0 %1567  ;;  %v1704_v11 = vadd.f32 %v1688_v26, %v6994_v17 }
 0x371   : > { %10607 = vst [vmem:[#allocation62_spill] sm:$0xff] %v7448_v23  ;;  %v1706_v14 = vadd.f32 %v1690_v3, %v10611_v6 }
 0x372   : > { %2042 = vadd.xlane.f32.xlu0 %v2041_v57  ;;  %v7463_v57 = vld [vmem:[%s7276_s10 + $0x70] sm:$0xff]  ;;  %v2008_v48 = vmul.f32 %v1704_v11, %v1704_v11  ;;  %v1720_v61 = vmul.f32 0.17677669, %v1704_v11 }
 0x373   : > { %10608 = vst [vmem:[#allocation63_spill] sm:$0xff] %v7463_v57  ;;  %vm10453_vm15 = vcmp.eq.f32.partialorder %v7463_v57, 0.0  ;;  %v1722_v3 = vmul.f32 0.17677669, %v1706_v14 }
 0x374   : > { %2039 = vadd.xlane.f32.xlu1 %v2038_v25  ;;  %v1791_v25 = vsel %vm534_vm0, %v7454_v62, -inf  ;;  %v3036_v26 = vpop.permute.xlu0 %3035  ;;  %v7487_v23 = vsel %vm10501_vm1, -1e+08, %v1720_v61 }
 0x376   : > { %1786 = vmax.xlane.f32.xlu0 %v1785_v2  ;;  %v1721_v2 = vmul.f32 0.17677669, %v1705_v36 }
 0x378   : > { %1783 = vmax.xlane.f32.xlu1 %v1782_v22  ;;  %v1788_v22 = vsel %vm534_vm0, %v7460_v20, -inf  ;;  %v7481_v36 = vsel %vm10453_vm15, -1e+08, %v1721_v2  ;;  %v3052_v11 = vpop.permute.xlu0 %3051  ;;  %v1794_v2 = vsel %vm534_vm0, %v7487_v23, -inf }
 0x379   : > { %v7506_v19 = vadd.f32 %v3052_v11, %v6975_v47 }
 0x37a   : > { %2048 = vadd.xlane.f32.xlu0 %v2047_v15  ;;  %v2053_v15 = vsel %vm534_vm0, %v2009_v21, 0.0  ;;  %v1797_v21 = vsel %vm534_vm0, %v7481_v36, -inf }
 0x37b   : > { %10613 = vst [vmem:[#allocation67_spill] sm:$0xff] %v7506_v19 }
 0x37c   : > { %2045 = vadd.xlane.f32.xlu1 %v2044_v38  ;;  %v2284_v38 = vpop.permute.xlu1 %2283 }
 0x37e   : > { %1792 = vmax.xlane.f32.xlu0 %v1791_v25  ;;  %v2050_v25 = vsel %vm534_vm0, %v2008_v48, 0.0  ;;  %v2286_v48 = vpop.permute.xlu0 %2285 }
 0x380   : > { %1789 = vmax.xlane.f32.xlu1 %v1788_v22  ;;  %v7492_v22 = vld [vmem:[%s7276_s10 + $0x78] sm:$0xff]  ;;  %v2300_v46 = vpop.permute.xlu1 %2299 }
 0x381   : > { %10612 = vst [vmem:[#allocation66_spill] sm:$0xff] %v7492_v22  ;;  %vm1738_vm15 = vcmp.eq.f32.partialorder %v7492_v22, 0.0  ;;  %v3107_v22 = vmul.f32 0.17677669, %v7506_v19  ;;  %v2339_v37 = vadd.f32 %v2300_v46, %v6975_v47 }
 0x382   : > { %2054 = vadd.xlane.f32.xlu0 %v2053_v15  ;;  %v2010_v15 = vmul.f32 %v1706_v14, %v1706_v14  ;;  %v2302_v49 = vpop.permute.xlu0 %2301  ;;  %v3083_v14 = vadd.f32 %v3036_v26, %v6951_v51 }
 0x383   : > { %v2355_v55 = vmul.f32 0.17677669, %v2339_v37  ;;  %v2691_v47 = vmul.f32 %v2339_v37, %v2339_v37 }
 0x384   : > { %2051 = vadd.xlane.f32.xlu1 %v2050_v25  ;;  %v2056_v61 = vsel %vm534_vm0, %v2010_v15, 0.0  ;;  %v7500_v25 = vsel %vm1738_vm15, -1e+08, %v1722_v3  ;;  %v3099_v52 = vmul.f32 0.17677669, %v3083_v14  ;;  %v2331_v15 = vadd.f32 %v2284_v38, %v6951_v51 }
 0x385   : > { %v1800_v8 = vsel %vm534_vm0, %v7500_v25, -inf  ;;  %v2340_v38 = vadd.f32 %v2302_v49, %v6980_v44 }
 0x386   : > { %1798 = vmax.xlane.f32.xlu0 %v1797_v21  ;;  %v3038_v21 = vpop.permute.xlu1 %3037  ;;  %v2347_v57 = vmul.f32 0.17677669, %v2331_v15 }
 0x387   : > { %v2692_v49 = vmul.f32 %v2340_v38, %v2340_v38 }
 0x388   : > { %1795 = vmax.xlane.f32.xlu1 %v1794_v2  ;;  %v3040_v2 = vpop.permute.xlu0 %3039 }
 0x38a   : > { %v3054_v7 = vpop.permute.xlu1 %3053 }
 0x38c   : > { %2057 = vadd.xlane.f32.xlu1 %v2056_v61  ;;  %v3056_v3 = vpop.permute.xlu0 %3055 }
 0x38e   : > { %v2288_v61 = vpop.permute.xlu1 %2287 }
 0x390   : > { %1801 = vmax.xlane.f32.xlu1 %v1800_v8  ;;  %v2332_v8 = vadd.f32 %v2286_v48, %v6954_v12  ;;  %v2290_v51 = vpop.permute.xlu0 %2289  ;;  %v2683_v48 = vmul.f32 %v2331_v15, %v2331_v15  ;;  %v7526_v15 = vadd.f32 %v3038_v21, %v6954_v12 }
 0x392   : > { %v2304_v26 = vpop.permute.xlu1 %2303  ;;  %v2348_v11 = vmul.f32 0.17677669, %v2332_v8 }
 0x394   : > { %v2306_v46 = vpop.permute.xlu0 %2305 }
 0x396   : > { %v3042_v19 = vpop.permute.xlu1 %3041 }
 0x398   : > { %v3044_v34 = vpop.permute.xlu0 %3043 }
 0x39c   : > { %3131 = vrot.lane.b32.xlu0 %v3099_v52, %s5900_s11  ;;  %v2356_v52 = vmul.f32 0.17677669, %v2340_v38  ;;  %v7536_v38 = vadd.f32 %v3054_v7, %v6980_v44 }
 0x39e   : > { %10615 = vst [vmem:[#allocation69_spill] sm:$0xff] %v7536_v38 }
 0x3a0   : > { %3147 = vrot.lane.b32.xlu0 %v3107_v22, %s5900_s11  ;;  %v2684_v22 = vmul.f32 %v2332_v8, %v2332_v8  ;;  %v7532_v8 = vadd.f32 %v3056_v3, %v6985_v58  ;;  %v2333_v3 = vadd.f32 %v2288_v61, %v6957_v40 }
 0x3a1   : > { %2379 = vrot.lane.b32.xlu1 %v2347_v57, %s5901_s7  ;;  %v3058_v57 = vpop.permute.xlu1 %3057 }
 0x3a2   : > { %10614 = vst [vmem:[#allocation68_spill] sm:$0xff] %v7532_v8  ;;  %v3109_v21 = vmul.f32 0.17677669, %v7532_v8 }
 0x3a4   : > { %2381 = vrot.lane.b32.xlu0 %v2348_v11, %s5901_s7  ;;  %v7523_v11 = vadd.f32 %v3040_v2, %v6957_v40  ;;  %v2685_v40 = vmul.f32 %v2333_v3, %v2333_v3 }
 0x3a5   : > { %2395 = vrot.lane.b32.xlu1 %v2355_v55, %s5901_s7  ;;  %v3435_v55 = vmul.f32 %v3083_v14, %v3083_v14  ;;  %v2292_v2 = vpop.permute.xlu1 %2291  ;;  %v3060_v14 = vpop.permute.xlu0 %3059 }
 0x3a6   : > { %v3101_v37 = vmul.f32 0.17677669, %v7523_v11 }
 0x3a8   : > { %2397 = vrot.lane.b32.xlu0 %v2356_v52, %s5901_s7  ;;  %v2334_v52 = vadd.f32 %v2290_v51, %v6960_v43 }
 0x3a9   : > { %2715 = vrot.lane.b32.xlu1 %v2683_v48, %s5901_s7  ;;  %v3108_v48 = vmul.f32 0.17677669, %v7536_v38 }
 0x3aa   : > { %v2350_v7 = vmul.f32 0.17677669, %v2334_v52 }
 0x3ac   : > { %2717 = vrot.lane.b32.xlu0 %v2684_v22, %s5901_s7  ;;  %v2294_v22 = vpop.permute.xlu0 %2293 }
 0x3ad   : > { %2731 = vrot.lane.b32.xlu1 %v2691_v47, %s5901_s7  ;;  %v3100_v47 = vmul.f32 0.17677669, %v7526_v15 }
 0x3b0   : > { %2733 = vrot.lane.b32.xlu0 %v2692_v49, %s5901_s7  ;;  %v2308_v49 = vpop.permute.xlu1 %2307  ;;  %v2310_v12 = vpop.permute.xlu0 %2309 }
 0x3b1   : > { %3467 = vrot.lane.b32.xlu1 %v3435_v55, %s5900_s11  ;;  %v2342_v55 = vadd.f32 %v2306_v46, %v6989_v28 }
 0x3b3   : > { %v2358_v51 = vmul.f32 0.17677669, %v2342_v55 }
 0x3b4   : > { %3135 = vrot.lane.b32.xlu0 %v3101_v37, %s5900_s11  ;;  %v2349_v37 = vmul.f32 0.17677669, %v2333_v3  ;;  %v3046_v61 = vpop.permute.xlu1 %3045  ;;  %v3048_v46 = vpop.permute.xlu0 %3047  ;;  %v2336_v3 = vadd.f32 %v2294_v22, %v6965_v53 }
 0x3b5   : > { %3133 = vrot.lane.b32.xlu1 %v3100_v47, %s5900_s11  ;;  %v2341_v47 = vadd.f32 %v2304_v26, %v6985_v58 }
 0x3b7   : > { %v2357_v44 = vmul.f32 0.17677669, %v2341_v47  ;;  %v2693_v58 = vmul.f32 %v2341_v47, %v2341_v47  ;;  %v2344_v47 = vadd.f32 %v2310_v12, %v6994_v17  ;;  %v2688_v12 = vmul.f32 %v2336_v3, %v2336_v3 }
 0x3b8   : > { %3151 = vrot.lane.b32.xlu0 %v3109_v21, %s5900_s11  ;;  %v2694_v21 = vmul.f32 %v2342_v55, %v2342_v55  ;;  %v3062_v26 = vpop.permute.xlu1 %3061  ;;  %v2686_v55 = vmul.f32 %v2334_v52, %v2334_v52 }
 0x3b9   : > { %3149 = vrot.lane.b32.xlu1 %v3108_v48, %s5900_s11  ;;  %v7553_v48 = vadd.f32 %v3044_v34, %v6962_v29 }
 0x3bb   : > { %10616 = vst [vmem:[#allocation70_spill] sm:$0xff] %v7553_v48 }
 0x3bc   : > { %2385 = vrot.lane.b32.xlu0 %v2350_v7, %s5901_s7  ;;  %v3103_v7 = vmul.f32 0.17677669, %v7553_v48 }
 0x3bd   : > { %2383 = vrot.lane.b32.xlu1 %v2349_v37, %s5901_s7  ;;  %v7559_v37 = vadd.f32 %v3060_v14, %v6992_v13  ;;  %v2352_v14 = vmul.f32 0.17677669, %v2336_v3 }
 0x3bf   : > { %10617 = vst [vmem:[#allocation71_spill] sm:$0xff] %v7559_v37  ;;  %v3111_v34 = vmul.f32 0.17677669, %v7559_v37 }
 0x3c0   : > { %2401 = vrot.lane.b32.xlu0 %v2358_v51, %s5901_s7  ;;  %v7566_v51 = vadd.f32 %v3042_v19, %v6960_v43  ;;  %v2360_v19 = vmul.f32 0.17677669, %v2344_v47 }
 0x3c1   : > { %2399 = vrot.lane.b32.xlu1 %v2357_v44, %s5901_s7  ;;  %v3064_v44 = vpop.permute.xlu0 %3063 }
 0x3c4   : > { %2737 = vrot.lane.b32.xlu0 %v2694_v21, %s5901_s7 }
 0x3c5   : > { %2719 = vrot.lane.b32.xlu1 %v2685_v40, %s5901_s7  ;;  %v2296_v40 = vpop.permute.xlu1 %2295  ;;  %v2298_v21 = vpop.permute.xlu0 %2297 }
 0x3c8   : > { %3139 = vrot.lane.b32.xlu0 %v3103_v7, %s5900_s11  ;;  %v3102_v7 = vmul.f32 0.17677669, %v7566_v51 }
 0x3c9   : > { %2735 = vrot.lane.b32.xlu1 %v2693_v58, %s5901_s7  ;;  %v7573_v58 = vadd.f32 %v3058_v57, %v6989_v28  ;;  %v2312_v52 = vpop.permute.xlu1 %2311  ;;  %v2314_v43 = vpop.permute.xlu0 %2313  ;;  %v2343_v57 = vadd.f32 %v2308_v49, %v6992_v13 }
 0x3cb   : > { %10618 = vst [vmem:[#allocation72_spill] sm:$0xff] %v7573_v58  ;;  %v3110_v22 = vmul.f32 0.17677669, %v7573_v58 }
 0x3cc   : > { %3155 = vrot.lane.b32.xlu0 %v3111_v34, %s5900_s11  ;;  %v2335_v34 = vadd.f32 %v2292_v2, %v6962_v29  ;;  %v2359_v2 = vmul.f32 0.17677669, %v2343_v57 }
 0x3cd   : > { %2721 = vrot.lane.b32.xlu1 %v2686_v55, %s5901_s7  ;;  %v3050_v28 = vpop.permute.xlu1 %3049 }
 0x3ce   : > { %v2351_v55 = vmul.f32 0.17677669, %v2335_v34 }
 0x3d0   : > { %2389 = vrot.lane.b32.xlu0 %v2352_v14, %s5901_s7  ;;  %v2696_v14 = vmul.f32 %v2344_v47, %v2344_v47 }
 0x3d1   : > { %3137 = vrot.lane.b32.xlu1 %v3102_v7, %s5900_s11  ;;  %v7587_v7 = vadd.f32 %v3048_v46, %v6968_v5  ;;  %v3066_v3 = vpop.permute.xlu1 %3065 }
 0x3d3   : > { %10620 = vst [vmem:[#allocation74_spill] sm:$0xff] %v7587_v7  ;;  %v3105_v49 = vmul.f32 0.17677669, %v7587_v7  ;;  %v10668_v7 = vld [vmem:[#allocation9_spill] sm:$0xff] }
 0x3d4   : > { %2405 = vrot.lane.b32.xlu0 %v2360_v19, %s5901_s7  ;;  %v7595_v19 = vadd.f32 %v3064_v44, %v6996_v35 }
 0x3d5   : > { %3153 = vrot.lane.b32.xlu1 %v3110_v22, %s5900_s11  ;;  %v2687_v22 = vmul.f32 %v2335_v34, %v2335_v34 }
 0x3d6   : > { %10621 = vst [vmem:[#allocation75_spill] sm:$0xff] %v7595_v19  ;;  %v3113_v47 = vmul.f32 0.17677669, %v7595_v19 }
 0x3d7   : > { %v7582_v38 = vpop.xlane.xlu0 %2012 }
 0x3d8   : > { %10619 = vst [vmem:[#allocation73_spill] sm:$0xff] %v7582_v38  ;;  %2725 = vrot.lane.b32.xlu0 %v2688_v12, %s5901_s7 }
 0x3d9   : > { %2387 = vrot.lane.b32.xlu1 %v2351_v55, %s5901_s7  ;;  %v2338_v55 = vadd.f32 %v2298_v21, %v6972_v16 }
 0x3db   : > { %v7589_v29 = vpop.xlane.xlu0 %1759  ;;  %v2354_v34 = vmul.f32 0.17677669, %v2338_v55 }
 0x3dc   : > { %2741 = vrot.lane.b32.xlu0 %v2696_v14, %s5901_s7  ;;  %v2695_v14 = vmul.f32 %v2343_v57, %v2343_v57 }
 0x3dd   : > { %2403 = vrot.lane.b32.xlu1 %v2359_v2, %s5901_s7  ;;  %v7604_v2 = vadd.f32 %v3046_v61, %v6965_v53 }
 0x3df   : > { %v7597_v12 = vpop.xlane.xlu0 %2018  ;;  %10623 = vst [vmem:[#allocation77_spill] sm:$0xff] %v7604_v2 }
 0x3e0   : > { %10622 = vst [vmem:[#allocation76_spill] sm:$0xff] %v7597_v12  ;;  %3143 = vrot.lane.b32.xlu0 %v3105_v49, %s5900_s11  ;;  %v2346_v49 = vadd.f32 %v2314_v43, %v10611_v6  ;;  %v7613_v12 = vadd.f32 %v3062_v26, %v6994_v17  ;;  %v2690_v26 = vmul.f32 %v2338_v55, %v2338_v55 }
 0x3e1   : > { %2723 = vrot.lane.b32.xlu1 %v2687_v22, %s5901_s7  ;;  %v1757_v46 = vpop.xlane.xlu1 %1756  ;;  %v3104_v22 = vmul.f32 0.17677669, %v7604_v2 }
 0x3e2   : > { %10625 = vst [vmem:[#allocation79_spill] sm:$0xff] %v7613_v12  ;;  %v2362_v57 = vmul.f32 0.17677669, %v2346_v49 }
 0x3e3   : > { %v1763_v38 = vpop.xlane.xlu0 %1762 }
 0x3e4   : > { %3159 = vrot.lane.b32.xlu0 %v3113_v47, %s5900_s11  ;;  %v3112_v47 = vmul.f32 0.17677669, %v7613_v12 }
 0x3e5   : > { %2739 = vrot.lane.b32.xlu1 %v2695_v14, %s5901_s7  ;;  %v7608_v44 = vpop.xlane.xlu1 %2015  ;;  %v2337_v14 = vadd.f32 %v2296_v40, %v6968_v5  ;;  %v2698_v40 = vmul.f32 %v2346_v49, %v2346_v49 }
 0x3e6   : > { %10624 = vst [vmem:[#allocation78_spill] sm:$0xff] %v7608_v44 }
 0x3e7   : > { %v7615_v21 = vpop.xlane.xlu0 %2024  ;;  %v2689_v55 = vmul.f32 %v2337_v14, %v2337_v14 }
 0x3e8   : > { %10626 = vst [vmem:[#allocation80_spill] sm:$0xff] %v7615_v21  ;;  %2393 = vrot.lane.b32.xlu0 %v2354_v34, %s5901_s7  ;;  %v2353_v21 = vmul.f32 0.17677669, %v2337_v14  ;;  %v2345_v34 = vadd.f32 %v2312_v52, %v6996_v35  ;;  %v7652_v14 = vadd.f32 %v3066_v3, %v10611_v6 }
 0x3e9   : > { %3141 = vrot.lane.b32.xlu1 %v3104_v22, %s5900_s11  ;;  %v7619_v61 = vpop.xlane.xlu1 %2021 }
 0x3ea   : > { %10627 = vst [vmem:[#allocation81_spill] sm:$0xff] %v7619_v61  ;;  %v2361_v61 = vmul.f32 0.17677669, %v2345_v34  ;;  %10633 = vst [vmem:[#allocation87_spill] sm:$0xff] %v7652_v14 }
 0x3eb   : > { %v1769_v44 = vpop.xlane.xlu0 %1768 }
 0x3ec   : > { %2409 = vrot.lane.b32.xlu0 %v2362_v57, %s5901_s7 }
 0x3ed   : > { %3157 = vrot.lane.b32.xlu1 %v3112_v47, %s5900_s11  ;;  %v7625_v43 = vpop.xlane.xlu1 %1765 }
 0x3ef   : > { %v7628_v17 = vpop.xlane.xlu0 %2030 }
 0x3f0   : > { %10628 = vst [vmem:[#allocation82_spill] sm:$0xff] %v7628_v17  ;;  %2729 = vrot.lane.b32.xlu0 %v2690_v26, %s5901_s7  ;;  %v2697_v26 = vmul.f32 %v2345_v34, %v2345_v34  ;;  %v1805_v34 = vsub.f32 %v7312_v41, %v1763_v38 }
 0x3f1   : > { %2391 = vrot.lane.b32.xlu1 %v2353_v21, %s5901_s7  ;;  %v7632_v22 = vpop.xlane.xlu1 %2027  ;;  %v7644_v21 = vadd.f32 %v3050_v28, %v6972_v16 }
 0x3f2   : > { %10629 = vst [vmem:[#allocation83_spill] sm:$0xff] %v7632_v22  ;;  %v1803_v22 = vsub.f32 %v7306_v39, %v1757_v46  ;;  %v3114_v39 = vmul.f32 0.17677669, %v7652_v14 }
 0x3f3   : > { %v1775_v13 = vpop.xlane.xlu0 %1774  ;;  %10632 = vst [vmem:[#allocation86_spill] sm:$0xff] %v7644_v21 }
 0x3f4   : > { %2745 = vrot.lane.b32.xlu0 %v2698_v40, %s5901_s7  ;;  %v1809_v41 = vsub.f32 %v7364_v56, %v1775_v13 }
 0x3f5   : > { %2407 = vrot.lane.b32.xlu1 %v2361_v61, %s5901_s7  ;;  %v7636_v57 = vpop.xlane.xlu1 %1771  ;;  %v3106_v61 = vmul.f32 0.17677669, %v7644_v21 }
 0x3f7   : > { %v7638_v47 = vpop.xlane.xlu0 %2036 }
 0x3f8   : > { %10630 = vst [vmem:[#allocation84_spill] sm:$0xff] %v7638_v47 }
 0x3f9   : > { %2727 = vrot.lane.b32.xlu1 %v2689_v55, %s5901_s7  ;;  %v7641_v52 = vpop.xlane.xlu1 %2033  ;;  %v1819_v55 = vmul.f32 1.442695, %v1803_v22 }
 0x3fa   : > { %10631 = vst [vmem:[#allocation85_spill] sm:$0xff] %v7641_v52  ;;  %v1807_v52 = vsub.f32 %v7336_v33, %v1769_v44 }
 0x3fb   : > { %v1781_v49 = vpop.xlane.xlu0 %1780  ;;  %5455 = vpow2.f32 %v1819_v55 }
 0x3fc   : > { %v1827_v22 = vmul.f32 1.442695, %v1807_v52  ;;  %v1811_v55 = vsub.f32 %v7392_v0, %v1781_v49  ;;  %v1804_v0 = vsub.f32 %v7288_v1, %v7589_v29 }
 0x3fd   : > { %2743 = vrot.lane.b32.xlu1 %v2697_v26, %s5901_s7  ;;  %v7648_v40 = vpop.xlane.xlu1 %1777  ;;  %v1823_v26 = vmul.f32 1.442695, %v1805_v34 }
 0x3ff   : > { %v7654_v47 = vpop.xlane.xlu0 %2042  ;;  %5457 = vpow2.f32 %v1823_v26 }
 0x400   : > { %10634 = vst [vmem:[#allocation88_spill] sm:$0xff] %v7654_v47  ;;  %5459 = vpow2.f32 %v1827_v22  ;;  %v5902_v47 = vmov 35  }
 0x401   : > { %3145 = vrot.lane.b32.xlu1 %v3106_v61, %s5900_s11  ;;  %v7658_v28 = vpop.xlane.xlu1 %2039  ;;  %5453 = vset.pattern.permute.xlu0 %v5902_v47 }
 0x402   : > { %10635 = vst [vmem:[#allocation89_spill] sm:$0xff] %v7658_v28  ;;  %v1831_v28 = vmul.f32 1.442695, %v1809_v41  ;;  %5454 = vset.pattern.permute.xlu1 %v5902_v47 }
 0x403   : > { %v1787_v46 = vpop.xlane.xlu0 %1786 }
 0x404   : > { %5461 = vpow2.f32 %v1831_v28  ;;  %v1813_v26 = vsub.f32 %v7420_v42, %v1787_v46  ;;  %v1821_v46 = vmul.f32 1.442695, %v1804_v0  ;;  %v1808_v0 = vsub.f32 %v7370_v18, %v7636_v57 }
 0x405   : > { %3161 = vrot.lane.b32.xlu1 %v3114_v39, %s5900_s11  ;;  %v7663_v3 = vpop.xlane.xlu1 %1783  ;;  %v7673_v33 = vpop.eup %5455  ;;  %v1835_v39 = vmul.f32 1.442695, %v1811_v55  ;;  %v1806_v55 = vsub.f32 %v7342_v31, %v7625_v43 }
 0x406   : > { %v1851_v13 = vsel %vm534_vm0, %v7673_v33, 0.0  ;;  %v1839_v22 = vmul.f32 1.442695, %v1813_v26 }
 0x407   : > { %v7665_v17 = vpop.xlane.xlu0 %2048  ;;  %5463 = vpow2.f32 %v1835_v39 }
 0x408   : > { %10636 = vst [vmem:[#allocation90_spill] sm:$0xff] %v7665_v17  ;;  %5465 = vpow2.f32 %v1839_v22  ;;  %v1829_v22 = vmul.f32 1.442695, %v1808_v0 }
 0x409   : > { %v7668_v38 = vpop.xlane.xlu1 %2045  ;;  %v7682_v56 = vpop.eup %5457  ;;  %5467 = vpow2.f32 %v1821_v46 }
 0x40a   : > { %10637 = vst [vmem:[#allocation91_spill] sm:$0xff] %v7668_v38  ;;  %v1857_v42 = vsel %vm534_vm0, %v7682_v56, 0.0  ;;  %v7692_v28 = vpop.eup %5459 }
 0x40b   : > { %v1793_v61 = vpop.xlane.xlu0 %1792  ;;  %v1863_v39 = vsel %vm534_vm0, %v7692_v28, 0.0 }
 0x40c   : > { %v1815_v29 = vsub.f32 %v7454_v62, %v1793_v61 }
 0x40d   : > { %v7671_v34 = vpop.xlane.xlu1 %1789 }
 0x40e   : > { %v7701_v26 = vpop.eup %5461  ;;  %v1843_v31 = vmul.f32 1.442695, %v1815_v29 }
 0x40f   : > { %v7675_v44 = vpop.xlane.xlu0 %2054  ;;  %v1869_v62 = vsel %vm534_vm0, %v7701_v26, 0.0 }
 0x410   : > { %10638 = vst [vmem:[#allocation92_spill] sm:$0xff] %v7675_v44 }
 0x411   : > { %v7678_v52 = vpop.xlane.xlu1 %2051  ;;  %v7711_v61 = vpop.eup %5463 }
 0x412   : > { %10639 = vst [vmem:[#allocation93_spill] sm:$0xff] %v7678_v52  ;;  %v1875_v57 = vsel %vm534_vm0, %v7711_v61, 0.0 }
 0x413   : > { %v7686_v49 = vpop.xlane.xlu0 %1798  ;;  %1852 = vadd.xlane.f32.xlu0 %v1851_v13  ;;  %v1825_v13 = vmul.f32 1.442695, %v1806_v55  ;;  %v7719_v55 = vpop.eup %5465 }
 0x414   : > { %v7723_v0 = vpop.eup %5467 }
 0x415   : > { %v7688_v41 = vpop.xlane.xlu1 %1795  ;;  %5469 = vpow2.f32 %v1825_v13 }
 0x416   : > { %5471 = vpow2.f32 %v1843_v31 }
 0x417   : > { %v3132_v52 = vpop.permute.xlu0 %3131  ;;  %1858 = vadd.xlane.f32.xlu0 %v1857_v42  ;;  %v1810_v42 = vsub.f32 %v7398_v9, %v7648_v40  ;;  %5473 = vpow2.f32 %v1829_v22  ;;  %v1881_v40 = vsel %vm534_vm0, %v7719_v55, 0.0 }
 0x418   : > { %v7733_v22 = vsel %vm1723_vm3, -1e+08, %v3132_v52 }
 0x419   : > { %v7697_v1 = vpop.xlane.xlu1 %2057  ;;  %v1833_v29 = vmul.f32 1.442695, %v1810_v42 }
 0x41a   : > { %10640 = vst [vmem:[#allocation94_spill] sm:$0xff] %v7697_v1 }
 0x41b   : > { %v7705_v44 = vpop.permute.xlu0 %3147  ;;  %1864 = vadd.xlane.f32.xlu0 %v1863_v39  ;;  %v1812_v39 = vsub.f32 %v7428_v45, %v7663_v3  ;;  %5475 = vpow2.f32 %v1833_v29  ;;  %v1854_v45 = vsel %vm534_vm0, %v7723_v0, 0.0  ;;  %v3195_v29 = vsel %vm534_vm0, %v7733_v22, -inf }
 0x41d   : > { %v7707_v43 = vpop.xlane.xlu1 %1801  ;;  %v1837_v31 = vmul.f32 1.442695, %v1812_v39 }
 0x41f   : > { %v2382_v46 = vpop.permute.xlu0 %2381  ;;  %1870 = vadd.xlane.f32.xlu0 %v1869_v62  ;;  %v1814_v62 = vsub.f32 %v7460_v20, %v7671_v34  ;;  %v7737_v3 = vpop.eup %5469  ;;  %5477 = vpow2.f32 %v1837_v31 }
 0x420   : > { %v7741_v39 = vpop.eup %5471  ;;  %v1860_v52 = vsel %vm534_vm0, %v7737_v3, 0.0 }
 0x421   : > { %v7715_v18 = vpop.permute.xlu1 %2379  ;;  %v1841_v20 = vmul.f32 1.442695, %v1814_v62 }
 0x423   : > { %v2398_v13 = vpop.permute.xlu0 %2397  ;;  %1876 = vadd.xlane.f32.xlu0 %v1875_v57  ;;  %5479 = vpow2.f32 %v1841_v20 }
 0x425   : > { %v7725_v9 = vpop.permute.xlu1 %2395 }
 0x427   : > { %v2718_v42 = vpop.permute.xlu0 %2717  ;;  %1882 = vadd.xlane.f32.xlu0 %v1881_v40  ;;  %v7745_v40 = vpop.eup %5473 }
 0x428   : > { %v1866_v17 = vsel %vm534_vm0, %v7745_v40, 0.0  ;;  %v7751_v31 = vpop.eup %5475 }
 0x429   : > { %1855 = vadd.xlane.f32.xlu1 %v1854_v45  ;;  %v2716_v57 = vpop.permute.xlu1 %2715  ;;  %v1887_v45 = vsel %vm534_vm0, %v7741_v39, 0.0  ;;  %v1872_v20 = vsel %vm534_vm0, %v7751_v31, 0.0 }
 0x42a   : > { %v2763_v14 = vsel %vm534_vm0, %v2716_v57, 0.0 }
 0x42b   : > { %v2734_v34 = vpop.permute.xlu0 %2733  ;;  %3196 = vmax.xlane.f32.xlu0 %v3195_v29  ;;  %v2766_v29 = vsel %vm534_vm0, %v2718_v42, 0.0 }
 0x42c   : > { %v2790_v16 = vsel %vm534_vm0, %v2734_v34, 0.0  ;;  %v7777_v34 = vsel %vm1732_vm12, -1e+08, %v2398_v13 }
 0x42d   : > { %1861 = vadd.xlane.f32.xlu1 %v1860_v52  ;;  %v2732_v1 = vpop.permute.xlu1 %2731 }
 0x42f   : > { %v3136_v38 = vpop.permute.xlu0 %3135  ;;  %1888 = vadd.xlane.f32.xlu0 %v1887_v45  ;;  %v7760_v45 = vpop.eup %5477 }
 0x430   : > { %v1878_v47 = vsel %vm534_vm0, %v7760_v45, 0.0 }
 0x431   : > { %1867 = vadd.xlane.f32.xlu1 %v1866_v17  ;;  %v7753_v62 = vpop.permute.xlu1 %3467  ;;  %v7765_v17 = vsel %vm1724_vm2, -1e+08, %v2382_v46  ;;  %v1817_v46 = vsub.f32 %v7481_v36, %v7686_v49  ;;  %v1816_v36 = vsub.f32 %v7487_v23, %v7688_v41  ;;  %v2787_v49 = vsel %vm534_vm0, %v2732_v1, 0.0 }
 0x432   : > { %10641 = vst [vmem:[#allocation95_spill] sm:$0xff] %v7753_v62 }
 0x433   : > { %v7756_v52 = vpop.permute.xlu0 %3151  ;;  %2767 = vadd.xlane.f32.xlu0 %v2766_v29  ;;  %v7771_v29 = vpop.eup %5479 }
 0x435   : > { %1873 = vadd.xlane.f32.xlu1 %v1872_v20  ;;  %v3134_v6 = vpop.permute.xlu1 %3133  ;;  %v2446_v20 = vsel %vm534_vm0, %v7765_v17, -inf }
 0x437   : > { %v7767_v42 = vpop.permute.xlu0 %2385  ;;  %2791 = vadd.xlane.f32.xlu0 %v2790_v16  ;;  %v1884_v16 = vsel %vm534_vm0, %v7771_v29, 0.0 }
 0x439   : > { %1879 = vadd.xlane.f32.xlu1 %v1878_v47  ;;  %v3150_v5 = vpop.permute.xlu1 %3149  ;;  %v2470_v47 = vsel %vm534_vm0, %v7777_v34, -inf }
 0x43a   : > { %v7789_v62 = vsel %vm1732_vm12, -1e+08, %v3150_v5  ;;  %v7800_v5 = vsel %vm1723_vm3, -1e+08, %v7715_v18  ;;  %v7820_v18 = vsel %vm1725_vm4, -1e+08, %v3136_v38 }
 0x43b   : > { %v7779_v53 = vpop.permute.xlu0 %2401  ;;  %2447 = vmax.xlane.f32.xlu0 %v2446_v20  ;;  %v1847_v20 = vmul.f32 1.442695, %v1817_v46  ;;  %v3222_v58 = vsel %vm534_vm0, %v7789_v62, -inf  ;;  %v1845_v46 = vmul.f32 1.442695, %v1816_v36  ;;  %v2443_v23 = vsel %vm534_vm0, %v7800_v5, -inf }
 0x43d   : > { %1885 = vadd.xlane.f32.xlu1 %v1884_v16  ;;  %v2384_v35 = vpop.permute.xlu1 %2383  ;;  %5481 = vpow2.f32 %v1847_v20 }
 0x43e   : > { %5483 = vpow2.f32 %v1845_v46 }
 0x43f   : > { %v2738_v13 = vpop.permute.xlu0 %2737  ;;  %2471 = vmax.xlane.f32.xlu0 %v2470_v47  ;;  %v7807_v47 = vsel %vm1725_vm4, -1e+08, %v2384_v35 }
 0x440   : > { %v2449_v1 = vsel %vm534_vm0, %v7807_v47, -inf }
 0x441   : > { %2764 = vadd.xlane.f32.xlu1 %v2763_v14  ;;  %v2400_v12 = vpop.permute.xlu1 %2399 }
 0x443   : > { %3223 = vmax.xlane.f32.xlu0 %v3222_v58  ;;  %v7802_v16 = vpop.permute.xlu0 %3139  ;;  %v7814_v58 = vsel %vm1731_vm9, -1e+08, %v7725_v9  ;;  %v7829_v9 = vsel %vm1731_vm9, -1e+08, %v7705_v44 }
 0x444   : > { %v2467_v20 = vsel %vm534_vm0, %v7814_v58, -inf  ;;  %v3219_v38 = vsel %vm534_vm0, %v7829_v9, -inf }
 0x445   : > { %2788 = vadd.xlane.f32.xlu1 %v2787_v49  ;;  %v2720_v14 = vpop.permute.xlu1 %2719  ;;  %v3201_v49 = vsel %vm534_vm0, %v7820_v18, -inf }
 0x446   : > { %v2769_v57 = vsel %vm534_vm0, %v2720_v14, 0.0 }
 0x447   : > { %2770 = vadd.xlane.f32.xlu0 %v2769_v57  ;;  %v7822_v35 = vpop.permute.xlu0 %3155  ;;  %v7833_v14 = vpop.eup %5481  ;;  %v7839_v57 = vsel %vm1724_vm2, -1e+08, %v3134_v6 }
 0x448   : > { %v1893_v44 = vsel %vm534_vm0, %v7833_v14, 0.0 }
 0x449   : > { %2444 = vmax.xlane.f32.xlu1 %v2443_v23  ;;  %v2736_v41 = vpop.permute.xlu1 %2735 }
 0x44b   : > { %2450 = vmax.xlane.f32.xlu0 %v2449_v1  ;;  %v2390_v46 = vpop.permute.xlu0 %2389  ;;  %v1818_v1 = vsub.f32 %v7500_v25, %v7707_v43  ;;  %v2796_v25 = vsel %vm534_vm0, %v2738_v13, 0.0  ;;  %v7856_v43 = vsel %vm1726_vm6, -1e+08, %v7767_v42 }
 0x44d   : > { %2468 = vmax.xlane.f32.xlu1 %v2467_v20  ;;  %v2722_v36 = vpop.permute.xlu1 %2721  ;;  %v3198_v20 = vsel %vm534_vm0, %v7839_v57, -inf  ;;  %v1849_v27 = vmul.f32 1.442695, %v1818_v1 }
 0x44e   : > { %v2772_v6 = vsel %vm534_vm0, %v2722_v36, 0.0  ;;  %v7861_v36 = vsel %vm1733_vm11, -1e+08, %v2400_v12  ;;  %v7875_v12 = vsel %vm1733_vm11, -1e+08, %v7756_v52 }
 0x44f   : > { %3202 = vmax.xlane.f32.xlu0 %v3201_v49  ;;  %v7847_v49 = vpop.eup %5483  ;;  %v2406_v54 = vpop.permute.xlu0 %2405  ;;  %5485 = vpow2.f32 %v1849_v27  ;;  %v7868_v27 = vsel %vm1734_vm14, -1e+08, %v7779_v53  ;;  %v2473_v42 = vsel %vm534_vm0, %v7861_v36, -inf }
 0x451   : > { %3220 = vmax.xlane.f32.xlu1 %v3219_v38  ;;  %v3138_v23 = vpop.permute.xlu1 %3137  ;;  %v1890_v38 = vsel %vm534_vm0, %v7847_v49, 0.0 }
 0x453   : > { %1894 = vadd.xlane.f32.xlu0 %v1893_v44  ;;  %v2793_v44 = vsel %vm534_vm0, %v2736_v41, 0.0  ;;  %v2726_v1 = vpop.permute.xlu0 %2725  ;;  %v2476_v41 = vsel %vm534_vm0, %v7868_v27, -inf }
 0x454   : > { %v2778_v24 = vsel %vm534_vm0, %v2726_v1, 0.0 }
 0x455   : > { %3199 = vmax.xlane.f32.xlu1 %v3198_v20  ;;  %v3154_v50 = vpop.permute.xlu1 %3153 }
 0x457   : > { %2773 = vadd.xlane.f32.xlu0 %v2772_v6  ;;  %v2452_v6 = vsel %vm534_vm0, %v7856_v43, -inf  ;;  %v2742_v53 = vpop.permute.xlu0 %2741 }
 0x459   : > { %1891 = vadd.xlane.f32.xlu1 %v1890_v38  ;;  %v2388_v30 = vpop.permute.xlu1 %2387  ;;  %v7881_v38 = vsel %vm1726_vm6, -1e+08, %v3138_v23 }
 0x45a   : > { %v3204_v52 = vsel %vm534_vm0, %v7881_v38, -inf  ;;  %v7906_v21 = vsel %vm1727_vm5, -1e+08, %v2388_v30 }
 0x45b   : > { %2797 = vadd.xlane.f32.xlu0 %v2796_v25  ;;  %v3225_v25 = vsel %vm534_vm0, %v7875_v12, -inf  ;;  %v7895_v60 = vpop.permute.xlu0 %3143  ;;  %10643 = vst [vmem:[#allocation97_spill] sm:$0xff] %v7906_v21  ;;  %v2455_v1 = vsel %vm534_vm0, %v7906_v21, -inf }
 0x45d   : > { %2794 = vadd.xlane.f32.xlu1 %v2793_v44  ;;  %v2404_v20 = vpop.permute.xlu1 %2403  ;;  %v7885_v44 = vpop.eup %5485 }
 0x45e   : > { %10642 = vst [vmem:[#allocation96_spill] sm:$0xff] %v7885_v44  ;;  %v1896_v23 = vsel %vm534_vm0, %v7885_v44, 0.0 }
 0x45f   : > { %2453 = vmax.xlane.f32.xlu0 %v2452_v6 }
 0x461   : > { %2474 = vmax.xlane.f32.xlu1 %v2473_v42  ;;  %v2724_v13 = vpop.permute.xlu1 %2723  ;;  %v7891_v42 = vsel %vm1734_vm14, -1e+08, %v3154_v50  ;;  %v7901_v50 = vpop.permute.xlu0 %3159 }
 0x462   : > { %v3228_v32 = vsel %vm534_vm0, %v7891_v42, -inf }
 0x463   : > { %2477 = vmax.xlane.f32.xlu0 %v2476_v41 }
 0x465   : > { %3226 = vmax.xlane.f32.xlu1 %v3225_v25  ;;  %v2740_v6 = vpop.permute.xlu1 %2739  ;;  %v2775_v25 = vsel %vm534_vm0, %v2724_v13, 0.0 }
 0x467   : > { %3205 = vmax.xlane.f32.xlu0 %v3204_v52  ;;  %v2799_v52 = vsel %vm534_vm0, %v2740_v6, 0.0  ;;  %v2394_v6 = vpop.permute.xlu0 %2393 }
 0x469   : > { %1897 = vadd.xlane.f32.xlu1 %v1896_v23  ;;  %v3142_v41 = vpop.permute.xlu1 %3141  ;;  %v2802_v23 = vsel %vm534_vm0, %v2742_v53, 0.0  ;;  %v7923_v53 = vsel %vm10501_vm1, -1e+08, %v2406_v54 }
 0x46a   : > { %10647 = vst [vmem:[#allocation100_spill] sm:$0xff] %v7923_v53  ;;  %v7936_v2 = vsel %vm1728_vm8, -1e+08, %v3142_v41 }
 0x46b   : > { %3229 = vmax.xlane.f32.xlu0 %v3228_v32  ;;  %v7911_v32 = vsel %vm1728_vm8, -1e+08, %v2390_v46  ;;  %10649 = vst [vmem:[#allocation102_spill] sm:$0xff] %v7936_v2 }
 0x46c   : > { %10644 = vst [vmem:[#allocation98_spill] sm:$0xff] %v7911_v32  ;;  %v2458_v30 = vsel %vm534_vm0, %v7911_v32, -inf }
 0x46d   : > { %2776 = vadd.xlane.f32.xlu1 %v2775_v25  ;;  %v3158_v4 = vpop.permute.xlu1 %3157 }
 0x46f   : > { %2779 = vadd.xlane.f32.xlu0 %v2778_v24  ;;  %v7917_v24 = vsel %vm1735_vm13, -1e+08, %v2404_v20 }
 0x470   : > { %10645 = vst [vmem:[#allocation99_spill] sm:$0xff] %v7917_v24  ;;  %v2479_v46 = vsel %vm534_vm0, %v7917_v24, -inf }
 0x471   : > { %2800 = vadd.xlane.f32.xlu1 %v2799_v52  ;;  %v2392_v13 = vpop.permute.xlu1 %2391  ;;  %v7930_v52 = vsel %vm1727_vm5, -1e+08, %v7802_v16  ;;  %v3210_v16 = vsel %vm534_vm0, %v7936_v2, -inf }
 0x472   : > { %10648 = vst [vmem:[#allocation101_spill] sm:$0xff] %v7930_v52  ;;  %v3207_v54 = vsel %vm534_vm0, %v7930_v52, -inf  ;;  %v7960_v19 = vsel %vm1729_vm7, -1e+08, %v2392_v13 }
 0x473   : > { %2803 = vadd.xlane.f32.xlu0 %v2802_v23  ;;  %v2482_v23 = vsel %vm534_vm0, %v7923_v53, -inf  ;;  %10653 = vst [vmem:[#allocation105_spill] sm:$0xff] %v7960_v19 }
 0x475   : > { %2456 = vmax.xlane.f32.xlu1 %v2455_v1  ;;  %v2408_v20 = vpop.permute.xlu1 %2407  ;;  %v2410_v1 = vpop.permute.xlu0 %2409 }
 0x477   : > { %2459 = vmax.xlane.f32.xlu0 %v2458_v30  ;;  %v7943_v30 = vsel %vm1735_vm13, -1e+08, %v7822_v35 }
 0x478   : > { %10650 = vst [vmem:[#allocation103_spill] sm:$0xff] %v7943_v30  ;;  %v3231_v41 = vsel %vm534_vm0, %v7943_v30, -inf }
 0x479   : > { %2480 = vmax.xlane.f32.xlu1 %v2479_v46  ;;  %v7949_v46 = vsel %vm10501_vm1, -1e+08, %v3158_v4  ;;  %v2728_v59 = vpop.permute.xlu1 %2727 }
 0x47a   : > { %10651 = vst [vmem:[#allocation104_spill] sm:$0xff] %v7949_v46  ;;  %v3234_v63 = vsel %vm534_vm0, %v7949_v46, -inf  ;;  %v2781_v35 = vsel %vm534_vm0, %v2728_v59, 0.0  ;;  %v2461_v59 = vsel %vm534_vm0, %v7960_v19, -inf }
 0x47b   : > { %2483 = vmax.xlane.f32.xlu0 %v2482_v23  ;;  %v2730_v23 = vpop.permute.xlu0 %2729 }
 0x47c   : > { %v2784_v10 = vsel %vm534_vm0, %v2730_v23, 0.0  ;;  %v10656_v23 = vld [vmem:[#allocation63_spill] sm:$0xff] }
 0x47d   : > { %3208 = vmax.xlane.f32.xlu1 %v3207_v54  ;;  %v2744_v54 = vpop.permute.xlu1 %2743  ;;  %vm10657_vm1 = vcmp.eq.f32.partialorder %v10656_v23, 0.0 }
 0x47e   : > { %v2805_v4 = vsel %vm534_vm0, %v2744_v54, 0.0 }
 0x47f   : > { %3211 = vmax.xlane.f32.xlu0 %v3210_v16  ;;  %v2746_v25 = vpop.permute.xlu0 %2745 }
 0x481   : > { %3232 = vmax.xlane.f32.xlu1 %v3231_v41  ;;  %v2808_v41 = vsel %vm534_vm0, %v2746_v25, 0.0  ;;  %v7977_v25 = vsel %vm1738_vm15, -1e+08, %v2410_v1 }
 0x482   : > { %10660 = vst [vmem:[#allocation108_spill] sm:$0xff] %v7977_v25 }
 0x483   : > { %3235 = vmax.xlane.f32.xlu0 %v3234_v63  ;;  %v7965_v63 = vsel %vm1730_vm10, -1e+08, %v2394_v6 }
 0x484   : > { %10655 = vst [vmem:[#allocation106_spill] sm:$0xff] %v7965_v63  ;;  %v2464_v13 = vsel %vm534_vm0, %v7965_v63, -inf }
 0x485   : > { %2782 = vadd.xlane.f32.xlu1 %v2781_v35  ;;  %v3146_v35 = vpop.permute.xlu1 %3145 }
 0x487   : > { %2785 = vadd.xlane.f32.xlu0 %v2784_v10  ;;  %v7971_v10 = vsel %vm10657_vm1, -1e+08, %v2408_v20  ;;  %v2488_v20 = vsel %vm534_vm0, %v7977_v25, -inf }
 0x488   : > { %10658 = vst [vmem:[#allocation107_spill] sm:$0xff] %v7971_v10  ;;  %v2485_v6 = vsel %vm534_vm0, %v7971_v10, -inf }
 0x489   : > { %2806 = vadd.xlane.f32.xlu1 %v2805_v4  ;;  %v7984_v4 = vsel %vm1729_vm7, -1e+08, %v7895_v60  ;;  %v3162_v1 = vpop.permute.xlu1 %3161 }
 0x48a   : > { %10661 = vst [vmem:[#allocation109_spill] sm:$0xff] %v7984_v4 }
 0x48b   : > { %2809 = vadd.xlane.f32.xlu0 %v2808_v41  ;;  %v7990_v41 = vsel %vm1730_vm10, -1e+08, %v3146_v35 }
 0x48c   : > { %10662 = vst [vmem:[#allocation110_spill] sm:$0xff] %v7990_v41  ;;  %v3216_v60 = vsel %vm534_vm0, %v7990_v41, -inf }
 0x48d   : > { %2462 = vmax.xlane.f32.xlu1 %v2461_v59  ;;  %v3213_v59 = vsel %vm534_vm0, %v7984_v4, -inf }
 0x48f   : > { %2465 = vmax.xlane.f32.xlu0 %v2464_v13  ;;  %v7997_v13 = vsel %vm10657_vm1, -1e+08, %v7901_v50 }
 0x490   : > { %10663 = vst [vmem:[#allocation111_spill] sm:$0xff] %v7997_v13  ;;  %v3237_v35 = vsel %vm534_vm0, %v7997_v13, -inf  ;;  %v10670_v13 = vld [vmem:[#allocation13_spill] sm:$0xff] }
 0x491   : > { %2486 = vmax.xlane.f32.xlu1 %v2485_v6  ;;  %v8003_v6 = vsel %vm1738_vm15, -1e+08, %v3162_v1  ;;  %v3438_v1 = vmul.f32 %v7566_v51, %v7566_v51 }
 0x492   : > { %10664 = vst [vmem:[#allocation112_spill] sm:$0xff] %v8003_v6 }
 0x493   : > { %2489 = vmax.xlane.f32.xlu0 %v2488_v20  ;;  %v3240_v20 = vsel %vm534_vm0, %v8003_v6, -inf }
 0x495   : > { %3214 = vmax.xlane.f32.xlu1 %v3213_v59  ;;  %v3437_v59 = vmul.f32 %v7523_v11, %v7523_v11  ;;  %v10666_v11 = vld [vmem:[#allocation3_spill] sm:$0xff] }
 0x497   : > { %3217 = vmax.xlane.f32.xlu0 %v3216_v60 }
 0x499   : > { %3238 = vmax.xlane.f32.xlu1 %v3237_v35  ;;  %v3436_v35 = vmul.f32 %v7526_v15, %v7526_v15 }
 0x49b   : > { %3241 = vmax.xlane.f32.xlu0 %v3240_v20  ;;  %v10665_v20 = vld [vmem:[#allocation5_spill] sm:$0xff] }
 0x4a0   : > { %v1853_v23 = vpop.xlane.xlu0 %1852 }
 0x4a1   : > { %5487 = vrcp.f32 %v1853_v23 }
 0x4a4   : > { %v1859_v50 = vpop.xlane.xlu0 %1858 }
 0x4a8   : > { %v1865_v37 = vpop.xlane.xlu0 %1864 }
 0x4aa   : > { %3471 = vrot.lane.b32.xlu1 %v3437_v59, %s5900_s11  ;;  %v10667_v59 = vld [vmem:[#allocation7_spill] sm:$0xff] }
 0x4ab   : > { %v5488_v23 = vpop.eup %5487 }
 0x4ac   : > { %v1871_v60 = vpop.xlane.xlu0 %1870 }
 0x4ae   : > { %3473 = vrot.lane.b32.xlu1 %v3438_v1, %s5900_s11  ;;  %v10669_v1 = vld [vmem:[#allocation11_spill] sm:$0xff] }
 0x4b0   : > { %v8017_v54 = vpop.xlane.xlu0 %1876 }
 0x4b1   : > { %3469 = vrot.lane.b32.xlu0 %v3436_v35, %s5900_s11  ;;  %v10671_v35 = vld [vmem:[#allocation15_spill] sm:$0xff] }
 0x4b2   : > { %3696 = vperm.xlu1 %5454, %v10665_v20  }
 0x4b4   : > { %v8021_v16 = vpop.xlane.xlu0 %1882 }
 0x4b5   : > { %3692 = vperm.xlu0 %5453, %v10666_v11   ;;  %v10673_v11 = vld [vmem:[#allocation17_spill] sm:$0xff] }
 0x4b6   : > { %3700 = vperm.xlu1 %5454, %v10667_v59   ;;  %v1856_v8 = vpop.xlane.xlu1 %1855  ;;  %v10674_v59 = vld [vmem:[#allocation4_spill] sm:$0xff] }
 0x4b7   : > { %5489 = vrcp.f32 %v1856_v8 }
 0x4b8   : > { %v8025_v51 = vpop.xlane.xlu0 %3196  ;;  %5491 = vrcp.f32 %v1859_v50 }
 0x4b9   : > { %3704 = vperm.xlu0 %5453, %v10668_v7   ;;  %v10676_v7 = vld [vmem:[#allocation6_spill] sm:$0xff] }
 0x4ba   : > { %3708 = vperm.xlu1 %5454, %v10669_v1   ;;  %v1862_v15 = vpop.xlane.xlu1 %1861  ;;  %v10677_v1 = vld [vmem:[#allocation8_spill] sm:$0xff] }
 0x4bb   : > { %5493 = vrcp.f32 %v1862_v15 }
 0x4bc   : > { %v8029_v48 = vpop.xlane.xlu0 %1888  ;;  %5495 = vrcp.f32 %v1865_v37 }
 0x4bd   : > { %3712 = vperm.xlu0 %5453, %v10670_v13  }
 0x4be   : > { %3716 = vperm.xlu1 %5454, %v10671_v35   ;;  %v1868_v20 = vpop.xlane.xlu1 %1867 }
 0x4c0   : > { %v8033_v6 = vpop.xlane.xlu0 %2767 }
 0x4c1   : > { %10672 = vst [vmem:[#allocation113_spill] sm:$0xff] %v8033_v6  ;;  %3720 = vperm.xlu0 %5453, %v10673_v11  }
 0x4c2   : > { %3724 = vperm.xlu1 %5454, %v10674_v59   ;;  %v1874_v4 = vpop.xlane.xlu1 %1873  ;;  %v1915_v59 = vmul.f32 %v5488_v23, %v7673_v33 }
 0x4c4   : > { %v8037_v41 = vpop.xlane.xlu0 %2791  ;;  %v2075_v8 = vadd.f32 1e-08, %v1915_v59 }
 0x4c5   : > { %10675 = vst [vmem:[#allocation114_spill] sm:$0xff] %v8037_v41  ;;  %3728 = vperm.xlu0 %5453, %v10676_v7   ;;  %v5490_v7 = vpop.eup %5489 }
 0x4c6   : > { %3732 = vperm.xlu1 %5454, %v10677_v1   ;;  %v8041_v10 = vpop.xlane.xlu1 %1879  ;;  %v5492_v25 = vpop.eup %5491  ;;  %v8059_v50 = vmul.f32 %v5490_v7, %v7723_v0  ;;  %5497 = vlog2.f32 %v2075_v8 }
 0x4c7   : > { %5499 = vrcp.f32 %v1868_v20  ;;  %v5494_v15 = vpop.eup %5493 }
 0x4c8   : > { %v8043_v13 = vpop.xlane.xlu0 %2447  ;;  %v2076_v37 = vadd.f32 1e-08, %v8059_v50  ;;  %5501 = vrcp.f32 %v1871_v60  ;;  %v5496_v7 = vpop.eup %5495  ;;  %v8083_v60 = vld [vmem:[%s7078_s27] sm:$0xff] }
 0x4c9   : > { %10681 = vst [vmem:[#allocation118_spill] sm:$0xff] %v8083_v60  ;;  %v1931_v20 = vmul.f32 %v8083_v60, %v1915_v59 }
 0x4ca   : > { %v8045_v35 = vpop.xlane.xlu1 %1885  ;;  %5503 = vlog2.f32 %v2076_v37 }
 0x4cc   : > { %v8047_v6 = vpop.xlane.xlu0 %2471 }
 0x4ce   : > { %v8049_v11 = vpop.xlane.xlu1 %2764 }
 0x4cf   : > { %10678 = vst [vmem:[#allocation115_spill] sm:$0xff] %v8049_v11  ;;  %v8064_v11 = vmul.f32 %v5492_v25, %v7682_v56  ;;  %v8080_v25 = vmul.f32 %v5496_v7, %v7692_v28 }
 0x4d0   : > { %v8052_v41 = vpop.xlane.xlu0 %3223  ;;  %v5498_v8 = vpop.eup %5497 }
 0x4d1   : > { %v2079_v28 = vadd.f32 1e-08, %v8080_v25  ;;  %v2092_v46 = vmul.f32 0.6931472, %v5498_v8 }
 0x4d2   : > { %v8054_v1 = vpop.xlane.xlu1 %2788 }
 0x4d3   : > { %10679 = vst [vmem:[#allocation116_spill] sm:$0xff] %v8054_v1  ;;  %v2077_v1 = vadd.f32 1e-08, %v8064_v11 }
 0x4d4   : > { %v8056_v19 = vpop.xlane.xlu0 %2770 }
 0x4d5   : > { %10680 = vst [vmem:[#allocation117_spill] sm:$0xff] %v8056_v19  ;;  %v8075_v19 = vmul.f32 %v5494_v15, %v7737_v3  ;;  %5505 = vlog2.f32 %v2077_v1  ;;  %v5500_v15 = vpop.eup %5499  ;;  %v8095_v1 = vld [vmem:[%s7078_s27 + $0x10] sm:$0xff] }
 0x4d6   : > { %v8061_v63 = vpop.xlane.xlu1 %2444  ;;  %5507 = vrcp.f32 %v1874_v4  ;;  %v5502_v7 = vpop.eup %5501  ;;  %v1947_v4 = vsel %vm534_vm0, %v1931_v20, 0.0  ;;  %10682 = vst [vmem:[#allocation119_spill] sm:$0xff] %v8095_v1  ;;  %v1933_v60 = vmul.f32 %v8095_v1, %v8064_v11  ;;  %v8102_v52 = vmul.f32 %v5500_v15, %v7745_v40 }
 0x4d7   : > { %v2078_v3 = vadd.f32 1e-08, %v8075_v19  ;;  %5509 = vrcp.f32 %v8017_v54  ;;  %v8105_v54 = vld [vmem:[%s7078_s27 + $0x8] sm:$0xff]  ;;  %v2059_v20 = vsub.f32 0.0, %v1915_v59  ;;  %v5504_v24 = vpop.eup %5503  ;;  %v8112_v1 = vmul.f32 %v5502_v7, %v7701_v26 }
 0x4d8   : > { %v8066_v33 = vpop.xlane.xlu0 %2450  ;;  %10684 = vst [vmem:[#allocation121_spill] sm:$0xff] %v8105_v54  ;;  %v1932_v2 = vmul.f32 %v8105_v54, %v8059_v50  ;;  %v1953_v8 = vsel %vm534_vm0, %v1933_v60, 0.0  ;;  %v8120_v54 = vld [vmem:[%s7078_s27 + $0x18] sm:$0xff]  ;;  %v2094_v7 = vmul.f32 0.6931472, %v5504_v24 }
 0x4d9   : > { %5511 = vlog2.f32 %v2078_v3  ;;  %v2123_v40 = vmul.f32 %v2092_v46, %v2059_v20  ;;  %10686 = vst [vmem:[#allocation123_spill] sm:$0xff] %v8120_v54  ;;  %v1934_v26 = vmul.f32 %v8120_v54, %v8075_v19  ;;  %v2081_v46 = vadd.f32 1e-08, %v8112_v1 }
 0x4da   : > { %v8069_v23 = vpop.xlane.xlu1 %2468  ;;  %5513 = vlog2.f32 %v2079_v28  ;;  %v1950_v59 = vsel %vm534_vm0, %v1932_v2, 0.0  ;;  %v2060_v2 = vsub.f32 0.0, %v8059_v50 }
 0x4db   : > { %v2139_v20 = vsel %vm534_vm0, %v2123_v40, 0.0  ;;  %v2061_v40 = vsub.f32 0.0, %v8064_v11 }
 0x4dc   : > { %v8072_v0 = vpop.xlane.xlu0 %3202 }
 0x4de   : > { %v8077_v56 = vpop.xlane.xlu1 %3220 }
 0x4df   : > { %v5506_v15 = vpop.eup %5505 }
 0x4e0   : > { %v8086_v30 = vpop.xlane.xlu0 %1894  ;;  %v2096_v21 = vmul.f32 0.6931472, %v5506_v15 }
 0x4e2   : > { %v8090_v37 = vpop.xlane.xlu1 %3199 }
 0x4e4   : > { %v8099_v44 = vpop.xlane.xlu0 %2773  ;;  %1948 = vadd.xlane.f32.xlu0 %v1947_v4  ;;  %v2080_v4 = vadd.f32 1e-08, %v8102_v52 }
 0x4e5   : > { %10683 = vst [vmem:[#allocation120_spill] sm:$0xff] %v8099_v44  ;;  %v5508_v44 = vpop.eup %5507 }
 0x4e6   : > { %v8109_v53 = vpop.xlane.xlu1 %1891  ;;  %v5510_v60 = vpop.eup %5509  ;;  %v8135_v54 = vmul.f32 %v5508_v44, %v7751_v31  ;;  %5515 = vlog2.f32 %v2080_v4  ;;  %v2125_v44 = vmul.f32 %v2096_v21, %v2061_v40 }
 0x4e7   : > { %v5512_v32 = vpop.eup %5511  ;;  %5517 = vlog2.f32 %v2081_v46  ;;  %v8161_v46 = vld [vmem:[%s7078_s27 + $0x30] sm:$0xff] }
 0x4e8   : > { %v8115_v3 = vpop.xlane.xlu0 %2797  ;;  %1954 = vadd.xlane.f32.xlu0 %v1953_v8  ;;  %v8129_v8 = vld [vmem:[%s7078_s27 + $0x20] sm:$0xff]  ;;  %v5514_v15 = vpop.eup %5513  ;;  %5519 = vrcp.f32 %v8041_v10  ;;  %v2082_v4 = vadd.f32 1e-08, %v8135_v54  ;;  %v2145_v10 = vsel %vm534_vm0, %v2125_v44, 0.0 }
 0x4e9   : > { %10685 = vst [vmem:[#allocation122_spill] sm:$0xff] %v8115_v3  ;;  %10688 = vst [vmem:[#allocation125_spill] sm:$0xff] %v8129_v8  ;;  %v1935_v3 = vmul.f32 %v8129_v8, %v8080_v25  ;;  %v8142_v8 = vmul.f32 %v5510_v60, %v7711_v61  ;;  %5521 = vrcp.f32 %v8021_v16  ;;  %v2062_v60 = vsub.f32 0.0, %v8075_v19 }
 0x4ea   : > { %1951 = vadd.xlane.f32.xlu1 %v1950_v59  ;;  %v8124_v28 = vpop.xlane.xlu1 %2794  ;;  %v1956_v59 = vsel %vm534_vm0, %v1934_v26, 0.0  ;;  %v8151_v26 = vld [vmem:[%s7078_s27 + $0x28] sm:$0xff]  ;;  %5523 = vlog2.f32 %v2082_v4  ;;  %v8176_v4 = vld [vmem:[%s7078_s27 + $0x38] sm:$0xff] }
 0x4eb   : > { %10687 = vst [vmem:[#allocation124_spill] sm:$0xff] %v8124_v28  ;;  %v2124_v28 = vmul.f32 %v2094_v7, %v2060_v2  ;;  %v1959_v31 = vsel %vm534_vm0, %v1935_v3, 0.0  ;;  %v1936_v61 = vmul.f32 %v8151_v26, %v8102_v52  ;;  %v2098_v7 = vmul.f32 0.6931472, %v5512_v32 }
 0x4ec   : > { %2140 = vadd.xlane.f32.xlu0 %v2139_v20  ;;  %v8137_v24 = vpop.xlane.xlu0 %2453  ;;  %v2083_v3 = vadd.f32 1e-08, %v8142_v8  ;;  %v2100_v20 = vmul.f32 0.6931472, %v5514_v15 }
 0x4ed   : > { %v2142_v11 = vsel %vm534_vm0, %v2124_v28, 0.0  ;;  %v1937_v28 = vmul.f32 %v8161_v46, %v8112_v1  ;;  %v1962_v16 = vsel %vm534_vm0, %v1936_v61, 0.0  ;;  %v2126_v2 = vmul.f32 %v2098_v7, %v2062_v60 }
 0x4ee   : > { %1957 = vadd.xlane.f32.xlu1 %v1956_v59  ;;  %v8144_v50 = vpop.xlane.xlu1 %2474  ;;  %v2063_v59 = vsub.f32 0.0, %v8080_v25  ;;  %5525 = vlog2.f32 %v2083_v3  ;;  %v1938_v25 = vmul.f32 %v8176_v4, %v8135_v54  ;;  %v2064_v60 = vsub.f32 0.0, %v8102_v52 }
 0x4ef   : > { %5527 = vrcp.f32 %v8045_v35  ;;  %v2148_v15 = vsel %vm534_vm0, %v2126_v2, 0.0  ;;  %v8185_v35 = vld [vmem:[%s7078_s27 + $0x40] sm:$0xff]  ;;  %v2491_v2 = vsub.f32 %v7800_v5, %v8061_v63 }
 0x4f0   : > { %1960 = vadd.xlane.f32.xlu0 %v1959_v31  ;;  %v8157_v21 = vpop.xlane.xlu0 %2477  ;;  %v5516_v40 = vpop.eup %5515  ;;  %v1965_v31 = vsel %vm534_vm0, %v1937_v28, 0.0  ;;  %v2127_v44 = vmul.f32 %v2100_v20, %v2063_v59  ;;  %5529 = vrcp.f32 %v8029_v48  ;;  %v1939_v28 = vmul.f32 %v8185_v35, %v8142_v8 }
 0x4f1   : > { %v2102_v61 = vmul.f32 0.6931472, %v5516_v40  ;;  %v1968_v48 = vsel %vm534_vm0, %v1938_v25, 0.0  ;;  %v2065_v40 = vsub.f32 0.0, %v8112_v1 }
 0x4f2   : > { %2143 = vadd.xlane.f32.xlu1 %v2142_v11  ;;  %v8166_v32 = vpop.xlane.xlu1 %3226  ;;  %v5518_v11 = vpop.eup %5517 }
 0x4f3   : > { %v5520_v7 = vpop.eup %5519  ;;  %v2104_v20 = vmul.f32 0.6931472, %v5518_v11  ;;  %v2128_v59 = vmul.f32 %v2102_v61, %v2064_v60  ;;  %v1971_v11 = vsel %vm534_vm0, %v1939_v28, 0.0  ;;  %v2507_v61 = vmul.f32 1.442695, %v2491_v2 }
 0x4f4   : > { %2146 = vadd.xlane.f32.xlu0 %v2145_v10  ;;  %v8172_v19 = vpop.xlane.xlu0 %3205  ;;  %v2151_v10 = vsel %vm534_vm0, %v2127_v44, 0.0  ;;  %v2066_v2 = vsub.f32 0.0, %v8135_v54  ;;  %v3244_v54 = vsub.f32 %v7839_v57, %v8090_v37  ;;  %v3252_v57 = vsub.f32 %v7789_v62, %v8052_v41 }
 0x4f5   : > { %v2129_v5 = vmul.f32 %v2104_v20, %v2065_v40  ;;  %v2500_v20 = vsub.f32 %v7777_v34, %v8047_v6  ;;  %5531 = vpow2.f32 %v2507_v61  ;;  %v2067_v6 = vsub.f32 0.0, %v8142_v8 }
 0x4f6   : > { %1963 = vadd.xlane.f32.xlu1 %v1962_v16  ;;  %v8181_v3 = vpop.xlane.xlu1 %1897  ;;  %v5522_v16 = vpop.eup %5521  ;;  %v3277_v41 = vmul.f32 1.442695, %v3252_v57 }
 0x4f7   : > { %v5524_v44 = vpop.eup %5523  ;;  %v8203_v63 = vmul.f32 %v5522_v16, %v7719_v55  ;;  %v3243_v55 = vsub.f32 %v7733_v22, %v8025_v51 }
 0x4f8   : > { %1966 = vadd.xlane.f32.xlu0 %v1965_v31  ;;  %v8195_v31 = vmul.f32 %v5520_v7, %v7760_v45  ;;  %v8199_v52 = vpop.xlane.xlu0 %3229  ;;  %v5526_v25 = vpop.eup %5525  ;;  %v2499_v45 = vsub.f32 %v7814_v58, %v8069_v23  ;;  %v2157_v58 = vsel %vm534_vm0, %v2129_v5, 0.0  ;;  %v8221_v23 = vld [vmem:[%s7078_s27 + $0x50] sm:$0xff]  ;;  %v3251_v5 = vsub.f32 %v7829_v9, %v8077_v56 }
 0x4f9   : > { %v5528_v28 = vpop.eup %5527  ;;  %v1941_v16 = vmul.f32 %v8221_v23, %v8203_v63  ;;  %v2085_v56 = vadd.f32 1e-08, %v8203_v63 }
 0x4fa   : > { %2149 = vadd.xlane.f32.xlu1 %v2148_v15  ;;  %v2492_v15 = vsub.f32 %v7765_v17, %v8043_v13  ;;  %v8207_v1 = vpop.xlane.xlu1 %2776  ;;  %v2154_v17 = vsel %vm534_vm0, %v2128_v59, 0.0  ;;  %v8211_v13 = vld [vmem:[%s7078_s27 + $0x48] sm:$0xff]  ;;  %v5530_v59 = vpop.eup %5529  ;;  %v2523_v40 = vmul.f32 1.442695, %v2499_v45 }
 0x4fb   : > { %10689 = vst [vmem:[#allocation126_spill] sm:$0xff] %v8207_v1  ;;  %v1940_v7 = vmul.f32 %v8211_v13, %v8195_v31  ;;  %v1977_v61 = vsel %vm534_vm0, %v1941_v16, 0.0  ;;  %v8241_v8 = vmul.f32 %v5530_v59, %v7741_v39  ;;  %v3261_v39 = vmul.f32 1.442695, %v3244_v54 }
 0x4fc   : > { %2152 = vadd.xlane.f32.xlu0 %v2151_v10  ;;  %v2106_v10 = vmul.f32 0.6931472, %v5524_v44  ;;  %v2509_v60 = vmul.f32 1.442695, %v2492_v15  ;;  %v8226_v22 = vpop.xlane.xlu0 %2779  ;;  %v8231_v44 = vmul.f32 %v5528_v28, %v7771_v29  ;;  %v3259_v15 = vmul.f32 1.442695, %v3243_v55 }
 0x4fd   : > { %10690 = vst [vmem:[#allocation127_spill] sm:$0xff] %v8226_v22  ;;  %v1974_v51 = vsel %vm534_vm0, %v1940_v7, 0.0  ;;  %v2084_v29 = vadd.f32 1e-08, %v8195_v31  ;;  %v3275_v7 = vmul.f32 1.442695, %v3251_v5 }
 0x4fe   : > { %1969 = vadd.xlane.f32.xlu1 %v1968_v48  ;;  %v2108_v48 = vmul.f32 0.6931472, %v5526_v25  ;;  %v2130_v34 = vmul.f32 %v2106_v10, %v2066_v2  ;;  %5533 = vpow2.f32 %v2509_v60  ;;  %v8237_v25 = vpop.xlane.xlu1 %2800  ;;  %v8257_v55 = vld [vmem:[%s7078_s27 + $0x60] sm:$0xff]  ;;  %v10727_v22 = vld [vmem:[#allocation12_spill] sm:$0xff] }
 0x4ff   : > { %10691 = vst [vmem:[#allocation128_spill] sm:$0xff] %v8237_v25  ;;  %5535 = vpow2.f32 %v2523_v40  ;;  %v1943_v62 = vmul.f32 %v8257_v55, %v8241_v8 }
 0x500   : > { %1972 = vadd.xlane.f32.xlu0 %v1971_v11  ;;  %v2525_v11 = vmul.f32 1.442695, %v2500_v20  ;;  %v2131_v45 = vmul.f32 %v2108_v48, %v2067_v6  ;;  %v2160_v37 = vsel %vm534_vm0, %v2130_v34, 0.0  ;;  %v8253_v10 = vpop.xlane.xlu0 %2803 }
 0x501   : > { %10692 = vst [vmem:[#allocation129_spill] sm:$0xff] %v8253_v10  ;;  %v1983_v16 = vsel %vm534_vm0, %v1943_v62, 0.0 }
 0x502   : > { %2155 = vadd.xlane.f32.xlu1 %v2154_v17  ;;  %v8248_v17 = vld [vmem:[%s7078_s27 + $0x58] sm:$0xff]  ;;  %5537 = vpow2.f32 %v2525_v11  ;;  %v2163_v28 = vsel %vm534_vm0, %v2131_v45, 0.0  ;;  %v8261_v60 = vpop.xlane.xlu1 %2456 }
 0x503   : > { %v1942_v9 = vmul.f32 %v8248_v17, %v8231_v44  ;;  %5539 = vpow2.f32 %v3259_v15 }
 0x504   : > { %2158 = vadd.xlane.f32.xlu0 %v2157_v58  ;;  %5541 = vlog2.f32 %v2084_v29  ;;  %v8264_v58 = vpop.eup %5531  ;;  %v8270_v48 = vpop.xlane.xlu0 %2459 }
 0x505   : > { %v1980_v20 = vsel %vm534_vm0, %v1942_v9, 0.0  ;;  %5543 = vlog2.f32 %v2085_v56  ;;  %v2539_v59 = vsel %vm534_vm0, %v8264_v58, 0.0 }
 0x506   : > { %1975 = vadd.xlane.f32.xlu1 %v1974_v51  ;;  %5545 = vpow2.f32 %v3261_v39  ;;  %v8277_v51 = vpop.xlane.xlu1 %2480  ;;  %v2502_v39 = vsub.f32 %v7868_v27, %v8157_v21 }
 0x507   : > { %5547 = vpow2.f32 %v3275_v7 }
 0x508   : > { %1978 = vadd.xlane.f32.xlu0 %v1977_v61  ;;  %v8267_v2 = vpop.eup %5533  ;;  %5549 = vrcp.f32 %v8109_v53  ;;  %v2493_v53 = vsub.f32 %v7807_v47, %v8066_v33  ;;  %v8291_v61 = vpop.xlane.xlu0 %2483  ;;  %v2501_v33 = vsub.f32 %v7861_v36, %v8144_v50  ;;  %v2068_v50 = vsub.f32 0.0, %v8195_v31 }
 0x509   : > { %5551 = vpow2.f32 %v3277_v41  ;;  %v8274_v40 = vpop.eup %5535  ;;  %v2542_v34 = vsel %vm534_vm0, %v8267_v2, 0.0  ;;  %v3245_v41 = vsub.f32 %v7820_v18, %v8072_v0  ;;  %v2529_v31 = vmul.f32 1.442695, %v2502_v39 }
 0x50a   : > { %2161 = vadd.xlane.f32.xlu1 %v2160_v37  ;;  %5553 = vrcp.f32 %v8086_v30  ;;  %v2563_v11 = vsel %vm534_vm0, %v8274_v40, 0.0  ;;  %v2494_v30 = vsub.f32 %v7856_v43, %v8137_v24  ;;  %v2511_v47 = vmul.f32 1.442695, %v2493_v53  ;;  %v8301_v37 = vpop.xlane.xlu1 %3208 }
 0x50b   : > { %v3246_v53 = vsub.f32 %v7881_v38, %v8172_v19  ;;  %v3253_v0 = vsub.f32 %v7875_v12, %v8166_v32  ;;  %v8336_v19 = vld [vmem:[%s7078_s27 + $0x68] sm:$0xff]  ;;  %v2087_v32 = vadd.f32 1e-08, %v8241_v8 }
 0x50c   : > { %2164 = vadd.xlane.f32.xlu0 %v2163_v28  ;;  %v8281_v6 = vpop.eup %5537  ;;  %v2513_v56 = vmul.f32 1.442695, %v2494_v30  ;;  %5555 = vpow2.f32 %v2511_v47  ;;  %v3263_v30 = vmul.f32 1.442695, %v3245_v41  ;;  %v10695_v41 = vld [vmem:[#allocation98_spill] sm:$0xff] }
 0x50d   : > { %v8285_v15 = vpop.eup %5539  ;;  %v2566_v45 = vsel %vm534_vm0, %v8281_v6, 0.0 }
 0x50e   : > { %1981 = vadd.xlane.f32.xlu1 %v1980_v20  ;;  %v5542_v54 = vpop.eup %5541  ;;  %v3291_v43 = vsel %vm534_vm0, %v8285_v15, 0.0  ;;  %v2527_v20 = vmul.f32 1.442695, %v2501_v33  ;;  %5557 = vpow2.f32 %v2513_v56 }
 0x50f   : > { %v5544_v5 = vpop.eup %5543  ;;  %v2110_v24 = vmul.f32 0.6931472, %v5542_v54 }
 0x510   : > { %1984 = vadd.xlane.f32.xlu0 %v1983_v16  ;;  %v8295_v29 = vpop.eup %5545  ;;  %v2112_v7 = vmul.f32 0.6931472, %v5544_v5  ;;  %v2069_v16 = vsub.f32 0.0, %v8203_v63  ;;  %v8326_v63 = vpop.xlane.xlu1 %3232  ;;  %5559 = vpow2.f32 %v2527_v20  ;;  %v3265_v5 = vmul.f32 1.442695, %v3246_v53 }
 0x511   : > { %v8299_v57 = vpop.eup %5547  ;;  %v3294_v36 = vsel %vm534_vm0, %v8295_v29, 0.0  ;;  %v2132_v21 = vmul.f32 %v2110_v24, %v2068_v50  ;;  %5561 = vpow2.f32 %v2529_v31  ;;  %v2496_v20 = vsub.f32 %v10695_v41, %v8270_v48  ;;  %v10698_v48 = vld [vmem:[#allocation100_spill] sm:$0xff] }
 0x512   : > { %2540 = vadd.xlane.f32.xlu1 %v2539_v59  ;;  %v5550_v9 = vpop.eup %5549  ;;  %v8315_v59 = vpop.xlane.xlu0 %3211  ;;  %v3315_v27 = vsel %vm534_vm0, %v8299_v57, 0.0  ;;  %v2133_v18 = vmul.f32 %v2112_v7, %v2069_v16 }
 0x513   : > { %v8307_v28 = vpop.eup %5551  ;;  %v2166_v38 = vsel %vm534_vm0, %v2132_v21, 0.0 }
 0x514   : > { %2543 = vadd.xlane.f32.xlu0 %v2542_v34  ;;  %v5554_v62 = vpop.eup %5553  ;;  %v8320_v34 = vmul.f32 %v5550_v9, %v7847_v49  ;;  %v2086_v49 = vadd.f32 1e-08, %v8231_v44  ;;  %v2169_v33 = vsel %vm534_vm0, %v2133_v18, 0.0  ;;  %v8351_v9 = vpop.xlane.xlu1 %2782 }
 0x515   : > { %v8331_v54 = vmul.f32 %v5554_v62, %v7833_v14  ;;  %v3254_v14 = vsub.f32 %v7891_v42, %v8199_v52  ;;  %10693 = vst [vmem:[#allocation130_spill] sm:$0xff] %v8351_v9 }
 0x516   : > { %2564 = vadd.xlane.f32.xlu1 %v2563_v11  ;;  %v3318_v11 = vsel %vm534_vm0, %v8307_v28, 0.0  ;;  %v1944_v12 = vmul.f32 %v8336_v19, %v8320_v34  ;;  %v8343_v47 = vpop.xlane.xlu0 %3235  ;;  %5563 = vlog2.f32 %v2086_v49  ;;  %v8354_v42 = vpop.eup %5555  ;;  %v2504_v49 = vsub.f32 %v10698_v48, %v8291_v61 }
 0x517   : > { %5565 = vpow2.f32 %v3263_v30  ;;  %v3281_v52 = vmul.f32 1.442695, %v3254_v14  ;;  %v2545_v50 = vsel %vm534_vm0, %v8354_v42, 0.0 }
 0x518   : > { %2567 = vadd.xlane.f32.xlu0 %v2566_v45  ;;  %v3279_v45 = vmul.f32 1.442695, %v3253_v0  ;;  %v1986_v56 = vsel %vm534_vm0, %v1944_v12, 0.0  ;;  %5567 = vlog2.f32 %v2087_v32  ;;  %v8357_v7 = vpop.eup %5557  ;;  %v8368_v16 = vpop.xlane.xlu1 %2806 }
 0x519   : > { %5569 = vpow2.f32 %v3265_v5  ;;  %10696 = vst [vmem:[#allocation98_spill] sm:$0xff] %v8368_v16  ;;  %v10700_v5 = vld [vmem:[#allocation99_spill] sm:$0xff] }
 0x51a   : > { %3292 = vadd.xlane.f32.xlu1 %v3291_v43  ;;  %v8347_v43 = vld [vmem:[%s7078_s27 + $0x70] sm:$0xff]  ;;  %5571 = vpow2.f32 %v3279_v45  ;;  %v8364_v62 = vpop.eup %5559  ;;  %v2503_v14 = vsub.f32 %v10700_v5, %v8277_v51  ;;  %v2070_v51 = vsub.f32 0.0, %v8231_v44  ;;  %v2089_v44 = vadd.f32 1e-08, %v8331_v54 }
 0x51b   : > { %v1945_v24 = vmul.f32 %v8347_v43, %v8331_v54  ;;  %5573 = vrcp.f32 %v8181_v3  ;;  %v8372_v21 = vpop.eup %5561  ;;  %v10697_v3 = vld [vmem:[#allocation97_spill] sm:$0xff]  ;;  %v2569_v18 = vsel %vm534_vm0, %v8364_v62, 0.0 }
 0x51c   : > { %3295 = vadd.xlane.f32.xlu0 %v3294_v36  ;;  %v8360_v36 = vpop.xlane.xlu0 %2785  ;;  %5575 = vpow2.f32 %v3281_v52  ;;  %v2495_v31 = vsub.f32 %v10697_v3, %v8261_v60  ;;  %v2572_v12 = vsel %vm534_vm0, %v8372_v21, 0.0  ;;  %v2533_v52 = vmul.f32 1.442695, %v2504_v49  ;;  %v10703_v49 = vld [vmem:[#allocation96_spill] sm:$0xff] }
 0x51d   : > { %v1989_v39 = vsel %vm534_vm0, %v1945_v24, 0.0  ;;  %10694 = vst [vmem:[#allocation131_spill] sm:$0xff] %v8360_v36  ;;  %v2531_v3 = vmul.f32 1.442695, %v2503_v14 }
 0x51e   : > { %3316 = vadd.xlane.f32.xlu1 %v3315_v27  ;;  %v2548_v27 = vsel %vm534_vm0, %v8357_v7, 0.0  ;;  %v2515_v60 = vmul.f32 1.442695, %v2495_v31  ;;  %v10702_v31 = vld [vmem:[#allocation101_spill] sm:$0xff] }
 0x520   : > { %3319 = vadd.xlane.f32.xlu0 %v3318_v11  ;;  %v5564_v53 = vpop.eup %5563  ;;  %v2517_v11 = vmul.f32 1.442695, %v2496_v20 }
 0x521   : > { %v8378_v0 = vpop.eup %5565  ;;  %v2114_v24 = vmul.f32 0.6931472, %v5564_v53  ;;  %v3247_v53 = vsub.f32 %v10702_v31, %v8301_v37 }
 0x522   : > { %2167 = vadd.xlane.f32.xlu1 %v2166_v38  ;;  %v5568_v30 = vpop.eup %5567  ;;  %v8382_v38 = vpop.xlane.xlu0 %2809  ;;  %v3297_v61 = vsel %vm534_vm0, %v8378_v0, 0.0  ;;  %5577 = vpow2.f32 %v2517_v11 }
 0x523   : > { %10699 = vst [vmem:[#allocation97_spill] sm:$0xff] %v8382_v38  ;;  %v8386_v32 = vpop.eup %5569  ;;  %v2116_v20 = vmul.f32 0.6931472, %v5568_v30  ;;  %5579 = vpow2.f32 %v2515_v60  ;;  %v2134_v48 = vmul.f32 %v2114_v24, %v2070_v51  ;;  %v10704_v60 = vld [vmem:[#allocation104_spill] sm:$0xff]  ;;  %v3267_v24 = vmul.f32 1.442695, %v3247_v53 }
 0x524   : > { %2170 = vadd.xlane.f32.xlu0 %v2169_v33  ;;  %v8390_v45 = vpop.eup %5571  ;;  %v8392_v33 = vpop.xlane.xlu1 %2462  ;;  %v3300_v41 = vsel %vm534_vm0, %v8386_v32, 0.0  ;;  %5581 = vpow2.f32 %v2533_v52  ;;  %v3256_v5 = vsub.f32 %v10704_v60, %v8343_v47 }
 0x525   : > { %5583 = vpow2.f32 %v2531_v3  ;;  %v2172_v52 = vsel %vm534_vm0, %v2134_v48, 0.0 }
 0x526   : > { %1987 = vadd.xlane.f32.xlu1 %v1986_v56  ;;  %v5574_v56 = vpop.eup %5573  ;;  %v2466_v11 = vpop.xlane.xlu0 %2465  ;;  %5585 = vlog2.f32 %v2089_v44 }
 0x528   : > { %1990 = vadd.xlane.f32.xlu0 %v1989_v39  ;;  %v10701_v39 = vld [vmem:[#allocation102_spill] sm:$0xff]  ;;  %v2487_v37 = vpop.xlane.xlu1 %2486 }
 0x52a   : > { %2546 = vadd.xlane.f32.xlu1 %v2545_v50  ;;  %v3248_v50 = vsub.f32 %v10701_v39, %v8315_v59  ;;  %v3321_v59 = vsel %vm534_vm0, %v8390_v45, 0.0  ;;  %v2490_v51 = vpop.xlane.xlu0 %2489 }
 0x52c   : > { %2549 = vadd.xlane.f32.xlu0 %v2548_v27  ;;  %v8401_v27 = vpop.eup %5575  ;;  %v3269_v30 = vmul.f32 1.442695, %v3248_v50  ;;  %v8421_v50 = vld [vmem:[%s7078_s27 + $0x78] sm:$0xff]  ;;  %v3215_v31 = vpop.xlane.xlu1 %3214 }
 0x52d   : > { %v8426_v3 = vpop.eup %5577 }
 0x52e   : > { %2570 = vadd.xlane.f32.xlu1 %v2569_v18  ;;  %v2071_v18 = vsub.f32 0.0, %v8241_v8  ;;  %v3324_v8 = vsel %vm534_vm0, %v8401_v27, 0.0  ;;  %5587 = vpow2.f32 %v3269_v30  ;;  %10706 = vst [vmem:[#allocation100_spill] sm:$0xff] %v8426_v3  ;;  %v10709_v30 = vld [vmem:[#allocation105_spill] sm:$0xff] }
 0x52f   : > { %v2497_v60 = vsub.f32 %v10709_v30, %v8392_v33  ;;  %v10712_v33 = vld [vmem:[#allocation107_spill] sm:$0xff] }
 0x530   : > { %2573 = vadd.xlane.f32.xlu0 %v2572_v12  ;;  %v8409_v12 = vmul.f32 %v5574_v56, %v10703_v49  ;;  %v2135_v14 = vmul.f32 %v2116_v20, %v2071_v18  ;;  %v10705_v56 = vld [vmem:[#allocation103_spill] sm:$0xff]  ;;  %v8429_v18 = vpop.eup %5579  ;;  %v2554_v49 = vsel %vm534_vm0, %v8426_v3, 0.0 }
 0x531   : > { %v3255_v39 = vsub.f32 %v10705_v56, %v8326_v63  ;;  %v8434_v44 = vpop.eup %5581 }
 0x532   : > { %3298 = vadd.xlane.f32.xlu1 %v3297_v61  ;;  %v2088_v61 = vadd.f32 1e-08, %v8320_v34  ;;  %v1946_v47 = vmul.f32 %v8421_v50, %v8409_v12  ;;  %v2175_v20 = vsel %vm534_vm0, %v2135_v14, 0.0  ;;  %10708 = vst [vmem:[#allocation99_spill] sm:$0xff] %v8434_v44  ;;  %v8440_v14 = vpop.eup %5583 }
 0x533   : > { %v3283_v63 = vmul.f32 1.442695, %v3255_v39  ;;  %v5586_v56 = vpop.eup %5585  ;;  %v3239_v39 = vpop.xlane.xlu1 %3238 }
 0x534   : > { %3301 = vadd.xlane.f32.xlu0 %v3300_v41  ;;  %v3285_v41 = vmul.f32 1.442695, %v3256_v5  ;;  %5589 = vlog2.f32 %v2088_v61  ;;  %v1992_v53 = vsel %vm534_vm0, %v1946_v47, 0.0  ;;  %v3218_v5 = vpop.xlane.xlu0 %3217 }
 0x535   : > { %5591 = vpow2.f32 %v3267_v24  ;;  %v10710_v24 = vld [vmem:[#allocation108_spill] sm:$0xff] }
 0x536   : > { %3322 = vadd.xlane.f32.xlu1 %v3321_v59  ;;  %5593 = vpow2.f32 %v3285_v41  ;;  %v10707_v59 = vld [vmem:[#allocation106_spill] sm:$0xff]  ;;  %v2519_v41 = vmul.f32 1.442695, %v2497_v60 }
 0x537   : > { %v2498_v48 = vsub.f32 %v10707_v59, %v2466_v11  ;;  %5595 = vpow2.f32 %v3283_v63  ;;  %v2506_v11 = vsub.f32 %v10710_v24, %v2490_v51  ;;  %v2120_v24 = vmul.f32 0.6931472, %v5586_v56  ;;  %v8458_v38 = vpop.permute.xlu1 %3471  ;;  %v10717_v56 = vld [vmem:[#allocation112_spill] sm:$0xff] }
 0x538   : > { %3325 = vadd.xlane.f32.xlu0 %v3324_v8  ;;  %v2551_v8 = vsel %vm534_vm0, %v8429_v18, 0.0  ;;  %v8445_v47 = vpop.eup %5587  ;;  %v3242_v30 = vpop.xlane.xlu0 %3241  ;;  %10716 = vst [vmem:[#allocation96_spill] sm:$0xff] %v8458_v38 }
 0x539   : > { %v2521_v61 = vmul.f32 1.442695, %v2498_v48  ;;  %10711 = vst [vmem:[#allocation102_spill] sm:$0xff] %v8445_v47  ;;  %v2537_v51 = vmul.f32 1.442695, %v2506_v11  ;;  %v10713_v48 = vld [vmem:[#allocation110_spill] sm:$0xff]  ;;  %v3258_v10 = vsub.f32 %v10717_v56, %v3242_v30 }
 0x53a   : > { %2173 = vadd.xlane.f32.xlu1 %v2172_v52  ;;  %v2578_v52 = vsel %vm534_vm0, %v8434_v44, 0.0 }
 0x53b   : > { %5597 = vpow2.f32 %v2521_v61 }
 0x53c   : > { %2176 = vadd.xlane.f32.xlu0 %v2175_v20  ;;  %v2505_v20 = vsub.f32 %v10712_v33, %v2487_v37  ;;  %5599 = vpow2.f32 %v2519_v41 }
 0x53d   : > { %5601 = vpow2.f32 %v2537_v51  ;;  %v3289_v51 = vmul.f32 1.442695, %v3258_v10 }
 0x53e   : > { %1993 = vadd.xlane.f32.xlu1 %v1992_v53  ;;  %v5590_v63 = vpop.eup %5589  ;;  %v2575_v53 = vsel %vm534_vm0, %v8440_v14, 0.0  ;;  %v2535_v37 = vmul.f32 1.442695, %v2505_v20  ;;  %v2072_v20 = vsub.f32 0.0, %v8320_v34 }
 0x53f   : > { %v8450_v59 = vpop.eup %5591  ;;  %v2118_v11 = vmul.f32 0.6931472, %v5590_v63 }
 0x540   : > { %2555 = vadd.xlane.f32.xlu0 %v2554_v49  ;;  %v3250_v49 = vsub.f32 %v10713_v48, %v3218_v5  ;;  %v8455_v60 = vpop.eup %5593  ;;  %v3303_v61 = vsel %vm534_vm0, %v8450_v59, 0.0  ;;  %v2073_v5 = vsub.f32 0.0, %v8331_v54  ;;  %5603 = vpow2.f32 %v2535_v37 }
 0x541   : > { %10714 = vst [vmem:[#allocation101_spill] sm:$0xff] %v8455_v60  ;;  %v3330_v41 = vsel %vm534_vm0, %v8455_v60, 0.0  ;;  %v2136_v63 = vmul.f32 %v2118_v11, %v2072_v20 }
 0x542   : > { %2552 = vadd.xlane.f32.xlu1 %v2551_v8  ;;  %v3306_v8 = vsel %vm534_vm0, %v8445_v47, 0.0  ;;  %v3273_v48 = vmul.f32 1.442695, %v3250_v49  ;;  %v8472_v49 = vpop.permute.xlu1 %3473 }
 0x543   : > { %10719 = vst [vmem:[#allocation104_spill] sm:$0xff] %v8472_v49 }
 0x544   : > { %2579 = vadd.xlane.f32.xlu0 %v2578_v52  ;;  %v10715_v52 = vld [vmem:[#allocation109_spill] sm:$0xff]  ;;  %5605 = vpow2.f32 %v3273_v48 }
 0x545   : > { %v3249_v33 = vsub.f32 %v10715_v52, %v3215_v31  ;;  %v2137_v31 = vmul.f32 %v2120_v24, %v2073_v5  ;;  %v10718_v52 = vld [vmem:[#allocation111_spill] sm:$0xff]  ;;  %v8477_v24 = vpop.permute.xlu0 %3469 }
 0x546   : > { %2576 = vadd.xlane.f32.xlu1 %v2575_v53  ;;  %v8463_v53 = vpop.eup %5595  ;;  %v3257_v16 = vsub.f32 %v10718_v52, %v3239_v39  ;;  %10721 = vst [vmem:[#allocation106_spill] sm:$0xff] %v8477_v24  ;;  %v2178_v39 = vsel %vm534_vm0, %v2136_v63, 0.0  ;;  %v8486_v5 = vpop.permute.xlu1 %3696 }
 0x547   : > { %v3327_v54 = vsel %vm534_vm0, %v8463_v53, 0.0  ;;  %v2181_v30 = vsel %vm534_vm0, %v2137_v31, 0.0 }
 0x548   : > { %3307 = vadd.xlane.f32.xlu0 %v3306_v8  ;;  %v3271_v8 = vmul.f32 1.442695, %v3249_v33  ;;  %v3287_v34 = vmul.f32 1.442695, %v3257_v16 }
 0x549   : > { %v3693_v11 = vpop.permute.xlu0 %3692 }
 0x54a   : > { %3304 = vadd.xlane.f32.xlu1 %v3303_v61  ;;  %v8475_v61 = vpop.eup %5597  ;;  %5607 = vpow2.f32 %v3271_v8  ;;  %v3701_v8 = vpop.permute.xlu1 %3700 }
 0x54b   : > { %10720 = vst [vmem:[#allocation103_spill] sm:$0xff] %v8475_v61  ;;  %v8480_v37 = vpop.eup %5599  ;;  %5609 = vpow2.f32 %v3289_v51  ;;  %v2560_v10 = vsel %vm534_vm0, %v8475_v61, 0.0 }
 0x54c   : > { %3331 = vadd.xlane.f32.xlu0 %v3330_v41  ;;  %v8484_v33 = vpop.eup %5601  ;;  %5611 = vpow2.f32 %v3287_v34  ;;  %v2557_v16 = vsel %vm534_vm0, %v8480_v37, 0.0 }
 0x54d   : > { %10722 = vst [vmem:[#allocation105_spill] sm:$0xff] %v8484_v33  ;;  %v8490_v48 = vpop.eup %5603  ;;  %v2584_v56 = vsel %vm534_vm0, %v8484_v33, 0.0  ;;  %v8500_v52 = vpop.permute.xlu0 %3704 }
 0x54e   : > { %3328 = vadd.xlane.f32.xlu1 %v3327_v54  ;;  %v8494_v41 = vpop.eup %5605  ;;  %v2581_v31 = vsel %vm534_vm0, %v8490_v48, 0.0 }
 0x54f   : > { %10723 = vst [vmem:[#allocation108_spill] sm:$0xff] %v8494_v41  ;;  %v3312_v54 = vsel %vm534_vm0, %v8494_v41, 0.0 }
 0x550   : > { %2182 = vadd.xlane.f32.xlu0 %v2181_v30 }
 0x552   : > { %2179 = vadd.xlane.f32.xlu1 %v2178_v39  ;;  %v3709_v39 = vpop.permute.xlu1 %3708 }
 0x554   : > { %2561 = vadd.xlane.f32.xlu0 %v2560_v10  ;;  %v8498_v20 = vpop.eup %5607  ;;  %v8512_v10 = vpop.permute.xlu0 %3712 }
 0x555   : > { %v8504_v63 = vpop.eup %5609  ;;  %v3309_v51 = vsel %vm534_vm0, %v8498_v20, 0.0 }
 0x556   : > { %2558 = vadd.xlane.f32.xlu1 %v2557_v16  ;;  %10724 = vst [vmem:[#allocation107_spill] sm:$0xff] %v8504_v63  ;;  %v8508_v30 = vpop.eup %5611  ;;  %v3336_v34 = vsel %vm534_vm0, %v8504_v63, 0.0  ;;  %v2090_v63 = vadd.f32 1e-08, %v8409_v12 }
 0x557   : > { %10725 = vst [vmem:[#allocation110_spill] sm:$0xff] %v8508_v30  ;;  %v3333_v16 = vsel %vm534_vm0, %v8508_v30, 0.0 }
 0x558   : > { %2585 = vadd.xlane.f32.xlu0 %v2584_v56  ;;  %v3717_v56 = vpop.permute.xlu1 %3716  ;;  %5613 = vlog2.f32 %v2090_v63 }
 0x55a   : > { %2582 = vadd.xlane.f32.xlu1 %v2581_v31  ;;  %v8516_v31 = vpop.permute.xlu0 %3720 }
 0x55c   : > { %3313 = vadd.xlane.f32.xlu0 %v3312_v54  ;;  %v3725_v54 = vpop.permute.xlu1 %3724 }
 0x55e   : > { %3310 = vadd.xlane.f32.xlu1 %v3309_v51  ;;  %v8518_v25 = vpop.permute.xlu0 %3728 }
 0x560   : > { %3337 = vadd.xlane.f32.xlu0 %v3336_v34  ;;  %v3733_v51 = vpop.permute.xlu1 %3732  ;;  %v10729_v34 = vld [vmem:[#allocation10_spill] sm:$0xff] }
 0x562   : > { %3334 = vadd.xlane.f32.xlu1 %v3333_v16  ;;  %v10732_v16 = vld [vmem:[#allocation14_spill] sm:$0xff] }
 0x571   : > { %v8520_v36 = vpop.xlane.xlu0 %1948 }
 0x572   : > { %10726 = vst [vmem:[#allocation109_spill] sm:$0xff] %v8520_v36  ;;  %v10735_v36 = vld [vmem:[#allocation18_spill] sm:$0xff] }
 0x573   : > { %3740 = vperm.xlu1 %5454, %v10727_v22   ;;  %v10737_v22 = vld [vmem:[#allocation118_spill] sm:$0xff] }
 0x575   : > { %v8523_v9 = vpop.xlane.xlu0 %1954 }
 0x576   : > { %10728 = vst [vmem:[#allocation112_spill] sm:$0xff] %v8523_v9  ;;  %3736 = vperm.xlu0 %5453, %v10729_v34   ;;  %v3755_v9 = vmul.f32 %v10737_v22, %v3693_v11  ;;  %v5614_v22 = vpop.eup %5613 }
 0x577   : > { %v8526_v1 = vpop.xlane.xlu1 %1951 }
 0x578   : > { %10730 = vst [vmem:[#allocation111_spill] sm:$0xff] %v8526_v1 }
 0x579   : > { %v8528_v49 = vpop.xlane.xlu0 %2140 }
 0x57a   : > { %10731 = vst [vmem:[#allocation132_spill] sm:$0xff] %v8528_v49  ;;  %3744 = vperm.xlu0 %5453, %v10732_v16   ;;  %v10740_v16 = vld [vmem:[#allocation119_spill] sm:$0xff] }
 0x57b   : > { %v8531_v38 = vpop.xlane.xlu1 %1957  ;;  %v3757_v34 = vmul.f32 %v10740_v16, %v3701_v8  ;;  %v2122_v8 = vmul.f32 0.6931472, %v5614_v22 }
 0x57c   : > { %10733 = vst [vmem:[#allocation133_spill] sm:$0xff] %v8531_v38 }
 0x57d   : > { %v8533_v24 = vpop.xlane.xlu0 %1960 }
 0x57e   : > { %10734 = vst [vmem:[#allocation134_spill] sm:$0xff] %v8533_v24  ;;  %3752 = vperm.xlu0 %5453, %v10735_v36   ;;  %v10743_v36 = vld [vmem:[#allocation125_spill] sm:$0xff] }
 0x57f   : > { %v8537_v41 = vpop.xlane.xlu1 %2143 }
 0x580   : > { %10736 = vst [vmem:[#allocation135_spill] sm:$0xff] %v8537_v41  ;;  %v3759_v41 = vmul.f32 %v10743_v36, %v3709_v39  ;;  %v2074_v36 = vsub.f32 0.0, %v8409_v12 }
 0x581   : > { %v8540_v33 = vpop.xlane.xlu0 %2146 }
 0x582   : > { %10738 = vst [vmem:[#allocation118_spill] sm:$0xff] %v8540_v33  ;;  %3787 = vrot.lane.b32.xlu0 %v3755_v9, %s5903_s13  ;;  %v3761_v9 = vmul.f32 %v8161_v46, %v3717_v56  ;;  %v3765_v46 = vmul.f32 %v8221_v23, %v3733_v51  ;;  %v10757_v33 = vld [vmem:[#allocation121_spill] sm:$0xff] }
 0x583   : > { %v8543_v49 = vpop.xlane.xlu1 %1963 }
 0x584   : > { %10739 = vst [vmem:[#allocation136_spill] sm:$0xff] %v8543_v49 }
 0x585   : > { %v8546_v38 = vpop.xlane.xlu0 %1966 }
 0x586   : > { %10741 = vst [vmem:[#allocation119_spill] sm:$0xff] %v8546_v38  ;;  %3791 = vrot.lane.b32.xlu0 %v3757_v34, %s5903_s13  ;;  %v3763_v34 = vmul.f32 %v8185_v35, %v3725_v54 }
 0x587   : > { %v8549_v24 = vpop.xlane.xlu1 %2149 }
 0x588   : > { %10742 = vst [vmem:[#allocation137_spill] sm:$0xff] %v8549_v24 }
 0x589   : > { %v8552_v1 = vpop.xlane.xlu0 %2152 }
 0x58a   : > { %10744 = vst [vmem:[#allocation125_spill] sm:$0xff] %v8552_v1  ;;  %3795 = vrot.lane.b32.xlu0 %v3759_v41, %s5903_s13  ;;  %v2138_v41 = vmul.f32 %v2122_v8, %v2074_v36 }
 0x58b   : > { %v8555_v11 = vpop.xlane.xlu1 %1969 }
 0x58c   : > { %10745 = vst [vmem:[#allocation138_spill] sm:$0xff] %v8555_v11  ;;  %v2184_v22 = vsel %vm534_vm0, %v2138_v41, 0.0  ;;  %v10755_v41 = vld [vmem:[#allocation16_spill] sm:$0xff] }
 0x58d   : > { %v8558_v63 = vpop.xlane.xlu0 %1972 }
 0x58e   : > { %10746 = vst [vmem:[#allocation139_spill] sm:$0xff] %v8558_v63  ;;  %3799 = vrot.lane.b32.xlu0 %v3761_v9, %s5903_s13 }
 0x58f   : > { %v8561_v16 = vpop.xlane.xlu1 %2155 }
 0x590   : > { %10747 = vst [vmem:[#allocation140_spill] sm:$0xff] %v8561_v16 }
 0x591   : > { %v8565_v39 = vpop.xlane.xlu0 %2158 }
 0x592   : > { %10748 = vst [vmem:[#allocation141_spill] sm:$0xff] %v8565_v39  ;;  %3803 = vrot.lane.b32.xlu0 %v3763_v34, %s5903_s13 }
 0x593   : > { %v8568_v24 = vpop.xlane.xlu1 %1975 }
 0x594   : > { %10749 = vst [vmem:[#allocation142_spill] sm:$0xff] %v8568_v24 }
 0x595   : > { %v8571_v56 = vpop.xlane.xlu0 %1978 }
 0x596   : > { %10750 = vst [vmem:[#allocation143_spill] sm:$0xff] %v8571_v56  ;;  %3807 = vrot.lane.b32.xlu0 %v3765_v46, %s5903_s13 }
 0x597   : > { %2185 = vadd.xlane.f32.xlu1 %v2184_v22  ;;  %v8575_v9 = vpop.xlane.xlu1 %2161 }
 0x598   : > { %10751 = vst [vmem:[#allocation144_spill] sm:$0xff] %v8575_v9  ;;  %v10756_v9 = vld [vmem:[#allocation70_spill] sm:$0xff] }
 0x599   : > { %v8577_v54 = vpop.xlane.xlu0 %2164 }
 0x59a   : > { %10752 = vst [vmem:[#allocation145_spill] sm:$0xff] %v8577_v54  ;;  %v3439_v54 = vmul.f32 %v10756_v9, %v10756_v9 }
 0x59b   : > { %v8579_v12 = vpop.xlane.xlu1 %1981 }
 0x59c   : > { %10753 = vst [vmem:[#allocation146_spill] sm:$0xff] %v8579_v12  ;;  %v3756_v12 = vmul.f32 %v10757_v33, %v8486_v5  ;;  %v3762_v5 = vmul.f32 %v8176_v4, %v8516_v31 }
 0x59d   : > { %v8581_v16 = vpop.xlane.xlu0 %1984 }
 0x59e   : > { %10754 = vst [vmem:[#allocation147_spill] sm:$0xff] %v8581_v16 }
 0x59f   : > { %v8583_v8 = vpop.xlane.xlu1 %2540 }
 0x5a0   : > { %5615 = vrcp.f32 %v8583_v8 }
 0x5a1   : > { %v8585_v34 = vpop.xlane.xlu0 %2543 }
 0x5a3   : > { %v8587_v51 = vpop.xlane.xlu1 %2564 }
 0x5a4   : > { %5617 = vrcp.f32 %v8587_v51  ;;  %v10782_v51 = vld [vmem:[#allocation86_spill] sm:$0xff] }
 0x5a5   : > { %v8589_v36 = vpop.xlane.xlu0 %2567 }
 0x5a7   : > { %v8591_v46 = vpop.xlane.xlu1 %3292 }
 0x5a8   : > { %3748 = vperm.xlu1 %5454, %v10755_v41   ;;  %v10760_v41 = vld [vmem:[#allocation123_spill] sm:$0xff]  ;;  %5619 = vrcp.f32 %v8591_v46 }
 0x5a9   : > { %v8594_v22 = vpop.xlane.xlu0 %3295  ;;  %v3758_v56 = vmul.f32 %v10760_v41, %v8500_v52  ;;  %v5855_v46 = vld [vmem:[%s7078_s27] sm:$0xff] }
 0x5ab   : > { %v8598_v39 = vpop.xlane.xlu1 %3316 }
 0x5ac   : > { %3475 = vrot.lane.b32.xlu1 %v3439_v54, %s5900_s11  ;;  %v3760_v54 = vmul.f32 %v8151_v26, %v8512_v10  ;;  %5621 = vrcp.f32 %v8598_v39 }
 0x5ad   : > { %v8601_v1 = vpop.xlane.xlu0 %3319 }
 0x5af   : > { %v8605_v16 = vpop.xlane.xlu1 %2167 }
 0x5b0   : > { %10758 = vst [vmem:[#allocation70_spill] sm:$0xff] %v8605_v16  ;;  %3789 = vrot.lane.b32.xlu1 %v3756_v12, %s5903_s13 }
 0x5b1   : > { %v8608_v24 = vpop.xlane.xlu0 %2170 }
 0x5b2   : > { %10759 = vst [vmem:[#allocation121_spill] sm:$0xff] %v8608_v24 }
 0x5b3   : > { %v8612_v11 = vpop.xlane.xlu1 %1987 }
 0x5b4   : > { %10761 = vst [vmem:[#allocation123_spill] sm:$0xff] %v8612_v11  ;;  %3793 = vrot.lane.b32.xlu1 %v3758_v56, %s5903_s13  ;;  %v3764_v56 = vmul.f32 %v8211_v13, %v8518_v25 }
 0x5b5   : > { %v8615_v9 = vpop.xlane.xlu0 %1990 }
 0x5b6   : > { %10762 = vst [vmem:[#allocation148_spill] sm:$0xff] %v8615_v9 }
 0x5b7   : > { %v8619_v63 = vpop.xlane.xlu1 %2546 }
 0x5b8   : > { %3797 = vrot.lane.b32.xlu1 %v3760_v54, %s5903_s13  ;;  %5623 = vrcp.f32 %v8619_v63 }
 0x5b9   : > { %v8622_v33 = vpop.xlane.xlu0 %2549 }
 0x5bb   : > { %v8626_v12 = vpop.xlane.xlu1 %2570 }
 0x5bc   : > { %3801 = vrot.lane.b32.xlu1 %v3762_v5, %s5903_s13  ;;  %5625 = vrcp.f32 %v8626_v12 }
 0x5bd   : > { %v8629_v52 = vpop.xlane.xlu0 %2573 }
 0x5bf   : > { %v8633_v41 = vpop.xlane.xlu1 %3298 }
 0x5c0   : > { %3805 = vrot.lane.b32.xlu1 %v3764_v56, %s5903_s13  ;;  %5627 = vrcp.f32 %v8633_v41 }
 0x5c1   : > { %v8636_v26 = vpop.xlane.xlu0 %3301 }
 0x5c3   : > { %v8638_v10 = vpop.xlane.xlu1 %3322 }
 0x5c4   : > { %5629 = vrcp.f32 %v8638_v10 }
 0x5c5   : > { %v8640_v54 = vpop.xlane.xlu0 %3325 }
 0x5c7   : > { %v8642_v4 = vpop.xlane.xlu1 %2173 }
 0x5c8   : > { %10763 = vst [vmem:[#allocation149_spill] sm:$0xff] %v8642_v4 }
 0x5c9   : > { %v8644_v31 = vpop.xlane.xlu0 %2176 }
 0x5ca   : > { %10764 = vst [vmem:[#allocation150_spill] sm:$0xff] %v8644_v31 }
 0x5cb   : > { %v8646_v5 = vpop.xlane.xlu1 %1993 }
 0x5cc   : > { %10765 = vst [vmem:[#allocation151_spill] sm:$0xff] %v8646_v5 }
 0x5cd   : > { %v8648_v16 = vpop.xlane.xlu0 %2555 }
 0x5cf   : > { %v8650_v24 = vpop.xlane.xlu1 %2552 }
 0x5d1   : > { %v8652_v13 = vpop.xlane.xlu0 %2579 }
 0x5d2   : > { %10766 = vst [vmem:[#allocation152_spill] sm:$0xff] %v8652_v13 }
 0x5d3   : > { %v8654_v25 = vpop.xlane.xlu1 %2576 }
 0x5d5   : > { %v8656_v56 = vpop.xlane.xlu0 %3307 }
 0x5d6   : > { %10767 = vst [vmem:[#allocation153_spill] sm:$0xff] %v8656_v56 }
 0x5d7   : > { %v8658_v11 = vpop.xlane.xlu1 %3304 }
 0x5d9   : > { %v8660_v9 = vpop.xlane.xlu0 %3331 }
 0x5da   : > { %10768 = vst [vmem:[#allocation154_spill] sm:$0xff] %v8660_v9 }
 0x5db   : > { %v8662_v49 = vpop.xlane.xlu1 %3328 }
 0x5dd   : > { %v8664_v4 = vpop.xlane.xlu0 %2182 }
 0x5de   : > { %10769 = vst [vmem:[#allocation155_spill] sm:$0xff] %v8664_v4 }
 0x5df   : > { %v8666_v31 = vpop.xlane.xlu1 %2179 }
 0x5e0   : > { %10770 = vst [vmem:[#allocation156_spill] sm:$0xff] %v8666_v31 }
 0x5e1   : > { %v8668_v5 = vpop.xlane.xlu0 %2561 }
 0x5e2   : > { %10771 = vst [vmem:[#allocation157_spill] sm:$0xff] %v8668_v5 }
 0x5e3   : > { %v8670_v38 = vpop.xlane.xlu1 %2558 }
 0x5e5   : > { %v8672_v61 = vpop.xlane.xlu0 %2585 }
 0x5e6   : > { %10772 = vst [vmem:[#allocation158_spill] sm:$0xff] %v8672_v61 }
 0x5e7   : > { %v8674_v60 = vpop.xlane.xlu1 %2582 }
 0x5e9   : > { %v8676_v47 = vpop.xlane.xlu0 %3313 }
 0x5ea   : > { %10773 = vst [vmem:[#allocation159_spill] sm:$0xff] %v8676_v47 }
 0x5eb   : > { %v8678_v44 = vpop.xlane.xlu1 %3310 }
 0x5ed   : > { %v8682_v9 = vpop.xlane.xlu0 %3337 }
 0x5ee   : > { %10774 = vst [vmem:[#allocation160_spill] sm:$0xff] %v8682_v9  ;;  %v10775_v9 = vld [vmem:[#allocation74_spill] sm:$0xff] }
 0x5ef   : > { %v8680_v3 = vpop.xlane.xlu1 %3334 }
 0x5f3   : > { %v3741_v56 = vpop.permute.xlu1 %3740 }
 0x5f4   : > { %v3767_v4 = vmul.f32 %v8257_v55, %v3741_v56  ;;  %v3441_v56 = vmul.f32 %v10775_v9, %v10775_v9 }
 0x5f5   : > { %v3737_v31 = vpop.permute.xlu0 %3736 }
 0x5f6   : > { %v3766_v5 = vmul.f32 %v8248_v17, %v3737_v31  ;;  %3811 = vrot.lane.b32.xlu0 %v3767_v4, %s5903_s13  ;;  %v10776_v17 = vld [vmem:[#allocation67_spill] sm:$0xff]  ;;  %v10777_v31 = vld [vmem:[#allocation68_spill] sm:$0xff] }
 0x5f7   : > { %v3443_v4 = vmul.f32 %v10776_v17, %v10776_v17  ;;  %v10781_v17 = vld [vmem:[#allocation77_spill] sm:$0xff] }
 0x5f8   : > { %3809 = vrot.lane.b32.xlu1 %v3766_v5, %s5903_s13 }
 0x5f9   : > { %v3745_v61 = vpop.permute.xlu0 %3744 }
 0x5fa   : > { %v3768_v30 = vmul.f32 %v8336_v19, %v3745_v61  ;;  %v3445_v19 = vmul.f32 %v10777_v31, %v10777_v31  ;;  %v10778_v61 = vld [vmem:[#allocation71_spill] sm:$0xff] }
 0x5fc   : > { %3813 = vrot.lane.b32.xlu1 %v3768_v30, %s5903_s13 }
 0x5fd   : > { %v3753_v47 = vpop.permute.xlu0 %3752 }
 0x5fe   : > { %v3770_v13 = vmul.f32 %v8421_v50, %v3753_v47  ;;  %v3447_v50 = vmul.f32 %v10778_v61, %v10778_v61  ;;  %v10779_v47 = vld [vmem:[#allocation75_spill] sm:$0xff] }
 0x5ff   : > { %v3449_v30 = vmul.f32 %v10779_v47, %v10779_v47  ;;  %v10783_v47 = vld [vmem:[#allocation69_spill] sm:$0xff] }
 0x600   : > { %3817 = vrot.lane.b32.xlu1 %v3770_v13, %s5903_s13 }
 0x604   : > { %3479 = vrot.lane.b32.xlu1 %v3441_v56, %s5900_s11  ;;  %v5616_v56 = vpop.eup %5615 }
 0x605   : > { %v8719_v8 = vmul.f32 %v5616_v56, %v8264_v58  ;;  %v5618_v31 = vpop.eup %5617 }
 0x606   : > { %v5620_v39 = vpop.eup %5619 }
 0x607   : > { %v2619_v61 = vmul.f32 %v5855_v46, %v8719_v8 }
 0x608   : > { %3483 = vrot.lane.b32.xlu1 %v3443_v4, %s5900_s11  ;;  %v3440_v4 = vmul.f32 %v10781_v17, %v10781_v17 }
 0x609   : > { %v2635_v58 = vsel %vm534_vm0, %v2619_v61, 0.0 }
 0x60c   : > { %3487 = vrot.lane.b32.xlu1 %v3445_v19, %s5900_s11  ;;  %v3442_v19 = vmul.f32 %v10782_v51, %v10782_v51 }
 0x610   : > { %3491 = vrot.lane.b32.xlu1 %v3447_v50, %s5900_s11  ;;  %v8728_v50 = vmul.f32 %v5618_v31, %v8274_v40  ;;  %v10784_v40 = vld [vmem:[#allocation72_spill] sm:$0xff] }
 0x611   : > { %v3446_v56 = vmul.f32 %v10784_v40, %v10784_v40 }
 0x612   : > { %v2627_v63 = vmul.f32 %v8185_v35, %v8728_v50  ;;  %v2835_v10 = vadd.f32 1e-08, %v8728_v50 }
 0x614   : > { %3495 = vrot.lane.b32.xlu1 %v3449_v30, %s5900_s11  ;;  %v3444_v30 = vmul.f32 %v10783_v47, %v10783_v47  ;;  %v2659_v12 = vsel %vm534_vm0, %v2627_v63, 0.0 }
 0x624   : > { %v8708_v9 = vpop.xlane.xlu1 %2185 }
 0x625   : > { %10780 = vst [vmem:[#allocation74_spill] sm:$0xff] %v8708_v9 }
 0x628   : > { %v3749_v5 = vpop.permute.xlu1 %3748 }
 0x629   : > { %v3769_v13 = vmul.f32 %v8347_v43, %v3749_v5  ;;  %v8738_v5 = vmul.f32 %v5620_v39, %v8285_v15  ;;  %v10785_v15 = vld [vmem:[#allocation79_spill] sm:$0xff] }
 0x62a   : > { %v3448_v51 = vmul.f32 %v10785_v15, %v10785_v15  ;;  %v10786_v39 = vld [vmem:[#allocation87_spill] sm:$0xff] }
 0x62b   : > { %3815 = vrot.lane.b32.xlu0 %v3769_v13, %s5903_s13  ;;  %v5622_v13 = vpop.eup %5621  ;;  %v3371_v17 = vmul.f32 %v5855_v46, %v8738_v5  ;;  %v3450_v47 = vmul.f32 %v10786_v39, %v10786_v39 }
 0x62c   : > { %v5624_v31 = vpop.eup %5623 }
 0x62d   : > { %v3387_v41 = vsel %vm534_vm0, %v3371_v17, 0.0  ;;  %v5626_v61 = vpop.eup %5625 }
 0x62f   : > { %3477 = vrot.lane.b32.xlu0 %v3440_v4, %s5900_s11  ;;  %v8747_v4 = vmul.f32 %v5622_v13, %v8299_v57  ;;  %v8758_v57 = vmul.f32 %v5624_v31, %v8354_v42  ;;  %v5628_v42 = vpop.eup %5627 }
 0x631   : > { %v3379_v46 = vmul.f32 %v8185_v35, %v8747_v4  ;;  %v8768_v35 = vmul.f32 %v5626_v61, %v8364_v62 }
 0x633   : > { %3481 = vrot.lane.b32.xlu0 %v3442_v19, %s5900_s11  ;;  %v2827_v19 = vadd.f32 1e-08, %v8719_v8  ;;  %v2629_v40 = vmul.f32 %v8221_v23, %v8768_v35 }
 0x635   : > { %5631 = vlog2.f32 %v2827_v19  ;;  %v2665_v17 = vsel %vm534_vm0, %v2629_v40, 0.0 }
 0x636   : > { %5633 = vlog2.f32 %v2835_v10 }
 0x637   : > { %3485 = vrot.lane.b32.xlu0 %v3444_v30, %s5900_s11  ;;  %v3411_v30 = vsel %vm534_vm0, %v3379_v46, 0.0  ;;  %5635 = vrcp.f32 %v8650_v24 }
 0x638   : > { %2636 = vadd.xlane.f32.xlu1 %v2635_v58  ;;  %v5856_v58 = vld [vmem:[%s7078_s27 + $0x10] sm:$0xff]  ;;  %5637 = vrcp.f32 %v8585_v34 }
 0x639   : > { %v2621_v63 = vmul.f32 %v5856_v58, %v8758_v57  ;;  %5639 = vrcp.f32 %v8654_v25 }
 0x63a   : > { %5641 = vrcp.f32 %v8589_v36  ;;  %v2829_v36 = vadd.f32 1e-08, %v8758_v57 }
 0x63b   : > { %3489 = vrot.lane.b32.xlu0 %v3446_v56, %s5900_s11  ;;  %v2641_v13 = vsel %vm534_vm0, %v2621_v63, 0.0  ;;  %v8774_v56 = vmul.f32 %v5628_v42, %v8378_v0  ;;  %5643 = vrcp.f32 %v8658_v11 }
 0x63c   : > { %2660 = vadd.xlane.f32.xlu1 %v2659_v12  ;;  %v5630_v12 = vpop.eup %5629  ;;  %5645 = vrcp.f32 %v8594_v22 }
 0x63d   : > { %v3373_v62 = vmul.f32 %v5856_v58, %v8774_v56  ;;  %v8780_v31 = vmul.f32 %v5630_v12, %v8390_v45  ;;  %5647 = vrcp.f32 %v8662_v49  ;;  %v2837_v49 = vadd.f32 1e-08, %v8768_v35 }
 0x63e   : > { %5649 = vrcp.f32 %v8601_v1  ;;  %v5858_v1 = vld [vmem:[%s7078_s27 + $0x8] sm:$0xff] }
 0x63f   : > { %3493 = vrot.lane.b32.xlu0 %v3448_v51, %s5900_s11  ;;  %v5632_v15 = vpop.eup %5631  ;;  %v3393_v0 = vsel %vm534_vm0, %v3373_v62, 0.0  ;;  %v3381_v51 = vmul.f32 %v8221_v23, %v8780_v31  ;;  %v2819_v23 = vsub.f32 0.0, %v8728_v50  ;;  %5651 = vlog2.f32 %v2829_v36  ;;  %v5859_v62 = vld [vmem:[%s7078_s27 + $0x48] sm:$0xff] }
 0x640   : > { %3388 = vadd.xlane.f32.xlu1 %v3387_v41  ;;  %v2844_v19 = vmul.f32 0.6931472, %v5632_v15  ;;  %v5634_v24 = vpop.eup %5633  ;;  %v2811_v41 = vsub.f32 0.0, %v8719_v8  ;;  %5653 = vrcp.f32 %v8622_v33 }
 0x641   : > { %v3417_v45 = vsel %vm534_vm0, %v3381_v51, 0.0  ;;  %v2860_v46 = vmul.f32 0.6931472, %v5634_v24  ;;  %v5636_v61 = vpop.eup %5635  ;;  %5655 = vlog2.f32 %v2837_v49  ;;  %v2821_v49 = vsub.f32 0.0, %v8768_v35 }
 0x642   : > { %v2875_v34 = vmul.f32 %v2844_v19, %v2811_v41  ;;  %v5638_v25 = vpop.eup %5637  ;;  %v8797_v11 = vmul.f32 %v5636_v61, %v8429_v18  ;;  %5657 = vrcp.f32 %v8629_v52 }
 0x643   : > { %3497 = vrot.lane.b32.xlu0 %v3450_v47, %s5900_s11  ;;  %v2883_v39 = vmul.f32 %v2860_v46, %v2819_v23  ;;  %v5640_v47 = vpop.eup %5639  ;;  %v8801_v22 = vmul.f32 %v5638_v25, %v8267_v2  ;;  %5659 = vrcp.f32 %v8670_v38 }
 0x644   : > { %3412 = vadd.xlane.f32.xlu1 %v3411_v30  ;;  %v2891_v8 = vsel %vm534_vm0, %v2875_v34, 0.0  ;;  %v5642_v50 = vpop.eup %5641  ;;  %v5857_v30 = vld [vmem:[%s7078_s27 + $0x20] sm:$0xff]  ;;  %v8808_v63 = vmul.f32 %v5640_v47, %v8440_v14  ;;  %5661 = vrcp.f32 %v8636_v26 }
 0x645   : > { %v2915_v10 = vsel %vm534_vm0, %v2883_v39, 0.0  ;;  %v2623_v58 = vmul.f32 %v5857_v30, %v8797_v11  ;;  %v5644_v18 = vpop.eup %5643  ;;  %v2620_v2 = vmul.f32 %v5858_v1, %v8801_v22  ;;  %v8814_v42 = vmul.f32 %v5642_v50, %v8281_v6 }
 0x646   : > { %v2631_v12 = vmul.f32 %v8257_v55, %v8808_v63  ;;  %v8820_v14 = vmul.f32 %v5644_v18, %v8450_v59  ;;  %5663 = vrcp.f32 %v8674_v60  ;;  %v2828_v26 = vadd.f32 1e-08, %v8801_v22 }
 0x647   : > { %v2647_v40 = vsel %vm534_vm0, %v2623_v58, 0.0  ;;  %v2638_v33 = vsel %vm534_vm0, %v2620_v2, 0.0  ;;  %v2628_v6 = vmul.f32 %v5859_v62, %v8814_v42  ;;  %5665 = vrcp.f32 %v8640_v54 }
 0x648   : > { %2642 = vadd.xlane.f32.xlu1 %v2641_v13  ;;  %v5646_v13 = vpop.eup %5645  ;;  %v2671_v55 = vsel %vm534_vm0, %v2631_v12, 0.0  ;;  %v3375_v59 = vmul.f32 %v5857_v30, %v8820_v14  ;;  %v2813_v60 = vsub.f32 0.0, %v8758_v57  ;;  %5667 = vrcp.f32 %v8678_v44  ;;  %v5861_v57 = vld [vmem:[%s7078_s27 + $0x18] sm:$0xff] }
 0x649   : > { %v8827_v15 = vmul.f32 %v5646_v13, %v8295_v29  ;;  %v2662_v19 = vsel %vm534_vm0, %v2628_v6, 0.0  ;;  %5669 = vlog2.f32 %v2828_v26  ;;  %v2836_v47 = vadd.f32 1e-08, %v8814_v42  ;;  %v10788_v26 = vld [vmem:[#allocation110_spill] sm:$0xff] }
 0x64a   : > { %v3399_v41 = vsel %vm534_vm0, %v3375_v59, 0.0  ;;  %5671 = vrcp.f32 %v8680_v3  ;;  %v2831_v30 = vadd.f32 1e-08, %v8797_v11  ;;  %v2839_v12 = vadd.f32 1e-08, %v8808_v63 }
 0x64b   : > { %v3372_v29 = vmul.f32 %v5858_v1, %v8827_v15  ;;  %5673 = vlog2.f32 %v2836_v47 }
 0x64c   : > { %2666 = vadd.xlane.f32.xlu1 %v2665_v17  ;;  %v5648_v17 = vpop.eup %5647  ;;  %5675 = vlog2.f32 %v2831_v30 }
 0x64d   : > { %v8833_v52 = vmul.f32 %v5648_v17, %v8463_v53  ;;  %5677 = vrcp.f32 %v8648_v16 }
 0x64e   : > { %5679 = vlog2.f32 %v2839_v12 }
 0x650   : > { %3394 = vadd.xlane.f32.xlu1 %v3393_v0  ;;  %v5650_v0 = vpop.eup %5649 }
 0x651   : > { %v5652_v51 = vpop.eup %5651  ;;  %v8839_v24 = vmul.f32 %v5650_v0, %v8307_v28  ;;  %v3390_v28 = vsel %vm534_vm0, %v3372_v29, 0.0 }
 0x652   : > { %v5654_v38 = vpop.eup %5653  ;;  %v2848_v34 = vmul.f32 0.6931472, %v5652_v51 }
 0x653   : > { %v5656_v46 = vpop.eup %5655  ;;  %v3380_v61 = vmul.f32 %v5859_v62, %v8839_v24  ;;  %v8851_v23 = vmul.f32 %v5654_v38, %v8357_v7  ;;  %v10787_v38 = vld [vmem:[#allocation152_spill] sm:$0xff] }
 0x654   : > { %3418 = vadd.xlane.f32.xlu1 %v3417_v45  ;;  %v5860_v45 = vld [vmem:[%s7078_s27 + $0x60] sm:$0xff]  ;;  %v5658_v25 = vpop.eup %5657  ;;  %v2877_v54 = vmul.f32 %v2848_v34, %v2813_v60  ;;  %5681 = vrcp.f32 %v10787_v38  ;;  %v10789_v60 = vld [vmem:[#allocation153_spill] sm:$0xff] }
 0x655   : > { %v3383_v53 = vmul.f32 %v5860_v45, %v8833_v52  ;;  %v5660_v39 = vpop.eup %5659  ;;  %v3414_v50 = vsel %vm534_vm0, %v3380_v61, 0.0  ;;  %v2622_v7 = vmul.f32 %v5861_v57, %v8851_v23  ;;  %v8861_v44 = vmul.f32 %v5658_v25, %v8372_v21  ;;  %v5862_v21 = vld [vmem:[%s7078_s27 + $0x58] sm:$0xff] }
 0x656   : > { %v2897_v58 = vsel %vm534_vm0, %v2877_v54, 0.0  ;;  %v8867_v1 = vmul.f32 %v5660_v39, %v8480_v37  ;;  %v5863_v37 = vld [vmem:[%s7078_s27 + $0x30] sm:$0xff]  ;;  %v8907_v39 = vpop.permute.xlu0 %3787  ;;  %v2830_v30 = vadd.f32 1e-08, %v8851_v23 }
 0x657   : > { %v3423_v36 = vsel %vm534_vm0, %v3383_v53, 0.0  ;;  %v2644_v35 = vsel %vm534_vm0, %v2622_v7, 0.0  ;;  %v2630_v13 = vmul.f32 %v5862_v21, %v8861_v44 }
 0x658   : > { %2892 = vadd.xlane.f32.xlu1 %v2891_v8  ;;  %v2864_v8 = vmul.f32 0.6931472, %v5656_v46  ;;  %v2833_v51 = vadd.f32 1e-08, %v8867_v1  ;;  %v2812_v46 = vsub.f32 0.0, %v8801_v22 }
 0x65a   : > { %v2885_v18 = vmul.f32 %v2864_v8, %v2821_v49  ;;  %5683 = vlog2.f32 %v2833_v51  ;;  %v10792_v51 = vld [vmem:[#allocation99_spill] sm:$0xff] }
 0x65b   : > { %5685 = vrcp.f32 %v10789_v60 }
 0x65c   : > { %2916 = vadd.xlane.f32.xlu1 %v2915_v10  ;;  %v5662_v10 = vpop.eup %5661  ;;  %v2921_v17 = vsel %vm534_vm0, %v2885_v18, 0.0 }
 0x65d   : > { %v5664_v2 = vpop.eup %5663  ;;  %v8873_v3 = vmul.f32 %v5662_v10, %v8386_v32  ;;  %v2668_v32 = vsel %vm534_vm0, %v2630_v13, 0.0  ;;  %v10790_v10 = vld [vmem:[#allocation154_spill] sm:$0xff] }
 0x65e   : > { %v8880_v62 = vmul.f32 %v5664_v2, %v8490_v48  ;;  %v2815_v2 = vsub.f32 0.0, %v8797_v11 }
 0x65f   : > { %v3374_v0 = vmul.f32 %v5861_v57, %v8873_v3  ;;  %v2820_v57 = vsub.f32 0.0, %v8814_v42 }
 0x660   : > { %2648 = vadd.xlane.f32.xlu1 %v2647_v40  ;;  %v5666_v40 = vpop.eup %5665  ;;  %v2633_v48 = vmul.f32 %v8347_v43, %v8880_v62  ;;  %v2841_v34 = vadd.f32 1e-08, %v8880_v62 }
 0x661   : > { %v5668_v6 = vpop.eup %5667 }
 0x662   : > { %2639 = vadd.xlane.f32.xlu0 %v2638_v33  ;;  %v2625_v33 = vmul.f32 %v5863_v37, %v8867_v1  ;;  %v5670_v59 = vpop.eup %5669  ;;  %v8893_v16 = vmul.f32 %v5668_v6, %v8498_v20  ;;  %v2677_v43 = vsel %vm534_vm0, %v2633_v48, 0.0  ;;  %5687 = vlog2.f32 %v2841_v34  ;;  %v5866_v34 = vld [vmem:[%s7078_s27 + $0x68] sm:$0xff] }
 0x663   : > { %v5672_v29 = vpop.eup %5671  ;;  %v2846_v45 = vmul.f32 0.6931472, %v5670_v59  ;;  %5689 = vrcp.f32 %v10790_v10  ;;  %v2838_v6 = vadd.f32 1e-08, %v8861_v44  ;;  %v2823_v59 = vsub.f32 0.0, %v8808_v63 }
 0x664   : > { %2672 = vadd.xlane.f32.xlu1 %v2671_v55  ;;  %v8886_v55 = vmul.f32 %v5666_v40, %v8401_v27  ;;  %v3396_v27 = vsel %vm534_vm0, %v3374_v0, 0.0  ;;  %v5674_v53 = vpop.eup %5673  ;;  %v3377_v20 = vmul.f32 %v5863_v37, %v8893_v16  ;;  %v8920_v40 = vpop.permute.xlu1 %3475  ;;  %5691 = vlog2.f32 %v2830_v30  ;;  %v10796_v30 = vld [vmem:[#allocation158_spill] sm:$0xff] }
 0x665   : > { %v5676_v61 = vpop.eup %5675  ;;  %v2862_v54 = vmul.f32 0.6931472, %v5674_v53  ;;  %5693 = vlog2.f32 %v2838_v6  ;;  %v2817_v63 = vsub.f32 0.0, %v8867_v1  ;;  %v2825_v1 = vsub.f32 0.0, %v8880_v62 }
 0x666   : > { %2663 = vadd.xlane.f32.xlu0 %v2662_v19  ;;  %v2653_v19 = vsel %vm534_vm0, %v2625_v33, 0.0  ;;  %v5678_v8 = vpop.eup %5677  ;;  %v3405_v47 = vsel %vm534_vm0, %v3377_v20, 0.0  ;;  %v2852_v7 = vmul.f32 0.6931472, %v5676_v61  ;;  %v8923_v33 = vpop.permute.xlu0 %3791  ;;  %v10793_v20 = vld [vmem:[#allocation102_spill] sm:$0xff] }
 0x667   : > { %v5680_v49 = vpop.eup %5679  ;;  %v2884_v18 = vmul.f32 %v2862_v54, %v2820_v57  ;;  %v10794_v54 = vld [vmem:[#allocation157_spill] sm:$0xff] }
 0x668   : > { %3400 = vadd.xlane.f32.xlu1 %v3399_v41  ;;  %v3382_v41 = vmul.f32 %v5862_v21, %v8886_v55  ;;  %v5682_v13 = vpop.eup %5681  ;;  %v2879_v12 = vmul.f32 %v2852_v7, %v2815_v2  ;;  %5695 = vrcp.f32 %v10794_v54 }
 0x669   : > { %v5684_v37 = vpop.eup %5683  ;;  %v2918_v11 = vsel %vm534_vm0, %v2884_v18, 0.0  ;;  %5697 = vrcp.f32 %v10796_v30 }
 0x66a   : > { %3391 = vadd.xlane.f32.xlu0 %v3390_v28  ;;  %v8903_v28 = vmul.f32 %v5672_v29, %v10788_v26  ;;  %v3420_v25 = vsel %vm534_vm0, %v3382_v41, 0.0  ;;  %v5686_v48 = vpop.eup %5685  ;;  %v2903_v29 = vsel %vm534_vm0, %v2879_v12, 0.0  ;;  %v8943_v61 = vpop.permute.xlu0 %3795  ;;  %v10797_v12 = vld [vmem:[#allocation159_spill] sm:$0xff] }
 0x66b   : > { %5699 = vrcp.f32 %v10797_v12 }
 0x66c   : > { %3424 = vadd.xlane.f32.xlu1 %v3423_v36  ;;  %v2876_v36 = vmul.f32 %v2846_v45, %v2812_v46  ;;  %v5688_v41 = vpop.eup %5687  ;;  %v8934_v45 = vpop.permute.xlu1 %3789  ;;  %v8941_v46 = vmul.f32 %v5686_v48, %v10793_v20  ;;  %v2822_v48 = vsub.f32 0.0, %v8861_v44 }
 0x66d   : > { %v5690_v26 = vpop.eup %5689 }
 0x66e   : > { %3415 = vadd.xlane.f32.xlu0 %v3414_v50  ;;  %v5864_v50 = vld [vmem:[%s7078_s27 + $0x70] sm:$0xff]  ;;  %v5692_v57 = vpop.eup %5691 }
 0x66f   : > { %v3385_v22 = vmul.f32 %v5864_v50, %v8903_v28  ;;  %v10795_v50 = vld [vmem:[#allocation101_spill] sm:$0xff]  ;;  %v2850_v62 = vmul.f32 0.6931472, %v5692_v57 }
 0x670   : > { %2898 = vadd.xlane.f32.xlu1 %v2897_v58  ;;  %v2894_v58 = vsel %vm534_vm0, %v2876_v36, 0.0  ;;  %v2872_v36 = vmul.f32 0.6931472, %v5688_v41  ;;  %v8953_v7 = vpop.permute.xlu1 %3793  ;;  %v10800_v41 = vld [vmem:[#allocation103_spill] sm:$0xff] }
 0x671   : > { %v3429_v42 = vsel %vm534_vm0, %v3385_v22, 0.0  ;;  %v8951_v22 = vmul.f32 %v5690_v26, %v10795_v50  ;;  %v5867_v26 = vld [vmem:[%s7078_s27 + $0x38] sm:$0xff] }
 0x672   : > { %2645 = vadd.xlane.f32.xlu0 %v2644_v35  ;;  %v10791_v35 = vld [vmem:[#allocation100_spill] sm:$0xff]  ;;  %v2889_v10 = vmul.f32 %v2872_v36, %v2825_v1  ;;  %v5868_v50 = vld [vmem:[%s7078_s27 + $0x78] sm:$0xff] }
 0x673   : > { %v8918_v21 = vmul.f32 %v5678_v8, %v10791_v35  ;;  %v3384_v2 = vmul.f32 %v5866_v34, %v8951_v22  ;;  %v5694_v35 = vpop.eup %5693 }
 0x674   : > { %2922 = vadd.xlane.f32.xlu1 %v2921_v17  ;;  %v2868_v17 = vmul.f32 0.6931472, %v5680_v49 }
 0x676   : > { %2669 = vadd.xlane.f32.xlu0 %v2668_v32  ;;  %v5865_v32 = vld [vmem:[%s7078_s27 + $0x28] sm:$0xff]  ;;  %v2887_v38 = vmul.f32 %v2868_v17, %v2823_v59  ;;  %v8964_v17 = vpop.permute.xlu1 %3797 }
 0x677   : > { %v2624_v0 = vmul.f32 %v5865_v32, %v8918_v21  ;;  %v10798_v59 = vld [vmem:[#allocation95_spill] sm:$0xff] }
 0x678   : > { %2654 = vadd.xlane.f32.xlu1 %v2653_v19  ;;  %v8931_v19 = vmul.f32 %v5682_v13, %v10792_v51  ;;  %v2927_v60 = vsel %vm534_vm0, %v2887_v38, 0.0  ;;  %v2933_v13 = vsel %vm534_vm0, %v2889_v10, 0.0  ;;  %v3515_v51 = vsel %vm534_vm0, %v10798_v59, 0.0 }
 0x679   : > { %v2650_v53 = vsel %vm534_vm0, %v2624_v0, 0.0 }
 0x67a   : > { %3397 = vadd.xlane.f32.xlu0 %v3396_v27  ;;  %v2856_v27 = vmul.f32 0.6931472, %v5684_v37  ;;  %v3426_v37 = vsel %vm534_vm0, %v3384_v2, 0.0  ;;  %v2840_v44 = vadd.f32 1e-08, %v8931_v19 }
 0x67c   : > { %2678 = vadd.xlane.f32.xlu1 %v2677_v43  ;;  %v2632_v43 = vmul.f32 %v5866_v34, %v8931_v19 }
 0x67e   : > { %3421 = vadd.xlane.f32.xlu0 %v3420_v25  ;;  %v2881_v25 = vmul.f32 %v2856_v27, %v2817_v63  ;;  %v2674_v8 = vsel %vm534_vm0, %v2632_v43, 0.0  ;;  %v8978_v43 = vpop.permute.xlu1 %3801 }
 0x680   : > { %3406 = vadd.xlane.f32.xlu1 %v3405_v47  ;;  %v3376_v47 = vmul.f32 %v5865_v32, %v8941_v46  ;;  %v2909_v49 = vsel %vm534_vm0, %v2881_v25, 0.0  ;;  %v5696_v32 = vpop.eup %5695  ;;  %v10801_v25 = vld [vmem:[#allocation105_spill] sm:$0xff] }
 0x681   : > { %v5698_v34 = vpop.eup %5697 }
 0x682   : > { %2895 = vadd.xlane.f32.xlu0 %v2894_v58  ;;  %v8957_v58 = vpop.permute.xlu0 %3799  ;;  %v3402_v18 = vsel %vm534_vm0, %v3376_v47, 0.0  ;;  %v8987_v36 = vmul.f32 %v5698_v34, %v10801_v25  ;;  %v5700_v54 = vpop.eup %5699  ;;  %v10807_v25 = vld [vmem:[#allocation19_spill] sm:$0xff] }
 0x684   : > { %3430 = vadd.xlane.f32.xlu1 %v3429_v42  ;;  %v2814_v42 = vsub.f32 0.0, %v8851_v23  ;;  %v10799_v23 = vld [vmem:[#allocation160_spill] sm:$0xff]  ;;  %v2634_v57 = vmul.f32 %v5868_v50, %v8987_v36 }
 0x685   : > { %5701 = vrcp.f32 %v10799_v23 }
 0x686   : > { %2919 = vadd.xlane.f32.xlu0 %v2918_v11  ;;  %v2878_v6 = vmul.f32 %v2850_v62, %v2814_v42  ;;  %v2866_v11 = vmul.f32 0.6931472, %v5694_v35  ;;  %v8967_v0 = vpop.permute.xlu0 %3803  ;;  %v2680_v35 = vsel %vm534_vm0, %v2634_v57, 0.0  ;;  %v10804_v42 = vld [vmem:[#allocation107_spill] sm:$0xff] }
 0x688   : > { %2904 = vadd.xlane.f32.xlu1 %v2903_v29  ;;  %v2832_v29 = vadd.f32 1e-08, %v8918_v21  ;;  %v2900_v38 = vsel %vm534_vm0, %v2878_v6, 0.0  ;;  %v2886_v27 = vmul.f32 %v2866_v11, %v2822_v48  ;;  %v10805_v11 = vld [vmem:[#allocation33_spill] sm:$0xff] }
 0x68a   : > { %2651 = vadd.xlane.f32.xlu0 %v2650_v53  ;;  %v8976_v53 = vmul.f32 %v5696_v32, %v10800_v41  ;;  %v8980_v63 = vpop.permute.xlu0 %3807  ;;  %5703 = vlog2.f32 %v2832_v29  ;;  %v2924_v20 = vsel %vm534_vm0, %v2886_v27, 0.0 }
 0x68b   : > { %5705 = vlog2.f32 %v2840_v44  ;;  %v2824_v44 = vsub.f32 0.0, %v8931_v19 }
 0x68c   : > { %2928 = vadd.xlane.f32.xlu1 %v2927_v60  ;;  %v2626_v60 = vmul.f32 %v5867_v26, %v8976_v53 }
 0x68e   : > { %2675 = vadd.xlane.f32.xlu0 %v2674_v8  ;;  %v3806_v8 = vpop.permute.xlu1 %3805  ;;  %v8989_v47 = vpop.permute.xlu0 %3811  ;;  %v2656_v1 = vsel %vm534_vm0, %v2626_v60, 0.0 }
 0x68f   : > { %v5702_v30 = vpop.eup %5701 }
 0x690   : > { %2910 = vadd.xlane.f32.xlu1 %v2909_v49  ;;  %v10802_v49 = vld [vmem:[#allocation108_spill] sm:$0xff]  ;;  %v9003_v12 = vmul.f32 %v5702_v30, %v10804_v42  ;;  %v2842_v42 = vadd.f32 1e-08, %v8987_v36 }
 0x691   : > { %v8995_v10 = vmul.f32 %v5700_v54, %v10802_v49  ;;  %v9021_v54 = vadd.f32 %v8907_v39, %v10807_v25  ;;  %v10810_v39 = vld [vmem:[#allocation106_spill] sm:$0xff] }
 0x692   : > { %3403 = vadd.xlane.f32.xlu0 %v3402_v18  ;;  %v10803_v18 = vld [vmem:[#allocation28_spill] sm:$0xff]  ;;  %v3518_v30 = vsel %vm534_vm0, %v10810_v39, 0.0 }
 0x693   : > { %v8998_v2 = vadd.f32 %v3806_v8, %v10803_v18  ;;  %v10808_v8 = vld [vmem:[#allocation20_spill] sm:$0xff] }
 0x694   : > { %2934 = vadd.xlane.f32.xlu1 %v2933_v13  ;;  %v3378_v13 = vmul.f32 %v5867_v26, %v8995_v10 }
 0x695   : > { %v3860_v6 = vmul.f32 0.17677669, %v8998_v2 }
 0x696   : > { %3427 = vadd.xlane.f32.xlu0 %v3426_v37  ;;  %v5704_v37 = vpop.eup %5703  ;;  %v3408_v59 = vsel %vm534_vm0, %v3378_v13, 0.0 }
 0x697   : > { %v2854_v48 = vmul.f32 0.6931472, %v5704_v37  ;;  %v5706_v23 = vpop.eup %5705 }
 0x698   : > { %3516 = vadd.xlane.f32.xlu1 %v3515_v51  ;;  %v3386_v51 = vmul.f32 %v5868_v50, %v9003_v12  ;;  %v2870_v34 = vmul.f32 0.6931472, %v5706_v23  ;;  %v10809_v50 = vld [vmem:[#allocation21_spill] sm:$0xff] }
 0x699   : > { %v9033_v57 = vadd.f32 %v8923_v33, %v10809_v50  ;;  %v2834_v33 = vadd.f32 1e-08, %v8976_v53 }
 0x69a   : > { %2901 = vadd.xlane.f32.xlu0 %v2900_v38  ;;  %v2816_v38 = vsub.f32 0.0, %v8918_v21  ;;  %v3432_v27 = vsel %vm534_vm0, %v3386_v51, 0.0  ;;  %v2888_v26 = vmul.f32 %v2870_v34, %v2824_v44  ;;  %v3851_v21 = vmul.f32 0.17677669, %v9021_v54 }
 0x69b   : > { %v3853_v18 = vmul.f32 0.17677669, %v9033_v57  ;;  %5707 = vlog2.f32 %v2834_v33  ;;  %v10818_v33 = vld [vmem:[#allocation22_spill] sm:$0xff] }
 0x69c   : > { %v2880_v41 = vmul.f32 %v2854_v48, %v2816_v38  ;;  %v2930_v60 = vsel %vm534_vm0, %v2888_v26, 0.0  ;;  %5709 = vlog2.f32 %v2842_v42  ;;  %v9089_v42 = vadd.f32 %v8953_v7, %v10818_v33  ;;  %v10824_v7 = vld [vmem:[#allocation24_spill] sm:$0xff] }
 0x69d   : > { %v3816_v62 = vpop.permute.xlu0 %3815 }
 0x69e   : > { %2925 = vadd.xlane.f32.xlu0 %v2924_v20  ;;  %v9007_v32 = vadd.f32 %v3816_v62, %v10805_v11  ;;  %v2906_v20 = vsel %vm534_vm0, %v2880_v41, 0.0  ;;  %v9042_v62 = vpop.permute.xlu1 %3809 }
 0x6a0   : > { %10806 = vst [vmem:[#allocation67_spill] sm:$0xff] %v9007_v32  ;;  %v3865_v29 = vmul.f32 0.17677669, %v9007_v32 }
 0x6a1   : > { %v9029_v19 = vpop.permute.xlu0 %3477 }
 0x6a2   : > { %2657 = vadd.xlane.f32.xlu0 %v2656_v1  ;;  %v9026_v1 = vadd.f32 %v8934_v45, %v10808_v8  ;;  %v9048_v13 = vpop.permute.xlu1 %3813 }
 0x6a4   : > { %v3852_v49 = vmul.f32 0.17677669, %v9026_v1 }
 0x6a5   : > { %v9040_v45 = vpop.permute.xlu0 %3481  ;;  %v5708_v51 = vpop.eup %5707 }
 0x6a6   : > { %2681 = vadd.xlane.f32.xlu0 %v2680_v35  ;;  %v2858_v48 = vmul.f32 0.6931472, %v5708_v51  ;;  %v5710_v23 = vpop.eup %5709 }
 0x6a7   : > { %v2874_v34 = vmul.f32 0.6931472, %v5710_v23  ;;  %v10821_v23 = vld [vmem:[#allocation23_spill] sm:$0xff] }
 0x6a9   : > { %3901 = vrot.lane.b32.xlu1 %v3860_v6, %s5904_s14  ;;  %v9045_v35 = vpop.permute.xlu0 %3485  ;;  %v9053_v6 = vpop.permute.xlu1 %3817 }
 0x6aa   : > { %3409 = vadd.xlane.f32.xlu0 %v3408_v59 }
 0x6ad   : > { %3911 = vrot.lane.b32.xlu1 %v3865_v29, %s5904_s14  ;;  %v9051_v37 = vpop.permute.xlu0 %3489  ;;  %v9057_v59 = vpop.permute.xlu1 %3479 }
 0x6ae   : > { %3433 = vadd.xlane.f32.xlu0 %v3432_v27  ;;  %v2818_v27 = vsub.f32 0.0, %v8976_v53 }
 0x6b0   : > { %v2882_v41 = vmul.f32 %v2858_v48, %v2818_v27  ;;  %v9097_v27 = vadd.f32 %v8943_v61, %v10821_v23  ;;  %v10826_v61 = vld [vmem:[#allocation25_spill] sm:$0xff] }
 0x6b1   : > { %v9055_v11 = vpop.permute.xlu0 %3493  ;;  %v9061_v38 = vpop.permute.xlu1 %3483  ;;  %v9115_v33 = vadd.f32 %v8957_v58, %v10826_v61 }
 0x6b2   : > { %2907 = vadd.xlane.f32.xlu0 %v2906_v20  ;;  %v2826_v20 = vsub.f32 0.0, %v8987_v36 }
 0x6b4   : > { %v2890_v25 = vmul.f32 %v2874_v34, %v2826_v20 }
 0x6b5   : > { %v9059_v29 = vpop.permute.xlu0 %3497  ;;  %v9067_v26 = vpop.permute.xlu1 %3487 }
 0x6b6   : > { %2931 = vadd.xlane.f32.xlu0 %v2930_v60  ;;  %v2912_v60 = vsel %vm534_vm0, %v2882_v41, 0.0  ;;  %v2936_v8 = vsel %vm534_vm0, %v2890_v25, 0.0  ;;  %v3854_v41 = vmul.f32 0.17677669, %v9089_v42  ;;  %v9108_v25 = vadd.f32 %v8964_v17, %v10824_v7  ;;  %v10829_v17 = vld [vmem:[#allocation26_spill] sm:$0xff] }
 0x6b7   : > { %v9126_v7 = vadd.f32 %v8978_v43, %v10829_v17  ;;  %v10834_v43 = vld [vmem:[#allocation29_spill] sm:$0xff] }
 0x6b8   : > { %v3856_v23 = vmul.f32 0.17677669, %v9108_v25  ;;  %v9144_v17 = vadd.f32 %v8980_v63, %v10834_v43  ;;  %v10842_v63 = vld [vmem:[#allocation31_spill] sm:$0xff] }
 0x6b9   : > { %v9075_v53 = vpop.permute.xlu1 %3491  ;;  %v9163_v43 = vadd.f32 %v8989_v47, %v10842_v63  ;;  %v10849_v63 = vld [vmem:[#allocation34_spill] sm:$0xff] }
 0x6ba   : > { %10835 = vst [vmem:[#allocation101_spill] sm:$0xff] %v9144_v17 }
 0x6bb   : > { %10843 = vst [vmem:[#allocation105_spill] sm:$0xff] %v9163_v43 }
 0x6bd   : > { %v9079_v39 = vpop.permute.xlu1 %3495 }
 0x6cc   : > { %3883 = vrot.lane.b32.xlu0 %v3851_v21, %s5904_s14 }
 0x6d0   : > { %3885 = vrot.lane.b32.xlu0 %v3852_v49, %s5904_s14 }
 0x6d1   : > { %3519 = vadd.xlane.f32.xlu1 %v3518_v30  ;;  %v9083_v30 = vpop.xlane.xlu1 %2636 }
 0x6d2   : > { %10816 = vst [vmem:[#allocation69_spill] sm:$0xff] %v9083_v30 }
 0x6d4   : > { %3887 = vrot.lane.b32.xlu0 %v3853_v18, %s5904_s14 }
 0x6d5   : > { %v9093_v48 = vpop.xlane.xlu1 %2660 }
 0x6d6   : > { %10820 = vst [vmem:[#allocation87_spill] sm:$0xff] %v9093_v48  ;;  %v9182_v48 = vadd.f32 %v9053_v6, %v10849_v63 }
 0x6d8   : > { %10850 = vst [vmem:[#allocation19_spill] sm:$0xff] %v9182_v48 }
 0x6d9   : > { %v9103_v20 = vpop.xlane.xlu1 %3388 }
 0x6da   : > { %10823 = vst [vmem:[#allocation110_spill] sm:$0xff] %v9103_v20 }
 0x6ef   : > { %v9064_v44 = vpop.xlane.xlu0 %2639 }
 0x6f0   : > { %10811 = vst [vmem:[#allocation68_spill] sm:$0xff] %v9064_v44 }
 0x6f3   : > { %v9070_v21 = vpop.xlane.xlu0 %2663  ;;  %2913 = vadd.xlane.f32.xlu0 %v2912_v60  ;;  %v3855_v60 = vmul.f32 0.17677669, %v9097_v27 }
 0x6f4   : > { %10812 = vst [vmem:[#allocation71_spill] sm:$0xff] %v9070_v21 }
 0x6f7   : > { %v9073_v50 = vpop.xlane.xlu0 %3391  ;;  %2937 = vadd.xlane.f32.xlu0 %v2936_v8 }
 0x6f8   : > { %10813 = vst [vmem:[#allocation75_spill] sm:$0xff] %v9073_v50 }
 0x6fb   : > { %v9077_v49 = vpop.xlane.xlu0 %3415 }
 0x6fc   : > { %10814 = vst [vmem:[#allocation77_spill] sm:$0xff] %v9077_v49 }
 0x6ff   : > { %v9081_v36 = vpop.xlane.xlu0 %2645 }
 0x700   : > { %10815 = vst [vmem:[#allocation86_spill] sm:$0xff] %v9081_v36 }
 0x703   : > { %v9085_v18 = vpop.xlane.xlu0 %2669 }
 0x704   : > { %10817 = vst [vmem:[#allocation72_spill] sm:$0xff] %v9085_v18 }
 0x707   : > { %v9091_v51 = vpop.xlane.xlu0 %3397 }
 0x708   : > { %10819 = vst [vmem:[#allocation79_spill] sm:$0xff] %v9091_v51 }
 0x70b   : > { %v9100_v34 = vpop.xlane.xlu0 %3421 }
 0x70c   : > { %10822 = vst [vmem:[#allocation152_spill] sm:$0xff] %v9100_v34  ;;  %v3857_v34 = vmul.f32 0.17677669, %v9115_v33 }
 0x70d   : > { %3889 = vrot.lane.b32.xlu0 %v3854_v41, %s5904_s14  ;;  %v9120_v41 = vpop.xlane.xlu1 %3412 }
 0x70e   : > { %10828 = vst [vmem:[#allocation100_spill] sm:$0xff] %v9120_v41 }
 0x70f   : > { %v9110_v8 = vpop.xlane.xlu0 %2895 }
 0x710   : > { %10825 = vst [vmem:[#allocation153_spill] sm:$0xff] %v9110_v8 }
 0x711   : > { %3891 = vrot.lane.b32.xlu0 %v3855_v60, %s5904_s14  ;;  %v9131_v58 = vpop.xlane.xlu1 %2642  ;;  %v10832_v60 = vld [vmem:[#allocation27_spill] sm:$0xff] }
 0x712   : > { %10831 = vst [vmem:[#allocation102_spill] sm:$0xff] %v9131_v58  ;;  %v9135_v61 = vadd.f32 %v8967_v0, %v10832_v60  ;;  %v3861_v0 = vmul.f32 0.17677669, %v9144_v17  ;;  %v10838_v60 = vld [vmem:[#allocation30_spill] sm:$0xff] }
 0x713   : > { %v9118_v9 = vpop.xlane.xlu0 %2919  ;;  %v9154_v21 = vadd.f32 %v9042_v62, %v10838_v60  ;;  %v10845_v62 = vld [vmem:[#allocation32_spill] sm:$0xff] }
 0x714   : > { %10827 = vst [vmem:[#allocation154_spill] sm:$0xff] %v9118_v9  ;;  %v3858_v9 = vmul.f32 0.17677669, %v9126_v7  ;;  %v9172_v60 = vadd.f32 %v9048_v13, %v10845_v62  ;;  %v3866_v13 = vmul.f32 0.17677669, %v9182_v48 }
 0x715   : > { %3893 = vrot.lane.b32.xlu0 %v3856_v23, %s5904_s14  ;;  %v3859_v23 = vmul.f32 0.17677669, %v9135_v61  ;;  %10839 = vst [vmem:[#allocation95_spill] sm:$0xff] %v9154_v21 }
 0x716   : > { %10846 = vst [vmem:[#allocation28_spill] sm:$0xff] %v9172_v60  ;;  %v3864_v47 = vmul.f32 0.17677669, %v9172_v60 }
 0x717   : > { %v9128_v8 = vpop.xlane.xlu0 %2651 }
 0x718   : > { %10830 = vst [vmem:[#allocation99_spill] sm:$0xff] %v9128_v8 }
 0x719   : > { %3895 = vrot.lane.b32.xlu0 %v3857_v34, %s5904_s14  ;;  %v9148_v34 = vpop.xlane.xlu1 %2666 }
 0x71a   : > { %10837 = vst [vmem:[#allocation159_spill] sm:$0xff] %v9148_v34  ;;  %v3862_v34 = vmul.f32 0.17677669, %v9154_v21  ;;  %v10895_v21 = vld [vmem:[#allocation104_spill] sm:$0xff] }
 0x71b   : > { %v9138_v18 = vpop.xlane.xlu0 %2675  ;;  %v3524_v17 = vsel %vm534_vm0, %v10895_v21, 0.0  ;;  %v3582_v21 = vadd.f32 1e-08, %v8873_v3 }
 0x71c   : > { %10833 = vst [vmem:[#allocation157_spill] sm:$0xff] %v9138_v18 }
 0x71d   : > { %3897 = vrot.lane.b32.xlu0 %v3858_v9, %s5904_s14  ;;  %v9159_v9 = vpop.xlane.xlu1 %3394 }
 0x71e   : > { %10841 = vst [vmem:[#allocation103_spill] sm:$0xff] %v9159_v9 }
 0x71f   : > { %v9146_v49 = vpop.xlane.xlu0 %3403 }
 0x720   : > { %10836 = vst [vmem:[#allocation158_spill] sm:$0xff] %v9146_v49 }
 0x721   : > { %3899 = vrot.lane.b32.xlu0 %v3859_v23, %s5904_s14  ;;  %v3863_v23 = vmul.f32 0.17677669, %v9163_v43  ;;  %v3580_v43 = vadd.f32 1e-08, %v8827_v15 }
 0x723   : > { %v9156_v18 = vpop.xlane.xlu0 %3427 }
 0x724   : > { %10840 = vst [vmem:[#allocation160_spill] sm:$0xff] %v9156_v18 }
 0x725   : > { %3903 = vrot.lane.b32.xlu0 %v3861_v0, %s5904_s14  ;;  %v9176_v0 = vpop.xlane.xlu1 %3418 }
 0x726   : > { %10848 = vst [vmem:[#allocation33_spill] sm:$0xff] %v9176_v0 }
 0x727   : > { %v9166_v41 = vpop.xlane.xlu0 %2901 }
 0x728   : > { %10844 = vst [vmem:[#allocation108_spill] sm:$0xff] %v9166_v41 }
 0x729   : > { %3905 = vrot.lane.b32.xlu0 %v3862_v34, %s5904_s14  ;;  %v9187_v34 = vpop.xlane.xlu1 %2892 }
 0x72a   : > { %10852 = vst [vmem:[#allocation21_spill] sm:$0xff] %v9187_v34 }
 0x72b   : > { %v9174_v18 = vpop.xlane.xlu0 %2925 }
 0x72c   : > { %10847 = vst [vmem:[#allocation107_spill] sm:$0xff] %v9174_v18 }
 0x72d   : > { %3907 = vrot.lane.b32.xlu0 %v3863_v23, %s5904_s14  ;;  %v9195_v23 = vpop.xlane.xlu1 %2916 }
 0x72e   : > { %10855 = vst [vmem:[#allocation23_spill] sm:$0xff] %v9195_v23 }
 0x72f   : > { %v9184_v41 = vpop.xlane.xlu0 %2657 }
 0x730   : > { %10851 = vst [vmem:[#allocation20_spill] sm:$0xff] %v9184_v41 }
 0x731   : > { %3909 = vrot.lane.b32.xlu0 %v3864_v47, %s5904_s14  ;;  %v9199_v6 = vpop.xlane.xlu1 %2648 }
 0x732   : > { %10857 = vst [vmem:[#allocation25_spill] sm:$0xff] %v9199_v6 }
 0x733   : > { %v9190_v62 = vpop.xlane.xlu0 %2681 }
 0x734   : > { %10853 = vst [vmem:[#allocation106_spill] sm:$0xff] %v9190_v62 }
 0x735   : > { %3913 = vrot.lane.b32.xlu0 %v3866_v13, %s5904_s14  ;;  %v9205_v47 = vpop.xlane.xlu1 %2672 }
 0x736   : > { %10860 = vst [vmem:[#allocation29_spill] sm:$0xff] %v9205_v47 }
 0x737   : > { %v9193_v18 = vpop.xlane.xlu0 %3409 }
 0x738   : > { %10854 = vst [vmem:[#allocation22_spill] sm:$0xff] %v9193_v18 }
 0x739   : > { %v9207_v49 = vpop.xlane.xlu1 %3400 }
 0x73a   : > { %10861 = vst [vmem:[#allocation30_spill] sm:$0xff] %v9207_v49 }
 0x73b   : > { %v9197_v0 = vpop.xlane.xlu0 %3433 }
 0x73c   : > { %10856 = vst [vmem:[#allocation24_spill] sm:$0xff] %v9197_v0 }
 0x73d   : > { %v9209_v13 = vpop.xlane.xlu1 %3424 }
 0x73e   : > { %10862 = vst [vmem:[#allocation31_spill] sm:$0xff] %v9209_v13 }
 0x73f   : > { %v9201_v63 = vpop.xlane.xlu0 %2907 }
 0x740   : > { %10858 = vst [vmem:[#allocation26_spill] sm:$0xff] %v9201_v63 }
 0x741   : > { %v9227_v13 = vpop.xlane.xlu1 %2898 }
 0x742   : > { %10866 = vst [vmem:[#allocation32_spill] sm:$0xff] %v9227_v13 }
 0x743   : > { %v9203_v41 = vpop.xlane.xlu0 %2931 }
 0x744   : > { %10859 = vst [vmem:[#allocation27_spill] sm:$0xff] %v9203_v41 }
 0x747   : > { %v3884_v34 = vpop.permute.xlu0 %3883 }
 0x748   : > { %v9213_v23 = vsel %vm1723_vm3, -1e+08, %v3884_v34 }
 0x749   : > { %v3947_v63 = vsel %vm534_vm0, %v9213_v23, -inf }
 0x74b   : > { %v3886_v62 = vpop.permute.xlu0 %3885 }
 0x74c   : > { %v9225_v36 = vsel %vm1724_vm2, -1e+08, %v3886_v62  ;;  %vm10890_vm2 = vmmov %vm10657_vm1 }
 0x74d   : > { %v3950_v18 = vsel %vm534_vm0, %v9225_v36, -inf }
 0x74f   : > { %v3888_v8 = vpop.permute.xlu0 %3887 }
 0x750   : > { %v9217_v51 = vsel %vm1725_vm4, -1e+08, %v3888_v8  ;;  %v9231_v8 = vpop.xlane.xlu1 %2922  ;;  %vm4443_vm4 = vcmask 7168  }
 0x751   : > { %v3953_v41 = vsel %vm534_vm0, %v9217_v51, -inf  ;;  %10867 = vst [vmem:[#allocation34_spill] sm:$0xff] %v9231_v8 }
 0x752   : > { %3954 = vmax.xlane.f32.xlu1 %v3953_v41 }
 0x754   : > { %3948 = vmax.xlane.f32.xlu0 %v3947_v63  ;;  %v9233_v0 = vpop.xlane.xlu1 %2654 }
 0x755   : > { %10868 = vst [vmem:[#allocation48_spill] sm:$0xff] %v9233_v0 }
 0x758   : > { %3951 = vmax.xlane.f32.xlu0 %v3950_v18  ;;  %v9235_v34 = vpop.xlane.xlu1 %2678 }
 0x759   : > { %10869 = vst [vmem:[#allocation49_spill] sm:$0xff] %v9235_v34 }
 0x75c   : > { %v9237_v41 = vpop.xlane.xlu1 %3406 }
 0x75d   : > { %10870 = vst [vmem:[#allocation47_spill] sm:$0xff] %v9237_v41 }
 0x760   : > { %v9239_v49 = vpop.xlane.xlu1 %3430 }
 0x761   : > { %10871 = vst [vmem:[#allocation161_spill] sm:$0xff] %v9239_v49 }
 0x764   : > { %v9241_v47 = vpop.xlane.xlu1 %2904 }
 0x765   : > { %10872 = vst [vmem:[#allocation162_spill] sm:$0xff] %v9241_v47 }
 0x768   : > { %v9243_v62 = vpop.xlane.xlu1 %2928 }
 0x769   : > { %10873 = vst [vmem:[#allocation163_spill] sm:$0xff] %v9243_v62 }
 0x76c   : > { %v9249_v6 = vpop.xlane.xlu1 %2910 }
 0x76d   : > { %10876 = vst [vmem:[#allocation166_spill] sm:$0xff] %v9249_v6 }
 0x770   : > { %v9257_v49 = vpop.xlane.xlu1 %2934 }
 0x771   : > { %10878 = vst [vmem:[#allocation51_spill] sm:$0xff] %v9257_v49 }
 0x780   : > { %v9245_v63 = vpop.xlane.xlu0 %2913 }
 0x781   : > { %10874 = vst [vmem:[#allocation164_spill] sm:$0xff] %v9245_v63 }
 0x784   : > { %v9247_v13 = vpop.xlane.xlu0 %2937 }
 0x785   : > { %10875 = vst [vmem:[#allocation165_spill] sm:$0xff] %v9247_v13 }
 0x788   : > { %v3890_v18 = vpop.permute.xlu0 %3889 }
 0x789   : > { %v9253_v0 = vsel %vm1726_vm6, -1e+08, %v3890_v18  ;;  %v9269_v18 = vpop.xlane.xlu1 %3516  ;;  %vm4477_vm6 = vcmask 23552  }
 0x78a   : > { %v3956_v34 = vsel %vm534_vm0, %v9253_v0, -inf  ;;  %10881 = vst [vmem:[#allocation50_spill] sm:$0xff] %v9269_v18 }
 0x78b   : > { %3957 = vmax.xlane.f32.xlu0 %v3956_v34 }
 0x78c   : > { %v3892_v47 = vpop.permute.xlu0 %3891 }
 0x78d   : > { %v9261_v62 = vsel %vm1727_vm5, -1e+08, %v3892_v47  ;;  %vm4460_vm5 = vcmask 15360  }
 0x78e   : > { %v3959_v13 = vsel %vm534_vm0, %v9261_v62, -inf }
 0x78f   : > { %3960 = vmax.xlane.f32.xlu1 %v3959_v13  ;;  %v3902_v13 = vpop.permute.xlu1 %3901 }
 0x790   : > { %v3894_v63 = vpop.permute.xlu0 %3893 }
 0x791   : > { %v9267_v8 = vsel %vm1728_vm8, -1e+08, %v3894_v63  ;;  %vm4815_vm8 = vcmask 39936  }
 0x792   : > { %v3962_v34 = vsel %vm534_vm0, %v9267_v8, -inf }
 0x793   : > { %3963 = vmax.xlane.f32.xlu0 %v3962_v34  ;;  %v9287_v34 = vsel %vm1732_vm12, -1e+08, %v3902_v13  ;;  %vm4899_vm12 = vcmask 80896  }
 0x794   : > { %v3896_v49 = vpop.permute.xlu0 %3895 }
 0x795   : > { %v9275_v41 = vsel %vm1729_vm7, -1e+08, %v3896_v49  ;;  %vm4638_vm7 = vcmask 31744  }
 0x796   : > { %v3965_v47 = vsel %vm534_vm0, %v9275_v41, -inf }
 0x797   : > { %3966 = vmax.xlane.f32.xlu1 %v3965_v47 }
 0x798   : > { %v3898_v30 = vpop.permute.xlu0 %3897 }
 0x799   : > { %v9281_v63 = vsel %vm1730_vm10, -1e+08, %v3898_v30  ;;  %v3974_v30 = vsel %vm534_vm0, %v9287_v34, -inf  ;;  %vm4849_vm10 = vcmask 56320  }
 0x79a   : > { %v3968_v18 = vsel %vm534_vm0, %v9281_v63, -inf }
 0x79b   : > { %3969 = vmax.xlane.f32.xlu0 %v3968_v18 }
 0x79c   : > { %v3900_v49 = vpop.permute.xlu0 %3899 }
 0x79d   : > { %v9291_v58 = vsel %vm1731_vm9, -1e+08, %v3900_v49  ;;  %v10891_v49 = vld [vmem:[#allocation65_spill] sm:$0xff]  ;;  %vm4832_vm9 = vcmask 48128  }
 0x79e   : > { %v3971_v47 = vsel %vm534_vm0, %v9291_v58, -inf  ;;  %vm10892_vm3 = vcmp.eq.f32.partialorder %v10891_v49, 0.0  ;;  %v3579_v49 = vadd.f32 1e-08, %v8738_v5 }
 0x79f   : > { %3972 = vmax.xlane.f32.xlu1 %v3971_v47  ;;  %3975 = vmax.xlane.f32.xlu0 %v3974_v30  ;;  %v3912_v47 = vpop.permute.xlu1 %3911 }
 0x7a0   : > { %v3904_v6 = vpop.permute.xlu0 %3903  ;;  %5711 = vlog2.f32 %v3579_v49  ;;  %v3545_v49 = vsel %vm534_vm0, %v9067_v26, 0.0  ;;  %v3563_v26 = vsub.f32 0.0, %v8738_v5  ;;  %v3564_v5 = vsub.f32 0.0, %v8827_v15 }
 0x7a1   : > { %v9299_v9 = vsel %vm1733_vm11, -1e+08, %v3904_v6  ;;  %5713 = vlog2.f32 %v3580_v43  ;;  %v3566_v15 = vsub.f32 0.0, %v8873_v3  ;;  %vm4882_vm11 = vcmask 72704  }
 0x7a2   : > { %v3977_v18 = vsel %vm534_vm0, %v9299_v9, -inf }
 0x7a3   : > { %3978 = vmax.xlane.f32.xlu1 %v3977_v18  ;;  %v9317_v18 = vsel %vm10890_vm2, -1e+08, %v3912_v47 }
 0x7a4   : > { %v3906_v13 = vpop.permute.xlu0 %3905  ;;  %v3989_v32 = vsel %vm534_vm0, %v9317_v18, -inf }
 0x7a5   : > { %v9305_v20 = vsel %vm1734_vm14, -1e+08, %v3906_v13 }
 0x7a6   : > { %v3980_v44 = vsel %vm534_vm0, %v9305_v20, -inf }
 0x7a7   : > { %3981 = vmax.xlane.f32.xlu0 %v3980_v44 }
 0x7a8   : > { %v3908_v30 = vpop.permute.xlu0 %3907 }
 0x7a9   : > { %v9311_v50 = vsel %vm1735_vm13, -1e+08, %v3908_v30 }
 0x7aa   : > { %v3983_v6 = vsel %vm534_vm0, %v9311_v50, -inf }
 0x7ab   : > { %3984 = vmax.xlane.f32.xlu1 %v3983_v6  ;;  %v10894_v6 = vld [vmem:[#allocation96_spill] sm:$0xff] }
 0x7ac   : > { %v3910_v13 = vpop.permute.xlu0 %3909 }
 0x7ad   : > { %v9321_v60 = vsel %vm10892_vm3, -1e+08, %v3910_v13  ;;  %v3521_v13 = vsel %vm534_vm0, %v10894_v6, 0.0  ;;  %v3539_v6 = vsel %vm534_vm0, %v9061_v38, 0.0  ;;  %v3586_v38 = vadd.f32 1e-08, %v8995_v10 }
 0x7ae   : > { %v3986_v44 = vsel %vm534_vm0, %v9321_v60, -inf }
 0x7af   : > { %3987 = vmax.xlane.f32.xlu0 %v3986_v44  ;;  %3990 = vmax.xlane.f32.xlu1 %v3989_v32  ;;  %v3527_v44 = vsel %vm534_vm0, %v8920_v40, 0.0  ;;  %v3581_v32 = vadd.f32 1e-08, %v8774_v56  ;;  %v3583_v40 = vadd.f32 1e-08, %v8820_v14 }
 0x7b0   : > { %v3914_v30 = vpop.permute.xlu0 %3913 }
 0x7b1   : > { %v9329_v48 = vsel %vm1738_vm15, -1e+08, %v3914_v30  ;;  %v3530_v30 = vsel %vm534_vm0, %v9029_v19, 0.0  ;;  %5715 = vlog2.f32 %v3581_v32  ;;  %v3584_v19 = vadd.f32 1e-08, %v8941_v46 }
 0x7b2   : > { %v3992_v47 = vsel %vm534_vm0, %v9329_v48, -inf  ;;  %5717 = vlog2.f32 %v3582_v21  ;;  %v3548_v32 = vsel %vm534_vm0, %v9051_v37, 0.0  ;;  %v3588_v21 = vadd.f32 1e-08, %v8839_v24 }
 0x7b3   : > { %3993 = vmax.xlane.f32.xlu0 %v3992_v47  ;;  %3522 = vadd.xlane.f32.xlu1 %v3521_v13  ;;  %v3533_v47 = vsel %vm534_vm0, %v9057_v59, 0.0  ;;  %5719 = vlog2.f32 %v3583_v40  ;;  %v3585_v59 = vadd.f32 1e-08, %v8893_v16  ;;  %v3542_v13 = vsel %vm534_vm0, %v9045_v35, 0.0 }
 0x7b4   : > { %5721 = vlog2.f32 %v3584_v19  ;;  %v3554_v37 = vsel %vm534_vm0, %v9055_v11, 0.0  ;;  %v3560_v11 = vsel %vm534_vm0, %v9059_v29, 0.0 }
 0x7b5   : > { %5723 = vlog2.f32 %v3585_v59 }
 0x7b7   : > { %3525 = vadd.xlane.f32.xlu0 %v3524_v17  ;;  %3528 = vadd.xlane.f32.xlu1 %v3527_v44  ;;  %v3536_v17 = vsel %vm534_vm0, %v9040_v45, 0.0  ;;  %v5712_v44 = vpop.eup %5711  ;;  %v3587_v45 = vadd.f32 1e-08, %v8747_v4 }
 0x7b8   : > { %v5714_v43 = vpop.eup %5713  ;;  %v3596_v35 = vmul.f32 0.6931472, %v5712_v44 }
 0x7b9   : > { %5725 = vlog2.f32 %v3587_v45  ;;  %v3598_v40 = vmul.f32 0.6931472, %v5714_v43 }
 0x7ba   : > { %5727 = vlog2.f32 %v3586_v38  ;;  %v3627_v19 = vmul.f32 %v3596_v35, %v3563_v26  ;;  %v3590_v38 = vadd.f32 1e-08, %v8886_v55 }
 0x7bb   : > { %3531 = vadd.xlane.f32.xlu0 %v3530_v30  ;;  %3534 = vadd.xlane.f32.xlu1 %v3533_v47  ;;  %v3551_v30 = vsel %vm534_vm0, %v9075_v53, 0.0  ;;  %v5716_v47 = vpop.eup %5715  ;;  %v3557_v53 = vsel %vm534_vm0, %v9079_v39, 0.0  ;;  %5729 = vlog2.f32 %v3588_v21  ;;  %v3628_v44 = vmul.f32 %v3598_v40, %v3564_v5 }
 0x7bc   : > { %v3600_v59 = vmul.f32 0.6931472, %v5716_v47  ;;  %v3643_v39 = vsel %vm534_vm0, %v3627_v19, 0.0  ;;  %v3569_v19 = vsub.f32 0.0, %v8893_v16 }
 0x7bd   : > { %v3646_v47 = vsel %vm534_vm0, %v3628_v44, 0.0 }
 0x7bf   : > { %3537 = vadd.xlane.f32.xlu0 %v3536_v17  ;;  %3540 = vadd.xlane.f32.xlu1 %v3539_v6  ;;  %v3589_v17 = vadd.f32 1e-08, %v8780_v31  ;;  %v5718_v6 = vpop.eup %5717 }
 0x7c0   : > { %v3602_v45 = vmul.f32 0.6931472, %v5718_v6 }
 0x7c1   : > { %5731 = vlog2.f32 %v3589_v17 }
 0x7c2   : > { %v3630_v26 = vmul.f32 %v3602_v45, %v3566_v15  ;;  %5733 = vlog2.f32 %v3590_v38  ;;  %v3571_v38 = vsub.f32 0.0, %v8747_v4  ;;  %v9389_v15 = vpop.xlane.xlu1 %3519 }
 0x7c3   : > { %3543 = vadd.xlane.f32.xlu0 %v3542_v13  ;;  %3546 = vadd.xlane.f32.xlu1 %v3545_v49  ;;  %v5720_v13 = vpop.eup %5719  ;;  %v3565_v49 = vsub.f32 0.0, %v8774_v56  ;;  %v3567_v56 = vsub.f32 0.0, %v8820_v14 }
 0x7c4   : > { %v5722_v43 = vpop.eup %5721  ;;  %v3652_v3 = vsel %vm534_vm0, %v3630_v26, 0.0 }
 0x7c5   : > { %v5724_v35 = vpop.eup %5723  ;;  %v3606_v29 = vmul.f32 0.6931472, %v5722_v43  ;;  %v3570_v43 = vsub.f32 0.0, %v8995_v10 }
 0x7c6   : > { %v5726_v21 = vpop.eup %5725  ;;  %v3608_v6 = vmul.f32 0.6931472, %v5724_v35 }
 0x7c7   : > { %3549 = vadd.xlane.f32.xlu0 %v3548_v32  ;;  %3552 = vadd.xlane.f32.xlu1 %v3551_v30  ;;  %v3629_v32 = vmul.f32 %v3600_v59, %v3565_v49  ;;  %v3604_v30 = vmul.f32 0.6931472, %v5720_v13  ;;  %v3612_v14 = vmul.f32 0.6931472, %v5726_v21 }
 0x7c8   : > { %v3633_v49 = vmul.f32 %v3608_v6, %v3569_v19  ;;  %v3574_v6 = vsub.f32 0.0, %v8886_v55 }
 0x7c9   : > { %v3649_v40 = vsel %vm534_vm0, %v3629_v32, 0.0  ;;  %v3631_v17 = vmul.f32 %v3604_v30, %v3567_v56  ;;  %v3572_v56 = vsub.f32 0.0, %v8839_v24 }
 0x7cb   : > { %3555 = vadd.xlane.f32.xlu0 %v3554_v37  ;;  %3558 = vadd.xlane.f32.xlu1 %v3557_v53  ;;  %v5728_v37 = vpop.eup %5727  ;;  %v3568_v53 = vsub.f32 0.0, %v8941_v46  ;;  %v3655_v13 = vsel %vm534_vm0, %v3631_v17, 0.0 }
 0x7cc   : > { %v5730_v59 = vpop.eup %5729  ;;  %v3610_v44 = vmul.f32 0.6931472, %v5728_v37 }
 0x7cd   : > { %v3632_v5 = vmul.f32 %v3606_v29, %v3568_v53  ;;  %v5732_v45 = vpop.eup %5731  ;;  %v3614_v46 = vmul.f32 0.6931472, %v5730_v59 }
 0x7ce   : > { %v3634_v32 = vmul.f32 %v3610_v44, %v3570_v43  ;;  %v3616_v30 = vmul.f32 0.6931472, %v5732_v45  ;;  %v5734_v35 = vpop.eup %5733 }
 0x7cf   : > { %3561 = vadd.xlane.f32.xlu0 %v3560_v11  ;;  %3644 = vadd.xlane.f32.xlu1 %v3643_v39  ;;  %v3635_v11 = vmul.f32 %v3612_v14, %v3571_v38  ;;  %v3658_v16 = vsel %vm534_vm0, %v3632_v5, 0.0  ;;  %v3661_v39 = vsel %vm534_vm0, %v3633_v49, 0.0  ;;  %v3636_v26 = vmul.f32 %v3614_v46, %v3572_v56 }
 0x7d0   : > { %v3664_v10 = vsel %vm534_vm0, %v3634_v32, 0.0 }
 0x7d1   : > { %v3667_v4 = vsel %vm534_vm0, %v3635_v11, 0.0  ;;  %v3670_v24 = vsel %vm534_vm0, %v3636_v26, 0.0 }
 0x7d3   : > { %3647 = vadd.xlane.f32.xlu0 %v3646_v47  ;;  %3650 = vadd.xlane.f32.xlu1 %v3649_v40  ;;  %v3573_v47 = vsub.f32 0.0, %v8780_v31  ;;  %v3618_v40 = vmul.f32 0.6931472, %v5734_v35 }
 0x7d5   : > { %v3637_v21 = vmul.f32 %v3616_v30, %v3573_v47  ;;  %v3638_v19 = vmul.f32 %v3618_v40, %v3574_v6 }
 0x7d7   : > { %3653 = vadd.xlane.f32.xlu0 %v3652_v3  ;;  %3656 = vadd.xlane.f32.xlu1 %v3655_v13  ;;  %v3673_v31 = vsel %vm534_vm0, %v3637_v21, 0.0 }
 0x7db   : > { %3659 = vadd.xlane.f32.xlu0 %v3658_v16  ;;  %3662 = vadd.xlane.f32.xlu1 %v3661_v39 }
 0x7df   : > { %3665 = vadd.xlane.f32.xlu0 %v3664_v10  ;;  %3668 = vadd.xlane.f32.xlu1 %v3667_v4  ;;  %v3955_v17 = vpop.xlane.xlu1 %3954 }
 0x7e0   : > { %v3997_v29 = vsub.f32 %v9217_v51, %v3955_v17  ;;  %v3676_v51 = vsel %vm534_vm0, %v3638_v19, 0.0 }
 0x7e1   : > { %v3949_v37 = vpop.xlane.xlu0 %3948 }
 0x7e2   : > { %v3995_v53 = vsub.f32 %v9213_v23, %v3949_v37  ;;  %v4015_v3 = vmul.f32 1.442695, %v3997_v29 }
 0x7e3   : > { %3671 = vadd.xlane.f32.xlu0 %v3670_v24  ;;  %3674 = vadd.xlane.f32.xlu1 %v3673_v31 }
 0x7e4   : > { %v4011_v14 = vmul.f32 1.442695, %v3995_v53 }
 0x7e5   : > { %v3952_v59 = vpop.xlane.xlu0 %3951 }
 0x7e6   : > { %5735 = vpow2.f32 %v4011_v14  ;;  %v3996_v13 = vsub.f32 %v9225_v36, %v3952_v59 }
 0x7e7   : > { %3677 = vadd.xlane.f32.xlu0 %v3676_v51  ;;  %5737 = vpow2.f32 %v4015_v3 }
 0x7e8   : > { %v4013_v55 = vmul.f32 1.442695, %v3996_v13 }
 0x7ea   : > { %5739 = vpow2.f32 %v4013_v55 }
 0x7f0   : > { %v9402_v23 = vpop.eup %5735 }
 0x7f1   : > { %v4043_v5 = vsel %vm534_vm0, %v9402_v23, 0.0  ;;  %v9406_v49 = vpop.eup %5737 }
 0x7f2   : > { %4044 = vadd.xlane.f32.xlu1 %v4043_v5  ;;  %v4049_v36 = vsel %vm534_vm0, %v9406_v49, 0.0  ;;  %v3591_v5 = vadd.f32 1e-08, %v8833_v52 }
 0x7f4   : > { %v9408_v44 = vpop.eup %5739 }
 0x7f5   : > { %v4046_v45 = vsel %vm534_vm0, %v9408_v44, 0.0 }
 0x7f6   : > { %4047 = vadd.xlane.f32.xlu0 %v4046_v45  ;;  %4050 = vadd.xlane.f32.xlu1 %v4049_v36 }
 0x818   : > { %v3958_v38 = vpop.xlane.xlu0 %3957 }
 0x819   : > { %v3998_v43 = vsub.f32 %v9253_v0, %v3958_v38 }
 0x81b   : > { %v4017_v11 = vmul.f32 1.442695, %v3998_v43  ;;  %v3592_v43 = vadd.f32 1e-08, %v8951_v22 }
 0x81c   : > { %v3961_v46 = vpop.xlane.xlu1 %3960 }
 0x81d   : > { %5741 = vpow2.f32 %v4017_v11  ;;  %v3999_v16 = vsub.f32 %v9261_v62, %v3961_v46 }
 0x81f   : > { %v4019_v39 = vmul.f32 1.442695, %v3999_v16 }
 0x820   : > { %v3964_v32 = vpop.xlane.xlu0 %3963 }
 0x821   : > { %5743 = vpow2.f32 %v4019_v39  ;;  %v4000_v30 = vsub.f32 %v9267_v8, %v3964_v32  ;;  %v3593_v39 = vadd.f32 1e-08, %v8903_v28 }
 0x823   : > { %v4021_v35 = vmul.f32 1.442695, %v4000_v30 }
 0x824   : > { %v3967_v56 = vpop.xlane.xlu1 %3966 }
 0x825   : > { %5745 = vpow2.f32 %v4021_v35  ;;  %v4001_v47 = vsub.f32 %v9275_v41, %v3967_v56 }
 0x827   : > { %v9418_v4 = vpop.eup %5741  ;;  %v4023_v10 = vmul.f32 1.442695, %v4001_v47 }
 0x828   : > { %v3970_v26 = vpop.xlane.xlu0 %3969  ;;  %v4052_v0 = vsel %vm534_vm0, %v9418_v4, 0.0 }
 0x829   : > { %5747 = vpow2.f32 %v4023_v10  ;;  %v4002_v62 = vsub.f32 %v9281_v63, %v3970_v26  ;;  %4053 = vadd.xlane.f32.xlu0 %v4052_v0  ;;  %v3594_v10 = vadd.f32 1e-08, %v9003_v12 }
 0x82b   : > { %v9423_v21 = vpop.eup %5743  ;;  %v4025_v40 = vmul.f32 1.442695, %v4002_v62 }
 0x82c   : > { %v3976_v8 = vpop.xlane.xlu0 %3975  ;;  %v3973_v17 = vpop.xlane.xlu1 %3972  ;;  %v4055_v29 = vsel %vm534_vm0, %v9423_v21, 0.0 }
 0x82d   : > { %5749 = vpow2.f32 %v4025_v40  ;;  %v4004_v41 = vsub.f32 %v9287_v34, %v3976_v8  ;;  %v4003_v6 = vsub.f32 %v9291_v58, %v3973_v17  ;;  %4056 = vadd.xlane.f32.xlu1 %v4055_v29 }
 0x82f   : > { %v9429_v37 = vpop.eup %5745  ;;  %v4029_v53 = vmul.f32 1.442695, %v4004_v41  ;;  %v4027_v24 = vmul.f32 1.442695, %v4003_v6 }
 0x830   : > { %v3979_v63 = vpop.xlane.xlu1 %3978  ;;  %v4058_v31 = vsel %vm534_vm0, %v9429_v37, 0.0 }
 0x831   : > { %5751 = vpow2.f32 %v4029_v53  ;;  %v4005_v19 = vsub.f32 %v9299_v9, %v3979_v63  ;;  %4059 = vadd.xlane.f32.xlu0 %v4058_v31 }
 0x832   : > { %5753 = vpow2.f32 %v4027_v24 }
 0x833   : > { %v9434_v3 = vpop.eup %5747  ;;  %v4031_v14 = vmul.f32 1.442695, %v4005_v19 }
 0x834   : > { %v3982_v34 = vpop.xlane.xlu0 %3981  ;;  %v4061_v58 = vsel %vm534_vm0, %v9434_v3, 0.0 }
 0x835   : > { %5755 = vpow2.f32 %v4031_v14  ;;  %v4006_v59 = vsub.f32 %v9305_v20, %v3982_v34  ;;  %4062 = vadd.xlane.f32.xlu1 %v4061_v58  ;;  %v3575_v34 = vsub.f32 0.0, %v8833_v52  ;;  %v3576_v52 = vsub.f32 0.0, %v8951_v22 }
 0x836   : > { %v3578_v22 = vsub.f32 0.0, %v9003_v12 }
 0x837   : > { %v9439_v13 = vpop.eup %5749  ;;  %v4033_v51 = vmul.f32 1.442695, %v4006_v59 }
 0x838   : > { %v3985_v55 = vpop.xlane.xlu1 %3984  ;;  %v4064_v9 = vsel %vm534_vm0, %v9439_v13, 0.0 }
 0x839   : > { %5757 = vpow2.f32 %v4033_v51  ;;  %v4007_v45 = vsub.f32 %v9311_v50, %v3985_v55  ;;  %4065 = vadd.xlane.f32.xlu0 %v4064_v9 }
 0x83a   : > { %5759 = vlog2.f32 %v3591_v5 }
 0x83b   : > { %v9445_v36 = vpop.eup %5751  ;;  %v4035_v38 = vmul.f32 1.442695, %v4007_v45 }
 0x83c   : > { %v9448_v20 = vpop.eup %5753  ;;  %v3988_v11 = vpop.xlane.xlu0 %3987  ;;  %v4070_v16 = vsel %vm534_vm0, %v9445_v36, 0.0 }
 0x83d   : > { %v3991_v46 = vpop.xlane.xlu1 %3990  ;;  %5761 = vpow2.f32 %v4035_v38  ;;  %v4008_v32 = vsub.f32 %v9321_v60, %v3988_v11  ;;  %4071 = vadd.xlane.f32.xlu0 %v4070_v16  ;;  %v4067_v30 = vsel %vm534_vm0, %v9448_v20, 0.0 }
 0x83e   : > { %v4009_v50 = vsub.f32 %v9317_v18, %v3991_v46  ;;  %4068 = vadd.xlane.f32.xlu1 %v4067_v30  ;;  %5763 = vlog2.f32 %v3592_v43  ;;  %v3577_v46 = vsub.f32 0.0, %v8903_v28 }
 0x83f   : > { %v9457_v35 = vpop.eup %5755  ;;  %v4037_v56 = vmul.f32 1.442695, %v4008_v32  ;;  %5765 = vlog2.f32 %v3593_v39 }
 0x840   : > { %v4039_v47 = vmul.f32 1.442695, %v4009_v50  ;;  %v3994_v26 = vpop.xlane.xlu0 %3993  ;;  %v4073_v60 = vsel %vm534_vm0, %v9457_v35, 0.0 }
 0x841   : > { %v9460_v0 = vpop.xlane.xlu1 %3522  ;;  %5767 = vpow2.f32 %v4037_v56  ;;  %v4010_v18 = vsub.f32 %v9329_v48, %v3994_v26 }
 0x842   : > { %5769 = vpow2.f32 %v4039_v47  ;;  %4074 = vadd.xlane.f32.xlu1 %v4073_v60 }
 0x843   : > { %v9465_v62 = vpop.eup %5757  ;;  %v4041_v40 = vmul.f32 1.442695, %v4010_v18  ;;  %5771 = vlog2.f32 %v3594_v10 }
 0x844   : > { %v9467_v8 = vpop.xlane.xlu0 %3525  ;;  %v4076_v29 = vsel %vm534_vm0, %v9465_v62, 0.0  ;;  %v5760_v41 = vpop.eup %5759 }
 0x845   : > { %v9469_v17 = vpop.xlane.xlu1 %3528  ;;  %5773 = vpow2.f32 %v4041_v40  ;;  %4077 = vadd.xlane.f32.xlu0 %v4076_v29  ;;  %v3620_v31 = vmul.f32 0.6931472, %v5760_v41 }
 0x847   : > { %v9473_v6 = vpop.eup %5761  ;;  %v3639_v38 = vmul.f32 %v3620_v31, %v3575_v34 }
 0x848   : > { %v9475_v53 = vpop.xlane.xlu0 %3531  ;;  %v4079_v24 = vsel %vm534_vm0, %v9473_v6, 0.0  ;;  %v5764_v63 = vpop.eup %5763 }
 0x849   : > { %v9477_v48 = vpop.xlane.xlu1 %3534  ;;  %4080 = vadd.xlane.f32.xlu1 %v4079_v24  ;;  %v5766_v19 = vpop.eup %5765  ;;  %v3622_v9 = vmul.f32 0.6931472, %v5764_v63  ;;  %v3679_v56 = vsel %vm534_vm0, %v3639_v38, 0.0 }
 0x84a   : > { %v3624_v43 = vmul.f32 0.6931472, %v5766_v19 }
 0x84b   : > { %v9481_v14 = vpop.eup %5767  ;;  %v3640_v50 = vmul.f32 %v3622_v9, %v3576_v52 }
 0x84c   : > { %v9484_v58 = vpop.eup %5769  ;;  %v9486_v59 = vpop.xlane.xlu0 %3537  ;;  %v4082_v55 = vsel %vm534_vm0, %v9481_v14, 0.0  ;;  %v3641_v47 = vmul.f32 %v3624_v43, %v3577_v46 }
 0x84d   : > { %v9488_v51 = vpop.xlane.xlu1 %3540  ;;  %v5772_v5 = vpop.eup %5771  ;;  %4083 = vadd.xlane.f32.xlu0 %v4082_v55  ;;  %v4085_v45 = vsel %vm534_vm0, %v9484_v58, 0.0  ;;  %v3682_v28 = vsel %vm534_vm0, %v3640_v50, 0.0 }
 0x84e   : > { %4086 = vadd.xlane.f32.xlu1 %v4085_v45  ;;  %v3626_v30 = vmul.f32 0.6931472, %v5772_v5  ;;  %v3685_v18 = vsel %vm534_vm0, %v3641_v47, 0.0  ;;  %v5869_v47 = vld [vmem:[%s7078_s27] sm:$0xff] }
 0x84f   : > { %v9495_v11 = vpop.eup %5773 }
 0x850   : > { %v9498_v16 = vpop.xlane.xlu0 %3543  ;;  %v4088_v32 = vsel %vm534_vm0, %v9495_v11, 0.0  ;;  %v3642_v60 = vmul.f32 %v3626_v30, %v3578_v22 }
 0x851   : > { %10896 = vst [vmem:[#allocation53_spill] sm:$0xff] %v9498_v16  ;;  %v9500_v39 = vpop.xlane.xlu1 %3546  ;;  %4089 = vadd.xlane.f32.xlu0 %v4088_v32 }
 0x852   : > { %3680 = vadd.xlane.f32.xlu1 %v3679_v56  ;;  %v3688_v41 = vsel %vm534_vm0, %v3642_v60, 0.0 }
 0x854   : > { %v9506_v10 = vpop.xlane.xlu0 %3549 }
 0x855   : > { %10897 = vst [vmem:[#allocation52_spill] sm:$0xff] %v9506_v10  ;;  %v9508_v26 = vpop.xlane.xlu1 %3552  ;;  %3683 = vadd.xlane.f32.xlu0 %v3682_v28 }
 0x856   : > { %10898 = vst [vmem:[#allocation55_spill] sm:$0xff] %v9508_v26  ;;  %3686 = vadd.xlane.f32.xlu1 %v3685_v18 }
 0x858   : > { %v9512_v40 = vpop.xlane.xlu0 %3555 }
 0x859   : > { %10899 = vst [vmem:[#allocation57_spill] sm:$0xff] %v9512_v40  ;;  %v9514_v29 = vpop.xlane.xlu1 %3558  ;;  %3689 = vadd.xlane.f32.xlu0 %v3688_v41 }
 0x85a   : > { %10900 = vst [vmem:[#allocation54_spill] sm:$0xff] %v9514_v29 }
 0x85c   : > { %v9517_v24 = vpop.xlane.xlu0 %3561 }
 0x85d   : > { %10901 = vst [vmem:[#allocation56_spill] sm:$0xff] %v9517_v24  ;;  %v9519_v12 = vpop.xlane.xlu1 %3644  ;;  %v5871_v24 = vld [vmem:[%s7078_s27 + $0x10] sm:$0xff] }
 0x860   : > { %v9521_v63 = vpop.xlane.xlu0 %3647 }
 0x861   : > { %v9523_v31 = vpop.xlane.xlu1 %3650 }
 0x864   : > { %v9525_v19 = vpop.xlane.xlu0 %3653 }
 0x865   : > { %v9527_v34 = vpop.xlane.xlu1 %3656 }
 0x868   : > { %v9529_v55 = vpop.xlane.xlu0 %3659 }
 0x869   : > { %v9531_v9 = vpop.xlane.xlu1 %3662 }
 0x86c   : > { %v9533_v5 = vpop.xlane.xlu0 %3665 }
 0x86d   : > { %v9535_v45 = vpop.xlane.xlu1 %3668 }
 0x870   : > { %v9537_v38 = vpop.xlane.xlu0 %3671 }
 0x871   : > { %10902 = vst [vmem:[#allocation60_spill] sm:$0xff] %v9537_v38  ;;  %v9539_v43 = vpop.xlane.xlu1 %3674 }
 0x872   : > { %10903 = vst [vmem:[#allocation59_spill] sm:$0xff] %v9539_v43 }
 0x874   : > { %v9541_v52 = vpop.xlane.xlu0 %3677 }
 0x875   : > { %10904 = vst [vmem:[#allocation63_spill] sm:$0xff] %v9541_v52 }
 0x87f   : > { %v4045_v46 = vpop.xlane.xlu1 %4044 }
 0x880   : > { %5775 = vrcp.f32 %v4045_v46 }
 0x883   : > { %v4048_v32 = vpop.xlane.xlu0 %4047  ;;  %v4051_v50 = vpop.xlane.xlu1 %4050 }
 0x884   : > { %5777 = vrcp.f32 %v4048_v32  ;;  %v5870_v32 = vld [vmem:[%s7078_s27 + $0x8] sm:$0xff] }
 0x885   : > { %5779 = vrcp.f32 %v4051_v50 }
 0x88a   : > { %v5776_v30 = vpop.eup %5775 }
 0x88b   : > { %v9544_v56 = vmul.f32 %v5776_v30, %v9402_v23 }
 0x88d   : > { %v4123_v22 = vmul.f32 %v5869_v47, %v9544_v56  ;;  %v4331_v52 = vadd.f32 1e-08, %v9544_v56 }
 0x88e   : > { %v5778_v28 = vpop.eup %5777 }
 0x88f   : > { %v5780_v60 = vpop.eup %5779  ;;  %v4139_v18 = vsel %vm534_vm0, %v4123_v22, 0.0  ;;  %v9550_v41 = vmul.f32 %v5778_v28, %v9408_v44 }
 0x890   : > { %4140 = vadd.xlane.f32.xlu1 %v4139_v18  ;;  %v9553_v46 = vmul.f32 %v5780_v60, %v9406_v49 }
 0x891   : > { %v4124_v50 = vmul.f32 %v5870_v32, %v9550_v41 }
 0x892   : > { %v4125_v23 = vmul.f32 %v5871_v24, %v9553_v46  ;;  %v5872_v24 = vld [vmem:[%s7078_s27 + $0x18] sm:$0xff] }
 0x893   : > { %v4142_v30 = vsel %vm534_vm0, %v4124_v50, 0.0 }
 0x894   : > { %4143 = vadd.xlane.f32.xlu0 %v4142_v30  ;;  %v4145_v47 = vsel %vm534_vm0, %v4125_v23, 0.0 }
 0x895   : > { %4146 = vadd.xlane.f32.xlu1 %v4145_v47 }
 0x8b6   : > { %v4054_v22 = vpop.xlane.xlu0 %4053 }
 0x8b7   : > { %5781 = vrcp.f32 %v4054_v22  ;;  %v5873_v22 = vld [vmem:[%s7078_s27 + $0x20] sm:$0xff] }
 0x8ba   : > { %v4057_v44 = vpop.xlane.xlu1 %4056 }
 0x8bb   : > { %5783 = vrcp.f32 %v4057_v44 }
 0x8be   : > { %v4060_v49 = vpop.xlane.xlu0 %4059 }
 0x8bf   : > { %5785 = vrcp.f32 %v4060_v49 }
 0x8c1   : > { %v5782_v28 = vpop.eup %5781 }
 0x8c2   : > { %v4063_v60 = vpop.xlane.xlu1 %4062  ;;  %v9562_v18 = vmul.f32 %v5782_v28, %v9418_v4 }
 0x8c3   : > { %5787 = vrcp.f32 %v4063_v60 }
 0x8c4   : > { %v4126_v32 = vmul.f32 %v5872_v24, %v9562_v18 }
 0x8c5   : > { %v5784_v50 = vpop.eup %5783 }
 0x8c6   : > { %v4066_v23 = vpop.xlane.xlu0 %4065  ;;  %v4148_v30 = vsel %vm534_vm0, %v4126_v32, 0.0  ;;  %v9568_v47 = vmul.f32 %v5784_v50, %v9423_v21  ;;  %v5874_v32 = vld [vmem:[%s7078_s27 + $0x28] sm:$0xff] }
 0x8c7   : > { %5789 = vrcp.f32 %v4066_v23  ;;  %4149 = vadd.xlane.f32.xlu0 %v4148_v30 }
 0x8c8   : > { %v4127_v44 = vmul.f32 %v5873_v22, %v9568_v47 }
 0x8c9   : > { %v5786_v49 = vpop.eup %5785 }
 0x8ca   : > { %v4072_v4 = vpop.xlane.xlu0 %4071  ;;  %v4151_v28 = vsel %vm534_vm0, %v4127_v44, 0.0  ;;  %v9574_v60 = vmul.f32 %v5786_v49, %v9429_v37  ;;  %v5875_v44 = vld [vmem:[%s7078_s27 + $0x30] sm:$0xff] }
 0x8cb   : > { %5791 = vrcp.f32 %v4072_v4  ;;  %v4069_v24 = vpop.xlane.xlu1 %4068  ;;  %4152 = vadd.xlane.f32.xlu1 %v4151_v28 }
 0x8cc   : > { %5793 = vrcp.f32 %v4069_v24  ;;  %v4128_v21 = vmul.f32 %v5874_v32, %v9574_v60  ;;  %v5876_v32 = vld [vmem:[%s7078_s27 + $0x38] sm:$0xff] }
 0x8cd   : > { %v5788_v50 = vpop.eup %5787 }
 0x8ce   : > { %v4154_v23 = vsel %vm534_vm0, %v4128_v21, 0.0  ;;  %v9580_v30 = vmul.f32 %v5788_v50, %v9434_v3 }
 0x8cf   : > { %v4075_v22 = vpop.xlane.xlu1 %4074  ;;  %4155 = vadd.xlane.f32.xlu0 %v4154_v23 }
 0x8d0   : > { %5795 = vrcp.f32 %v4075_v22  ;;  %v4129_v37 = vmul.f32 %v5875_v44, %v9580_v30 }
 0x8d1   : > { %v5790_v49 = vpop.eup %5789 }
 0x8d2   : > { %v4078_v4 = vpop.xlane.xlu0 %4077  ;;  %v4157_v28 = vsel %vm534_vm0, %v4129_v37, 0.0  ;;  %v9586_v24 = vmul.f32 %v5790_v49, %v9439_v13  ;;  %v5877_v13 = vld [vmem:[%s7078_s27 + $0x48] sm:$0xff] }
 0x8d3   : > { %5797 = vrcp.f32 %v4078_v4  ;;  %4158 = vadd.xlane.f32.xlu1 %v4157_v28  ;;  %v5878_v4 = vld [vmem:[%s7078_s27 + $0x40] sm:$0xff] }
 0x8d4   : > { %v4130_v3 = vmul.f32 %v5876_v32, %v9586_v24 }
 0x8d5   : > { %v5792_v21 = vpop.eup %5791 }
 0x8d6   : > { %v5794_v50 = vpop.eup %5793  ;;  %v4081_v23 = vpop.xlane.xlu1 %4080  ;;  %v4160_v22 = vsel %vm534_vm0, %v4130_v3, 0.0  ;;  %v9592_v44 = vmul.f32 %v5792_v21, %v9445_v36 }
 0x8d7   : > { %5799 = vrcp.f32 %v4081_v23  ;;  %4161 = vadd.xlane.f32.xlu0 %v4160_v22  ;;  %v9595_v37 = vmul.f32 %v5794_v50, %v9448_v20  ;;  %v5879_v50 = vld [vmem:[%s7078_s27 + $0x50] sm:$0xff] }
 0x8d8   : > { %v4132_v49 = vmul.f32 %v5877_v13, %v9592_v44 }
 0x8d9   : > { %v4131_v28 = vmul.f32 %v5878_v4, %v9595_v37 }
 0x8da   : > { %v5796_v32 = vpop.eup %5795  ;;  %v4084_v40 = vpop.xlane.xlu0 %4083  ;;  %v4166_v29 = vsel %vm534_vm0, %v4132_v49, 0.0 }
 0x8db   : > { %5801 = vrcp.f32 %v4084_v40  ;;  %v4087_v36 = vpop.xlane.xlu1 %4086  ;;  %4167 = vadd.xlane.f32.xlu0 %v4166_v29  ;;  %v4163_v3 = vsel %vm534_vm0, %v4131_v28, 0.0  ;;  %v9604_v20 = vmul.f32 %v5796_v32, %v9457_v35  ;;  %v5880_v29 = vld [vmem:[%s7078_s27 + $0x58] sm:$0xff]  ;;  %v5881_v32 = vld [vmem:[%s7078_s27 + $0x60] sm:$0xff] }
 0x8dc   : > { %5803 = vrcp.f32 %v4087_v36  ;;  %4164 = vadd.xlane.f32.xlu1 %v4163_v3 }
 0x8dd   : > { %v5798_v21 = vpop.eup %5797  ;;  %v4133_v23 = vmul.f32 %v5879_v50, %v9604_v20 }
 0x8de   : > { %v4090_v22 = vpop.xlane.xlu0 %4089  ;;  %v9609_v13 = vmul.f32 %v5798_v21, %v9465_v62 }
 0x8df   : > { %5805 = vrcp.f32 %v4090_v22  ;;  %v4169_v40 = vsel %vm534_vm0, %v4133_v23, 0.0  ;;  %v5882_v22 = vld [vmem:[%s7078_s27 + $0x68] sm:$0xff] }
 0x8e0   : > { %4170 = vadd.xlane.f32.xlu1 %v4169_v40  ;;  %v4134_v35 = vmul.f32 %v5880_v29, %v9609_v13  ;;  %v5883_v29 = vld [vmem:[%s7078_s27 + $0x70] sm:$0xff]  ;;  %5807 = vlog2.f32 %v4331_v52 }
 0x8e1   : > { %v5800_v49 = vpop.eup %5799 }
 0x8e2   : > { %v4172_v4 = vsel %vm534_vm0, %v4134_v35, 0.0  ;;  %v9616_v28 = vmul.f32 %v5800_v49, %v9473_v6 }
 0x8e3   : > { %4173 = vadd.xlane.f32.xlu0 %v4172_v4 }
 0x8e4   : > { %v4135_v62 = vmul.f32 %v5881_v32, %v9616_v28  ;;  %v5884_v32 = vld [vmem:[%s7078_s27 + $0x78] sm:$0xff] }
 0x8e5   : > { %v5802_v36 = vpop.eup %5801 }
 0x8e6   : > { %v5804_v3 = vpop.eup %5803  ;;  %v4175_v21 = vsel %vm534_vm0, %v4135_v62, 0.0  ;;  %v9622_v50 = vmul.f32 %v5802_v36, %v9481_v14  ;;  %v4187_v36 = vmul.f32 %v9021_v54, %v9021_v54  ;;  %v4191_v54 = vmul.f32 %v9097_v27, %v9097_v27 }
 0x8e7   : > { %4176 = vadd.xlane.f32.xlu1 %v4175_v21  ;;  %v9625_v23 = vmul.f32 %v5804_v3, %v9484_v58  ;;  %v4189_v3 = vmul.f32 %v9033_v57, %v9033_v57  ;;  %v4190_v21 = vmul.f32 %v9089_v42, %v9089_v42  ;;  %v4194_v57 = vmul.f32 %v9126_v7, %v9126_v7 }
 0x8e8   : > { %v4136_v6 = vmul.f32 %v5882_v22, %v9622_v50  ;;  %v4192_v22 = vmul.f32 %v9108_v25, %v9108_v25  ;;  %v4195_v42 = vmul.f32 %v9135_v61, %v9135_v61  ;;  %v4196_v27 = vmul.f32 %v8998_v2, %v8998_v2  ;;  %v10905_v25 = vld [vmem:[#allocation101_spill] sm:$0xff] }
 0x8e9   : > { %v5806_v40 = vpop.eup %5805  ;;  %v4137_v35 = vmul.f32 %v5883_v29, %v9625_v23  ;;  %v10908_v29 = vld [vmem:[#allocation28_spill] sm:$0xff] }
 0x8ea   : > { %v4178_v49 = vsel %vm534_vm0, %v4136_v6, 0.0  ;;  %v9633_v4 = vmul.f32 %v5806_v40, %v9495_v11  ;;  %v4188_v11 = vmul.f32 %v9026_v1, %v9026_v1  ;;  %v4193_v1 = vmul.f32 %v9115_v33, %v9115_v33  ;;  %v10906_v6 = vld [vmem:[#allocation95_spill] sm:$0xff]  ;;  %v10907_v40 = vld [vmem:[#allocation105_spill] sm:$0xff]  ;;  %v5808_v52 = vpop.eup %5807 }
 0x8eb   : > { %4179 = vadd.xlane.f32.xlu0 %v4178_v49  ;;  %v4181_v14 = vsel %vm534_vm0, %v4137_v35, 0.0  ;;  %v4197_v33 = vmul.f32 %v10905_v25, %v10905_v25  ;;  %v4198_v7 = vmul.f32 %v10906_v6, %v10906_v6  ;;  %v4199_v61 = vmul.f32 %v10907_v40, %v10907_v40  ;;  %v10909_v35 = vld [vmem:[#allocation19_spill] sm:$0xff] }
 0x8ec   : > { %4182 = vadd.xlane.f32.xlu1 %v4181_v14  ;;  %v4138_v58 = vmul.f32 %v5884_v32, %v9633_v4  ;;  %v4200_v2 = vmul.f32 %v10908_v29, %v10908_v29  ;;  %v4202_v49 = vmul.f32 %v10909_v35, %v10909_v35  ;;  %v10910_v14 = vld [vmem:[#allocation67_spill] sm:$0xff]  ;;  %v4348_v43 = vmul.f32 0.6931472, %v5808_v52 }
 0x8ed   : > { %v4201_v32 = vmul.f32 %v10910_v14, %v10910_v14 }
 0x8ee   : > { %v4184_v62 = vsel %vm534_vm0, %v4138_v58, 0.0  ;;  %v9687_v58 = vpop.xlane.xlu1 %3680 }
 0x8ef   : > { %4185 = vadd.xlane.f32.xlu0 %v4184_v62  ;;  %10911 = vst [vmem:[#allocation65_spill] sm:$0xff] %v9687_v58  ;;  %v9689_v62 = vpop.xlane.xlu0 %3683 }
 0x8f0   : > { %10912 = vst [vmem:[#allocation66_spill] sm:$0xff] %v9689_v62 }
 0x8fd   : > { %4219 = vrot.lane.b32.xlu1 %v4187_v36, %s5904_s14  ;;  %v9691_v36 = vpop.xlane.xlu1 %3686 }
 0x8fe   : > { %10913 = vst [vmem:[#allocation96_spill] sm:$0xff] %v9691_v36 }
 0x901   : > { %4223 = vrot.lane.b32.xlu1 %v4189_v3, %s5904_s14 }
 0x905   : > { %4225 = vrot.lane.b32.xlu1 %v4190_v21, %s5904_s14  ;;  %4221 = vrot.lane.b32.xlu0 %v4188_v11, %s5904_s14  ;;  %v9695_v11 = vpop.xlane.xlu0 %3689 }
 0x906   : > { %10914 = vst [vmem:[#allocation104_spill] sm:$0xff] %v9695_v11 }
 0x909   : > { %4229 = vrot.lane.b32.xlu1 %v4192_v22, %s5904_s14  ;;  %4227 = vrot.lane.b32.xlu0 %v4191_v54, %s5904_s14 }
 0x90d   : > { %4233 = vrot.lane.b32.xlu1 %v4194_v57, %s5904_s14  ;;  %4231 = vrot.lane.b32.xlu0 %v4193_v1, %s5904_s14 }
 0x911   : > { %4237 = vrot.lane.b32.xlu1 %v4196_v27, %s5904_s14  ;;  %4235 = vrot.lane.b32.xlu0 %v4195_v42, %s5904_s14 }
 0x915   : > { %4241 = vrot.lane.b32.xlu1 %v4198_v7, %s5904_s14  ;;  %4239 = vrot.lane.b32.xlu0 %v4197_v33, %s5904_s14 }
 0x919   : > { %4245 = vrot.lane.b32.xlu1 %v4200_v2, %s5904_s14  ;;  %4243 = vrot.lane.b32.xlu0 %v4199_v61, %s5904_s14 }
 0x91d   : > { %4249 = vrot.lane.b32.xlu1 %v4202_v49, %s5904_s14  ;;  %4247 = vrot.lane.b32.xlu0 %v4201_v32, %s5904_s14  ;;  %v9693_v3 = vpop.xlane.xlu1 %4140 }
 0x921   : > { %v9697_v21 = vpop.xlane.xlu0 %4143 }
 0x922   : > { %v9699_v54 = vpop.xlane.xlu1 %4146 }
 0x954   : > { %v9701_v22 = vpop.xlane.xlu0 %4149 }
 0x958   : > { %v9703_v1 = vpop.xlane.xlu1 %4152 }
 0x95c   : > { %v9705_v57 = vpop.xlane.xlu0 %4155 }
 0x960   : > { %v9707_v42 = vpop.xlane.xlu1 %4158 }
 0x964   : > { %v9709_v27 = vpop.xlane.xlu0 %4161 }
 0x968   : > { %v9713_v33 = vpop.xlane.xlu0 %4167 }
 0x969   : > { %v9711_v25 = vpop.xlane.xlu1 %4164 }
 0x96d   : > { %v9715_v6 = vpop.xlane.xlu1 %4170 }
 0x970   : > { %v9717_v7 = vpop.xlane.xlu0 %4173 }
 0x974   : > { %v9719_v40 = vpop.xlane.xlu1 %4176 }
 0x978   : > { %v9721_v61 = vpop.xlane.xlu0 %4179 }
 0x979   : > { %v9723_v29 = vpop.xlane.xlu1 %4182 }
 0x97c   : > { %v9725_v2 = vpop.xlane.xlu0 %4185 }
 0x97d   : > { %v4220_v35 = vpop.permute.xlu1 %4219 }
 0x97e   : > { %v4267_v49 = vsel %vm534_vm0, %v4220_v35, 0.0 }
 0x97f   : > { %4268 = vadd.xlane.f32.xlu0 %v4267_v49 }
 0x980   : > { %v4222_v14 = vpop.permute.xlu0 %4221 }
 0x981   : > { %v4224_v32 = vpop.permute.xlu1 %4223  ;;  %v4270_v11 = vsel %vm534_vm0, %v4222_v14, 0.0 }
 0x982   : > { %4271 = vadd.xlane.f32.xlu1 %v4270_v11  ;;  %v4273_v62 = vsel %vm534_vm0, %v4224_v32, 0.0 }
 0x983   : > { %4274 = vadd.xlane.f32.xlu0 %v4273_v62 }
 0x984   : > { %v4228_v36 = vpop.permute.xlu0 %4227 }
 0x985   : > { %v4226_v58 = vpop.permute.xlu1 %4225  ;;  %v4279_v10 = vsel %vm534_vm0, %v4228_v36, 0.0 }
 0x986   : > { %4280 = vadd.xlane.f32.xlu1 %v4279_v10  ;;  %v4276_v26 = vsel %vm534_vm0, %v4226_v58, 0.0 }
 0x987   : > { %4277 = vadd.xlane.f32.xlu0 %v4276_v26 }
 0x988   : > { %v4232_v35 = vpop.permute.xlu0 %4231 }
 0x989   : > { %v4230_v49 = vpop.permute.xlu1 %4229  ;;  %v4285_v38 = vsel %vm534_vm0, %v4232_v35, 0.0 }
 0x98a   : > { %4286 = vadd.xlane.f32.xlu1 %v4285_v38  ;;  %v4282_v11 = vsel %vm534_vm0, %v4230_v49, 0.0 }
 0x98b   : > { %4283 = vadd.xlane.f32.xlu0 %v4282_v11 }
 0x98c   : > { %v4236_v62 = vpop.permute.xlu0 %4235 }
 0x98d   : > { %v4234_v14 = vpop.permute.xlu1 %4233  ;;  %v4291_v32 = vsel %vm534_vm0, %v4236_v62, 0.0 }
 0x98e   : > { %4292 = vadd.xlane.f32.xlu1 %v4291_v32  ;;  %v4288_v36 = vsel %vm534_vm0, %v4234_v14, 0.0  ;;  %v4315_v14 = vsub.f32 0.0, %v9544_v56  ;;  %v10916_v56 = vld [vmem:[#allocation111_spill] sm:$0xff] }
 0x98f   : > { %4289 = vadd.xlane.f32.xlu0 %v4288_v36 }
 0x990   : > { %v4240_v10 = vpop.permute.xlu0 %4239  ;;  %v4379_v16 = vmul.f32 %v4348_v43, %v4315_v14  ;;  %v10919_v14 = vld [vmem:[#allocation112_spill] sm:$0xff] }
 0x991   : > { %v4238_v58 = vpop.permute.xlu1 %4237  ;;  %v4297_v26 = vsel %vm534_vm0, %v4240_v10, 0.0 }
 0x992   : > { %4298 = vadd.xlane.f32.xlu1 %v4297_v26  ;;  %v4294_v35 = vsel %vm534_vm0, %v4238_v58, 0.0 }
 0x993   : > { %4295 = vadd.xlane.f32.xlu0 %v4294_v35  ;;  %v4395_v35 = vsel %vm534_vm0, %v4379_v16, 0.0  ;;  %v10918_v16 = vld [vmem:[#allocation102_spill] sm:$0xff] }
 0x994   : > { %v4244_v38 = vpop.permute.xlu0 %4243 }
 0x995   : > { %v4242_v49 = vpop.permute.xlu1 %4241  ;;  %v4303_v11 = vsel %vm534_vm0, %v4244_v38, 0.0  ;;  %v10915_v38 = vld [vmem:[#allocation68_spill] sm:$0xff] }
 0x996   : > { %4304 = vadd.xlane.f32.xlu1 %v4303_v11  ;;  %v4300_v62 = vsel %vm534_vm0, %v4242_v49, 0.0  ;;  %v4445_v49 = vsel %vm4443_vm4, %v10916_v56, %v10915_v38  ;;  %v10917_v11 = vld [vmem:[#allocation75_spill] sm:$0xff]  ;;  %v10923_v38 = vld [vmem:[#allocation110_spill] sm:$0xff]  ;;  %v10924_v56 = vld [vmem:[#allocation25_spill] sm:$0xff] }
 0x997   : > { %4301 = vadd.xlane.f32.xlu0 %v4300_v62  ;;  %v4462_v43 = vsel %vm4460_vm5, %v4445_v49, %v10917_v11  ;;  %v10925_v49 = vld [vmem:[#allocation134_spill] sm:$0xff] }
 0x998   : > { %v4248_v32 = vpop.permute.xlu0 %4247  ;;  %v4479_v62 = vsel %vm4477_vm6, %v4462_v43, %v9697_v21  ;;  %v4448_v11 = vsel %vm4443_vm4, %v10925_v49, %v10924_v56  ;;  %v10933_v56 = vld [vmem:[#allocation99_spill] sm:$0xff]  ;;  %v10934_v49 = vld [vmem:[#allocation136_spill] sm:$0xff] }
 0x999   : > { %v4309_v36 = vsel %vm534_vm0, %v4248_v32, 0.0  ;;  %v4246_v10 = vpop.permute.xlu1 %4245  ;;  %v4446_v32 = vsel %vm4443_vm4, %v10919_v14, %v10918_v16  ;;  %v10927_v14 = vld [vmem:[#allocation86_spill] sm:$0xff] }
 0x99a   : > { %4310 = vadd.xlane.f32.xlu1 %v4309_v36  ;;  %v4306_v58 = vsel %vm534_vm0, %v4246_v10, 0.0  ;;  %v10920_v36 = vld [vmem:[#allocation103_spill] sm:$0xff] }
 0x99b   : > { %4307 = vadd.xlane.f32.xlu0 %v4306_v58  ;;  %v4463_v10 = vsel %vm4460_vm5, %v4446_v32, %v10920_v36  ;;  %v10921_v58 = vld [vmem:[#allocation69_spill] sm:$0xff] }
 0x99c   : > { %v10928_v32 = vld [vmem:[#allocation133_spill] sm:$0xff] }
 0x99d   : > { %v4250_v26 = vpop.permute.xlu1 %4249 }
 0x99e   : > { %v4312_v52 = vsel %vm534_vm0, %v4250_v26, 0.0  ;;  %4396 = vadd.xlane.f32.xlu1 %v4395_v35  ;;  %v10922_v26 = vld [vmem:[#allocation109_spill] sm:$0xff] }
 0x99f   : > { %4313 = vadd.xlane.f32.xlu0 %v4312_v52  ;;  %v4444_v35 = vsel %vm4443_vm4, %v10922_v26, %v10921_v58  ;;  %v4480_v52 = vsel %vm4477_vm6, %v4463_v10, %v9699_v54  ;;  %v4447_v54 = vsel %vm4443_vm4, %v10928_v32, %v10927_v14  ;;  %v10929_v10 = vld [vmem:[#allocation79_spill] sm:$0xff]  ;;  %v10930_v26 = vld [vmem:[#allocation48_spill] sm:$0xff] }
 0x9a0   : > { %v4461_v21 = vsel %vm4460_vm5, %v4444_v35, %v10923_v38  ;;  %v4464_v58 = vsel %vm4460_vm5, %v4447_v54, %v10929_v10  ;;  %v10931_v35 = vld [vmem:[#allocation119_spill] sm:$0xff]  ;;  %v10938_v54 = vld [vmem:[#allocation100_spill] sm:$0xff] }
 0x9a1   : > { %v4478_v43 = vsel %vm4477_vm6, %v4461_v21, %v9693_v3  ;;  %v4450_v3 = vsel %vm4443_vm4, %v10931_v35, %v10930_v26  ;;  %v10932_v38 = vld [vmem:[#allocation47_spill] sm:$0xff]  ;;  %v10939_v10 = vld [vmem:[#allocation20_spill] sm:$0xff]  ;;  %v10941_v35 = vld [vmem:[#allocation22_spill] sm:$0xff] }
 0x9a2   : > { %v4467_v21 = vsel %vm4460_vm5, %v4450_v3, %v10932_v38  ;;  %v10937_v14 = vld [vmem:[#allocation139_spill] sm:$0xff] }
 0x9a3   : > { %v10943_v38 = vld [vmem:[#allocation143_spill] sm:$0xff] }
 0x9af   : > { %4512 = vrot.lane.b32.xlu1 %v4479_v62, %s5905_s15  ;;  %v10926_v62 = vld [vmem:[#allocation30_spill] sm:$0xff] }
 0x9b0   : > { %v4465_v16 = vsel %vm4460_vm5, %v4448_v11, %v10926_v62  ;;  %v4484_v11 = vsel %vm4477_vm6, %v4467_v21, %v9707_v42 }
 0x9b1   : > { %v4482_v36 = vsel %vm4477_vm6, %v4465_v16, %v9703_v1  ;;  %v4449_v1 = vsel %vm4443_vm4, %v10934_v49, %v10933_v56  ;;  %v10936_v16 = vld [vmem:[#allocation87_spill] sm:$0xff]  ;;  %v10944_v56 = vld [vmem:[#allocation33_spill] sm:$0xff] }
 0x9b3   : > { %4514 = vrot.lane.b32.xlu1 %v4480_v52, %s5905_s15  ;;  %v4481_v52 = vsel %vm4477_vm6, %v4464_v58, %v9701_v22  ;;  %v4452_v22 = vsel %vm4443_vm4, %v10937_v14, %v10936_v16  ;;  %v10940_v58 = vld [vmem:[#allocation138_spill] sm:$0xff]  ;;  %v10948_v14 = vld [vmem:[#allocation29_spill] sm:$0xff] }
 0x9b4   : > { %v4451_v42 = vsel %vm4443_vm4, %v10940_v58, %v10939_v10  ;;  %v10951_v10 = vld [vmem:[#allocation72_spill] sm:$0xff]  ;;  %v10952_v58 = vld [vmem:[#allocation146_spill] sm:$0xff] }
 0x9b5   : > { %4510 = vrot.lane.b32.xlu0 %v4478_v43, %s5905_s15  ;;  %v10935_v43 = vld [vmem:[#allocation158_spill] sm:$0xff]  ;;  %v4468_v3 = vsel %vm4460_vm5, %v4451_v42, %v10941_v35 }
 0x9b6   : > { %v4466_v62 = vsel %vm4460_vm5, %v4449_v1, %v10935_v43  ;;  %v4485_v21 = vsel %vm4477_vm6, %v4468_v3, %v9709_v27  ;;  %v10945_v1 = vld [vmem:[#allocation71_spill] sm:$0xff]  ;;  %v10954_v3 = vld [vmem:[#allocation49_spill] sm:$0xff] }
 0x9b7   : > { %4518 = vrot.lane.b32.xlu1 %v4482_v36, %s5905_s15  ;;  %v4483_v32 = vsel %vm4477_vm6, %v4466_v62, %v9705_v57  ;;  %v4469_v36 = vsel %vm4460_vm5, %v4452_v22, %v10938_v54  ;;  %v10947_v62 = vld [vmem:[#allocation77_spill] sm:$0xff]  ;;  %v10949_v22 = vld [vmem:[#allocation147_spill] sm:$0xff] }
 0x9b8   : > { %v4486_v26 = vsel %vm4477_vm6, %v4469_v36, %v9711_v25  ;;  %v4456_v27 = vsel %vm4443_vm4, %v10949_v22, %v10948_v14  ;;  %v10950_v54 = vld [vmem:[#allocation31_spill] sm:$0xff]  ;;  %v10962_v14 = vld [vmem:[#allocation24_spill] sm:$0xff] }
 0x9b9   : > { %4516 = vrot.lane.b32.xlu0 %v4481_v52, %s5905_s15  ;;  %v10942_v52 = vld [vmem:[#allocation159_spill] sm:$0xff]  ;;  %v4473_v36 = vsel %vm4460_vm5, %v4456_v27, %v10950_v54  ;;  %v4332_v27 = vadd.f32 1e-08, %v9550_v41 }
 0x9ba   : > { %v4454_v57 = vsel %vm4443_vm4, %v10943_v38, %v10942_v52  ;;  %v4490_v42 = vsel %vm4477_vm6, %v4473_v36, %v9719_v40  ;;  %v10955_v52 = vld [vmem:[#allocation148_spill] sm:$0xff] }
 0x9bb   : > { %4522 = vrot.lane.b32.xlu1 %v4484_v11, %s5905_s15  ;;  %v4471_v49 = vsel %vm4460_vm5, %v4454_v57, %v10944_v56  ;;  %v10946_v11 = vld [vmem:[#allocation142_spill] sm:$0xff]  ;;  %v10956_v57 = vld [vmem:[#allocation161_spill] sm:$0xff]  ;;  %5809 = vlog2.f32 %v4332_v27 }
 0x9bc   : > { %v4453_v25 = vsel %vm4443_vm4, %v10946_v11, %v10945_v1  ;;  %v4488_v43 = vsel %vm4477_vm6, %v4471_v49, %v9715_v6  ;;  %v4455_v6 = vsel %vm4443_vm4, %v10952_v58, %v10951_v10  ;;  %v10957_v56 = vld [vmem:[#allocation157_spill] sm:$0xff]  ;;  %v10958_v49 = vld [vmem:[#allocation123_spill] sm:$0xff]  ;;  %v10959_v11 = vld [vmem:[#allocation160_spill] sm:$0xff]  ;;  %v4316_v58 = vsub.f32 0.0, %v9550_v41 }
 0x9bd   : > { %4520 = vrot.lane.b32.xlu0 %v4483_v32, %s5905_s15  ;;  %v4470_v16 = vsel %vm4460_vm5, %v4453_v25, %v10947_v62  ;;  %v4457_v40 = vsel %vm4443_vm4, %v10958_v49, %v10957_v56  ;;  %v10961_v62 = vld [vmem:[#allocation151_spill] sm:$0xff] }
 0x9be   : > { %v4487_v32 = vsel %vm4477_vm6, %v4470_v16, %v9713_v33  ;;  %v4458_v33 = vsel %vm4443_vm4, %v10955_v52, %v10954_v3  ;;  %v4474_v25 = vsel %vm4460_vm5, %v4457_v40, %v10959_v11 }
 0x9bf   : > { %4526 = vrot.lane.b32.xlu1 %v4486_v26, %s5905_s15  ;;  %v10953_v26 = vld [vmem:[#allocation152_spill] sm:$0xff] }
 0x9c0   : > { %v4472_v35 = vsel %vm4460_vm5, %v4455_v6, %v10953_v26  ;;  %v4317_v6 = vsub.f32 0.0, %v9553_v46 }
 0x9c1   : > { %4524 = vrot.lane.b32.xlu0 %v4485_v21, %s5905_s15  ;;  %v4489_v38 = vsel %vm4477_vm6, %v4472_v35, %v9717_v7  ;;  %v4475_v21 = vsel %vm4460_vm5, %v4458_v33, %v10956_v57  ;;  %v4491_v7 = vsel %vm4477_vm6, %v4474_v25, %v9721_v61 }
 0x9c2   : > { %v4492_v1 = vsel %vm4477_vm6, %v4475_v21, %v9723_v29 }
 0x9c3   : > { %4530 = vrot.lane.b32.xlu1 %v4488_v43, %s5905_s15  ;;  %v10960_v43 = vld [vmem:[#allocation106_spill] sm:$0xff] }
 0x9c4   : > { %v4459_v16 = vsel %vm4443_vm4, %v10961_v62, %v10960_v43 }
 0x9c5   : > { %4528 = vrot.lane.b32.xlu0 %v4487_v32, %s5905_s15  ;;  %v4476_v22 = vsel %vm4460_vm5, %v4459_v16, %v10962_v14  ;;  %v4333_v32 = vadd.f32 1e-08, %v9553_v46  ;;  %v5810_v61 = vpop.eup %5809  ;;  %v10968_v16 = vld [vmem:[#allocation5_spill] sm:$0xff] }
 0x9c6   : > { %v4493_v29 = vsel %vm4477_vm6, %v4476_v22, %v9725_v2  ;;  %v4350_v36 = vmul.f32 0.6931472, %v5810_v61  ;;  %v1469_v14 = vand.u32 2147483647, %v10968_v16  ;;  %v10969_v22 = vld [vmem:[#allocation3_spill] sm:$0xff] }
 0x9c7   : > { %4534 = vrot.lane.b32.xlu1 %v4490_v42, %s5905_s15  ;;  %5811 = vlog2.f32 %v4333_v32  ;;  %v10972_v16 = vld [vmem:[#allocation11_spill] sm:$0xff] }
 0x9c8   : > { %v4380_v42 = vmul.f32 %v4350_v36, %v4316_v58  ;;  %v10970_v36 = vld [vmem:[#allocation7_spill] sm:$0xff]  ;;  %v10971_v58 = vld [vmem:[#allocation9_spill] sm:$0xff] }
 0x9c9   : > { %4532 = vrot.lane.b32.xlu0 %v4489_v38, %s5905_s15 }
 0x9ca   : > { %v4398_v2 = vsel %vm534_vm0, %v4380_v42, 0.0 }
 0x9cb   : > { %4538 = vrot.lane.b32.xlu1 %v4492_v1, %s5905_s15 }
 0x9cd   : > { %4536 = vrot.lane.b32.xlu0 %v4491_v7, %s5905_s15 }
 0x9d1   : > { %4540 = vrot.lane.b32.xlu0 %v4493_v29, %s5905_s15  ;;  %v5812_v54 = vpop.eup %5811  ;;  %v1468_v29 = vand.u32 2147483647, %v10969_v22  ;;  %v1472_v22 = vand.u32 2147483647, %v10972_v16 }
 0x9d2   : > { %v4352_v10 = vmul.f32 0.6931472, %v5812_v54 }
 0x9d4   : > { %v4381_v26 = vmul.f32 %v4352_v10, %v4317_v6  ;;  %v1470_v10 = vand.u32 2147483647, %v10970_v36  ;;  %v1471_v6 = vand.u32 2147483647, %v10971_v58 }
 0x9d6   : > { %v4401_v35 = vsel %vm534_vm0, %v4381_v26, 0.0 }
 0x9ef   : > { %4399 = vadd.xlane.f32.xlu1 %v4398_v2 }
 0x9f0   : > { %4402 = vadd.xlane.f32.xlu0 %v4401_v35 }
 0xa0c   : > { %v9880_v3 = vpop.xlane.xlu0 %4268 }
 0xa0f   : > { %v9882_v52 = vpop.xlane.xlu1 %4271 }
 0xa10   : > { %v9884_v33 = vpop.xlane.xlu0 %4274 }
 0xa13   : > { %v9886_v38 = vpop.xlane.xlu1 %4280 }
 0xa14   : > { %v9888_v57 = vpop.xlane.xlu0 %4277 }
 0xa17   : > { %v9890_v41 = vpop.xlane.xlu1 %4286 }
 0xa18   : > { %v9892_v46 = vpop.xlane.xlu0 %4283 }
 0xa1b   : > { %v9894_v21 = vpop.xlane.xlu1 %4292 }
 0xa1c   : > { %v9896_v56 = vpop.xlane.xlu0 %4289 }
 0xa1f   : > { %v9898_v49 = vpop.xlane.xlu1 %4298 }
 0xa20   : > { %v9900_v40 = vpop.xlane.xlu0 %4295 }
 0xa23   : > { %v9902_v1 = vpop.xlane.xlu1 %4304 }
 0xa24   : > { %10963 = vst [vmem:[#allocation101_spill] sm:$0xff] %v9902_v1  ;;  %v9904_v11 = vpop.xlane.xlu0 %4301 }
 0xa25   : > { %10964 = vst [vmem:[#allocation95_spill] sm:$0xff] %v9904_v11 }
 0xa27   : > { %v9906_v25 = vpop.xlane.xlu1 %4310 }
 0xa28   : > { %10965 = vst [vmem:[#allocation105_spill] sm:$0xff] %v9906_v25  ;;  %v9908_v7 = vpop.xlane.xlu0 %4307 }
 0xa29   : > { %10966 = vst [vmem:[#allocation28_spill] sm:$0xff] %v9908_v7 }
 0xa2b   : > { %v9910_v43 = vpop.xlane.xlu1 %4396 }
 0xa2c   : > { %v9912_v62 = vpop.xlane.xlu0 %4313 }
 0xa2d   : > { %10967 = vst [vmem:[#allocation19_spill] sm:$0xff] %v9912_v62 }
 0xa2f   : > { %v4513_v27 = vpop.permute.xlu1 %4512 }
 0xa30   : > { %v4511_v32 = vpop.permute.xlu0 %4510  ;;  %v4559_v61 = vmul.f32 %v4513_v27, %v1469_v14  ;;  %v10973_v14 = vld [vmem:[#allocation13_spill] sm:$0xff] }
 0xa31   : > { %v4558_v54 = vmul.f32 %v4511_v32, %v1468_v29  ;;  %v1473_v29 = vand.u32 2147483647, %v10973_v14 }
 0xa32   : > { %4592 = vrot.lane.b32.xlu1 %v4559_v61, %s5906_s16 }
 0xa33   : > { %4590 = vrot.lane.b32.xlu0 %v4558_v54, %s5906_s16  ;;  %v4515_v42 = vpop.permute.xlu1 %4514  ;;  %v10974_v54 = vld [vmem:[#allocation15_spill] sm:$0xff] }
 0xa34   : > { %v4517_v26 = vpop.permute.xlu0 %4516  ;;  %v4560_v2 = vmul.f32 %v4515_v42, %v1470_v10  ;;  %v1474_v58 = vand.u32 2147483647, %v10974_v54  ;;  %v10975_v10 = vld [vmem:[#allocation17_spill] sm:$0xff] }
 0xa35   : > { %v4561_v35 = vmul.f32 %v4517_v26, %v1471_v6  ;;  %v1475_v6 = vand.u32 2147483647, %v10975_v10 }
 0xa36   : > { %4594 = vrot.lane.b32.xlu1 %v4560_v2, %s5906_s16 }
 0xa37   : > { %4596 = vrot.lane.b32.xlu0 %v4561_v35, %s5906_s16  ;;  %v4519_v27 = vpop.permute.xlu1 %4518  ;;  %v10976_v35 = vld [vmem:[#allocation4_spill] sm:$0xff] }
 0xa38   : > { %v4521_v32 = vpop.permute.xlu0 %4520  ;;  %v4562_v61 = vmul.f32 %v4519_v27, %v1472_v22  ;;  %v1476_v14 = vand.u32 2147483647, %v10976_v35  ;;  %v10977_v22 = vld [vmem:[#allocation6_spill] sm:$0xff] }
 0xa39   : > { %v4563_v36 = vmul.f32 %v4521_v32, %v1473_v29  ;;  %v1477_v29 = vand.u32 2147483647, %v10977_v22 }
 0xa3a   : > { %4598 = vrot.lane.b32.xlu1 %v4562_v61, %s5906_s16 }
 0xa3b   : > { %4600 = vrot.lane.b32.xlu0 %v4563_v36, %s5906_s16  ;;  %v4523_v42 = vpop.permute.xlu1 %4522  ;;  %v10978_v36 = vld [vmem:[#allocation8_spill] sm:$0xff] }
 0xa3c   : > { %v4525_v26 = vpop.permute.xlu0 %4524  ;;  %v4564_v2 = vmul.f32 %v4523_v42, %v1474_v58  ;;  %v1478_v10 = vand.u32 2147483647, %v10978_v36  ;;  %v10979_v58 = vld [vmem:[#allocation10_spill] sm:$0xff] }
 0xa3d   : > { %v4565_v16 = vmul.f32 %v4525_v26, %v1475_v6  ;;  %v1479_v6 = vand.u32 2147483647, %v10979_v58 }
 0xa3e   : > { %4602 = vrot.lane.b32.xlu1 %v4564_v2, %s5906_s16 }
 0xa3f   : > { %4604 = vrot.lane.b32.xlu0 %v4565_v16, %s5906_s16  ;;  %v4527_v27 = vpop.permute.xlu1 %4526  ;;  %v10980_v16 = vld [vmem:[#allocation12_spill] sm:$0xff] }
 0xa40   : > { %v4529_v32 = vpop.permute.xlu0 %4528  ;;  %v4566_v61 = vmul.f32 %v4527_v27, %v1476_v14  ;;  %v1480_v22 = vand.u32 2147483647, %v10980_v16  ;;  %v10981_v14 = vld [vmem:[#allocation14_spill] sm:$0xff] }
 0xa41   : > { %v4567_v54 = vmul.f32 %v4529_v32, %v1477_v29  ;;  %v1481_v29 = vand.u32 2147483647, %v10981_v14 }
 0xa42   : > { %4606 = vrot.lane.b32.xlu1 %v4566_v61, %s5906_s16 }
 0xa43   : > { %4608 = vrot.lane.b32.xlu0 %v4567_v54, %s5906_s16  ;;  %v4531_v42 = vpop.permute.xlu1 %4530  ;;  %v10982_v54 = vld [vmem:[#allocation16_spill] sm:$0xff] }
 0xa44   : > { %v4533_v26 = vpop.permute.xlu0 %4532  ;;  %v4568_v2 = vmul.f32 %v4531_v42, %v1478_v10  ;;  %v1482_v58 = vand.u32 2147483647, %v10982_v54  ;;  %v10983_v10 = vld [vmem:[#allocation18_spill] sm:$0xff]  ;;  %v4318_v54 = vsub.f32 0.0, %v9562_v18 }
 0xa45   : > { %v4569_v35 = vmul.f32 %v4533_v26, %v1479_v6  ;;  %v1483_v6 = vand.u32 2147483647, %v10983_v10 }
 0xa46   : > { %4610 = vrot.lane.b32.xlu1 %v4568_v2, %s5906_s16 }
 0xa47   : > { %4612 = vrot.lane.b32.xlu0 %v4569_v35, %s5906_s16  ;;  %v4535_v27 = vpop.permute.xlu1 %4534  ;;  %v4335_v35 = vadd.f32 1e-08, %v9568_v47 }
 0xa48   : > { %v4537_v32 = vpop.permute.xlu0 %4536  ;;  %v4570_v61 = vmul.f32 %v4535_v27, %v1480_v22  ;;  %v4334_v22 = vadd.f32 1e-08, %v9562_v18 }
 0xa49   : > { %v4571_v36 = vmul.f32 %v4537_v32, %v1481_v29  ;;  %5813 = vlog2.f32 %v4335_v35  ;;  %v4319_v32 = vsub.f32 0.0, %v9568_v47 }
 0xa4a   : > { %4614 = vrot.lane.b32.xlu1 %v4570_v61, %s5906_s16  ;;  %5815 = vlog2.f32 %v4334_v22 }
 0xa4b   : > { %4616 = vrot.lane.b32.xlu0 %v4571_v36, %s5906_s16  ;;  %v4539_v42 = vpop.permute.xlu1 %4538 }
 0xa4c   : > { %v4541_v26 = vpop.permute.xlu0 %4540  ;;  %v4572_v2 = vmul.f32 %v4539_v42, %v1482_v58 }
 0xa4d   : > { %v4573_v16 = vmul.f32 %v4541_v26, %v1483_v6 }
 0xa4e   : > { %4618 = vrot.lane.b32.xlu1 %v4572_v2, %s5906_s16 }
 0xa4f   : > { %4620 = vrot.lane.b32.xlu0 %v4573_v16, %s5906_s16 }
 0xa53   : > { %v5814_v14 = vpop.eup %5813 }
 0xa54   : > { %v4356_v29 = vmul.f32 0.6931472, %v5814_v14  ;;  %v5816_v27 = vpop.eup %5815 }
 0xa55   : > { %v4354_v36 = vmul.f32 0.6931472, %v5816_v27 }
 0xa56   : > { %v4383_v61 = vmul.f32 %v4356_v29, %v4319_v32  ;;  %v4336_v32 = vadd.f32 1e-08, %v9574_v60 }
 0xa57   : > { %v4382_v10 = vmul.f32 %v4354_v36, %v4318_v54  ;;  %v4337_v54 = vadd.f32 1e-08, %v9580_v30 }
 0xa58   : > { %v4407_v58 = vsel %vm534_vm0, %v4383_v61, 0.0  ;;  %5817 = vlog2.f32 %v4336_v32 }
 0xa59   : > { %v4404_v6 = vsel %vm534_vm0, %v4382_v10, 0.0  ;;  %5819 = vlog2.f32 %v4337_v54 }
 0xa6e   : > { %4408 = vadd.xlane.f32.xlu0 %v4407_v58 }
 0xa72   : > { %4405 = vadd.xlane.f32.xlu1 %v4404_v6  ;;  %v4338_v6 = vadd.f32 1e-08, %v9586_v24 }
 0xa74   : > { %5821 = vlog2.f32 %v4338_v6  ;;  %v5818_v6 = vpop.eup %5817 }
 0xa7c   : > { %v9952_v42 = vpop.xlane.xlu1 %4399 }
 0xa7d   : > { %v9954_v26 = vpop.xlane.xlu0 %4402 }
 0xaa4   : > { %v4593_v2 = vpop.permute.xlu1 %4592 }
 0xaa5   : > { %v4591_v16 = vpop.permute.xlu0 %4590  ;;  %v4642_v47 = vsel %vm4638_vm7, %v4593_v2, 0.0 }
 0xaa6   : > { %v4639_v35 = vsel %vm4638_vm7, %v4591_v16, 0.0  ;;  %4643 = vadd.xlane.f32.xlu1 %v4642_v47  ;;  %v4339_v47 = vadd.f32 1e-08, %v9595_v37 }
 0xaa7   : > { %4640 = vadd.xlane.f32.xlu0 %v4639_v35 }
 0xaa8   : > { %v4595_v18 = vpop.permute.xlu1 %4594  ;;  %5823 = vlog2.f32 %v4339_v47 }
 0xaa9   : > { %v4597_v22 = vpop.permute.xlu0 %4596  ;;  %v4645_v14 = vsel %vm4638_vm7, %v4595_v18, 0.0 }
 0xaaa   : > { %v4648_v29 = vsel %vm4638_vm7, %v4597_v22, 0.0  ;;  %v4340_v22 = vadd.f32 1e-08, %v9592_v44 }
 0xaab   : > { %4649 = vadd.xlane.f32.xlu1 %v4648_v29  ;;  %4646 = vadd.xlane.f32.xlu0 %v4645_v14 }
 0xaac   : > { %v4599_v27 = vpop.permute.xlu1 %4598  ;;  %5825 = vlog2.f32 %v4340_v22 }
 0xaad   : > { %v4601_v61 = vpop.permute.xlu0 %4600  ;;  %v4651_v36 = vsel %vm4638_vm7, %v4599_v27, 0.0  ;;  %v4341_v27 = vadd.f32 1e-08, %v9604_v20 }
 0xaae   : > { %v4654_v58 = vsel %vm4638_vm7, %v4601_v61, 0.0 }
 0xaaf   : > { %4655 = vadd.xlane.f32.xlu1 %v4654_v58  ;;  %4652 = vadd.xlane.f32.xlu0 %v4651_v36  ;;  %v4342_v36 = vadd.f32 1e-08, %v9609_v13  ;;  %5827 = vlog2.f32 %v4341_v27 }
 0xab0   : > { %v4603_v10 = vpop.permute.xlu1 %4602 }
 0xab1   : > { %v4605_v2 = vpop.permute.xlu0 %4604  ;;  %v4657_v16 = vsel %vm4638_vm7, %v4603_v10, 0.0  ;;  %v4343_v10 = vadd.f32 1e-08, %v9616_v28  ;;  %5829 = vlog2.f32 %v4342_v36  ;;  %v4321_v36 = vsub.f32 0.0, %v9580_v30 }
 0xab2   : > { %v4660_v35 = vsel %vm4638_vm7, %v4605_v2, 0.0  ;;  %v4322_v30 = vsub.f32 0.0, %v9586_v24 }
 0xab3   : > { %4661 = vadd.xlane.f32.xlu1 %v4660_v35  ;;  %4658 = vadd.xlane.f32.xlu0 %v4657_v16  ;;  %v5820_v16 = vpop.eup %5819  ;;  %v4344_v35 = vadd.f32 1e-08, %v9622_v50  ;;  %5831 = vlog2.f32 %v4343_v10  ;;  %v4346_v10 = vadd.f32 1e-08, %v9633_v4 }
 0xab4   : > { %v4607_v18 = vpop.permute.xlu1 %4606  ;;  %v5822_v27 = vpop.eup %5821 }
 0xab5   : > { %v4609_v14 = vpop.permute.xlu0 %4608  ;;  %v4663_v29 = vsel %vm4638_vm7, %v4607_v18, 0.0  ;;  %v5824_v62 = vpop.eup %5823  ;;  %5833 = vlog2.f32 %v4344_v35 }
 0xab6   : > { %v4666_v32 = vsel %vm4638_vm7, %v4609_v14, 0.0  ;;  %v4358_v14 = vmul.f32 0.6931472, %v5818_v6  ;;  %v5826_v7 = vpop.eup %5825  ;;  %v4364_v25 = vmul.f32 0.6931472, %v5824_v62  ;;  %v4324_v62 = vsub.f32 0.0, %v9592_v44 }
 0xab7   : > { %4667 = vadd.xlane.f32.xlu1 %v4666_v32  ;;  %4664 = vadd.xlane.f32.xlu0 %v4663_v29  ;;  %v4345_v29 = vadd.f32 1e-08, %v9625_v23 }
 0xab8   : > { %v4611_v61 = vpop.permute.xlu1 %4610 }
 0xab9   : > { %v4613_v54 = vpop.permute.xlu0 %4612  ;;  %v4669_v58 = vsel %vm4638_vm7, %v4611_v61, 0.0  ;;  %v4360_v61 = vmul.f32 0.6931472, %v5820_v16  ;;  %5835 = vlog2.f32 %v4345_v29 }
 0xaba   : > { %v4672_v2 = vsel %vm4638_vm7, %v4613_v54, 0.0  ;;  %v4320_v54 = vsub.f32 0.0, %v9574_v60  ;;  %v4323_v60 = vsub.f32 0.0, %v9595_v37  ;;  %5837 = vlog2.f32 %v4346_v10 }
 0xabb   : > { %4673 = vadd.xlane.f32.xlu1 %v4672_v2  ;;  %4670 = vadd.xlane.f32.xlu0 %v4669_v58  ;;  %v4385_v16 = vmul.f32 %v4360_v61, %v4321_v36 }
 0xabc   : > { %v4615_v47 = vpop.permute.xlu1 %4614  ;;  %v4384_v6 = vmul.f32 %v4358_v14, %v4320_v54  ;;  %v4387_v54 = vmul.f32 %v4364_v25, %v4323_v60  ;;  %v4326_v25 = vsub.f32 0.0, %v9609_v13 }
 0xabd   : > { %v4617_v18 = vpop.permute.xlu0 %4616  ;;  %v4675_v22 = vsel %vm4638_vm7, %v4615_v47, 0.0  ;;  %v4413_v29 = vsel %vm534_vm0, %v4385_v16, 0.0  ;;  %v4327_v16 = vsub.f32 0.0, %v9616_v28 }
 0xabe   : > { %v4678_v32 = vsel %vm4638_vm7, %v4617_v18, 0.0  ;;  %v4410_v35 = vsel %vm534_vm0, %v4384_v6, 0.0 }
 0xabf   : > { %4679 = vadd.xlane.f32.xlu1 %v4678_v32  ;;  %4676 = vadd.xlane.f32.xlu0 %v4675_v22  ;;  %v4362_v32 = vmul.f32 0.6931472, %v5822_v27  ;;  %v5828_v22 = vpop.eup %5827  ;;  %v4325_v27 = vsub.f32 0.0, %v9604_v20 }
 0xac0   : > { %v4619_v58 = vpop.permute.xlu1 %4618  ;;  %v5830_v14 = vpop.eup %5829 }
 0xac1   : > { %v4621_v2 = vpop.permute.xlu0 %4620  ;;  %v4681_v47 = vsel %vm4638_vm7, %v4619_v58, 0.0  ;;  %v4366_v58 = vmul.f32 0.6931472, %v5826_v7  ;;  %v4386_v11 = vmul.f32 %v4362_v32, %v4322_v30  ;;  %v5832_v61 = vpop.eup %5831  ;;  %v4370_v36 = vmul.f32 0.6931472, %v5830_v14 }
 0xac2   : > { %v4684_v18 = vsel %vm4638_vm7, %v4621_v2, 0.0  ;;  %v4368_v2 = vmul.f32 0.6931472, %v5828_v22  ;;  %v5834_v24 = vpop.eup %5833  ;;  %v4372_v10 = vmul.f32 0.6931472, %v5832_v61 }
 0xac3   : > { %4685 = vadd.xlane.f32.xlu1 %v4684_v18  ;;  %4682 = vadd.xlane.f32.xlu0 %v4681_v47  ;;  %v4388_v37 = vmul.f32 %v4366_v58, %v4324_v62  ;;  %v4419_v47 = vsel %vm534_vm0, %v4387_v54, 0.0  ;;  %v4416_v7 = vsel %vm534_vm0, %v4386_v11, 0.0  ;;  %v5836_v18 = vpop.eup %5835  ;;  %v4390_v32 = vmul.f32 %v4370_v36, %v4326_v25 }
 0xac4   : > { %v4389_v6 = vmul.f32 %v4368_v2, %v4325_v27  ;;  %v4391_v22 = vmul.f32 %v4372_v10, %v4327_v16  ;;  %v4376_v60 = vmul.f32 0.6931472, %v5836_v18  ;;  %v4374_v30 = vmul.f32 0.6931472, %v5834_v24  ;;  %v10985_v24 = vld [vmem:[#allocation36_spill] sm:$0xff]  ;;  %v10988_v18 = vld [vmem:[#allocation45_spill] sm:$0xff] }
 0xac5   : > { %v4422_v44 = vsel %vm534_vm0, %v4388_v37, 0.0  ;;  %v4329_v11 = vsub.f32 0.0, %v9625_v23  ;;  %v4328_v58 = vsub.f32 0.0, %v9622_v50  ;;  %v4428_v14 = vsel %vm534_vm0, %v4390_v32, 0.0  ;;  %v5059_v23 = vld [vmem:[#allocation2] ss:$0 sm:$0xff] }
 0xac6   : > { %v4425_v20 = vsel %vm534_vm0, %v4389_v6, 0.0  ;;  %v4431_v13 = vsel %vm534_vm0, %v4391_v22, 0.0  ;;  %v4330_v2 = vsub.f32 0.0, %v9633_v4  ;;  %v10984_v37 = vld [vmem:[#allocation37_spill] sm:$0xff]  ;;  %v10987_v6 = vld [vmem:[#allocation39_spill] sm:$0xff]  ;;  %v1584_v25 = vadd.f32 %v5059_v23, %v10988_v18  ;;  %v10991_v22 = vld [vmem:[#allocation58_spill] sm:$0xff] }
 0xac7   : > { %4414 = vadd.xlane.f32.xlu1 %v4413_v29  ;;  %4411 = vadd.xlane.f32.xlu0 %v4410_v35  ;;  %v5838_v35 = vpop.eup %5837  ;;  %v4393_v28 = vmul.f32 %v4376_v60, %v4329_v11  ;;  %v4392_v29 = vmul.f32 %v4374_v30, %v4328_v58  ;;  %v1579_v36 = vadd.f32 %v5059_v23, %v10984_v37  ;;  %v10986_v4 = vld [vmem:[#allocation41_spill] sm:$0xff]  ;;  %v10989_v16 = vld [vmem:[#allocation43_spill] sm:$0xff]  ;;  %v10993_v11 = vld [vmem:[#allocation38_spill] sm:$0xff] }
 0xac8   : > { %v4378_v54 = vmul.f32 0.6931472, %v5838_v35  ;;  %v1580_v10 = vadd.f32 %v5059_v23, %v10987_v6  ;;  %v10990_v32 = vld [vmem:[#allocation61_spill] sm:$0xff]  ;;  %v1585_v60 = vadd.f32 %v5059_v23, %v10991_v22  ;;  %v10992_v30 = vld [vmem:[#allocation35_spill] sm:$0xff]  ;;  %v1587_v58 = vadd.f32 %v5059_v23, %v10993_v11  ;;  %v10999_v37 = vld [vmem:[#allocation62_spill] sm:$0xff] }
 0xac9   : > { %v4437_v61 = vsel %vm534_vm0, %v4393_v28, 0.0  ;;  %v4434_v62 = vsel %vm534_vm0, %v4392_v29, 0.0  ;;  %v1588_v35 = vadd.f32 %v5059_v23, %v10992_v30  ;;  %v10995_v28 = vld [vmem:[#allocation40_spill] sm:$0xff] }
 0xaca   : > { %v4394_v27 = vmul.f32 %v4378_v54, %v4330_v2  ;;  %v1589_v29 = vadd.f32 %v5059_v23, %v10995_v28  ;;  %v10996_v54 = vld [vmem:[#allocation46_spill] sm:$0xff] }
 0xacb   : > { %4420 = vadd.xlane.f32.xlu1 %v4419_v47  ;;  %4417 = vadd.xlane.f32.xlu0 %v4416_v7  ;;  %v1581_v47 = vadd.f32 %v5059_v23, %v10985_v24  ;;  %v1582_v7 = vadd.f32 %v5059_v23, %v10986_v4  ;;  %v1592_v2 = vadd.f32 %v5059_v23, %v10996_v54 }
 0xacc   : > { %v4440_v50 = vsel %vm534_vm0, %v4394_v27, 0.0  ;;  %v10998_v27 = vld [vmem:[#allocation64_spill] sm:$0xff] }
 0xacf   : > { %4426 = vadd.xlane.f32.xlu1 %v4425_v20  ;;  %4423 = vadd.xlane.f32.xlu0 %v4422_v44  ;;  %v1583_v44 = vadd.f32 %v5059_v23, %v10989_v16  ;;  %v1586_v20 = vadd.f32 %v5059_v23, %v10990_v32 }
 0xad3   : > { %4432 = vadd.xlane.f32.xlu1 %v4431_v13  ;;  %4429 = vadd.xlane.f32.xlu0 %v4428_v14  ;;  %v10994_v14 = vld [vmem:[#allocation42_spill] sm:$0xff] }
 0xad4   : > { %v1590_v13 = vadd.f32 %v5059_v23, %v10994_v14 }
 0xad7   : > { %4438 = vadd.xlane.f32.xlu1 %v4437_v61  ;;  %4435 = vadd.xlane.f32.xlu0 %v4434_v62  ;;  %v10997_v61 = vld [vmem:[#allocation44_spill] sm:$0xff] }
 0xad8   : > { %v1591_v62 = vadd.f32 %v5059_v23, %v10997_v61 }
 0xadb   : > { %4441 = vadd.xlane.f32.xlu0 %v4440_v50  ;;  %v1594_v50 = vadd.f32 %v5059_v23, %v10998_v27 }
 0xae8   : > { %4703 = vrot.lane.b32.xlu1 %v1579_v36, %s5907_s17  ;;  %v1593_v36 = vadd.f32 %v5059_v23, %v10999_v37 }
 0xaec   : > { %4707 = vrot.lane.b32.xlu1 %v1581_v47, %s5907_s17 }
 0xaf0   : > { %4709 = vrot.lane.b32.xlu1 %v1582_v7, %s5907_s17 }
 0xaf1   : > { %4705 = vrot.lane.b32.xlu0 %v1580_v10, %s5907_s17 }
 0xaf4   : > { %4713 = vrot.lane.b32.xlu1 %v1584_v25, %s5907_s17 }
 0xaf5   : > { %4711 = vrot.lane.b32.xlu0 %v1583_v44, %s5907_s17 }
 0xaf8   : > { %4717 = vrot.lane.b32.xlu1 %v1586_v20, %s5907_s17 }
 0xaf9   : > { %4715 = vrot.lane.b32.xlu0 %v1585_v60, %s5907_s17 }
 0xafb   : > { %v10039_v47 = vpop.xlane.xlu0 %4408 }
 0xafc   : > { %4721 = vrot.lane.b32.xlu1 %v1588_v35, %s5907_s17 }
 0xafd   : > { %4719 = vrot.lane.b32.xlu0 %v1587_v58, %s5907_s17 }
 0xaff   : > { %v10037_v24 = vpop.xlane.xlu1 %4405 }
 0xb00   : > { %4725 = vrot.lane.b32.xlu1 %v1590_v13, %s5907_s17 }
 0xb01   : > { %4723 = vrot.lane.b32.xlu0 %v1589_v29, %s5907_s17 }
 0xb04   : > { %4729 = vrot.lane.b32.xlu1 %v1592_v2, %s5907_s17 }
 0xb05   : > { %4727 = vrot.lane.b32.xlu0 %v1591_v62, %s5907_s17 }
 0xb08   : > { %4733 = vrot.lane.b32.xlu1 %v1594_v50, %s5907_s17 }
 0xb09   : > { %4731 = vrot.lane.b32.xlu0 %v1593_v36, %s5907_s17 }
 0xb33   : > { %v4644_v4 = vpop.xlane.xlu1 %4643 }
 0xb34   : > { %v4641_v7 = vpop.xlane.xlu0 %4640 }
 0xb38   : > { %v4647_v6 = vpop.xlane.xlu0 %4646  ;;  %v4650_v10 = vpop.xlane.xlu1 %4649 }
 0xb3c   : > { %v4653_v18 = vpop.xlane.xlu0 %4652  ;;  %v10041_v25 = vpop.xlane.xlu1 %4655 }
 0xb40   : > { %v10043_v16 = vpop.xlane.xlu0 %4658  ;;  %v10045_v44 = vpop.xlane.xlu1 %4661 }
 0xb44   : > { %v10047_v23 = vpop.xlane.xlu0 %4664  ;;  %v10049_v32 = vpop.xlane.xlu1 %4667 }
 0xb48   : > { %v10051_v20 = vpop.xlane.xlu0 %4670  ;;  %v10053_v22 = vpop.xlane.xlu1 %4673 }
 0xb4c   : > { %v10055_v60 = vpop.xlane.xlu0 %4676  ;;  %v10057_v30 = vpop.xlane.xlu1 %4679 }
 0xb4d   : > { %11000 = vst [vmem:[#allocation67_spill] sm:$0xff] %v10057_v30 }
 0xb50   : > { %v10059_v35 = vpop.xlane.xlu0 %4682  ;;  %v10061_v11 = vpop.xlane.xlu1 %4685 }
 0xb51   : > { %11001 = vst [vmem:[#allocation68_spill] sm:$0xff] %v10059_v35  ;;  %11002 = vst [vmem:[#allocation111_spill] sm:$0xff] %v10061_v11  ;;  %v11010_v11 = vld [vmem:[#allocation73_spill] sm:$0xff]  ;;  %v11011_v35 = vld [vmem:[#allocation115_spill] sm:$0xff] }
 0xb54   : > { %v10063_v58 = vpop.xlane.xlu0 %4411  ;;  %v10065_v14 = vpop.xlane.xlu1 %4414 }
 0xb58   : > { %v10067_v13 = vpop.xlane.xlu0 %4417  ;;  %v10069_v28 = vpop.xlane.xlu1 %4420 }
 0xb5c   : > { %v10071_v29 = vpop.xlane.xlu0 %4423  ;;  %v10073_v54 = vpop.xlane.xlu1 %4426 }
 0xb5d   : > { %11003 = vst [vmem:[#allocation75_spill] sm:$0xff] %v10071_v29  ;;  %11004 = vst [vmem:[#allocation102_spill] sm:$0xff] %v10073_v54  ;;  %v11013_v29 = vld [vmem:[#allocation132_spill] sm:$0xff] }
 0xb60   : > { %v10075_v2 = vpop.xlane.xlu0 %4429  ;;  %v10077_v61 = vpop.xlane.xlu1 %4432 }
 0xb61   : > { %11005 = vst [vmem:[#allocation112_spill] sm:$0xff] %v10075_v2  ;;  %11006 = vst [vmem:[#allocation103_spill] sm:$0xff] %v10077_v61  ;;  %v11012_v61 = vld [vmem:[#allocation50_spill] sm:$0xff] }
 0xb64   : > { %v10079_v62 = vpop.xlane.xlu0 %4435  ;;  %v10081_v27 = vpop.xlane.xlu1 %4438 }
 0xb65   : > { %11007 = vst [vmem:[#allocation69_spill] sm:$0xff] %v10079_v62  ;;  %11008 = vst [vmem:[#allocation109_spill] sm:$0xff] %v10081_v27 }
 0xb68   : > { %v10083_v50 = vpop.xlane.xlu0 %4441  ;;  %v4704_v37 = vpop.permute.xlu1 %4703 }
 0xb69   : > { %11009 = vst [vmem:[#allocation110_spill] sm:$0xff] %v10083_v50  ;;  %v4751_v36 = vsel %vm4443_vm4, %v4641_v7, %v4704_v37 }
 0xb6a   : > { %v4767_v30 = vsel %vm4460_vm5, %v4751_v36, %v11010_v11  ;;  %v11014_v36 = vld [vmem:[#allocation78_spill] sm:$0xff] }
 0xb6b   : > { %v4783_v2 = vsel %vm4477_vm6, %v4767_v30, %v11011_v35  ;;  %v11015_v35 = vld [vmem:[#allocation76_spill] sm:$0xff] }
 0xb6c   : > { %v4799_v62 = vsel %vm4638_vm7, %v4783_v2, %v11012_v61  ;;  %v4706_v1 = vpop.permute.xlu0 %4705  ;;  %v4708_v27 = vpop.permute.xlu1 %4707 }
 0xb6d   : > { %v4816_v50 = vsel %vm4815_vm8, %v4799_v62, %v9880_v3  ;;  %v4752_v7 = vsel %vm4443_vm4, %v4644_v4, %v4706_v1  ;;  %v4753_v37 = vsel %vm4443_vm4, %v4647_v6, %v4708_v27  ;;  %v11016_v3 = vld [vmem:[#allocation21_spill] sm:$0xff] }
 0xb6e   : > { %v4833_v11 = vsel %vm4832_vm9, %v4816_v50, %v11013_v29  ;;  %v4768_v30 = vsel %vm4460_vm5, %v4752_v7, %v11014_v36  ;;  %v4769_v54 = vsel %vm4460_vm5, %v4753_v37, %v11015_v35  ;;  %v11017_v4 = vld [vmem:[#allocation113_spill] sm:$0xff]  ;;  %v11021_v35 = vld [vmem:[#allocation80_spill] sm:$0xff] }
 0xb6f   : > { %v4850_v1 = vsel %vm4849_vm10, %v4833_v11, %v11016_v3  ;;  %v4784_v6 = vsel %vm4477_vm6, %v4768_v30, %v11017_v4  ;;  %v11018_v29 = vld [vmem:[#allocation117_spill] sm:$0xff]  ;;  %v11020_v30 = vld [vmem:[#allocation118_spill] sm:$0xff] }
 0xb70   : > { %v4785_v2 = vsel %vm4477_vm6, %v4769_v54, %v11018_v29  ;;  %v4866_v61 = vsel %vm534_vm0, %v4850_v1, %v9519_v12  ;;  %v4800_v62 = vsel %vm4638_vm7, %v4784_v6, %v9389_v15  ;;  %v4712_v50 = vpop.permute.xlu0 %4711  ;;  %v4710_v7 = vpop.permute.xlu1 %4709  ;;  %v11019_v12 = vld [vmem:[#allocation135_spill] sm:$0xff]  ;;  %v11023_v1 = vld [vmem:[#allocation32_spill] sm:$0xff]  ;;  %v11024_v4 = vld [vmem:[#allocation126_spill] sm:$0xff] }
 0xb71   : > { %v4801_v27 = vsel %vm4638_vm7, %v4785_v2, %v9460_v0  ;;  %v4883_v37 = vsel %vm4882_vm11, %v4866_v61, %v9910_v43  ;;  %v4817_v11 = vsel %vm4815_vm8, %v4800_v62, %v9882_v52  ;;  %v4755_v36 = vsel %vm4443_vm4, %v4653_v18, %v4712_v50  ;;  %v11022_v52 = vld [vmem:[#allocation153_spill] sm:$0xff] }
 0xb72   : > { %v4818_v54 = vsel %vm4815_vm8, %v4801_v27, %v9884_v33  ;;  %4900 = vst.msk [vmem:[%s10106_s19] sm:$0xff] %vm4899_vm12, %v4883_v37  ;;  %v4834_v15 = vsel %vm4832_vm9, %v4817_v11, %v11019_v12  ;;  %v4771_v3 = vsel %vm4460_vm5, %v4755_v36, %v11021_v35  ;;  %v4754_v43 = vsel %vm4443_vm4, %v4650_v10, %v4710_v7  ;;  %v11025_v29 = vld [vmem:[#allocation81_spill] sm:$0xff]  ;;  %v11026_v27 = vld [vmem:[#allocation120_spill] sm:$0xff] }
 0xb73   : > { %v4835_v0 = vsel %vm4832_vm9, %v4818_v54, %v11020_v30  ;;  %v4851_v33 = vsel %vm4849_vm10, %v4834_v15, %v11022_v52  ;;  %v4787_v6 = vsel %vm4477_vm6, %v4771_v3, %v11024_v4  ;;  %v4770_v2 = vsel %vm4460_vm5, %v4754_v43, %v11025_v29  ;;  %v11029_v15 = vld [vmem:[#allocation137_spill] sm:$0xff]  ;;  %v11031_v3 = vld [vmem:[#allocation83_spill] sm:$0xff] }
 0xb74   : > { %v4852_v18 = vsel %vm4849_vm10, %v4835_v0, %v11023_v1  ;;  %v4867_v61 = vsel %vm534_vm0, %v4851_v33, %v9521_v63  ;;  %v4803_v10 = vsel %vm4638_vm7, %v4787_v6, %v9469_v17  ;;  %v4786_v50 = vsel %vm4477_vm6, %v4770_v2, %v11026_v27  ;;  %v4716_v7 = vpop.permute.xlu0 %4715  ;;  %v4714_v37 = vpop.permute.xlu1 %4713  ;;  %v11027_v17 = vld [vmem:[#allocation125_spill] sm:$0xff]  ;;  %v11030_v0 = vld [vmem:[#allocation82_spill] sm:$0xff]  ;;  %v11034_v1 = vld [vmem:[#allocation127_spill] sm:$0xff] }
 0xb75   : > { %v4868_v62 = vsel %vm534_vm0, %v4852_v18, %v9523_v31  ;;  %v4884_v11 = vsel %vm4882_vm11, %v4867_v61, %v9952_v42  ;;  %v4820_v63 = vsel %vm4815_vm8, %v4803_v10, %v9886_v38  ;;  %v4802_v31 = vsel %vm4638_vm7, %v4786_v50, %v9467_v8 }
 0xb76   : > { %v4885_v54 = vsel %vm4882_vm11, %v4868_v62, %v9954_v26  ;;  %4901 = vst.msk [vmem:[%s10106_s19 + $0x8] sm:$0xff] %vm4899_vm12, %v4884_v11  ;;  %v4837_v36 = vsel %vm4832_vm9, %v4820_v63, %v11027_v17  ;;  %v4819_v12 = vsel %vm4815_vm8, %v4802_v31, %v9888_v57  ;;  %v4757_v42 = vsel %vm4443_vm4, %v10043_v16, %v4716_v7  ;;  %v11028_v26 = vld [vmem:[#allocation162_spill] sm:$0xff]  ;;  %v11032_v16 = vld [vmem:[#allocation108_spill] sm:$0xff]  ;;  %v11041_v31 = vld [vmem:[#allocation85_spill] sm:$0xff] }
 0xb77   : > { %4902 = vst.msk [vmem:[%s10106_s19 + $0x10] sm:$0xff] %vm4899_vm12, %v4885_v54  ;;  %v4756_v38 = vsel %vm4443_vm4, %v10041_v25, %v4714_v37  ;;  %v4854_v8 = vsel %vm4849_vm10, %v4837_v36, %v11028_v26  ;;  %v4836_v30 = vsel %vm4832_vm9, %v4819_v12, %v11029_v15  ;;  %v4773_v35 = vsel %vm4460_vm5, %v4757_v42, %v11030_v0  ;;  %v11033_v25 = vld [vmem:[#allocation130_spill] sm:$0xff]  ;;  %v11037_v7 = vld [vmem:[#allocation84_spill] sm:$0xff]  ;;  %v11042_v26 = vld [vmem:[#allocation131_spill] sm:$0xff] }
 0xb78   : > { %v4772_v43 = vsel %vm4460_vm5, %v4756_v38, %v11031_v3  ;;  %v4870_v57 = vsel %vm534_vm0, %v4854_v8, %v9527_v34  ;;  %v4853_v52 = vsel %vm4849_vm10, %v4836_v30, %v11032_v16  ;;  %v4789_v33 = vsel %vm4477_vm6, %v4773_v35, %v11033_v25  ;;  %v4720_v4 = vpop.permute.xlu0 %4719  ;;  %v4718_v6 = vpop.permute.xlu1 %4717  ;;  %v11038_v37 = vld [vmem:[#allocation166_spill] sm:$0xff]  ;;  %v11040_v54 = vld [vmem:[#allocation116_spill] sm:$0xff] }
 0xb79   : > { %v4788_v18 = vsel %vm4477_vm6, %v4772_v43, %v11034_v1  ;;  %v4887_v29 = vsel %vm4882_vm11, %v4870_v57, %v10039_v47  ;;  %v4869_v2 = vsel %vm534_vm0, %v4853_v52, %v9525_v19  ;;  %v4805_v34 = vsel %vm4638_vm7, %v4789_v33, %v9477_v48  ;;  %v11035_v48 = vld [vmem:[#allocation141_spill] sm:$0xff]  ;;  %v11045_v3 = vld [vmem:[#allocation144_spill] sm:$0xff] }
 0xb7a   : > { %v4804_v61 = vsel %vm4638_vm7, %v4788_v18, %v9475_v53  ;;  %4904 = vst.msk [vmem:[%s10106_s19 + $0x20] sm:$0xff] %vm4899_vm12, %v4887_v29  ;;  %v4886_v62 = vsel %vm4882_vm11, %v4869_v2, %v10037_v24  ;;  %v4822_v10 = vsel %vm4815_vm8, %v4805_v34, %v9890_v41  ;;  %v4759_v19 = vsel %vm4443_vm4, %v10047_v23, %v4720_v4  ;;  %v11036_v53 = vld [vmem:[#allocation140_spill] sm:$0xff]  ;;  %v11039_v23 = vld [vmem:[#allocation26_spill] sm:$0xff]  ;;  %v11047_v52 = vld [vmem:[#allocation89_spill] sm:$0xff] }
 0xb7b   : > { %v4821_v47 = vsel %vm4815_vm8, %v4804_v61, %v9892_v46  ;;  %4903 = vst.msk [vmem:[%s10106_s19 + $0x18] sm:$0xff] %vm4899_vm12, %v4886_v62  ;;  %v4839_v27 = vsel %vm4832_vm9, %v4822_v10, %v11035_v48  ;;  %v4775_v24 = vsel %vm4460_vm5, %v4759_v19, %v11037_v7  ;;  %v4758_v41 = vsel %vm4443_vm4, %v10045_v44, %v4718_v6  ;;  %v11046_v57 = vld [vmem:[#allocation88_spill] sm:$0xff]  ;;  %v11050_v6 = vld [vmem:[#allocation114_spill] sm:$0xff]  ;;  %v11051_v62 = vld [vmem:[#allocation53_spill] sm:$0xff] }
 0xb7c   : > { %v4838_v50 = vsel %vm4832_vm9, %v4821_v47, %v11036_v53  ;;  %v4856_v46 = vsel %vm4849_vm10, %v4839_v27, %v11038_v37  ;;  %v4791_v63 = vsel %vm4477_vm6, %v4775_v24, %v11040_v54  ;;  %v4774_v17 = vsel %vm4460_vm5, %v4758_v41, %v11041_v31  ;;  %v4724_v36 = vpop.permute.xlu0 %4723  ;;  %v4722_v12 = vpop.permute.xlu1 %4721  ;;  %v11048_v1 = vld [vmem:[#allocation164_spill] sm:$0xff]  ;;  %v11053_v48 = vld [vmem:[#allocation70_spill] sm:$0xff]  ;;  %v11059_v54 = vld [vmem:[#allocation59_spill] sm:$0xff] }
 0xb7d   : > { %v4855_v11 = vsel %vm4849_vm10, %v4838_v50, %v11039_v23  ;;  %v4872_v42 = vsel %vm534_vm0, %v4856_v46, %v9531_v9  ;;  %v4807_v38 = vsel %vm4638_vm7, %v4791_v63, %v9488_v51  ;;  %v4790_v8 = vsel %vm4477_vm6, %v4774_v17, %v11042_v26  ;;  %v11043_v51 = vld [vmem:[#allocation145_spill] sm:$0xff]  ;;  %v11049_v18 = vld [vmem:[#allocation124_spill] sm:$0xff]  ;;  %v11054_v53 = vld [vmem:[#allocation90_spill] sm:$0xff] }
 0xb7e   : > { %v4871_v44 = vsel %vm534_vm0, %v4855_v11, %v9529_v55  ;;  %v4889_v15 = vsel %vm4882_vm11, %v4872_v42, %v10065_v14  ;;  %v4824_v0 = vsel %vm4815_vm8, %v4807_v38, %v9894_v21  ;;  %v4806_v9 = vsel %vm4638_vm7, %v4790_v8, %v9486_v59  ;;  %v11055_v50 = vld [vmem:[#allocation34_spill] sm:$0xff]  ;;  %v11057_v41 = vld [vmem:[#allocation128_spill] sm:$0xff]  ;;  %v11058_v46 = vld [vmem:[#allocation91_spill] sm:$0xff] }
 0xb7f   : > { %v4888_v30 = vsel %vm4882_vm11, %v4871_v44, %v10063_v58  ;;  %4906 = vst.msk [vmem:[%s10106_s19 + $0x30] sm:$0xff] %vm4899_vm12, %v4889_v15  ;;  %v4841_v55 = vsel %vm4832_vm9, %v4824_v0, %v11043_v51  ;;  %v4823_v35 = vsel %vm4815_vm8, %v4806_v9, %v9896_v56  ;;  %v4761_v14 = vsel %vm4443_vm4, %v10051_v20, %v4724_v36  ;;  %v11044_v58 = vld [vmem:[#allocation23_spill] sm:$0xff]  ;;  %v11056_v7 = vld [vmem:[#allocation154_spill] sm:$0xff]  ;;  %v11060_v31 = vld [vmem:[#allocation60_spill] sm:$0xff] }
 0xb80   : > { %4905 = vst.msk [vmem:[%s10106_s19 + $0x28] sm:$0xff] %vm4899_vm12, %v4888_v30  ;;  %v4760_v21 = vsel %vm4443_vm4, %v10049_v32, %v4722_v12  ;;  %v4858_v59 = vsel %vm4849_vm10, %v4841_v55, %v11044_v58  ;;  %v4840_v43 = vsel %vm4832_vm9, %v4823_v35, %v11045_v3  ;;  %v4777_v16 = vsel %vm4460_vm5, %v4761_v14, %v11046_v57  ;;  %v4728_v56 = vpop.permute.xlu0 %4727  ;;  %v4726_v33 = vpop.permute.xlu1 %4725  ;;  %v11061_v17 = vld [vmem:[#allocation55_spill] sm:$0xff]  ;;  %v11062_v12 = vld [vmem:[#allocation122_spill] sm:$0xff]  ;;  %v11065_v15 = vld [vmem:[#allocation101_spill] sm:$0xff] }
 0xb81   : > { %v4776_v25 = vsel %vm4460_vm5, %v4760_v21, %v11047_v52  ;;  %v4874_v20 = vsel %vm534_vm0, %v4858_v59, %v9535_v45  ;;  %v4857_v32 = vsel %vm4849_vm10, %v4840_v43, %v11048_v1  ;;  %v4793_v4 = vsel %vm4477_vm6, %v4777_v16, %v11049_v18  ;;  %v11063_v44 = vld [vmem:[#allocation102_spill] sm:$0xff]  ;;  %v11064_v26 = vld [vmem:[#allocation75_spill] sm:$0xff]  ;;  %v11066_v0 = vld [vmem:[#allocation52_spill] sm:$0xff] }
 0xb82   : > { %v4792_v29 = vsel %vm4477_vm6, %v4776_v25, %v11050_v6  ;;  %v4891_v2 = vsel %vm4882_vm11, %v4874_v20, %v10069_v28  ;;  %v4873_v34 = vsel %vm534_vm0, %v4857_v32, %v9533_v5  ;;  %v4809_v61 = vsel %vm4638_vm7, %v4793_v4, %v9500_v39  ;;  %v11052_v39 = vld [vmem:[#allocation121_spill] sm:$0xff]  ;;  %v11067_v51 = vld [vmem:[#allocation150_spill] sm:$0xff]  ;;  %v11068_v35 = vld [vmem:[#allocation95_spill] sm:$0xff] }
 0xb83   : > { %v4808_v45 = vsel %vm4638_vm7, %v4792_v29, %v11051_v62  ;;  %4908 = vst.msk [vmem:[%s10106_s19 + $0x40] sm:$0xff] %vm4899_vm12, %v4891_v2  ;;  %v4890_v10 = vsel %vm4882_vm11, %v4873_v34, %v10067_v13  ;;  %v4826_v47 = vsel %vm4815_vm8, %v4809_v61, %v9898_v49  ;;  %v4763_v5 = vsel %vm4443_vm4, %v10055_v60, %v4728_v56  ;;  %v11069_v21 = vld [vmem:[#allocation68_spill] sm:$0xff]  ;;  %v11070_v59 = vld [vmem:[#allocation67_spill] sm:$0xff]  ;;  %v11072_v16 = vld [vmem:[#allocation149_spill] sm:$0xff] }
 0xb84   : > { %v4825_v28 = vsel %vm4815_vm8, %v4808_v45, %v9900_v40  ;;  %4907 = vst.msk [vmem:[%s10106_s19 + $0x38] sm:$0xff] %vm4899_vm12, %v4890_v10  ;;  %v4843_v19 = vsel %vm4832_vm9, %v4826_v47, %v11052_v39  ;;  %v4779_v13 = vsel %vm4460_vm5, %v4763_v5, %v11054_v53  ;;  %v4762_v49 = vsel %vm4443_vm4, %v10053_v22, %v4726_v33  ;;  %v4730_v40 = vpop.permute.xlu1 %4729  ;;  %v4732_v11 = vpop.permute.xlu0 %4731  ;;  %v11071_v43 = vld [vmem:[#allocation163_spill] sm:$0xff]  ;;  %v11073_v25 = vld [vmem:[#allocation92_spill] sm:$0xff]  ;;  %v11074_v33 = vld [vmem:[#allocation93_spill] sm:$0xff] }
 0xb85   : > { %v4842_v27 = vsel %vm4832_vm9, %v4825_v28, %v11053_v48  ;;  %v4860_v60 = vsel %vm4849_vm10, %v4843_v19, %v11055_v50  ;;  %v4795_v37 = vsel %vm4477_vm6, %v4779_v13, %v11057_v41  ;;  %v4778_v23 = vsel %vm4460_vm5, %v4762_v49, %v11058_v46  ;;  %v11075_v32 = vld [vmem:[#allocation65_spill] sm:$0xff]  ;;  %v11076_v4 = vld [vmem:[#allocation107_spill] sm:$0xff]  ;;  %v11077_v29 = vld [vmem:[#allocation98_spill] sm:$0xff] }
 0xb86   : > { %v4859_v24 = vsel %vm4849_vm10, %v4842_v27, %v11056_v7  ;;  %v4876_v63 = vsel %vm534_vm0, %v4860_v60, %v11059_v54  ;;  %v4811_v36 = vsel %vm4638_vm7, %v4795_v37, %v11061_v17  ;;  %v4794_v42 = vsel %vm4477_vm6, %v4778_v23, %v11062_v12  ;;  %v11078_v34 = vld [vmem:[#allocation129_spill] sm:$0xff]  ;;  %v11079_v62 = vld [vmem:[#allocation103_spill] sm:$0xff]  ;;  %v11081_v28 = vld [vmem:[#allocation54_spill] sm:$0xff] }
 0xb87   : > { %v4875_v22 = vsel %vm534_vm0, %v4859_v24, %v11060_v31  ;;  %v4893_v38 = vsel %vm4882_vm11, %v4876_v63, %v11063_v44  ;;  %v4828_v30 = vsel %vm4815_vm8, %v4811_v36, %v11065_v15  ;;  %v4810_v9 = vsel %vm4638_vm7, %v4794_v42, %v11066_v0  ;;  %v11080_v10 = vld [vmem:[#allocation63_spill] sm:$0xff]  ;;  %v11082_v39 = vld [vmem:[#allocation57_spill] sm:$0xff]  ;;  %v11083_v48 = vld [vmem:[#allocation112_spill] sm:$0xff] }
 0xb88   : > { %v4892_v8 = vsel %vm4882_vm11, %v4875_v22, %v11064_v26  ;;  %4910 = vst.msk [vmem:[%s10106_s19 + $0x50] sm:$0xff] %vm4899_vm12, %v4893_v38  ;;  %v4845_v55 = vsel %vm4832_vm9, %v4828_v30, %v11067_v51  ;;  %v4827_v14 = vsel %vm4815_vm8, %v4810_v9, %v11068_v35  ;;  %v4765_v58 = vsel %vm4443_vm4, %v11069_v21, %v4732_v11  ;;  %v4734_v1 = vpop.permute.xlu1 %4733  ;;  %v11084_v53 = vld [vmem:[#allocation105_spill] sm:$0xff]  ;;  %v11085_v49 = vld [vmem:[#allocation28_spill] sm:$0xff]  ;;  %v11086_v50 = vld [vmem:[#allocation111_spill] sm:$0xff] }
 0xb89   : > { %4909 = vst.msk [vmem:[%s10106_s19 + $0x48] sm:$0xff] %vm4899_vm12, %v4892_v8  ;;  %v4764_v3 = vsel %vm4443_vm4, %v11070_v59, %v4730_v40  ;;  %v4862_v57 = vsel %vm4849_vm10, %v4845_v55, %v11071_v43  ;;  %v4844_v52 = vsel %vm4832_vm9, %v4827_v14, %v11072_v16  ;;  %v4781_v56 = vsel %vm4460_vm5, %v4765_v58, %v11073_v25  ;;  %v11087_v7 = vld [vmem:[#allocation155_spill] sm:$0xff]  ;;  %v11088_v41 = vld [vmem:[#allocation156_spill] sm:$0xff]  ;;  %v11089_v46 = vld [vmem:[#allocation94_spill] sm:$0xff] }
 0xb8a   : > { %v4780_v20 = vsel %vm4460_vm5, %v4764_v3, %v11074_v33  ;;  %v4878_v18 = vsel %vm534_vm0, %v4862_v57, %v11075_v32  ;;  %v4861_v6 = vsel %vm4849_vm10, %v4844_v52, %v11076_v4  ;;  %v4797_v2 = vsel %vm4477_vm6, %v4781_v56, %v11077_v29  ;;  %v11090_v11 = vld [vmem:[#allocation51_spill] sm:$0xff]  ;;  %v11092_v22 = vld [vmem:[#allocation97_spill] sm:$0xff]  ;;  %v11093_v36 = vld [vmem:[#allocation96_spill] sm:$0xff] }
 0xb8b   : > { %v4796_v61 = vsel %vm4477_vm6, %v4780_v20, %v11078_v34  ;;  %v4895_v45 = vsel %vm4882_vm11, %v4878_v18, %v11079_v62  ;;  %v4877_v47 = vsel %vm534_vm0, %v4861_v6, %v11080_v10  ;;  %v4813_v5 = vsel %vm4638_vm7, %v4797_v2, %v11081_v28  ;;  %v11091_v63 = vld [vmem:[#allocation27_spill] sm:$0xff]  ;;  %v11094_v42 = vld [vmem:[#allocation66_spill] sm:$0xff]  ;;  %v11095_v38 = vld [vmem:[#allocation56_spill] sm:$0xff] }
 0xb8c   : > { %v4812_v19 = vsel %vm4638_vm7, %v4796_v61, %v11082_v39  ;;  %4912 = vst.msk [vmem:[%s10106_s19 + $0x60] sm:$0xff] %vm4899_vm12, %v4895_v45  ;;  %v4894_v27 = vsel %vm4882_vm11, %v4877_v47, %v11083_v48  ;;  %v4830_v13 = vsel %vm4815_vm8, %v4813_v5, %v11084_v53  ;;  %v4766_v60 = vsel %vm4443_vm4, %v11086_v50, %v4734_v1  ;;  %v11096_v8 = vld [vmem:[#allocation109_spill] sm:$0xff]  ;;  %v11098_v9 = vld [vmem:[#allocation19_spill] sm:$0xff]  ;;  %v11099_v55 = vld [vmem:[#allocation74_spill] sm:$0xff] }
 0xb8d   : > { %v4829_v40 = vsel %vm4815_vm8, %v4812_v19, %v11085_v49  ;;  %4911 = vst.msk [vmem:[%s10106_s19 + $0x58] sm:$0xff] %vm4899_vm12, %v4894_v27  ;;  %v4847_v24 = vsel %vm4832_vm9, %v4830_v13, %v11087_v7  ;;  %v4782_v23 = vsel %vm4460_vm5, %v4766_v60, %v11089_v46  ;;  %v11097_v30 = vld [vmem:[#allocation69_spill] sm:$0xff]  ;;  %v11101_v58 = vld [vmem:[#allocation104_spill] sm:$0xff]  ;;  %v11102_v3 = vld [vmem:[#allocation110_spill] sm:$0xff] }
 0xb8e   : > { %v4846_v37 = vsel %vm4832_vm9, %v4829_v40, %v11088_v41  ;;  %v4864_v54 = vsel %vm4849_vm10, %v4847_v24, %v11090_v11  ;;  %v4798_v17 = vsel %vm4477_vm6, %v4782_v23, %v11092_v22  ;;  %v11100_v14 = vld [vmem:[#allocation165_spill] sm:$0xff] }
 0xb8f   : > { %v4863_v31 = vsel %vm4849_vm10, %v4846_v37, %v11091_v63  ;;  %v4880_v12 = vsel %vm534_vm0, %v4864_v54, %v11093_v36  ;;  %v4814_v26 = vsel %vm4638_vm7, %v4798_v17, %v11095_v38 }
 0xb90   : > { %v4879_v44 = vsel %vm534_vm0, %v4863_v31, %v11094_v42  ;;  %v4897_v15 = vsel %vm4882_vm11, %v4880_v12, %v11096_v8  ;;  %v4831_v51 = vsel %vm4815_vm8, %v4814_v26, %v11098_v9 }
 0xb91   : > { %v4896_v0 = vsel %vm4882_vm11, %v4879_v44, %v11097_v30  ;;  %4914 = vst.msk [vmem:[%s10106_s19 + $0x70] sm:$0xff] %vm4899_vm12, %v4897_v15  ;;  %v4848_v35 = vsel %vm4832_vm9, %v4831_v51, %v11099_v55 }
 0xb92   : > { %4913 = vst.msk [vmem:[%s10106_s19 + $0x68] sm:$0xff] %vm4899_vm12, %v4896_v0  ;;  %v4865_v21 = vsel %vm4849_vm10, %v4848_v35, %v11100_v14 }
 0xb93   : > { %v4881_v59 = vsel %vm534_vm0, %v4865_v21, %v11101_v58 }
 0xb94   : > { %v4898_v43 = vsel %vm4882_vm11, %v4881_v59, %v11102_v3 }
 0xb95   : > { %4915 = vst.msk [vmem:[%s10106_s19 + $0x78] sm:$0xff] %vm4899_vm12, %v4898_v43 }
 0xb96 PF: > { %s20_s29 = sadd.s32 1, %s5891_s29  }
 0xb97   : > { %p17_p4 = scmp.ge.s32.totalorder %s20_s29, 4  }
 0xb99   :  { %19 = sbr.rel (!%p17_p4) target bundleno = 3 (0x3), region = 88 }

</bundles_post_ra>
